<compile_context>
chip_gen: v7x
topology: tpu7x:2x2x1
jax: 0.10.0
libtpu: 0.0.40
codegen_flags: <defaults>
</compile_context>

<pallas_src>
import functools

import jax
import jax.numpy as jnp
from jax import lax
from jax.experimental import pallas as pl
from jax.experimental.pallas import tpu as pltpu

# Name compatibility: CompilerParams (current jax) vs TPUCompilerParams (older releases).
_CompilerParams = getattr(pltpu, "CompilerParams", None) or getattr(pltpu, "TPUCompilerParams")


def _cparams(*sem):
    return _CompilerParams(dimension_semantics=tuple(sem))


# ---------------------------------------------------------------------------
# Haar DWT high-band extraction (dwt_init + DWT_Hc norm), fused 9-channel output
# ---------------------------------------------------------------------------
def _dwt_kernel(x1_ref, x2_ref, x3_ref, x4_ref, o_ref):
    c = x1_ref.shape[-1]
    x1 = x1_ref[...] * 0.5
    x2 = x2_ref[...] * 0.5
    x3 = x3_ref[...] * 0.5
    x4 = x4_ref[...] * 0.5
    hl = -x1 - x2 + x3 + x4
    lh = -x1 + x2 - x3 + x4
    hh = x1 - x2 - x3 + x4
    # DWT_Hc norm: Hc * 0.5 + 0.5 ; write HL|LH|HH at channel offsets (single fused output).
    o_ref[:, :, :, 0:c] = (hl * 0.5 + 0.5).astype(o_ref.dtype)
    o_ref[:, :, :, c:2 * c] = (lh * 0.5 + 0.5).astype(o_ref.dtype)
    o_ref[:, :, :, 2 * c:3 * c] = (hh * 0.5 + 0.5).astype(o_ref.dtype)


def dwt_hc(x_nhwc):
    # polyphase strided slices (XLA glue on the smallest tensor in the network)
    x1 = x_nhwc[:, 0::2, 0::2, :]
    x2 = x_nhwc[:, 1::2, 0::2, :]
    x3 = x_nhwc[:, 0::2, 1::2, :]
    x4 = x_nhwc[:, 1::2, 1::2, :]
    n, hd, wd, c = x1.shape
    in_spec = pl.BlockSpec((1, hd, wd, c), lambda b: (b, 0, 0, 0))
    out_spec = pl.BlockSpec((1, hd, wd, 3 * c), lambda b: (b, 0, 0, 0))
    return pl.pallas_call(
        _dwt_kernel,
        grid=(n,),
        in_specs=[in_spec] * 4,
        out_specs=out_spec,
        out_shape=jax.ShapeDtypeStruct((n, hd, wd, 3 * c), jnp.bfloat16),
        compiler_params=_cparams("parallel"),
    )(x1, x2, x3, x4)


# ---------------------------------------------------------------------------
# Conv2d (k=4, stride 1, pad 2) as an implicit GEMM: grid (cout_tile, batch, out_row),
# 16 unrolled bf16 MXU dots per output row, f32 accumulation, fused bias + activation.
# ---------------------------------------------------------------------------
def _conv_rows_kernel(*refs, kk, wo, act):
    xrows = refs[:kk]                 # kk refs, each block [1, 1, Wp, Cin] (rows h+0..h+kk-1)
    w_ref = refs[kk]                  # [kk, kk, Cin, 128] bf16
    b_ref = refs[kk + 1]              # [1, 128] f32
    o_ref = refs[kk + 2]              # [1, 1, Wo, 128]
    acc = jnp.zeros((wo, o_ref.shape[-1]), jnp.float32)
    for kh in range(kk):
        for kw in range(kk):
            xs = xrows[kh][0, 0, pl.ds(kw, wo), :]                       # [Wo, Cin] bf16
            acc = acc + jnp.dot(xs, w_ref[kh, kw],
                                preferred_element_type=jnp.float32)      # MXU, f32 acc
    acc = acc + b_ref[...]
    if act == "leaky":
        acc = jnp.where(acc >= 0, acc, 0.2 * acc)                        # LeakyReLU(0.2)
    elif act == "sigmoid":
        acc = 1.0 / (1.0 + jnp.exp(-acc))                                # torch.sigmoid
    o_ref[0, 0, :, :] = acc.astype(o_ref.dtype)


def conv2d_pallas(x_nhwc, w_hwio, b, *, act="none", out_dtype=jnp.bfloat16, pad=2):
    kk = int(w_hwio.shape[0])
    cin_w = int(w_hwio.shape[2])
    cout = int(w_hwio.shape[3])
    cin_x = int(x_nhwc.shape[-1])
    cout_p = max(128, ((cout + 127) // 128) * 128)    # lane-dense output channels
    ct = cout_p // 128

    # zero-pad weight to (kk, kk, cin_x, cout_p) and bias to (1, cout_p):
    #  - extra cin rows meet exactly-zero padded activation channels -> contribute 0
    #  - extra cout columns produce exactly-zero (leaky) / discarded (sigmoid) channels
    w_p = jnp.pad(w_hwio.astype(jnp.bfloat16),
                  ((0, 0), (0, 0), (0, cin_x - cin_w), (0, cout_p - cout)))
    b_p = jnp.pad(b.astype(jnp.float32), (0, cout_p - cout)).reshape(1, cout_p)

    # TODO(synk): fold the spatial zero-pad into the kernel (masked edge rows) to drop this
    # extra HBM pass per layer.
    xp = jnp.pad(x_nhwc.astype(jnp.bfloat16), ((0, 0), (pad, pad), (pad, pad), (0, 0)))
    n, hp, wp, cin = xp.shape
    ho, wo = hp - kk + 1, wp - kk + 1

    # Four views of the same padded activation: row block h+kh for tap row kh.
    x_specs = [
        pl.BlockSpec((1, 1, wp, cin), (lambda j, bi, h, kh=kh: (bi, h + kh, 0, 0)))
        for kh in range(kk)
    ]
    # Full weight tap block per cout tile: constant across the inner (batch,row) sweep,
    # so it stays resident in VMEM and is only re-fetched when j changes.
    w_spec = pl.BlockSpec((kk, kk, cin, 128), lambda j, bi, h: (0, 0, 0, j))
    b_spec = pl.BlockSpec((1, 128), lambda j, bi, h: (0, j))
    o_spec = pl.BlockSpec((1, 1, wo, 128), lambda j, bi, h: (bi, h, 0, j))

    return pl.pallas_call(
        functools.partial(_conv_rows_kernel, kk=kk, wo=wo, act=act),
        grid=(ct, n, ho),
        in_specs=x_specs + [w_spec, b_spec],
        out_specs=o_spec,
        out_shape=jax.ShapeDtypeStruct((n, ho, wo, cout_p), out_dtype),
        compiler_params=_cparams("parallel", "parallel", "parallel"),
    )(*([xp] * kk), w_p, b_p)


# ---------------------------------------------------------------------------
# InstanceNorm2d (affine=False, eps=1e-5, biased var) + LeakyReLU(0.2)
# tiled over (batch, 128-channel) blocks; full H*W reduction stays in-block.
# ---------------------------------------------------------------------------
def _inorm_lrelu_kernel(x_ref, o_ref):
    x = x_ref[...].astype(jnp.float32)                # [1, H*W, 128]
    mean = jnp.mean(x, axis=1, keepdims=True)
    cen = x - mean
    var = jnp.mean(cen * cen, axis=1, keepdims=True)
    y = cen * lax.rsqrt(var + 1e-5)
    y = jnp.where(y >= 0, y, 0.2 * y)
    o_ref[...] = y.astype(o_ref.dtype)


def instance_norm_lrelu(x_nhwc):
    n, h, w, c = x_nhwc.shape
    x3 = x_nhwc.reshape(n, h * w, c)                  # free contiguous reshape
    spec = pl.BlockSpec((1, h * w, 128), lambda bi, j: (bi, 0, j))
    out = pl.pallas_call(
        _inorm_lrelu_kernel,
        grid=(n, c // 128),
        in_specs=[spec],
        out_specs=spec,
        out_shape=jax.ShapeDtypeStruct((n, h * w, c), x_nhwc.dtype),
        compiler_params=_cparams("parallel", "parallel"),
    )(x3)
    return out.reshape(n, h, w, c)


# ---------------------------------------------------------------------------
# Parameters (deterministic, synthetic) and full forward.
# NLayerDiscriminator_stride1(input_nc=9, ndf=64, n_layers=2, kw=4, padw=2):
#   Conv(9->64,k4,p2)+LReLU | Conv(64->128)+IN+LReLU | Conv(128->256)+IN+LReLU | Conv(256->1)
# ---------------------------------------------------------------------------
def init_params(key):
    dims = [(4, 4, 9, 64), (4, 4, 64, 128), (4, 4, 128, 256), (4, 4, 256, 1)]
    params = []
    for shp in dims:
        key, kw_, kb_ = jax.random.split(key, 3)
        w = jax.random.normal(kw_, shp, jnp.float32) * 0.05
        b = jax.random.normal(kb_, (shp[-1],), jnp.float32) * 0.05
        params.append((w, b))
    return params


def discriminator_wavelet_forward(x_nchw, params):
    # y=None path of Discriminator_wavelet.forward; wgan=False -> sigmoid at the end.
    x = jnp.transpose(x_nchw, (0, 2, 3, 1)).astype(jnp.float32)     # NCHW -> NHWC
    hc = dwt_hc(x)                                                  # [N, H/2, W/2, 9] bf16
    (w1, b1), (w2, b2), (w3, b3), (w4, b4) = params
    h = conv2d_pallas(hc, w1, b1, act="leaky")                      # [N,.,.,128] (64 valid)
    h = conv2d_pallas(h, w2, b2, act="none")                        # [N,.,.,128]
    h = instance_norm_lrelu(h)
    h = conv2d_pallas(h, w3, b3, act="none")                        # [N,.,.,256]
    h = instance_norm_lrelu(h)
    h = conv2d_pallas(h, w4, b4, act="sigmoid", out_dtype=jnp.float32)   # [N,.,.,128] ch0 valid
    out = h[..., :1]                                                # drop padded channels
    return jnp.transpose(out, (0, 3, 1, 2))                         # back to NCHW


if __name__ == "__main__":
    key = jax.random.PRNGKey(0)
    kx, kp = jax.random.split(key)
    # batch=2, channels=3 (RGB -> 9 wavelet channels), spatial=16
    x = jax.random.normal(kx, (2, 3, 16, 16), jnp.float32)
    params = init_params(kp)
    out = jax.jit(discriminator_wavelet_forward)(x, params)
    out = jax.block_until_ready(out)
    # DWT halves spatial (16->8); each k=4,p=2,s=1 conv adds 1 -> 12x12, 1 channel
    assert out.shape == (2, 1, 12, 12), out.shape
    assert bool(jnp.all(jnp.isfinite(out)))
    assert bool(jnp.all((out >= 0.0) & (out <= 1.0)))  # sigmoid output
    print("KERNEL_OK")
</pallas_src>

<mosaic_0001>
module attributes {stable_mosaic.version = 11 : i64} {
  func.func @_dwt_kernel(%arg0: i32, %arg1: memref<1x8x8x3xf32, #tpu.memory_space<vmem>>, %arg2: memref<1x8x8x3xf32, #tpu.memory_space<vmem>>, %arg3: memref<1x8x8x3xf32, #tpu.memory_space<vmem>>, %arg4: memref<1x8x8x3xf32, #tpu.memory_space<vmem>>, %arg5: memref<1x8x8x9xbf16, #tpu.memory_space<vmem>>) attributes {dimension_semantics = [#tpu.dimension_semantics<parallel>], iteration_bounds = array<i64: 2>, scalar_prefetch = 0 : i64, scratch_operands = 0 : i64, tpu.core_type = #tpu.core_type<tc>, window_params = [{transform_indices = @transform_0, window_bounds = array<i64: 1, 8, 8, 3>}, {transform_indices = @transform_1, window_bounds = array<i64: 1, 8, 8, 3>}, {transform_indices = @transform_2, window_bounds = array<i64: 1, 8, 8, 3>}, {transform_indices = @transform_3, window_bounds = array<i64: 1, 8, 8, 3>}, {transform_indices = @transform_4, window_bounds = array<i64: 1, 8, 8, 9>}]} {
    %c0 = arith.constant 0 : index
    %c0_0 = arith.constant 0 : index
    %c0_1 = arith.constant 0 : index
    %c0_2 = arith.constant 0 : index
    %0 = vector.load %arg1[%c0, %c0_0, %c0_1, %c0_2] : memref<1x8x8x3xf32, #tpu.memory_space<vmem>>, vector<1x8x8x3xf32>
    %cst = arith.constant 5.000000e-01 : f32
    %1 = vector.broadcast %cst : f32 to vector<1x8x8x3xf32>
    %2 = arith.mulf %0, %1 : vector<1x8x8x3xf32>
    %c0_3 = arith.constant 0 : index
    %c0_4 = arith.constant 0 : index
    %c0_5 = arith.constant 0 : index
    %c0_6 = arith.constant 0 : index
    %3 = vector.load %arg2[%c0_3, %c0_4, %c0_5, %c0_6] : memref<1x8x8x3xf32, #tpu.memory_space<vmem>>, vector<1x8x8x3xf32>
    %cst_7 = arith.constant 5.000000e-01 : f32
    %4 = vector.broadcast %cst_7 : f32 to vector<1x8x8x3xf32>
    %5 = arith.mulf %3, %4 : vector<1x8x8x3xf32>
    %c0_8 = arith.constant 0 : index
    %c0_9 = arith.constant 0 : index
    %c0_10 = arith.constant 0 : index
    %c0_11 = arith.constant 0 : index
    %6 = vector.load %arg3[%c0_8, %c0_9, %c0_10, %c0_11] : memref<1x8x8x3xf32, #tpu.memory_space<vmem>>, vector<1x8x8x3xf32>
    %cst_12 = arith.constant 5.000000e-01 : f32
    %7 = vector.broadcast %cst_12 : f32 to vector<1x8x8x3xf32>
    %8 = arith.mulf %6, %7 : vector<1x8x8x3xf32>
    %c0_13 = arith.constant 0 : index
    %c0_14 = arith.constant 0 : index
    %c0_15 = arith.constant 0 : index
    %c0_16 = arith.constant 0 : index
    %9 = vector.load %arg4[%c0_13, %c0_14, %c0_15, %c0_16] : memref<1x8x8x3xf32, #tpu.memory_space<vmem>>, vector<1x8x8x3xf32>
    %cst_17 = arith.constant 5.000000e-01 : f32
    %10 = vector.broadcast %cst_17 : f32 to vector<1x8x8x3xf32>
    %11 = arith.mulf %9, %10 : vector<1x8x8x3xf32>
    %cst_18 = arith.constant 0.000000e+00 : f32
    %12 = vector.broadcast %cst_18 : f32 to vector<1x8x8x3xf32>
    %13 = arith.subf %12, %2 : vector<1x8x8x3xf32>
    %14 = arith.subf %13, %5 : vector<1x8x8x3xf32>
    %15 = arith.addf %14, %8 : vector<1x8x8x3xf32>
    %16 = arith.addf %15, %11 : vector<1x8x8x3xf32>
    %cst_19 = arith.constant 0.000000e+00 : f32
    %17 = vector.broadcast %cst_19 : f32 to vector<1x8x8x3xf32>
    %18 = arith.subf %17, %2 : vector<1x8x8x3xf32>
    %19 = arith.addf %18, %5 : vector<1x8x8x3xf32>
    %20 = arith.subf %19, %8 : vector<1x8x8x3xf32>
    %21 = arith.addf %20, %11 : vector<1x8x8x3xf32>
    %22 = arith.subf %2, %5 : vector<1x8x8x3xf32>
    %23 = arith.subf %22, %8 : vector<1x8x8x3xf32>
    %24 = arith.addf %23, %11 : vector<1x8x8x3xf32>
    %cst_20 = arith.constant 5.000000e-01 : f32
    %25 = vector.broadcast %cst_20 : f32 to vector<1x8x8x3xf32>
    %26 = arith.mulf %16, %25 : vector<1x8x8x3xf32>
    %cst_21 = arith.constant 5.000000e-01 : f32
    %27 = vector.broadcast %cst_21 : f32 to vector<1x8x8x3xf32>
    %28 = arith.addf %26, %27 : vector<1x8x8x3xf32>
    %29 = arith.truncf %28 : vector<1x8x8x3xf32> to vector<1x8x8x3xbf16>
    %c0_22 = arith.constant 0 : index
    %c0_23 = arith.constant 0 : index
    %c0_24 = arith.constant 0 : index
    %c0_25 = arith.constant 0 : index
    %30 = vector.load %arg5[%c0_22, %c0_23, %c0_24, %c0_25] : memref<1x8x8x9xbf16, #tpu.memory_space<vmem>>, vector<1x8x8x3xbf16>
    tpu.vector_store %arg5[%c0_22, %c0_23, %c0_24, %c0_25], %29 {strides = array<i32>} : memref<1x8x8x9xbf16, #tpu.memory_space<vmem>>, vector<1x8x8x3xbf16>,
    %cst_26 = arith.constant 5.000000e-01 : f32
    %31 = vector.broadcast %cst_26 : f32 to vector<1x8x8x3xf32>
    %32 = arith.mulf %21, %31 : vector<1x8x8x3xf32>
    %cst_27 = arith.constant 5.000000e-01 : f32
    %33 = vector.broadcast %cst_27 : f32 to vector<1x8x8x3xf32>
    %34 = arith.addf %32, %33 : vector<1x8x8x3xf32>
    %35 = arith.truncf %34 : vector<1x8x8x3xf32> to vector<1x8x8x3xbf16>
    %c0_28 = arith.constant 0 : index
    %c0_29 = arith.constant 0 : index
    %c0_30 = arith.constant 0 : index
    %c3 = arith.constant 3 : index
    %36 = vector.load %arg5[%c0_28, %c0_29, %c0_30, %c3] : memref<1x8x8x9xbf16, #tpu.memory_space<vmem>>, vector<1x8x8x3xbf16>
    tpu.vector_store %arg5[%c0_28, %c0_29, %c0_30, %c3], %35 {strides = array<i32>} : memref<1x8x8x9xbf16, #tpu.memory_space<vmem>>, vector<1x8x8x3xbf16>,
    %cst_31 = arith.constant 5.000000e-01 : f32
    %37 = vector.broadcast %cst_31 : f32 to vector<1x8x8x3xf32>
    %38 = arith.mulf %24, %37 : vector<1x8x8x3xf32>
    %cst_32 = arith.constant 5.000000e-01 : f32
    %39 = vector.broadcast %cst_32 : f32 to vector<1x8x8x3xf32>
    %40 = arith.addf %38, %39 : vector<1x8x8x3xf32>
    %41 = arith.truncf %40 : vector<1x8x8x3xf32> to vector<1x8x8x3xbf16>
    %c0_33 = arith.constant 0 : index
    %c0_34 = arith.constant 0 : index
    %c0_35 = arith.constant 0 : index
    %c6 = arith.constant 6 : index
    %42 = vector.load %arg5[%c0_33, %c0_34, %c0_35, %c6] : memref<1x8x8x9xbf16, #tpu.memory_space<vmem>>, vector<1x8x8x3xbf16>
    tpu.vector_store %arg5[%c0_33, %c0_34, %c0_35, %c6], %41 {strides = array<i32>} : memref<1x8x8x9xbf16, #tpu.memory_space<vmem>>, vector<1x8x8x3xbf16>,
    return
  }
  func.func @transform_0(%arg0: i32) -> (i32, i32, i32, i32) {
    %c0_i32 = arith.constant 0 : i32
    %c0_i32_0 = arith.constant 0 : i32
    %c0_i32_1 = arith.constant 0 : i32
    %c0_i32_2 = arith.constant 0 : i32
    return %arg0, %c0_i32, %c0_i32_0, %c0_i32_1 : i32, i32, i32, i32
  }
  func.func @transform_1(%arg0: i32) -> (i32, i32, i32, i32) {
    %c0_i32 = arith.constant 0 : i32
    %c0_i32_0 = arith.constant 0 : i32
    %c0_i32_1 = arith.constant 0 : i32
    %c0_i32_2 = arith.constant 0 : i32
    return %arg0, %c0_i32, %c0_i32_0, %c0_i32_1 : i32, i32, i32, i32
  }
  func.func @transform_2(%arg0: i32) -> (i32, i32, i32, i32) {
    %c0_i32 = arith.constant 0 : i32
    %c0_i32_0 = arith.constant 0 : i32
    %c0_i32_1 = arith.constant 0 : i32
    %c0_i32_2 = arith.constant 0 : i32
    return %arg0, %c0_i32, %c0_i32_0, %c0_i32_1 : i32, i32, i32, i32
  }
  func.func @transform_3(%arg0: i32) -> (i32, i32, i32, i32) {
    %c0_i32 = arith.constant 0 : i32
    %c0_i32_0 = arith.constant 0 : i32
    %c0_i32_1 = arith.constant 0 : i32
    %c0_i32_2 = arith.constant 0 : i32
    return %arg0, %c0_i32, %c0_i32_0, %c0_i32_1 : i32, i32, i32, i32
  }
  func.func @transform_4(%arg0: i32) -> (i32, i32, i32, i32) {
    %c0_i32 = arith.constant 0 : i32
    %c0_i32_0 = arith.constant 0 : i32
    %c0_i32_1 = arith.constant 0 : i32
    %c0_i32_2 = arith.constant 0 : i32
    return %arg0, %c0_i32, %c0_i32_0, %c0_i32_1 : i32, i32, i32, i32
  }
}

module attributes {stable_mosaic.version = 11 : i64} {
  func.func @_conv_rows_kernel(%arg0: i32, %arg1: i32, %arg2: i32, %arg3: memref<1x1x12x9xbf16, #tpu.memory_space<vmem>>, %arg4: memref<1x1x12x9xbf16, #tpu.memory_space<vmem>>, %arg5: memref<1x1x12x9xbf16, #tpu.memory_space<vmem>>, %arg6: memref<1x1x12x9xbf16, #tpu.memory_space<vmem>>, %arg7: memref<4x4x9x128xbf16, #tpu.memory_space<vmem>>, %arg8: memref<1x128xf32, #tpu.memory_space<vmem>>, %arg9: memref<1x1x9x128xbf16, #tpu.memory_space<vmem>>) attributes {dimension_semantics = [#tpu.dimension_semantics<parallel>, #tpu.dimension_semantics<parallel>, #tpu.dimension_semantics<parallel>], iteration_bounds = array<i64: 1, 2, 9>, scalar_prefetch = 0 : i64, scratch_operands = 0 : i64, tpu.core_type = #tpu.core_type<tc>, window_params = [{transform_indices = @transform_0, window_bounds = array<i64: 1, 1, 12, 9>}, {transform_indices = @transform_1, window_bounds = array<i64: 1, 1, 12, 9>}, {transform_indices = @transform_2, window_bounds = array<i64: 1, 1, 12, 9>}, {transform_indices = @transform_3, window_bounds = array<i64: 1, 1, 12, 9>}, {transform_indices = @transform_4, window_bounds = array<i64: 4, 4, 9, 128>}, {transform_indices = @transform_5, window_bounds = array<i64: 1, 128>}, {transform_indices = @transform_6, window_bounds = array<i64: 1, 1, 9, 128>}]} {
    %cst = arith.constant 0.000000e+00 : f32
    %0 = vector.broadcast %cst : f32 to vector<9x128xf32>
    %c0 = arith.constant 0 : index
    %c0_0 = arith.constant 0 : index
    %c0_1 = arith.constant 0 : index
    %c0_2 = arith.constant 0 : index
    %1 = vector.load %arg3[%c0, %c0_0, %c0_1, %c0_2] : memref<1x1x12x9xbf16, #tpu.memory_space<vmem>>, vector<1x1x9x9xbf16>
    %2 = vector.shape_cast %1 : vector<1x1x9x9xbf16> to vector<9x9xbf16>
    %c0_3 = arith.constant 0 : index
    %c0_4 = arith.constant 0 : index
    %c0_5 = arith.constant 0 : index
    %c0_6 = arith.constant 0 : index
    %3 = vector.load %arg7[%c0_3, %c0_4, %c0_5, %c0_6] : memref<4x4x9x128xbf16, #tpu.memory_space<vmem>>, vector<1x1x9x128xbf16>
    %4 = vector.shape_cast %3 : vector<1x1x9x128xbf16> to vector<9x128xbf16>
    %cst_7 = arith.constant dense<0.000000e+00> : vector<9x128xf32>
    %5 = tpu.matmul %2, %4, %cst_7 {dimension_numbers = #tpu.dot_dimension_numbers<[1], [0], [0], [1], [0, 0, 1, 1], [], []>} : vector<9x9xbf16>, vector<9x128xbf16>, vector<9x128xf32> -> vector<9x128xf32>
    %6 = arith.addf %0, %5 : vector<9x128xf32>
    %c0_8 = arith.constant 0 : index
    %c0_9 = arith.constant 0 : index
    %c1 = arith.constant 1 : index
    %c0_10 = arith.constant 0 : index
    %7 = vector.load %arg3[%c0_8, %c0_9, %c1, %c0_10] : memref<1x1x12x9xbf16, #tpu.memory_space<vmem>>, vector<1x1x9x9xbf16>
    %8 = vector.shape_cast %7 : vector<1x1x9x9xbf16> to vector<9x9xbf16>
    %c0_11 = arith.constant 0 : index
    %c1_12 = arith.constant 1 : index
    %c0_13 = arith.constant 0 : index
    %c0_14 = arith.constant 0 : index
    %9 = vector.load %arg7[%c0_11, %c1_12, %c0_13, %c0_14] : memref<4x4x9x128xbf16, #tpu.memory_space<vmem>>, vector<1x1x9x128xbf16>
    %10 = vector.shape_cast %9 : vector<1x1x9x128xbf16> to vector<9x128xbf16>
    %cst_15 = arith.constant dense<0.000000e+00> : vector<9x128xf32>
    %11 = tpu.matmul %8, %10, %cst_15 {dimension_numbers = #tpu.dot_dimension_numbers<[1], [0], [0], [1], [0, 0, 1, 1], [], []>} : vector<9x9xbf16>, vector<9x128xbf16>, vector<9x128xf32> -> vector<9x128xf32>
    %12 = arith.addf %6, %11 : vector<9x128xf32>
    %c0_16 = arith.constant 0 : index
    %c0_17 = arith.constant 0 : index
    %c2 = arith.constant 2 : index
    %c0_18 = arith.constant 0 : index
    %13 = vector.load %arg3[%c0_16, %c0_17, %c2, %c0_18] : memref<1x1x12x9xbf16, #tpu.memory_space<vmem>>, vector<1x1x9x9xbf16>
    %14 = vector.shape_cast %13 : vector<1x1x9x9xbf16> to vector<9x9xbf16>
    %c0_19 = arith.constant 0 : index
    %c2_20 = arith.constant 2 : index
    %c0_21 = arith.constant 0 : index
    %c0_22 = arith.constant 0 : index
    %15 = vector.load %arg7[%c0_19, %c2_20, %c0_21, %c0_22] : memref<4x4x9x128xbf16, #tpu.memory_space<vmem>>, vector<1x1x9x128xbf16>
    %16 = vector.shape_cast %15 : vector<1x1x9x128xbf16> to vector<9x128xbf16>
    %cst_23 = arith.constant dense<0.000000e+00> : vector<9x128xf32>
    %17 = tpu.matmul %14, %16, %cst_23 {dimension_numbers = #tpu.dot_dimension_numbers<[1], [0], [0], [1], [0, 0, 1, 1], [], []>} : vector<9x9xbf16>, vector<9x128xbf16>, vector<9x128xf32> -> vector<9x128xf32>
    %18 = arith.addf %12, %17 : vector<9x128xf32>
    %c0_24 = arith.constant 0 : index
    %c0_25 = arith.constant 0 : index
    %c3 = arith.constant 3 : index
    %c0_26 = arith.constant 0 : index
    %19 = vector.load %arg3[%c0_24, %c0_25, %c3, %c0_26] : memref<1x1x12x9xbf16, #tpu.memory_space<vmem>>, vector<1x1x9x9xbf16>
    %20 = vector.shape_cast %19 : vector<1x1x9x9xbf16> to vector<9x9xbf16>
    %c0_27 = arith.constant 0 : index
    %c3_28 = arith.constant 3 : index
    %c0_29 = arith.constant 0 : index
    %c0_30 = arith.constant 0 : index
    %21 = vector.load %arg7[%c0_27, %c3_28, %c0_29, %c0_30] : memref<4x4x9x128xbf16, #tpu.memory_space<vmem>>, vector<1x1x9x128xbf16>
    %22 = vector.shape_cast %21 : vector<1x1x9x128xbf16> to vector<9x128xbf16>
    %cst_31 = arith.constant dense<0.000000e+00> : vector<9x128xf32>
    %23 = tpu.matmul %20, %22, %cst_31 {dimension_numbers = #tpu.dot_dimension_numbers<[1], [0], [0], [1], [0, 0, 1, 1], [], []>} : vector<9x9xbf16>, vector<9x128xbf16>, vector<9x128xf32> -> vector<9x128xf32>
    %24 = arith.addf %18, %23 : vector<9x128xf32>
    %c0_32 = arith.constant 0 : index
    %c0_33 = arith.constant 0 : index
    %c0_34 = arith.constant 0 : index
    %c0_35 = arith.constant 0 : index
    %25 = vector.load %arg4[%c0_32, %c0_33, %c0_34, %c0_35] : memref<1x1x12x9xbf16, #tpu.memory_space<vmem>>, vector<1x1x9x9xbf16>
    %26 = vector.shape_cast %25 : vector<1x1x9x9xbf16> to vector<9x9xbf16>
    %c1_36 = arith.constant 1 : index
    %c0_37 = arith.constant 0 : index
    %c0_38 = arith.constant 0 : index
    %c0_39 = arith.constant 0 : index
    %27 = vector.load %arg7[%c1_36, %c0_37, %c0_38, %c0_39] : memref<4x4x9x128xbf16, #tpu.memory_space<vmem>>, vector<1x1x9x128xbf16>
    %28 = vector.shape_cast %27 : vector<1x1x9x128xbf16> to vector<9x128xbf16>
    %cst_40 = arith.constant dense<0.000000e+00> : vector<9x128xf32>
    %29 = tpu.matmul %26, %28, %cst_40 {dimension_numbers = #tpu.dot_dimension_numbers<[1], [0], [0], [1], [0, 0, 1, 1], [], []>} : vector<9x9xbf16>, vector<9x128xbf16>, vector<9x128xf32> -> vector<9x128xf32>
    %30 = arith.addf %24, %29 : vector<9x128xf32>
    %c0_41 = arith.constant 0 : index
    %c0_42 = arith.constant 0 : index
    %c1_43 = arith.constant 1 : index
    %c0_44 = arith.constant 0 : index
    %31 = vector.load %arg4[%c0_41, %c0_42, %c1_43, %c0_44] : memref<1x1x12x9xbf16, #tpu.memory_space<vmem>>, vector<1x1x9x9xbf16>
    %32 = vector.shape_cast %31 : vector<1x1x9x9xbf16> to vector<9x9xbf16>
    %c1_45 = arith.constant 1 : index
    %c1_46 = arith.constant 1 : index
    %c0_47 = arith.constant 0 : index
    %c0_48 = arith.constant 0 : index
    %33 = vector.load %arg7[%c1_45, %c1_46, %c0_47, %c0_48] : memref<4x4x9x128xbf16, #tpu.memory_space<vmem>>, vector<1x1x9x128xbf16>
    %34 = vector.shape_cast %33 : vector<1x1x9x128xbf16> to vector<9x128xbf16>
    %cst_49 = arith.constant dense<0.000000e+00> : vector<9x128xf32>
    %35 = tpu.matmul %32, %34, %cst_49 {dimension_numbers = #tpu.dot_dimension_numbers<[1], [0], [0], [1], [0, 0, 1, 1], [], []>} : vector<9x9xbf16>, vector<9x128xbf16>, vector<9x128xf32> -> vector<9x128xf32>
    %36 = arith.addf %30, %35 : vector<9x128xf32>
    %c0_50 = arith.constant 0 : index
    %c0_51 = arith.constant 0 : index
    %c2_52 = arith.constant 2 : index
    %c0_53 = arith.constant 0 : index
    %37 = vector.load %arg4[%c0_50, %c0_51, %c2_52, %c0_53] : memref<1x1x12x9xbf16, #tpu.memory_space<vmem>>, vector<1x1x9x9xbf16>
    %38 = vector.shape_cast %37 : vector<1x1x9x9xbf16> to vector<9x9xbf16>
    %c1_54 = arith.constant 1 : index
    %c2_55 = arith.constant 2 : index
    %c0_56 = arith.constant 0 : index
    %c0_57 = arith.constant 0 : index
    %39 = vector.load %arg7[%c1_54, %c2_55, %c0_56, %c0_57] : memref<4x4x9x128xbf16, #tpu.memory_space<vmem>>, vector<1x1x9x128xbf16>
    %40 = vector.shape_cast %39 : vector<1x1x9x128xbf16> to vector<9x128xbf16>
    %cst_58 = arith.constant dense<0.000000e+00> : vector<9x128xf32>
    %41 = tpu.matmul %38, %40, %cst_58 {dimension_numbers = #tpu.dot_dimension_numbers<[1], [0], [0], [1], [0, 0, 1, 1], [], []>} : vector<9x9xbf16>, vector<9x128xbf16>, vector<9x128xf32> -> vector<9x128xf32>
    %42 = arith.addf %36, %41 : vector<9x128xf32>
    %c0_59 = arith.constant 0 : index
    %c0_60 = arith.constant 0 : index
    %c3_61 = arith.constant 3 : index
    %c0_62 = arith.constant 0 : index
    %43 = vector.load %arg4[%c0_59, %c0_60, %c3_61, %c0_62] : memref<1x1x12x9xbf16, #tpu.memory_space<vmem>>, vector<1x1x9x9xbf16>
    %44 = vector.shape_cast %43 : vector<1x1x9x9xbf16> to vector<9x9xbf16>
    %c1_63 = arith.constant 1 : index
    %c3_64 = arith.constant 3 : index
    %c0_65 = arith.constant 0 : index
    %c0_66 = arith.constant 0 : index
    %45 = vector.load %arg7[%c1_63, %c3_64, %c0_65, %c0_66] : memref<4x4x9x128xbf16, #tpu.memory_space<vmem>>, vector<1x1x9x128xbf16>
    %46 = vector.shape_cast %45 : vector<1x1x9x128xbf16> to vector<9x128xbf16>
    %cst_67 = arith.constant dense<0.000000e+00> : vector<9x128xf32>
    %47 = tpu.matmul %44, %46, %cst_67 {dimension_numbers = #tpu.dot_dimension_numbers<[1], [0], [0], [1], [0, 0, 1, 1], [], []>} : vector<9x9xbf16>, vector<9x128xbf16>, vector<9x128xf32> -> vector<9x128xf32>
    %48 = arith.addf %42, %47 : vector<9x128xf32>
    %c0_68 = arith.constant 0 : index
    %c0_69 = arith.constant 0 : index
    %c0_70 = arith.constant 0 : index
    %c0_71 = arith.constant 0 : index
    %49 = vector.load %arg5[%c0_68, %c0_69, %c0_70, %c0_71] : memref<1x1x12x9xbf16, #tpu.memory_space<vmem>>, vector<1x1x9x9xbf16>
    %50 = vector.shape_cast %49 : vector<1x1x9x9xbf16> to vector<9x9xbf16>
    %c2_72 = arith.constant 2 : index
    %c0_73 = arith.constant 0 : index
    %c0_74 = arith.constant 0 : index
    %c0_75 = arith.constant 0 : index
    %51 = vector.load %arg7[%c2_72, %c0_73, %c0_74, %c0_75] : memref<4x4x9x128xbf16, #tpu.memory_space<vmem>>, vector<1x1x9x128xbf16>
    %52 = vector.shape_cast %51 : vector<1x1x9x128xbf16> to vector<9x128xbf16>
    %cst_76 = arith.constant dense<0.000000e+00> : vector<9x128xf32>
    %53 = tpu.matmul %50, %52, %cst_76 {dimension_numbers = #tpu.dot_dimension_numbers<[1], [0], [0], [1], [0, 0, 1, 1], [], []>} : vector<9x9xbf16>, vector<9x128xbf16>, vector<9x128xf32> -> vector<9x128xf32>
    %54 = arith.addf %48, %53 : vector<9x128xf32>
    %c0_77 = arith.constant 0 : index
    %c0_78 = arith.constant 0 : index
    %c1_79 = arith.constant 1 : index
    %c0_80 = arith.constant 0 : index
    %55 = vector.load %arg5[%c0_77, %c0_78, %c1_79, %c0_80] : memref<1x1x12x9xbf16, #tpu.memory_space<vmem>>, vector<1x1x9x9xbf16>
    %56 = vector.shape_cast %55 : vector<1x1x9x9xbf16> to vector<9x9xbf16>
    %c2_81 = arith.constant 2 : index
    %c1_82 = arith.constant 1 : index
    %c0_83 = arith.constant 0 : index
    %c0_84 = arith.constant 0 : index
    %57 = vector.load %arg7[%c2_81, %c1_82, %c0_83, %c0_84] : memref<4x4x9x128xbf16, #tpu.memory_space<vmem>>, vector<1x1x9x128xbf16>
    %58 = vector.shape_cast %57 : vector<1x1x9x128xbf16> to vector<9x128xbf16>
    %cst_85 = arith.constant dense<0.000000e+00> : vector<9x128xf32>
    %59 = tpu.matmul %56, %58, %cst_85 {dimension_numbers = #tpu.dot_dimension_numbers<[1], [0], [0], [1], [0, 0, 1, 1], [], []>} : vector<9x9xbf16>, vector<9x128xbf16>, vector<9x128xf32> -> vector<9x128xf32>
    %60 = arith.addf %54, %59 : vector<9x128xf32>
    %c0_86 = arith.constant 0 : index
    %c0_87 = arith.constant 0 : index
    %c2_88 = arith.constant 2 : index
    %c0_89 = arith.constant 0 : index
    %61 = vector.load %arg5[%c0_86, %c0_87, %c2_88, %c0_89] : memref<1x1x12x9xbf16, #tpu.memory_space<vmem>>, vector<1x1x9x9xbf16>
    %62 = vector.shape_cast %61 : vector<1x1x9x9xbf16> to vector<9x9xbf16>
    %c2_90 = arith.constant 2 : index
    %c2_91 = arith.constant 2 : index
    %c0_92 = arith.constant 0 : index
    %c0_93 = arith.constant 0 : index
    %63 = vector.load %arg7[%c2_90, %c2_91, %c0_92, %c0_93] : memref<4x4x9x128xbf16, #tpu.memory_space<vmem>>, vector<1x1x9x128xbf16>
    %64 = vector.shape_cast %63 : vector<1x1x9x128xbf16> to vector<9x128xbf16>
    %cst_94 = arith.constant dense<0.000000e+00> : vector<9x128xf32>
    %65 = tpu.matmul %62, %64, %cst_94 {dimension_numbers = #tpu.dot_dimension_numbers<[1], [0], [0], [1], [0, 0, 1, 1], [], []>} : vector<9x9xbf16>, vector<9x128xbf16>, vector<9x128xf32> -> vector<9x128xf32>
    %66 = arith.addf %60, %65 : vector<9x128xf32>
    %c0_95 = arith.constant 0 : index
    %c0_96 = arith.constant 0 : index
    %c3_97 = arith.constant 3 : index
    %c0_98 = arith.constant 0 : index
    %67 = vector.load %arg5[%c0_95, %c0_96, %c3_97, %c0_98] : memref<1x1x12x9xbf16, #tpu.memory_space<vmem>>, vector<1x1x9x9xbf16>
    %68 = vector.shape_cast %67 : vector<1x1x9x9xbf16> to vector<9x9xbf16>
    %c2_99 = arith.constant 2 : index
    %c3_100 = arith.constant 3 : index
    %c0_101 = arith.constant 0 : index
    %c0_102 = arith.constant 0 : index
    %69 = vector.load %arg7[%c2_99, %c3_100, %c0_101, %c0_102] : memref<4x4x9x128xbf16, #tpu.memory_space<vmem>>, vector<1x1x9x128xbf16>
    %70 = vector.shape_cast %69 : vector<1x1x9x128xbf16> to vector<9x128xbf16>
    %cst_103 = arith.constant dense<0.000000e+00> : vector<9x128xf32>
    %71 = tpu.matmul %68, %70, %cst_103 {dimension_numbers = #tpu.dot_dimension_numbers<[1], [0], [0], [1], [0, 0, 1, 1], [], []>} : vector<9x9xbf16>, vector<9x128xbf16>, vector<9x128xf32> -> vector<9x128xf32>
    %72 = arith.addf %66, %71 : vector<9x128xf32>
    %c0_104 = arith.constant 0 : index
    %c0_105 = arith.constant 0 : index
    %c0_106 = arith.constant 0 : index
    %c0_107 = arith.constant 0 : index
    %73 = vector.load %arg6[%c0_104, %c0_105, %c0_106, %c0_107] : memref<1x1x12x9xbf16, #tpu.memory_space<vmem>>, vector<1x1x9x9xbf16>
    %74 = vector.shape_cast %73 : vector<1x1x9x9xbf16> to vector<9x9xbf16>
    %c3_108 = arith.constant 3 : index
    %c0_109 = arith.constant 0 : index
    %c0_110 = arith.constant 0 : index
    %c0_111 = arith.constant 0 : index
    %75 = vector.load %arg7[%c3_108, %c0_109, %c0_110, %c0_111] : memref<4x4x9x128xbf16, #tpu.memory_space<vmem>>, vector<1x1x9x128xbf16>
    %76 = vector.shape_cast %75 : vector<1x1x9x128xbf16> to vector<9x128xbf16>
    %cst_112 = arith.constant dense<0.000000e+00> : vector<9x128xf32>
    %77 = tpu.matmul %74, %76, %cst_112 {dimension_numbers = #tpu.dot_dimension_numbers<[1], [0], [0], [1], [0, 0, 1, 1], [], []>} : vector<9x9xbf16>, vector<9x128xbf16>, vector<9x128xf32> -> vector<9x128xf32>
    %78 = arith.addf %72, %77 : vector<9x128xf32>
    %c0_113 = arith.constant 0 : index
    %c0_114 = arith.constant 0 : index
    %c1_115 = arith.constant 1 : index
    %c0_116 = arith.constant 0 : index
    %79 = vector.load %arg6[%c0_113, %c0_114, %c1_115, %c0_116] : memref<1x1x12x9xbf16, #tpu.memory_space<vmem>>, vector<1x1x9x9xbf16>
    %80 = vector.shape_cast %79 : vector<1x1x9x9xbf16> to vector<9x9xbf16>
    %c3_117 = arith.constant 3 : index
    %c1_118 = arith.constant 1 : index
    %c0_119 = arith.constant 0 : index
    %c0_120 = arith.constant 0 : index
    %81 = vector.load %arg7[%c3_117, %c1_118, %c0_119, %c0_120] : memref<4x4x9x128xbf16, #tpu.memory_space<vmem>>, vector<1x1x9x128xbf16>
    %82 = vector.shape_cast %81 : vector<1x1x9x128xbf16> to vector<9x128xbf16>
    %cst_121 = arith.constant dense<0.000000e+00> : vector<9x128xf32>
    %83 = tpu.matmul %80, %82, %cst_121 {dimension_numbers = #tpu.dot_dimension_numbers<[1], [0], [0], [1], [0, 0, 1, 1], [], []>} : vector<9x9xbf16>, vector<9x128xbf16>, vector<9x128xf32> -> vector<9x128xf32>
    %84 = arith.addf %78, %83 : vector<9x128xf32>
    %c0_122 = arith.constant 0 : index
    %c0_123 = arith.constant 0 : index
    %c2_124 = arith.constant 2 : index
    %c0_125 = arith.constant 0 : index
    %85 = vector.load %arg6[%c0_122, %c0_123, %c2_124, %c0_125] : memref<1x1x12x9xbf16, #tpu.memory_space<vmem>>, vector<1x1x9x9xbf16>
    %86 = vector.shape_cast %85 : vector<1x1x9x9xbf16> to vector<9x9xbf16>
    %c3_126 = arith.constant 3 : index
    %c2_127 = arith.constant 2 : index
    %c0_128 = arith.constant 0 : index
    %c0_129 = arith.constant 0 : index
    %87 = vector.load %arg7[%c3_126, %c2_127, %c0_128, %c0_129] : memref<4x4x9x128xbf16, #tpu.memory_space<vmem>>, vector<1x1x9x128xbf16>
    %88 = vector.shape_cast %87 : vector<1x1x9x128xbf16> to vector<9x128xbf16>
    %cst_130 = arith.constant dense<0.000000e+00> : vector<9x128xf32>
    %89 = tpu.matmul %86, %88, %cst_130 {dimension_numbers = #tpu.dot_dimension_numbers<[1], [0], [0], [1], [0, 0, 1, 1], [], []>} : vector<9x9xbf16>, vector<9x128xbf16>, vector<9x128xf32> -> vector<9x128xf32>
    %90 = arith.addf %84, %89 : vector<9x128xf32>
    %c0_131 = arith.constant 0 : index
    %c0_132 = arith.constant 0 : index
    %c3_133 = arith.constant 3 : index
    %c0_134 = arith.constant 0 : index
    %91 = vector.load %arg6[%c0_131, %c0_132, %c3_133, %c0_134] : memref<1x1x12x9xbf16, #tpu.memory_space<vmem>>, vector<1x1x9x9xbf16>
    %92 = vector.shape_cast %91 : vector<1x1x9x9xbf16> to vector<9x9xbf16>
    %c3_135 = arith.constant 3 : index
    %c3_136 = arith.constant 3 : index
    %c0_137 = arith.constant 0 : index
    %c0_138 = arith.constant 0 : index
    %93 = vector.load %arg7[%c3_135, %c3_136, %c0_137, %c0_138] : memref<4x4x9x128xbf16, #tpu.memory_space<vmem>>, vector<1x1x9x128xbf16>
    %94 = vector.shape_cast %93 : vector<1x1x9x128xbf16> to vector<9x128xbf16>
    %cst_139 = arith.constant dense<0.000000e+00> : vector<9x128xf32>
    %95 = tpu.matmul %92, %94, %cst_139 {dimension_numbers = #tpu.dot_dimension_numbers<[1], [0], [0], [1], [0, 0, 1, 1], [], []>} : vector<9x9xbf16>, vector<9x128xbf16>, vector<9x128xf32> -> vector<9x128xf32>
    %96 = arith.addf %90, %95 : vector<9x128xf32>
    %c0_140 = arith.constant 0 : index
    %c0_141 = arith.constant 0 : index
    %97 = vector.load %arg8[%c0_140, %c0_141] : memref<1x128xf32, #tpu.memory_space<vmem>>, vector<1x128xf32>
    %98 = vector.broadcast %97 : vector<1x128xf32> to vector<9x128xf32>
    %99 = arith.addf %96, %98 : vector<9x128xf32>
    %cst_142 = arith.constant 0.000000e+00 : f32
    %100 = vector.broadcast %cst_142 : f32 to vector<9x128xf32>
    %101 = arith.cmpf oge, %99, %100 : vector<9x128xf32>
    %cst_143 = arith.constant 2.000000e-01 : f32
    %102 = vector.broadcast %cst_143 : f32 to vector<9x128xf32>
    %103 = arith.mulf %102, %99 : vector<9x128xf32>
    %104 = arith.select %101, %99, %103 : vector<9x128xi1>, vector<9x128xf32>
    %105 = arith.truncf %104 : vector<9x128xf32> to vector<9x128xbf16>
    %c0_144 = arith.constant 0 : index
    %c0_145 = arith.constant 0 : index
    %c0_146 = arith.constant 0 : index
    %c0_147 = arith.constant 0 : index
    %106 = vector.load %arg9[%c0_144, %c0_145, %c0_146, %c0_147] : memref<1x1x9x128xbf16, #tpu.memory_space<vmem>>, vector<1x1x9x128xbf16>
    %107 = vector.shape_cast %106 : vector<1x1x9x128xbf16> to vector<9x128xbf16>
    %108 = vector.shape_cast %105 : vector<9x128xbf16> to vector<1x1x9x128xbf16>
    tpu.vector_store %arg9[%c0_144, %c0_145, %c0_146, %c0_147], %108 {strides = array<i32>} : memref<1x1x9x128xbf16, #tpu.memory_space<vmem>>, vector<1x1x9x128xbf16>,
    return
  }
  func.func @transform_0(%arg0: i32, %arg1: i32, %arg2: i32) -> (i32, i32, i32, i32) {
    %c0_i32 = arith.constant 0 : i32
    %0 = arith.addi %arg2, %c0_i32 : i32
    %c0_i32_0 = arith.constant 0 : i32
    %c0_i32_1 = arith.constant 0 : i32
    %c0_i32_2 = arith.constant 0 : i32
    return %arg1, %0, %c0_i32_0, %c0_i32_1 : i32, i32, i32, i32
  }
  func.func @transform_1(%arg0: i32, %arg1: i32, %arg2: i32) -> (i32, i32, i32, i32) {
    %c1_i32 = arith.constant 1 : i32
    %0 = arith.addi %arg2, %c1_i32 : i32
    %c0_i32 = arith.constant 0 : i32
    %c0_i32_0 = arith.constant 0 : i32
    %c0_i32_1 = arith.constant 0 : i32
    return %arg1, %0, %c0_i32, %c0_i32_0 : i32, i32, i32, i32
  }
  func.func @transform_2(%arg0: i32, %arg1: i32, %arg2: i32) -> (i32, i32, i32, i32) {
    %c2_i32 = arith.constant 2 : i32
    %0 = arith.addi %arg2, %c2_i32 : i32
    %c0_i32 = arith.constant 0 : i32
    %c0_i32_0 = arith.constant 0 : i32
    %c0_i32_1 = arith.constant 0 : i32
    return %arg1, %0, %c0_i32, %c0_i32_0 : i32, i32, i32, i32
  }
  func.func @transform_3(%arg0: i32, %arg1: i32, %arg2: i32) -> (i32, i32, i32, i32) {
    %c3_i32 = arith.constant 3 : i32
    %0 = arith.addi %arg2, %c3_i32 : i32
    %c0_i32 = arith.constant 0 : i32
    %c0_i32_0 = arith.constant 0 : i32
    %c0_i32_1 = arith.constant 0 : i32
    return %arg1, %0, %c0_i32, %c0_i32_0 : i32, i32, i32, i32
  }
  func.func @transform_4(%arg0: i32, %arg1: i32, %arg2: i32) -> (i32, i32, i32, i32) {
    %c0_i32 = arith.constant 0 : i32
    %c0_i32_0 = arith.constant 0 : i32
    %c0_i32_1 = arith.constant 0 : i32
    %c0_i32_2 = arith.constant 0 : i32
    return %c0_i32, %c0_i32_0, %c0_i32_1, %arg0 : i32, i32, i32, i32
  }
  func.func @transform_5(%arg0: i32, %arg1: i32, %arg2: i32) -> (i32, i32) {
    %c0_i32 = arith.constant 0 : i32
    %c0_i32_0 = arith.constant 0 : i32
    return %c0_i32, %arg0 : i32, i32
  }
  func.func @transform_6(%arg0: i32, %arg1: i32, %arg2: i32) -> (i32, i32, i32, i32) {
    %c0_i32 = arith.constant 0 : i32
    %c0_i32_0 = arith.constant 0 : i32
    return %arg1, %arg2, %c0_i32, %arg0 : i32, i32, i32, i32
  }
}

module attributes {stable_mosaic.version = 11 : i64} {
  func.func @_conv_rows_kernel(%arg0: i32, %arg1: i32, %arg2: i32, %arg3: memref<1x1x13x128xbf16, #tpu.memory_space<vmem>>, %arg4: memref<1x1x13x128xbf16, #tpu.memory_space<vmem>>, %arg5: memref<1x1x13x128xbf16, #tpu.memory_space<vmem>>, %arg6: memref<1x1x13x128xbf16, #tpu.memory_space<vmem>>, %arg7: memref<4x4x128x128xbf16, #tpu.memory_space<vmem>>, %arg8: memref<1x128xf32, #tpu.memory_space<vmem>>, %arg9: memref<1x1x10x128xbf16, #tpu.memory_space<vmem>>) attributes {dimension_semantics = [#tpu.dimension_semantics<parallel>, #tpu.dimension_semantics<parallel>, #tpu.dimension_semantics<parallel>], iteration_bounds = array<i64: 1, 2, 10>, scalar_prefetch = 0 : i64, scratch_operands = 0 : i64, tpu.core_type = #tpu.core_type<tc>, window_params = [{transform_indices = @transform_0, window_bounds = array<i64: 1, 1, 13, 128>}, {transform_indices = @transform_1, window_bounds = array<i64: 1, 1, 13, 128>}, {transform_indices = @transform_2, window_bounds = array<i64: 1, 1, 13, 128>}, {transform_indices = @transform_3, window_bounds = array<i64: 1, 1, 13, 128>}, {transform_indices = @transform_4, window_bounds = array<i64: 4, 4, 128, 128>}, {transform_indices = @transform_5, window_bounds = array<i64: 1, 128>}, {transform_indices = @transform_6, window_bounds = array<i64: 1, 1, 10, 128>}]} {
    %cst = arith.constant 0.000000e+00 : f32
    %0 = vector.broadcast %cst : f32 to vector<10x128xf32>
    %c0 = arith.constant 0 : index
    %c0_0 = arith.constant 0 : index
    %c0_1 = arith.constant 0 : index
    %c0_2 = arith.constant 0 : index
    %1 = vector.load %arg3[%c0, %c0_0, %c0_1, %c0_2] : memref<1x1x13x128xbf16, #tpu.memory_space<vmem>>, vector<1x1x10x128xbf16>
    %2 = vector.shape_cast %1 : vector<1x1x10x128xbf16> to vector<10x128xbf16>
    %c0_3 = arith.constant 0 : index
    %c0_4 = arith.constant 0 : index
    %c0_5 = arith.constant 0 : index
    %c0_6 = arith.constant 0 : index
    %3 = vector.load %arg7[%c0_3, %c0_4, %c0_5, %c0_6] : memref<4x4x128x128xbf16, #tpu.memory_space<vmem>>, vector<1x1x128x128xbf16>
    %4 = vector.shape_cast %3 : vector<1x1x128x128xbf16> to vector<128x128xbf16>
    %cst_7 = arith.constant dense<0.000000e+00> : vector<10x128xf32>
    %5 = tpu.matmul %2, %4, %cst_7 {dimension_numbers = #tpu.dot_dimension_numbers<[1], [0], [0], [1], [0, 0, 1, 1], [], []>} : vector<10x128xbf16>, vector<128x128xbf16>, vector<10x128xf32> -> vector<10x128xf32>
    %6 = arith.addf %0, %5 : vector<10x128xf32>
    %c0_8 = arith.constant 0 : index
    %c0_9 = arith.constant 0 : index
    %c1 = arith.constant 1 : index
    %c0_10 = arith.constant 0 : index
    %7 = vector.load %arg3[%c0_8, %c0_9, %c1, %c0_10] : memref<1x1x13x128xbf16, #tpu.memory_space<vmem>>, vector<1x1x10x128xbf16>
    %8 = vector.shape_cast %7 : vector<1x1x10x128xbf16> to vector<10x128xbf16>
    %c0_11 = arith.constant 0 : index
    %c1_12 = arith.constant 1 : index
    %c0_13 = arith.constant 0 : index
    %c0_14 = arith.constant 0 : index
    %9 = vector.load %arg7[%c0_11, %c1_12, %c0_13, %c0_14] : memref<4x4x128x128xbf16, #tpu.memory_space<vmem>>, vector<1x1x128x128xbf16>
    %10 = vector.shape_cast %9 : vector<1x1x128x128xbf16> to vector<128x128xbf16>
    %cst_15 = arith.constant dense<0.000000e+00> : vector<10x128xf32>
    %11 = tpu.matmul %8, %10, %cst_15 {dimension_numbers = #tpu.dot_dimension_numbers<[1], [0], [0], [1], [0, 0, 1, 1], [], []>} : vector<10x128xbf16>, vector<128x128xbf16>, vector<10x128xf32> -> vector<10x128xf32>
    %12 = arith.addf %6, %11 : vector<10x128xf32>
    %c0_16 = arith.constant 0 : index
    %c0_17 = arith.constant 0 : index
    %c2 = arith.constant 2 : index
    %c0_18 = arith.constant 0 : index
    %13 = vector.load %arg3[%c0_16, %c0_17, %c2, %c0_18] : memref<1x1x13x128xbf16, #tpu.memory_space<vmem>>, vector<1x1x10x128xbf16>
    %14 = vector.shape_cast %13 : vector<1x1x10x128xbf16> to vector<10x128xbf16>
    %c0_19 = arith.constant 0 : index
    %c2_20 = arith.constant 2 : index
    %c0_21 = arith.constant 0 : index
    %c0_22 = arith.constant 0 : index
    %15 = vector.load %arg7[%c0_19, %c2_20, %c0_21, %c0_22] : memref<4x4x128x128xbf16, #tpu.memory_space<vmem>>, vector<1x1x128x128xbf16>
    %16 = vector.shape_cast %15 : vector<1x1x128x128xbf16> to vector<128x128xbf16>
    %cst_23 = arith.constant dense<0.000000e+00> : vector<10x128xf32>
    %17 = tpu.matmul %14, %16, %cst_23 {dimension_numbers = #tpu.dot_dimension_numbers<[1], [0], [0], [1], [0, 0, 1, 1], [], []>} : vector<10x128xbf16>, vector<128x128xbf16>, vector<10x128xf32> -> vector<10x128xf32>
    %18 = arith.addf %12, %17 : vector<10x128xf32>
    %c0_24 = arith.constant 0 : index
    %c0_25 = arith.constant 0 : index
    %c3 = arith.constant 3 : index
    %c0_26 = arith.constant 0 : index
    %19 = vector.load %arg3[%c0_24, %c0_25, %c3, %c0_26] : memref<1x1x13x128xbf16, #tpu.memory_space<vmem>>, vector<1x1x10x128xbf16>
    %20 = vector.shape_cast %19 : vector<1x1x10x128xbf16> to vector<10x128xbf16>
    %c0_27 = arith.constant 0 : index
    %c3_28 = arith.constant 3 : index
    %c0_29 = arith.constant 0 : index
    %c0_30 = arith.constant 0 : index
    %21 = vector.load %arg7[%c0_27, %c3_28, %c0_29, %c0_30] : memref<4x4x128x128xbf16, #tpu.memory_space<vmem>>, vector<1x1x128x128xbf16>
    %22 = vector.shape_cast %21 : vector<1x1x128x128xbf16> to vector<128x128xbf16>
    %cst_31 = arith.constant dense<0.000000e+00> : vector<10x128xf32>
    %23 = tpu.matmul %20, %22, %cst_31 {dimension_numbers = #tpu.dot_dimension_numbers<[1], [0], [0], [1], [0, 0, 1, 1], [], []>} : vector<10x128xbf16>, vector<128x128xbf16>, vector<10x128xf32> -> vector<10x128xf32>
    %24 = arith.addf %18, %23 : vector<10x128xf32>
    %c0_32 = arith.constant 0 : index
    %c0_33 = arith.constant 0 : index
    %c0_34 = arith.constant 0 : index
    %c0_35 = arith.constant 0 : index
    %25 = vector.load %arg4[%c0_32, %c0_33, %c0_34, %c0_35] : memref<1x1x13x128xbf16, #tpu.memory_space<vmem>>, vector<1x1x10x128xbf16>
    %26 = vector.shape_cast %25 : vector<1x1x10x128xbf16> to vector<10x128xbf16>
    %c1_36 = arith.constant 1 : index
    %c0_37 = arith.constant 0 : index
    %c0_38 = arith.constant 0 : index
    %c0_39 = arith.constant 0 : index
    %27 = vector.load %arg7[%c1_36, %c0_37, %c0_38, %c0_39] : memref<4x4x128x128xbf16, #tpu.memory_space<vmem>>, vector<1x1x128x128xbf16>
    %28 = vector.shape_cast %27 : vector<1x1x128x128xbf16> to vector<128x128xbf16>
    %cst_40 = arith.constant dense<0.000000e+00> : vector<10x128xf32>
    %29 = tpu.matmul %26, %28, %cst_40 {dimension_numbers = #tpu.dot_dimension_numbers<[1], [0], [0], [1], [0, 0, 1, 1], [], []>} : vector<10x128xbf16>, vector<128x128xbf16>, vector<10x128xf32> -> vector<10x128xf32>
    %30 = arith.addf %24, %29 : vector<10x128xf32>
    %c0_41 = arith.constant 0 : index
    %c0_42 = arith.constant 0 : index
    %c1_43 = arith.constant 1 : index
    %c0_44 = arith.constant 0 : index
    %31 = vector.load %arg4[%c0_41, %c0_42, %c1_43, %c0_44] : memref<1x1x13x128xbf16, #tpu.memory_space<vmem>>, vector<1x1x10x128xbf16>
    %32 = vector.shape_cast %31 : vector<1x1x10x128xbf16> to vector<10x128xbf16>
    %c1_45 = arith.constant 1 : index
    %c1_46 = arith.constant 1 : index
    %c0_47 = arith.constant 0 : index
    %c0_48 = arith.constant 0 : index
    %33 = vector.load %arg7[%c1_45, %c1_46, %c0_47, %c0_48] : memref<4x4x128x128xbf16, #tpu.memory_space<vmem>>, vector<1x1x128x128xbf16>
    %34 = vector.shape_cast %33 : vector<1x1x128x128xbf16> to vector<128x128xbf16>
    %cst_49 = arith.constant dense<0.000000e+00> : vector<10x128xf32>
    %35 = tpu.matmul %32, %34, %cst_49 {dimension_numbers = #tpu.dot_dimension_numbers<[1], [0], [0], [1], [0, 0, 1, 1], [], []>} : vector<10x128xbf16>, vector<128x128xbf16>, vector<10x128xf32> -> vector<10x128xf32>
    %36 = arith.addf %30, %35 : vector<10x128xf32>
    %c0_50 = arith.constant 0 : index
    %c0_51 = arith.constant 0 : index
    %c2_52 = arith.constant 2 : index
    %c0_53 = arith.constant 0 : index
    %37 = vector.load %arg4[%c0_50, %c0_51, %c2_52, %c0_53] : memref<1x1x13x128xbf16, #tpu.memory_space<vmem>>, vector<1x1x10x128xbf16>
    %38 = vector.shape_cast %37 : vector<1x1x10x128xbf16> to vector<10x128xbf16>
    %c1_54 = arith.constant 1 : index
    %c2_55 = arith.constant 2 : index
    %c0_56 = arith.constant 0 : index
    %c0_57 = arith.constant 0 : index
    %39 = vector.load %arg7[%c1_54, %c2_55, %c0_56, %c0_57] : memref<4x4x128x128xbf16, #tpu.memory_space<vmem>>, vector<1x1x128x128xbf16>
    %40 = vector.shape_cast %39 : vector<1x1x128x128xbf16> to vector<128x128xbf16>
    %cst_58 = arith.constant dense<0.000000e+00> : vector<10x128xf32>
    %41 = tpu.matmul %38, %40, %cst_58 {dimension_numbers = #tpu.dot_dimension_numbers<[1], [0], [0], [1], [0, 0, 1, 1], [], []>} : vector<10x128xbf16>, vector<128x128xbf16>, vector<10x128xf32> -> vector<10x128xf32>
    %42 = arith.addf %36, %41 : vector<10x128xf32>
    %c0_59 = arith.constant 0 : index
    %c0_60 = arith.constant 0 : index
    %c3_61 = arith.constant 3 : index
    %c0_62 = arith.constant 0 : index
    %43 = vector.load %arg4[%c0_59, %c0_60, %c3_61, %c0_62] : memref<1x1x13x128xbf16, #tpu.memory_space<vmem>>, vector<1x1x10x128xbf16>
    %44 = vector.shape_cast %43 : vector<1x1x10x128xbf16> to vector<10x128xbf16>
    %c1_63 = arith.constant 1 : index
    %c3_64 = arith.constant 3 : index
    %c0_65 = arith.constant 0 : index
    %c0_66 = arith.constant 0 : index
    %45 = vector.load %arg7[%c1_63, %c3_64, %c0_65, %c0_66] : memref<4x4x128x128xbf16, #tpu.memory_space<vmem>>, vector<1x1x128x128xbf16>
    %46 = vector.shape_cast %45 : vector<1x1x128x128xbf16> to vector<128x128xbf16>
    %cst_67 = arith.constant dense<0.000000e+00> : vector<10x128xf32>
    %47 = tpu.matmul %44, %46, %cst_67 {dimension_numbers = #tpu.dot_dimension_numbers<[1], [0], [0], [1], [0, 0, 1, 1], [], []>} : vector<10x128xbf16>, vector<128x128xbf16>, vector<10x128xf32> -> vector<10x128xf32>
    %48 = arith.addf %42, %47 : vector<10x128xf32>
    %c0_68 = arith.constant 0 : index
    %c0_69 = arith.constant 0 : index
    %c0_70 = arith.constant 0 : index
    %c0_71 = arith.constant 0 : index
    %49 = vector.load %arg5[%c0_68, %c0_69, %c0_70, %c0_71] : memref<1x1x13x128xbf16, #tpu.memory_space<vmem>>, vector<1x1x10x128xbf16>
    %50 = vector.shape_cast %49 : vector<1x1x10x128xbf16> to vector<10x128xbf16>
    %c2_72 = arith.constant 2 : index
    %c0_73 = arith.constant 0 : index
    %c0_74 = arith.constant 0 : index
    %c0_75 = arith.constant 0 : index
    %51 = vector.load %arg7[%c2_72, %c0_73, %c0_74, %c0_75] : memref<4x4x128x128xbf16, #tpu.memory_space<vmem>>, vector<1x1x128x128xbf16>
    %52 = vector.shape_cast %51 : vector<1x1x128x128xbf16> to vector<128x128xbf16>
    %cst_76 = arith.constant dense<0.000000e+00> : vector<10x128xf32>
    %53 = tpu.matmul %50, %52, %cst_76 {dimension_numbers = #tpu.dot_dimension_numbers<[1], [0], [0], [1], [0, 0, 1, 1], [], []>} : vector<10x128xbf16>, vector<128x128xbf16>, vector<10x128xf32> -> vector<10x128xf32>
    %54 = arith.addf %48, %53 : vector<10x128xf32>
    %c0_77 = arith.constant 0 : index
    %c0_78 = arith.constant 0 : index
    %c1_79 = arith.constant 1 : index
    %c0_80 = arith.constant 0 : index
    %55 = vector.load %arg5[%c0_77, %c0_78, %c1_79, %c0_80] : memref<1x1x13x128xbf16, #tpu.memory_space<vmem>>, vector<1x1x10x128xbf16>
    %56 = vector.shape_cast %55 : vector<1x1x10x128xbf16> to vector<10x128xbf16>
    %c2_81 = arith.constant 2 : index
    %c1_82 = arith.constant 1 : index
    %c0_83 = arith.constant 0 : index
    %c0_84 = arith.constant 0 : index
    %57 = vector.load %arg7[%c2_81, %c1_82, %c0_83, %c0_84] : memref<4x4x128x128xbf16, #tpu.memory_space<vmem>>, vector<1x1x128x128xbf16>
    %58 = vector.shape_cast %57 : vector<1x1x128x128xbf16> to vector<128x128xbf16>
    %cst_85 = arith.constant dense<0.000000e+00> : vector<10x128xf32>
    %59 = tpu.matmul %56, %58, %cst_85 {dimension_numbers = #tpu.dot_dimension_numbers<[1], [0], [0], [1], [0, 0, 1, 1], [], []>} : vector<10x128xbf16>, vector<128x128xbf16>, vector<10x128xf32> -> vector<10x128xf32>
    %60 = arith.addf %54, %59 : vector<10x128xf32>
    %c0_86 = arith.constant 0 : index
    %c0_87 = arith.constant 0 : index
    %c2_88 = arith.constant 2 : index
    %c0_89 = arith.constant 0 : index
    %61 = vector.load %arg5[%c0_86, %c0_87, %c2_88, %c0_89] : memref<1x1x13x128xbf16, #tpu.memory_space<vmem>>, vector<1x1x10x128xbf16>
    %62 = vector.shape_cast %61 : vector<1x1x10x128xbf16> to vector<10x128xbf16>
    %c2_90 = arith.constant 2 : index
    %c2_91 = arith.constant 2 : index
    %c0_92 = arith.constant 0 : index
    %c0_93 = arith.constant 0 : index
    %63 = vector.load %arg7[%c2_90, %c2_91, %c0_92, %c0_93] : memref<4x4x128x128xbf16, #tpu.memory_space<vmem>>, vector<1x1x128x128xbf16>
    %64 = vector.shape_cast %63 : vector<1x1x128x128xbf16> to vector<128x128xbf16>
    %cst_94 = arith.constant dense<0.000000e+00> : vector<10x128xf32>
    %65 = tpu.matmul %62, %64, %cst_94 {dimension_numbers = #tpu.dot_dimension_numbers<[1], [0], [0], [1], [0, 0, 1, 1], [], []>} : vector<10x128xbf16>, vector<128x128xbf16>, vector<10x128xf32> -> vector<10x128xf32>
    %66 = arith.addf %60, %65 : vector<10x128xf32>
    %c0_95 = arith.constant 0 : index
    %c0_96 = arith.constant 0 : index
    %c3_97 = arith.constant 3 : index
    %c0_98 = arith.constant 0 : index
    %67 = vector.load %arg5[%c0_95, %c0_96, %c3_97, %c0_98] : memref<1x1x13x128xbf16, #tpu.memory_space<vmem>>, vector<1x1x10x128xbf16>
    %68 = vector.shape_cast %67 : vector<1x1x10x128xbf16> to vector<10x128xbf16>
    %c2_99 = arith.constant 2 : index
    %c3_100 = arith.constant 3 : index
    %c0_101 = arith.constant 0 : index
    %c0_102 = arith.constant 0 : index
    %69 = vector.load %arg7[%c2_99, %c3_100, %c0_101, %c0_102] : memref<4x4x128x128xbf16, #tpu.memory_space<vmem>>, vector<1x1x128x128xbf16>
    %70 = vector.shape_cast %69 : vector<1x1x128x128xbf16> to vector<128x128xbf16>
    %cst_103 = arith.constant dense<0.000000e+00> : vector<10x128xf32>
    %71 = tpu.matmul %68, %70, %cst_103 {dimension_numbers = #tpu.dot_dimension_numbers<[1], [0], [0], [1], [0, 0, 1, 1], [], []>} : vector<10x128xbf16>, vector<128x128xbf16>, vector<10x128xf32> -> vector<10x128xf32>
    %72 = arith.addf %66, %71 : vector<10x128xf32>
    %c0_104 = arith.constant 0 : index
    %c0_105 = arith.constant 0 : index
    %c0_106 = arith.constant 0 : index
    %c0_107 = arith.constant 0 : index
    %73 = vector.load %arg6[%c0_104, %c0_105, %c0_106, %c0_107] : memref<1x1x13x128xbf16, #tpu.memory_space<vmem>>, vector<1x1x10x128xbf16>
    %74 = vector.shape_cast %73 : vector<1x1x10x128xbf16> to vector<10x128xbf16>
    %c3_108 = arith.constant 3 : index
    %c0_109 = arith.constant 0 : index
    %c0_110 = arith.constant 0 : index
    %c0_111 = arith.constant 0 : index
    %75 = vector.load %arg7[%c3_108, %c0_109, %c0_110, %c0_111] : memref<4x4x128x128xbf16, #tpu.memory_space<vmem>>, vector<1x1x128x128xbf16>
    %76 = vector.shape_cast %75 : vector<1x1x128x128xbf16> to vector<128x128xbf16>
    %cst_112 = arith.constant dense<0.000000e+00> : vector<10x128xf32>
    %77 = tpu.matmul %74, %76, %cst_112 {dimension_numbers = #tpu.dot_dimension_numbers<[1], [0], [0], [1], [0, 0, 1, 1], [], []>} : vector<10x128xbf16>, vector<128x128xbf16>, vector<10x128xf32> -> vector<10x128xf32>
    %78 = arith.addf %72, %77 : vector<10x128xf32>
    %c0_113 = arith.constant 0 : index
    %c0_114 = arith.constant 0 : index
    %c1_115 = arith.constant 1 : index
    %c0_116 = arith.constant 0 : index
    %79 = vector.load %arg6[%c0_113, %c0_114, %c1_115, %c0_116] : memref<1x1x13x128xbf16, #tpu.memory_space<vmem>>, vector<1x1x10x128xbf16>
    %80 = vector.shape_cast %79 : vector<1x1x10x128xbf16> to vector<10x128xbf16>
    %c3_117 = arith.constant 3 : index
    %c1_118 = arith.constant 1 : index
    %c0_119 = arith.constant 0 : index
    %c0_120 = arith.constant 0 : index
    %81 = vector.load %arg7[%c3_117, %c1_118, %c0_119, %c0_120] : memref<4x4x128x128xbf16, #tpu.memory_space<vmem>>, vector<1x1x128x128xbf16>
    %82 = vector.shape_cast %81 : vector<1x1x128x128xbf16> to vector<128x128xbf16>
    %cst_121 = arith.constant dense<0.000000e+00> : vector<10x128xf32>
    %83 = tpu.matmul %80, %82, %cst_121 {dimension_numbers = #tpu.dot_dimension_numbers<[1], [0], [0], [1], [0, 0, 1, 1], [], []>} : vector<10x128xbf16>, vector<128x128xbf16>, vector<10x128xf32> -> vector<10x128xf32>
    %84 = arith.addf %78, %83 : vector<10x128xf32>
    %c0_122 = arith.constant 0 : index
    %c0_123 = arith.constant 0 : index
    %c2_124 = arith.constant 2 : index
    %c0_125 = arith.constant 0 : index
    %85 = vector.load %arg6[%c0_122, %c0_123, %c2_124, %c0_125] : memref<1x1x13x128xbf16, #tpu.memory_space<vmem>>, vector<1x1x10x128xbf16>
    %86 = vector.shape_cast %85 : vector<1x1x10x128xbf16> to vector<10x128xbf16>
    %c3_126 = arith.constant 3 : index
    %c2_127 = arith.constant 2 : index
    %c0_128 = arith.constant 0 : index
    %c0_129 = arith.constant 0 : index
    %87 = vector.load %arg7[%c3_126, %c2_127, %c0_128, %c0_129] : memref<4x4x128x128xbf16, #tpu.memory_space<vmem>>, vector<1x1x128x128xbf16>
    %88 = vector.shape_cast %87 : vector<1x1x128x128xbf16> to vector<128x128xbf16>
    %cst_130 = arith.constant dense<0.000000e+00> : vector<10x128xf32>
    %89 = tpu.matmul %86, %88, %cst_130 {dimension_numbers = #tpu.dot_dimension_numbers<[1], [0], [0], [1], [0, 0, 1, 1], [], []>} : vector<10x128xbf16>, vector<128x128xbf16>, vector<10x128xf32> -> vector<10x128xf32>
    %90 = arith.addf %84, %89 : vector<10x128xf32>
    %c0_131 = arith.constant 0 : index
    %c0_132 = arith.constant 0 : index
    %c3_133 = arith.constant 3 : index
    %c0_134 = arith.constant 0 : index
    %91 = vector.load %arg6[%c0_131, %c0_132, %c3_133, %c0_134] : memref<1x1x13x128xbf16, #tpu.memory_space<vmem>>, vector<1x1x10x128xbf16>
    %92 = vector.shape_cast %91 : vector<1x1x10x128xbf16> to vector<10x128xbf16>
    %c3_135 = arith.constant 3 : index
    %c3_136 = arith.constant 3 : index
    %c0_137 = arith.constant 0 : index
    %c0_138 = arith.constant 0 : index
    %93 = vector.load %arg7[%c3_135, %c3_136, %c0_137, %c0_138] : memref<4x4x128x128xbf16, #tpu.memory_space<vmem>>, vector<1x1x128x128xbf16>
    %94 = vector.shape_cast %93 : vector<1x1x128x128xbf16> to vector<128x128xbf16>
    %cst_139 = arith.constant dense<0.000000e+00> : vector<10x128xf32>
    %95 = tpu.matmul %92, %94, %cst_139 {dimension_numbers = #tpu.dot_dimension_numbers<[1], [0], [0], [1], [0, 0, 1, 1], [], []>} : vector<10x128xbf16>, vector<128x128xbf16>, vector<10x128xf32> -> vector<10x128xf32>
    %96 = arith.addf %90, %95 : vector<10x128xf32>
    %c0_140 = arith.constant 0 : index
    %c0_141 = arith.constant 0 : index
    %97 = vector.load %arg8[%c0_140, %c0_141] : memref<1x128xf32, #tpu.memory_space<vmem>>, vector<1x128xf32>
    %98 = vector.broadcast %97 : vector<1x128xf32> to vector<10x128xf32>
    %99 = arith.addf %96, %98 : vector<10x128xf32>
    %100 = arith.truncf %99 : vector<10x128xf32> to vector<10x128xbf16>
    %c0_142 = arith.constant 0 : index
    %c0_143 = arith.constant 0 : index
    %c0_144 = arith.constant 0 : index
    %c0_145 = arith.constant 0 : index
    %101 = vector.load %arg9[%c0_142, %c0_143, %c0_144, %c0_145] : memref<1x1x10x128xbf16, #tpu.memory_space<vmem>>, vector<1x1x10x128xbf16>
    %102 = vector.shape_cast %101 : vector<1x1x10x128xbf16> to vector<10x128xbf16>
    %103 = vector.shape_cast %100 : vector<10x128xbf16> to vector<1x1x10x128xbf16>
    tpu.vector_store %arg9[%c0_142, %c0_143, %c0_144, %c0_145], %103 {strides = array<i32>} : memref<1x1x10x128xbf16, #tpu.memory_space<vmem>>, vector<1x1x10x128xbf16>,
    return
  }
  func.func @transform_0(%arg0: i32, %arg1: i32, %arg2: i32) -> (i32, i32, i32, i32) {
    %c0_i32 = arith.constant 0 : i32
    %0 = arith.addi %arg2, %c0_i32 : i32
    %c0_i32_0 = arith.constant 0 : i32
    %c0_i32_1 = arith.constant 0 : i32
    %c0_i32_2 = arith.constant 0 : i32
    return %arg1, %0, %c0_i32_0, %c0_i32_1 : i32, i32, i32, i32
  }
  func.func @transform_1(%arg0: i32, %arg1: i32, %arg2: i32) -> (i32, i32, i32, i32) {
    %c1_i32 = arith.constant 1 : i32
    %0 = arith.addi %arg2, %c1_i32 : i32
    %c0_i32 = arith.constant 0 : i32
    %c0_i32_0 = arith.constant 0 : i32
    %c0_i32_1 = arith.constant 0 : i32
    return %arg1, %0, %c0_i32, %c0_i32_0 : i32, i32, i32, i32
  }
  func.func @transform_2(%arg0: i32, %arg1: i32, %arg2: i32) -> (i32, i32, i32, i32) {
    %c2_i32 = arith.constant 2 : i32
    %0 = arith.addi %arg2, %c2_i32 : i32
    %c0_i32 = arith.constant 0 : i32
    %c0_i32_0 = arith.constant 0 : i32
    %c0_i32_1 = arith.constant 0 : i32
    return %arg1, %0, %c0_i32, %c0_i32_0 : i32, i32, i32, i32
  }
  func.func @transform_3(%arg0: i32, %arg1: i32, %arg2: i32) -> (i32, i32, i32, i32) {
    %c3_i32 = arith.constant 3 : i32
    %0 = arith.addi %arg2, %c3_i32 : i32
    %c0_i32 = arith.constant 0 : i32
    %c0_i32_0 = arith.constant 0 : i32
    %c0_i32_1 = arith.constant 0 : i32
    return %arg1, %0, %c0_i32, %c0_i32_0 : i32, i32, i32, i32
  }
  func.func @transform_4(%arg0: i32, %arg1: i32, %arg2: i32) -> (i32, i32, i32, i32) {
    %c0_i32 = arith.constant 0 : i32
    %c0_i32_0 = arith.constant 0 : i32
    %c0_i32_1 = arith.constant 0 : i32
    %c0_i32_2 = arith.constant 0 : i32
    return %c0_i32, %c0_i32_0, %c0_i32_1, %arg0 : i32, i32, i32, i32
  }
  func.func @transform_5(%arg0: i32, %arg1: i32, %arg2: i32) -> (i32, i32) {
    %c0_i32 = arith.constant 0 : i32
    %c0_i32_0 = arith.constant 0 : i32
    return %c0_i32, %arg0 : i32, i32
  }
  func.func @transform_6(%arg0: i32, %arg1: i32, %arg2: i32) -> (i32, i32, i32, i32) {
    %c0_i32 = arith.constant 0 : i32
    %c0_i32_0 = arith.constant 0 : i32
    return %arg1, %arg2, %c0_i32, %arg0 : i32, i32, i32, i32
  }
}

module attributes {stable_mosaic.version = 11 : i64} {
  func.func @_inorm_lrelu_kernel(%arg0: i32, %arg1: i32, %arg2: memref<1x100x128xbf16, #tpu.memory_space<vmem>>, %arg3: memref<1x100x128xbf16, #tpu.memory_space<vmem>>) attributes {dimension_semantics = [#tpu.dimension_semantics<parallel>, #tpu.dimension_semantics<parallel>], iteration_bounds = array<i64: 2, 1>, scalar_prefetch = 0 : i64, scratch_operands = 0 : i64, tpu.core_type = #tpu.core_type<tc>, window_params = [{transform_indices = @transform_0, window_bounds = array<i64: 1, 100, 128>}, {transform_indices = @transform_1, window_bounds = array<i64: 1, 100, 128>}]} {
    %c0 = arith.constant 0 : index
    %c0_0 = arith.constant 0 : index
    %c0_1 = arith.constant 0 : index
    %0 = vector.load %arg2[%c0, %c0_0, %c0_1] : memref<1x100x128xbf16, #tpu.memory_space<vmem>>, vector<1x100x128xbf16>
    %1 = arith.extf %0 : vector<1x100x128xbf16> to vector<1x100x128xf32>
    %cst = arith.constant dense<0.000000e+00> : vector<1x128xf32>
    %2 = vector.multi_reduction <add>, %1, %cst [1] : vector<1x100x128xf32> to vector<1x128xf32>
    %3 = vector.shape_cast %2 : vector<1x128xf32> to vector<1x1x128xf32>
    %cst_2 = arith.constant 1.000000e+02 : f32
    %4 = vector.broadcast %cst_2 : f32 to vector<1x1x128xf32>
    %5 = arith.divf %3, %4 : vector<1x1x128xf32>
    %6 = vector.broadcast %5 : vector<1x1x128xf32> to vector<1x100x128xf32>
    %7 = arith.subf %1, %6 : vector<1x100x128xf32>
    %8 = arith.mulf %7, %7 : vector<1x100x128xf32>
    %cst_3 = arith.constant dense<0.000000e+00> : vector<1x128xf32>
    %9 = vector.multi_reduction <add>, %8, %cst_3 [1] : vector<1x100x128xf32> to vector<1x128xf32>
    %10 = vector.shape_cast %9 : vector<1x128xf32> to vector<1x1x128xf32>
    %cst_4 = arith.constant 1.000000e+02 : f32
    %11 = vector.broadcast %cst_4 : f32 to vector<1x1x128xf32>
    %12 = arith.divf %10, %11 : vector<1x1x128xf32>
    %cst_5 = arith.constant 9.99999974E-6 : f32
    %13 = vector.broadcast %cst_5 : f32 to vector<1x1x128xf32>
    %14 = arith.addf %12, %13 : vector<1x1x128xf32>
    %15 = math.rsqrt %14 : vector<1x1x128xf32>
    %16 = vector.broadcast %15 : vector<1x1x128xf32> to vector<1x100x128xf32>
    %17 = arith.mulf %7, %16 : vector<1x100x128xf32>
    %cst_6 = arith.constant 0.000000e+00 : f32
    %18 = vector.broadcast %cst_6 : f32 to vector<1x100x128xf32>
    %19 = arith.cmpf oge, %17, %18 : vector<1x100x128xf32>
    %cst_7 = arith.constant 2.000000e-01 : f32
    %20 = vector.broadcast %cst_7 : f32 to vector<1x100x128xf32>
    %21 = arith.mulf %20, %17 : vector<1x100x128xf32>
    %22 = arith.select %19, %17, %21 : vector<1x100x128xi1>, vector<1x100x128xf32>
    %23 = arith.truncf %22 : vector<1x100x128xf32> to vector<1x100x128xbf16>
    %c0_8 = arith.constant 0 : index
    %c0_9 = arith.constant 0 : index
    %c0_10 = arith.constant 0 : index
    %24 = vector.load %arg3[%c0_8, %c0_9, %c0_10] : memref<1x100x128xbf16, #tpu.memory_space<vmem>>, vector<1x100x128xbf16>
    tpu.vector_store %arg3[%c0_8, %c0_9, %c0_10], %23 {strides = array<i32>} : memref<1x100x128xbf16, #tpu.memory_space<vmem>>, vector<1x100x128xbf16>,
    return
  }
  func.func @transform_0(%arg0: i32, %arg1: i32) -> (i32, i32, i32) {
    %c0_i32 = arith.constant 0 : i32
    %c0_i32_0 = arith.constant 0 : i32
    return %arg0, %c0_i32, %arg1 : i32, i32, i32
  }
  func.func @transform_1(%arg0: i32, %arg1: i32) -> (i32, i32, i32) {
    %c0_i32 = arith.constant 0 : i32
    %c0_i32_0 = arith.constant 0 : i32
    return %arg0, %c0_i32, %arg1 : i32, i32, i32
  }
}

module attributes {stable_mosaic.version = 11 : i64} {
  func.func @_conv_rows_kernel(%arg0: i32, %arg1: i32, %arg2: i32, %arg3: memref<1x1x14x128xbf16, #tpu.memory_space<vmem>>, %arg4: memref<1x1x14x128xbf16, #tpu.memory_space<vmem>>, %arg5: memref<1x1x14x128xbf16, #tpu.memory_space<vmem>>, %arg6: memref<1x1x14x128xbf16, #tpu.memory_space<vmem>>, %arg7: memref<4x4x128x128xbf16, #tpu.memory_space<vmem>>, %arg8: memref<1x128xf32, #tpu.memory_space<vmem>>, %arg9: memref<1x1x11x128xbf16, #tpu.memory_space<vmem>>) attributes {dimension_semantics = [#tpu.dimension_semantics<parallel>, #tpu.dimension_semantics<parallel>, #tpu.dimension_semantics<parallel>], iteration_bounds = array<i64: 2, 2, 11>, scalar_prefetch = 0 : i64, scratch_operands = 0 : i64, tpu.core_type = #tpu.core_type<tc>, window_params = [{transform_indices = @transform_0, window_bounds = array<i64: 1, 1, 14, 128>}, {transform_indices = @transform_1, window_bounds = array<i64: 1, 1, 14, 128>}, {transform_indices = @transform_2, window_bounds = array<i64: 1, 1, 14, 128>}, {transform_indices = @transform_3, window_bounds = array<i64: 1, 1, 14, 128>}, {transform_indices = @transform_4, window_bounds = array<i64: 4, 4, 128, 128>}, {transform_indices = @transform_5, window_bounds = array<i64: 1, 128>}, {transform_indices = @transform_6, window_bounds = array<i64: 1, 1, 11, 128>}]} {
    %cst = arith.constant 0.000000e+00 : f32
    %0 = vector.broadcast %cst : f32 to vector<11x128xf32>
    %c0 = arith.constant 0 : index
    %c0_0 = arith.constant 0 : index
    %c0_1 = arith.constant 0 : index
    %c0_2 = arith.constant 0 : index
    %1 = vector.load %arg3[%c0, %c0_0, %c0_1, %c0_2] : memref<1x1x14x128xbf16, #tpu.memory_space<vmem>>, vector<1x1x11x128xbf16>
    %2 = vector.shape_cast %1 : vector<1x1x11x128xbf16> to vector<11x128xbf16>
    %c0_3 = arith.constant 0 : index
    %c0_4 = arith.constant 0 : index
    %c0_5 = arith.constant 0 : index
    %c0_6 = arith.constant 0 : index
    %3 = vector.load %arg7[%c0_3, %c0_4, %c0_5, %c0_6] : memref<4x4x128x128xbf16, #tpu.memory_space<vmem>>, vector<1x1x128x128xbf16>
    %4 = vector.shape_cast %3 : vector<1x1x128x128xbf16> to vector<128x128xbf16>
    %cst_7 = arith.constant dense<0.000000e+00> : vector<11x128xf32>
    %5 = tpu.matmul %2, %4, %cst_7 {dimension_numbers = #tpu.dot_dimension_numbers<[1], [0], [0], [1], [0, 0, 1, 1], [], []>} : vector<11x128xbf16>, vector<128x128xbf16>, vector<11x128xf32> -> vector<11x128xf32>
    %6 = arith.addf %0, %5 : vector<11x128xf32>
    %c0_8 = arith.constant 0 : index
    %c0_9 = arith.constant 0 : index
    %c1 = arith.constant 1 : index
    %c0_10 = arith.constant 0 : index
    %7 = vector.load %arg3[%c0_8, %c0_9, %c1, %c0_10] : memref<1x1x14x128xbf16, #tpu.memory_space<vmem>>, vector<1x1x11x128xbf16>
    %8 = vector.shape_cast %7 : vector<1x1x11x128xbf16> to vector<11x128xbf16>
    %c0_11 = arith.constant 0 : index
    %c1_12 = arith.constant 1 : index
    %c0_13 = arith.constant 0 : index
    %c0_14 = arith.constant 0 : index
    %9 = vector.load %arg7[%c0_11, %c1_12, %c0_13, %c0_14] : memref<4x4x128x128xbf16, #tpu.memory_space<vmem>>, vector<1x1x128x128xbf16>
    %10 = vector.shape_cast %9 : vector<1x1x128x128xbf16> to vector<128x128xbf16>
    %cst_15 = arith.constant dense<0.000000e+00> : vector<11x128xf32>
    %11 = tpu.matmul %8, %10, %cst_15 {dimension_numbers = #tpu.dot_dimension_numbers<[1], [0], [0], [1], [0, 0, 1, 1], [], []>} : vector<11x128xbf16>, vector<128x128xbf16>, vector<11x128xf32> -> vector<11x128xf32>
    %12 = arith.addf %6, %11 : vector<11x128xf32>
    %c0_16 = arith.constant 0 : index
    %c0_17 = arith.constant 0 : index
    %c2 = arith.constant 2 : index
    %c0_18 = arith.constant 0 : index
    %13 = vector.load %arg3[%c0_16, %c0_17, %c2, %c0_18] : memref<1x1x14x128xbf16, #tpu.memory_space<vmem>>, vector<1x1x11x128xbf16>
    %14 = vector.shape_cast %13 : vector<1x1x11x128xbf16> to vector<11x128xbf16>
    %c0_19 = arith.constant 0 : index
    %c2_20 = arith.constant 2 : index
    %c0_21 = arith.constant 0 : index
    %c0_22 = arith.constant 0 : index
    %15 = vector.load %arg7[%c0_19, %c2_20, %c0_21, %c0_22] : memref<4x4x128x128xbf16, #tpu.memory_space<vmem>>, vector<1x1x128x128xbf16>
    %16 = vector.shape_cast %15 : vector<1x1x128x128xbf16> to vector<128x128xbf16>
    %cst_23 = arith.constant dense<0.000000e+00> : vector<11x128xf32>
    %17 = tpu.matmul %14, %16, %cst_23 {dimension_numbers = #tpu.dot_dimension_numbers<[1], [0], [0], [1], [0, 0, 1, 1], [], []>} : vector<11x128xbf16>, vector<128x128xbf16>, vector<11x128xf32> -> vector<11x128xf32>
    %18 = arith.addf %12, %17 : vector<11x128xf32>
    %c0_24 = arith.constant 0 : index
    %c0_25 = arith.constant 0 : index
    %c3 = arith.constant 3 : index
    %c0_26 = arith.constant 0 : index
    %19 = vector.load %arg3[%c0_24, %c0_25, %c3, %c0_26] : memref<1x1x14x128xbf16, #tpu.memory_space<vmem>>, vector<1x1x11x128xbf16>
    %20 = vector.shape_cast %19 : vector<1x1x11x128xbf16> to vector<11x128xbf16>
    %c0_27 = arith.constant 0 : index
    %c3_28 = arith.constant 3 : index
    %c0_29 = arith.constant 0 : index
    %c0_30 = arith.constant 0 : index
    %21 = vector.load %arg7[%c0_27, %c3_28, %c0_29, %c0_30] : memref<4x4x128x128xbf16, #tpu.memory_space<vmem>>, vector<1x1x128x128xbf16>
    %22 = vector.shape_cast %21 : vector<1x1x128x128xbf16> to vector<128x128xbf16>
    %cst_31 = arith.constant dense<0.000000e+00> : vector<11x128xf32>
    %23 = tpu.matmul %20, %22, %cst_31 {dimension_numbers = #tpu.dot_dimension_numbers<[1], [0], [0], [1], [0, 0, 1, 1], [], []>} : vector<11x128xbf16>, vector<128x128xbf16>, vector<11x128xf32> -> vector<11x128xf32>
    %24 = arith.addf %18, %23 : vector<11x128xf32>
    %c0_32 = arith.constant 0 : index
    %c0_33 = arith.constant 0 : index
    %c0_34 = arith.constant 0 : index
    %c0_35 = arith.constant 0 : index
    %25 = vector.load %arg4[%c0_32, %c0_33, %c0_34, %c0_35] : memref<1x1x14x128xbf16, #tpu.memory_space<vmem>>, vector<1x1x11x128xbf16>
    %26 = vector.shape_cast %25 : vector<1x1x11x128xbf16> to vector<11x128xbf16>
    %c1_36 = arith.constant 1 : index
    %c0_37 = arith.constant 0 : index
    %c0_38 = arith.constant 0 : index
    %c0_39 = arith.constant 0 : index
    %27 = vector.load %arg7[%c1_36, %c0_37, %c0_38, %c0_39] : memref<4x4x128x128xbf16, #tpu.memory_space<vmem>>, vector<1x1x128x128xbf16>
    %28 = vector.shape_cast %27 : vector<1x1x128x128xbf16> to vector<128x128xbf16>
    %cst_40 = arith.constant dense<0.000000e+00> : vector<11x128xf32>
    %29 = tpu.matmul %26, %28, %cst_40 {dimension_numbers = #tpu.dot_dimension_numbers<[1], [0], [0], [1], [0, 0, 1, 1], [], []>} : vector<11x128xbf16>, vector<128x128xbf16>, vector<11x128xf32> -> vector<11x128xf32>
    %30 = arith.addf %24, %29 : vector<11x128xf32>
    %c0_41 = arith.constant 0 : index
    %c0_42 = arith.constant 0 : index
    %c1_43 = arith.constant 1 : index
    %c0_44 = arith.constant 0 : index
    %31 = vector.load %arg4[%c0_41, %c0_42, %c1_43, %c0_44] : memref<1x1x14x128xbf16, #tpu.memory_space<vmem>>, vector<1x1x11x128xbf16>
    %32 = vector.shape_cast %31 : vector<1x1x11x128xbf16> to vector<11x128xbf16>
    %c1_45 = arith.constant 1 : index
    %c1_46 = arith.constant 1 : index
    %c0_47 = arith.constant 0 : index
    %c0_48 = arith.constant 0 : index
    %33 = vector.load %arg7[%c1_45, %c1_46, %c0_47, %c0_48] : memref<4x4x128x128xbf16, #tpu.memory_space<vmem>>, vector<1x1x128x128xbf16>
    %34 = vector.shape_cast %33 : vector<1x1x128x128xbf16> to vector<128x128xbf16>
    %cst_49 = arith.constant dense<0.000000e+00> : vector<11x128xf32>
    %35 = tpu.matmul %32, %34, %cst_49 {dimension_numbers = #tpu.dot_dimension_numbers<[1], [0], [0], [1], [0, 0, 1, 1], [], []>} : vector<11x128xbf16>, vector<128x128xbf16>, vector<11x128xf32> -> vector<11x128xf32>
    %36 = arith.addf %30, %35 : vector<11x128xf32>
    %c0_50 = arith.constant 0 : index
    %c0_51 = arith.constant 0 : index
    %c2_52 = arith.constant 2 : index
    %c0_53 = arith.constant 0 : index
    %37 = vector.load %arg4[%c0_50, %c0_51, %c2_52, %c0_53] : memref<1x1x14x128xbf16, #tpu.memory_space<vmem>>, vector<1x1x11x128xbf16>
    %38 = vector.shape_cast %37 : vector<1x1x11x128xbf16> to vector<11x128xbf16>
    %c1_54 = arith.constant 1 : index
    %c2_55 = arith.constant 2 : index
    %c0_56 = arith.constant 0 : index
    %c0_57 = arith.constant 0 : index
    %39 = vector.load %arg7[%c1_54, %c2_55, %c0_56, %c0_57] : memref<4x4x128x128xbf16, #tpu.memory_space<vmem>>, vector<1x1x128x128xbf16>
    %40 = vector.shape_cast %39 : vector<1x1x128x128xbf16> to vector<128x128xbf16>
    %cst_58 = arith.constant dense<0.000000e+00> : vector<11x128xf32>
    %41 = tpu.matmul %38, %40, %cst_58 {dimension_numbers = #tpu.dot_dimension_numbers<[1], [0], [0], [1], [0, 0, 1, 1], [], []>} : vector<11x128xbf16>, vector<128x128xbf16>, vector<11x128xf32> -> vector<11x128xf32>
    %42 = arith.addf %36, %41 : vector<11x128xf32>
    %c0_59 = arith.constant 0 : index
    %c0_60 = arith.constant 0 : index
    %c3_61 = arith.constant 3 : index
    %c0_62 = arith.constant 0 : index
    %43 = vector.load %arg4[%c0_59, %c0_60, %c3_61, %c0_62] : memref<1x1x14x128xbf16, #tpu.memory_space<vmem>>, vector<1x1x11x128xbf16>
    %44 = vector.shape_cast %43 : vector<1x1x11x128xbf16> to vector<11x128xbf16>
    %c1_63 = arith.constant 1 : index
    %c3_64 = arith.constant 3 : index
    %c0_65 = arith.constant 0 : index
    %c0_66 = arith.constant 0 : index
    %45 = vector.load %arg7[%c1_63, %c3_64, %c0_65, %c0_66] : memref<4x4x128x128xbf16, #tpu.memory_space<vmem>>, vector<1x1x128x128xbf16>
    %46 = vector.shape_cast %45 : vector<1x1x128x128xbf16> to vector<128x128xbf16>
    %cst_67 = arith.constant dense<0.000000e+00> : vector<11x128xf32>
    %47 = tpu.matmul %44, %46, %cst_67 {dimension_numbers = #tpu.dot_dimension_numbers<[1], [0], [0], [1], [0, 0, 1, 1], [], []>} : vector<11x128xbf16>, vector<128x128xbf16>, vector<11x128xf32> -> vector<11x128xf32>
    %48 = arith.addf %42, %47 : vector<11x128xf32>
    %c0_68 = arith.constant 0 : index
    %c0_69 = arith.constant 0 : index
    %c0_70 = arith.constant 0 : index
    %c0_71 = arith.constant 0 : index
    %49 = vector.load %arg5[%c0_68, %c0_69, %c0_70, %c0_71] : memref<1x1x14x128xbf16, #tpu.memory_space<vmem>>, vector<1x1x11x128xbf16>
    %50 = vector.shape_cast %49 : vector<1x1x11x128xbf16> to vector<11x128xbf16>
    %c2_72 = arith.constant 2 : index
    %c0_73 = arith.constant 0 : index
    %c0_74 = arith.constant 0 : index
    %c0_75 = arith.constant 0 : index
    %51 = vector.load %arg7[%c2_72, %c0_73, %c0_74, %c0_75] : memref<4x4x128x128xbf16, #tpu.memory_space<vmem>>, vector<1x1x128x128xbf16>
    %52 = vector.shape_cast %51 : vector<1x1x128x128xbf16> to vector<128x128xbf16>
    %cst_76 = arith.constant dense<0.000000e+00> : vector<11x128xf32>
    %53 = tpu.matmul %50, %52, %cst_76 {dimension_numbers = #tpu.dot_dimension_numbers<[1], [0], [0], [1], [0, 0, 1, 1], [], []>} : vector<11x128xbf16>, vector<128x128xbf16>, vector<11x128xf32> -> vector<11x128xf32>
    %54 = arith.addf %48, %53 : vector<11x128xf32>
    %c0_77 = arith.constant 0 : index
    %c0_78 = arith.constant 0 : index
    %c1_79 = arith.constant 1 : index
    %c0_80 = arith.constant 0 : index
    %55 = vector.load %arg5[%c0_77, %c0_78, %c1_79, %c0_80] : memref<1x1x14x128xbf16, #tpu.memory_space<vmem>>, vector<1x1x11x128xbf16>
    %56 = vector.shape_cast %55 : vector<1x1x11x128xbf16> to vector<11x128xbf16>
    %c2_81 = arith.constant 2 : index
    %c1_82 = arith.constant 1 : index
    %c0_83 = arith.constant 0 : index
    %c0_84 = arith.constant 0 : index
    %57 = vector.load %arg7[%c2_81, %c1_82, %c0_83, %c0_84] : memref<4x4x128x128xbf16, #tpu.memory_space<vmem>>, vector<1x1x128x128xbf16>
    %58 = vector.shape_cast %57 : vector<1x1x128x128xbf16> to vector<128x128xbf16>
    %cst_85 = arith.constant dense<0.000000e+00> : vector<11x128xf32>
    %59 = tpu.matmul %56, %58, %cst_85 {dimension_numbers = #tpu.dot_dimension_numbers<[1], [0], [0], [1], [0, 0, 1, 1], [], []>} : vector<11x128xbf16>, vector<128x128xbf16>, vector<11x128xf32> -> vector<11x128xf32>
    %60 = arith.addf %54, %59 : vector<11x128xf32>
    %c0_86 = arith.constant 0 : index
    %c0_87 = arith.constant 0 : index
    %c2_88 = arith.constant 2 : index
    %c0_89 = arith.constant 0 : index
    %61 = vector.load %arg5[%c0_86, %c0_87, %c2_88, %c0_89] : memref<1x1x14x128xbf16, #tpu.memory_space<vmem>>, vector<1x1x11x128xbf16>
    %62 = vector.shape_cast %61 : vector<1x1x11x128xbf16> to vector<11x128xbf16>
    %c2_90 = arith.constant 2 : index
    %c2_91 = arith.constant 2 : index
    %c0_92 = arith.constant 0 : index
    %c0_93 = arith.constant 0 : index
    %63 = vector.load %arg7[%c2_90, %c2_91, %c0_92, %c0_93] : memref<4x4x128x128xbf16, #tpu.memory_space<vmem>>, vector<1x1x128x128xbf16>
    %64 = vector.shape_cast %63 : vector<1x1x128x128xbf16> to vector<128x128xbf16>
    %cst_94 = arith.constant dense<0.000000e+00> : vector<11x128xf32>
    %65 = tpu.matmul %62, %64, %cst_94 {dimension_numbers = #tpu.dot_dimension_numbers<[1], [0], [0], [1], [0, 0, 1, 1], [], []>} : vector<11x128xbf16>, vector<128x128xbf16>, vector<11x128xf32> -> vector<11x128xf32>
    %66 = arith.addf %60, %65 : vector<11x128xf32>
    %c0_95 = arith.constant 0 : index
    %c0_96 = arith.constant 0 : index
    %c3_97 = arith.constant 3 : index
    %c0_98 = arith.constant 0 : index
    %67 = vector.load %arg5[%c0_95, %c0_96, %c3_97, %c0_98] : memref<1x1x14x128xbf16, #tpu.memory_space<vmem>>, vector<1x1x11x128xbf16>
    %68 = vector.shape_cast %67 : vector<1x1x11x128xbf16> to vector<11x128xbf16>
    %c2_99 = arith.constant 2 : index
    %c3_100 = arith.constant 3 : index
    %c0_101 = arith.constant 0 : index
    %c0_102 = arith.constant 0 : index
    %69 = vector.load %arg7[%c2_99, %c3_100, %c0_101, %c0_102] : memref<4x4x128x128xbf16, #tpu.memory_space<vmem>>, vector<1x1x128x128xbf16>
    %70 = vector.shape_cast %69 : vector<1x1x128x128xbf16> to vector<128x128xbf16>
    %cst_103 = arith.constant dense<0.000000e+00> : vector<11x128xf32>
    %71 = tpu.matmul %68, %70, %cst_103 {dimension_numbers = #tpu.dot_dimension_numbers<[1], [0], [0], [1], [0, 0, 1, 1], [], []>} : vector<11x128xbf16>, vector<128x128xbf16>, vector<11x128xf32> -> vector<11x128xf32>
    %72 = arith.addf %66, %71 : vector<11x128xf32>
    %c0_104 = arith.constant 0 : index
    %c0_105 = arith.constant 0 : index
    %c0_106 = arith.constant 0 : index
    %c0_107 = arith.constant 0 : index
    %73 = vector.load %arg6[%c0_104, %c0_105, %c0_106, %c0_107] : memref<1x1x14x128xbf16, #tpu.memory_space<vmem>>, vector<1x1x11x128xbf16>
    %74 = vector.shape_cast %73 : vector<1x1x11x128xbf16> to vector<11x128xbf16>
    %c3_108 = arith.constant 3 : index
    %c0_109 = arith.constant 0 : index
    %c0_110 = arith.constant 0 : index
    %c0_111 = arith.constant 0 : index
    %75 = vector.load %arg7[%c3_108, %c0_109, %c0_110, %c0_111] : memref<4x4x128x128xbf16, #tpu.memory_space<vmem>>, vector<1x1x128x128xbf16>
    %76 = vector.shape_cast %75 : vector<1x1x128x128xbf16> to vector<128x128xbf16>
    %cst_112 = arith.constant dense<0.000000e+00> : vector<11x128xf32>
    %77 = tpu.matmul %74, %76, %cst_112 {dimension_numbers = #tpu.dot_dimension_numbers<[1], [0], [0], [1], [0, 0, 1, 1], [], []>} : vector<11x128xbf16>, vector<128x128xbf16>, vector<11x128xf32> -> vector<11x128xf32>
    %78 = arith.addf %72, %77 : vector<11x128xf32>
    %c0_113 = arith.constant 0 : index
    %c0_114 = arith.constant 0 : index
    %c1_115 = arith.constant 1 : index
    %c0_116 = arith.constant 0 : index
    %79 = vector.load %arg6[%c0_113, %c0_114, %c1_115, %c0_116] : memref<1x1x14x128xbf16, #tpu.memory_space<vmem>>, vector<1x1x11x128xbf16>
    %80 = vector.shape_cast %79 : vector<1x1x11x128xbf16> to vector<11x128xbf16>
    %c3_117 = arith.constant 3 : index
    %c1_118 = arith.constant 1 : index
    %c0_119 = arith.constant 0 : index
    %c0_120 = arith.constant 0 : index
    %81 = vector.load %arg7[%c3_117, %c1_118, %c0_119, %c0_120] : memref<4x4x128x128xbf16, #tpu.memory_space<vmem>>, vector<1x1x128x128xbf16>
    %82 = vector.shape_cast %81 : vector<1x1x128x128xbf16> to vector<128x128xbf16>
    %cst_121 = arith.constant dense<0.000000e+00> : vector<11x128xf32>
    %83 = tpu.matmul %80, %82, %cst_121 {dimension_numbers = #tpu.dot_dimension_numbers<[1], [0], [0], [1], [0, 0, 1, 1], [], []>} : vector<11x128xbf16>, vector<128x128xbf16>, vector<11x128xf32> -> vector<11x128xf32>
    %84 = arith.addf %78, %83 : vector<11x128xf32>
    %c0_122 = arith.constant 0 : index
    %c0_123 = arith.constant 0 : index
    %c2_124 = arith.constant 2 : index
    %c0_125 = arith.constant 0 : index
    %85 = vector.load %arg6[%c0_122, %c0_123, %c2_124, %c0_125] : memref<1x1x14x128xbf16, #tpu.memory_space<vmem>>, vector<1x1x11x128xbf16>
    %86 = vector.shape_cast %85 : vector<1x1x11x128xbf16> to vector<11x128xbf16>
    %c3_126 = arith.constant 3 : index
    %c2_127 = arith.constant 2 : index
    %c0_128 = arith.constant 0 : index
    %c0_129 = arith.constant 0 : index
    %87 = vector.load %arg7[%c3_126, %c2_127, %c0_128, %c0_129] : memref<4x4x128x128xbf16, #tpu.memory_space<vmem>>, vector<1x1x128x128xbf16>
    %88 = vector.shape_cast %87 : vector<1x1x128x128xbf16> to vector<128x128xbf16>
    %cst_130 = arith.constant dense<0.000000e+00> : vector<11x128xf32>
    %89 = tpu.matmul %86, %88, %cst_130 {dimension_numbers = #tpu.dot_dimension_numbers<[1], [0], [0], [1], [0, 0, 1, 1], [], []>} : vector<11x128xbf16>, vector<128x128xbf16>, vector<11x128xf32> -> vector<11x128xf32>
    %90 = arith.addf %84, %89 : vector<11x128xf32>
    %c0_131 = arith.constant 0 : index
    %c0_132 = arith.constant 0 : index
    %c3_133 = arith.constant 3 : index
    %c0_134 = arith.constant 0 : index
    %91 = vector.load %arg6[%c0_131, %c0_132, %c3_133, %c0_134] : memref<1x1x14x128xbf16, #tpu.memory_space<vmem>>, vector<1x1x11x128xbf16>
    %92 = vector.shape_cast %91 : vector<1x1x11x128xbf16> to vector<11x128xbf16>
    %c3_135 = arith.constant 3 : index
    %c3_136 = arith.constant 3 : index
    %c0_137 = arith.constant 0 : index
    %c0_138 = arith.constant 0 : index
    %93 = vector.load %arg7[%c3_135, %c3_136, %c0_137, %c0_138] : memref<4x4x128x128xbf16, #tpu.memory_space<vmem>>, vector<1x1x128x128xbf16>
    %94 = vector.shape_cast %93 : vector<1x1x128x128xbf16> to vector<128x128xbf16>
    %cst_139 = arith.constant dense<0.000000e+00> : vector<11x128xf32>
    %95 = tpu.matmul %92, %94, %cst_139 {dimension_numbers = #tpu.dot_dimension_numbers<[1], [0], [0], [1], [0, 0, 1, 1], [], []>} : vector<11x128xbf16>, vector<128x128xbf16>, vector<11x128xf32> -> vector<11x128xf32>
    %96 = arith.addf %90, %95 : vector<11x128xf32>
    %c0_140 = arith.constant 0 : index
    %c0_141 = arith.constant 0 : index
    %97 = vector.load %arg8[%c0_140, %c0_141] : memref<1x128xf32, #tpu.memory_space<vmem>>, vector<1x128xf32>
    %98 = vector.broadcast %97 : vector<1x128xf32> to vector<11x128xf32>
    %99 = arith.addf %96, %98 : vector<11x128xf32>
    %100 = arith.truncf %99 : vector<11x128xf32> to vector<11x128xbf16>
    %c0_142 = arith.constant 0 : index
    %c0_143 = arith.constant 0 : index
    %c0_144 = arith.constant 0 : index
    %c0_145 = arith.constant 0 : index
    %101 = vector.load %arg9[%c0_142, %c0_143, %c0_144, %c0_145] : memref<1x1x11x128xbf16, #tpu.memory_space<vmem>>, vector<1x1x11x128xbf16>
    %102 = vector.shape_cast %101 : vector<1x1x11x128xbf16> to vector<11x128xbf16>
    %103 = vector.shape_cast %100 : vector<11x128xbf16> to vector<1x1x11x128xbf16>
    tpu.vector_store %arg9[%c0_142, %c0_143, %c0_144, %c0_145], %103 {strides = array<i32>} : memref<1x1x11x128xbf16, #tpu.memory_space<vmem>>, vector<1x1x11x128xbf16>,
    return
  }
  func.func @transform_0(%arg0: i32, %arg1: i32, %arg2: i32) -> (i32, i32, i32, i32) {
    %c0_i32 = arith.constant 0 : i32
    %0 = arith.addi %arg2, %c0_i32 : i32
    %c0_i32_0 = arith.constant 0 : i32
    %c0_i32_1 = arith.constant 0 : i32
    %c0_i32_2 = arith.constant 0 : i32
    return %arg1, %0, %c0_i32_0, %c0_i32_1 : i32, i32, i32, i32
  }
  func.func @transform_1(%arg0: i32, %arg1: i32, %arg2: i32) -> (i32, i32, i32, i32) {
    %c1_i32 = arith.constant 1 : i32
    %0 = arith.addi %arg2, %c1_i32 : i32
    %c0_i32 = arith.constant 0 : i32
    %c0_i32_0 = arith.constant 0 : i32
    %c0_i32_1 = arith.constant 0 : i32
    return %arg1, %0, %c0_i32, %c0_i32_0 : i32, i32, i32, i32
  }
  func.func @transform_2(%arg0: i32, %arg1: i32, %arg2: i32) -> (i32, i32, i32, i32) {
    %c2_i32 = arith.constant 2 : i32
    %0 = arith.addi %arg2, %c2_i32 : i32
    %c0_i32 = arith.constant 0 : i32
    %c0_i32_0 = arith.constant 0 : i32
    %c0_i32_1 = arith.constant 0 : i32
    return %arg1, %0, %c0_i32, %c0_i32_0 : i32, i32, i32, i32
  }
  func.func @transform_3(%arg0: i32, %arg1: i32, %arg2: i32) -> (i32, i32, i32, i32) {
    %c3_i32 = arith.constant 3 : i32
    %0 = arith.addi %arg2, %c3_i32 : i32
    %c0_i32 = arith.constant 0 : i32
    %c0_i32_0 = arith.constant 0 : i32
    %c0_i32_1 = arith.constant 0 : i32
    return %arg1, %0, %c0_i32, %c0_i32_0 : i32, i32, i32, i32
  }
  func.func @transform_4(%arg0: i32, %arg1: i32, %arg2: i32) -> (i32, i32, i32, i32) {
    %c0_i32 = arith.constant 0 : i32
    %c0_i32_0 = arith.constant 0 : i32
    %c0_i32_1 = arith.constant 0 : i32
    %c0_i32_2 = arith.constant 0 : i32
    return %c0_i32, %c0_i32_0, %c0_i32_1, %arg0 : i32, i32, i32, i32
  }
  func.func @transform_5(%arg0: i32, %arg1: i32, %arg2: i32) -> (i32, i32) {
    %c0_i32 = arith.constant 0 : i32
    %c0_i32_0 = arith.constant 0 : i32
    return %c0_i32, %arg0 : i32, i32
  }
  func.func @transform_6(%arg0: i32, %arg1: i32, %arg2: i32) -> (i32, i32, i32, i32) {
    %c0_i32 = arith.constant 0 : i32
    %c0_i32_0 = arith.constant 0 : i32
    return %arg1, %arg2, %c0_i32, %arg0 : i32, i32, i32, i32
  }
}

module attributes {stable_mosaic.version = 11 : i64} {
  func.func @_inorm_lrelu_kernel(%arg0: i32, %arg1: i32, %arg2: memref<1x121x128xbf16, #tpu.memory_space<vmem>>, %arg3: memref<1x121x128xbf16, #tpu.memory_space<vmem>>) attributes {dimension_semantics = [#tpu.dimension_semantics<parallel>, #tpu.dimension_semantics<parallel>], iteration_bounds = array<i64: 2, 2>, scalar_prefetch = 0 : i64, scratch_operands = 0 : i64, tpu.core_type = #tpu.core_type<tc>, window_params = [{transform_indices = @transform_0, window_bounds = array<i64: 1, 121, 128>}, {transform_indices = @transform_1, window_bounds = array<i64: 1, 121, 128>}]} {
    %c0 = arith.constant 0 : index
    %c0_0 = arith.constant 0 : index
    %c0_1 = arith.constant 0 : index
    %0 = vector.load %arg2[%c0, %c0_0, %c0_1] : memref<1x121x128xbf16, #tpu.memory_space<vmem>>, vector<1x121x128xbf16>
    %1 = arith.extf %0 : vector<1x121x128xbf16> to vector<1x121x128xf32>
    %cst = arith.constant dense<0.000000e+00> : vector<1x128xf32>
    %2 = vector.multi_reduction <add>, %1, %cst [1] : vector<1x121x128xf32> to vector<1x128xf32>
    %3 = vector.shape_cast %2 : vector<1x128xf32> to vector<1x1x128xf32>
    %cst_2 = arith.constant 1.210000e+02 : f32
    %4 = vector.broadcast %cst_2 : f32 to vector<1x1x128xf32>
    %5 = arith.divf %3, %4 : vector<1x1x128xf32>
    %6 = vector.broadcast %5 : vector<1x1x128xf32> to vector<1x121x128xf32>
    %7 = arith.subf %1, %6 : vector<1x121x128xf32>
    %8 = arith.mulf %7, %7 : vector<1x121x128xf32>
    %cst_3 = arith.constant dense<0.000000e+00> : vector<1x128xf32>
    %9 = vector.multi_reduction <add>, %8, %cst_3 [1] : vector<1x121x128xf32> to vector<1x128xf32>
    %10 = vector.shape_cast %9 : vector<1x128xf32> to vector<1x1x128xf32>
    %cst_4 = arith.constant 1.210000e+02 : f32
    %11 = vector.broadcast %cst_4 : f32 to vector<1x1x128xf32>
    %12 = arith.divf %10, %11 : vector<1x1x128xf32>
    %cst_5 = arith.constant 9.99999974E-6 : f32
    %13 = vector.broadcast %cst_5 : f32 to vector<1x1x128xf32>
    %14 = arith.addf %12, %13 : vector<1x1x128xf32>
    %15 = math.rsqrt %14 : vector<1x1x128xf32>
    %16 = vector.broadcast %15 : vector<1x1x128xf32> to vector<1x121x128xf32>
    %17 = arith.mulf %7, %16 : vector<1x121x128xf32>
    %cst_6 = arith.constant 0.000000e+00 : f32
    %18 = vector.broadcast %cst_6 : f32 to vector<1x121x128xf32>
    %19 = arith.cmpf oge, %17, %18 : vector<1x121x128xf32>
    %cst_7 = arith.constant 2.000000e-01 : f32
    %20 = vector.broadcast %cst_7 : f32 to vector<1x121x128xf32>
    %21 = arith.mulf %20, %17 : vector<1x121x128xf32>
    %22 = arith.select %19, %17, %21 : vector<1x121x128xi1>, vector<1x121x128xf32>
    %23 = arith.truncf %22 : vector<1x121x128xf32> to vector<1x121x128xbf16>
    %c0_8 = arith.constant 0 : index
    %c0_9 = arith.constant 0 : index
    %c0_10 = arith.constant 0 : index
    %24 = vector.load %arg3[%c0_8, %c0_9, %c0_10] : memref<1x121x128xbf16, #tpu.memory_space<vmem>>, vector<1x121x128xbf16>
    tpu.vector_store %arg3[%c0_8, %c0_9, %c0_10], %23 {strides = array<i32>} : memref<1x121x128xbf16, #tpu.memory_space<vmem>>, vector<1x121x128xbf16>,
    return
  }
  func.func @transform_0(%arg0: i32, %arg1: i32) -> (i32, i32, i32) {
    %c0_i32 = arith.constant 0 : i32
    %c0_i32_0 = arith.constant 0 : i32
    return %arg0, %c0_i32, %arg1 : i32, i32, i32
  }
  func.func @transform_1(%arg0: i32, %arg1: i32) -> (i32, i32, i32) {
    %c0_i32 = arith.constant 0 : i32
    %c0_i32_0 = arith.constant 0 : i32
    return %arg0, %c0_i32, %arg1 : i32, i32, i32
  }
}

module attributes {stable_mosaic.version = 11 : i64} {
  func.func @_conv_rows_kernel(%arg0: i32, %arg1: i32, %arg2: i32, %arg3: memref<1x1x15x256xbf16, #tpu.memory_space<vmem>>, %arg4: memref<1x1x15x256xbf16, #tpu.memory_space<vmem>>, %arg5: memref<1x1x15x256xbf16, #tpu.memory_space<vmem>>, %arg6: memref<1x1x15x256xbf16, #tpu.memory_space<vmem>>, %arg7: memref<4x4x256x128xbf16, #tpu.memory_space<vmem>>, %arg8: memref<1x128xf32, #tpu.memory_space<vmem>>, %arg9: memref<1x1x12x128xf32, #tpu.memory_space<vmem>>) attributes {dimension_semantics = [#tpu.dimension_semantics<parallel>, #tpu.dimension_semantics<parallel>, #tpu.dimension_semantics<parallel>], iteration_bounds = array<i64: 1, 2, 12>, scalar_prefetch = 0 : i64, scratch_operands = 0 : i64, tpu.core_type = #tpu.core_type<tc>, window_params = [{transform_indices = @transform_0, window_bounds = array<i64: 1, 1, 15, 256>}, {transform_indices = @transform_1, window_bounds = array<i64: 1, 1, 15, 256>}, {transform_indices = @transform_2, window_bounds = array<i64: 1, 1, 15, 256>}, {transform_indices = @transform_3, window_bounds = array<i64: 1, 1, 15, 256>}, {transform_indices = @transform_4, window_bounds = array<i64: 4, 4, 256, 128>}, {transform_indices = @transform_5, window_bounds = array<i64: 1, 128>}, {transform_indices = @transform_6, window_bounds = array<i64: 1, 1, 12, 128>}]} {
    %cst = arith.constant 0.000000e+00 : f32
    %0 = vector.broadcast %cst : f32 to vector<12x128xf32>
    %c0 = arith.constant 0 : index
    %c0_0 = arith.constant 0 : index
    %c0_1 = arith.constant 0 : index
    %c0_2 = arith.constant 0 : index
    %1 = vector.load %arg3[%c0, %c0_0, %c0_1, %c0_2] : memref<1x1x15x256xbf16, #tpu.memory_space<vmem>>, vector<1x1x12x256xbf16>
    %2 = vector.shape_cast %1 : vector<1x1x12x256xbf16> to vector<12x256xbf16>
    %c0_3 = arith.constant 0 : index
    %c0_4 = arith.constant 0 : index
    %c0_5 = arith.constant 0 : index
    %c0_6 = arith.constant 0 : index
    %3 = vector.load %arg7[%c0_3, %c0_4, %c0_5, %c0_6] : memref<4x4x256x128xbf16, #tpu.memory_space<vmem>>, vector<1x1x256x128xbf16>
    %4 = vector.shape_cast %3 : vector<1x1x256x128xbf16> to vector<256x128xbf16>
    %cst_7 = arith.constant dense<0.000000e+00> : vector<12x128xf32>
    %5 = tpu.matmul %2, %4, %cst_7 {dimension_numbers = #tpu.dot_dimension_numbers<[1], [0], [0], [1], [0, 0, 1, 1], [], []>} : vector<12x256xbf16>, vector<256x128xbf16>, vector<12x128xf32> -> vector<12x128xf32>
    %6 = arith.addf %0, %5 : vector<12x128xf32>
    %c0_8 = arith.constant 0 : index
    %c0_9 = arith.constant 0 : index
    %c1 = arith.constant 1 : index
    %c0_10 = arith.constant 0 : index
    %7 = vector.load %arg3[%c0_8, %c0_9, %c1, %c0_10] : memref<1x1x15x256xbf16, #tpu.memory_space<vmem>>, vector<1x1x12x256xbf16>
    %8 = vector.shape_cast %7 : vector<1x1x12x256xbf16> to vector<12x256xbf16>
    %c0_11 = arith.constant 0 : index
    %c1_12 = arith.constant 1 : index
    %c0_13 = arith.constant 0 : index
    %c0_14 = arith.constant 0 : index
    %9 = vector.load %arg7[%c0_11, %c1_12, %c0_13, %c0_14] : memref<4x4x256x128xbf16, #tpu.memory_space<vmem>>, vector<1x1x256x128xbf16>
    %10 = vector.shape_cast %9 : vector<1x1x256x128xbf16> to vector<256x128xbf16>
    %cst_15 = arith.constant dense<0.000000e+00> : vector<12x128xf32>
    %11 = tpu.matmul %8, %10, %cst_15 {dimension_numbers = #tpu.dot_dimension_numbers<[1], [0], [0], [1], [0, 0, 1, 1], [], []>} : vector<12x256xbf16>, vector<256x128xbf16>, vector<12x128xf32> -> vector<12x128xf32>
    %12 = arith.addf %6, %11 : vector<12x128xf32>
    %c0_16 = arith.constant 0 : index
    %c0_17 = arith.constant 0 : index
    %c2 = arith.constant 2 : index
    %c0_18 = arith.constant 0 : index
    %13 = vector.load %arg3[%c0_16, %c0_17, %c2, %c0_18] : memref<1x1x15x256xbf16, #tpu.memory_space<vmem>>, vector<1x1x12x256xbf16>
    %14 = vector.shape_cast %13 : vector<1x1x12x256xbf16> to vector<12x256xbf16>
    %c0_19 = arith.constant 0 : index
    %c2_20 = arith.constant 2 : index
    %c0_21 = arith.constant 0 : index
    %c0_22 = arith.constant 0 : index
    %15 = vector.load %arg7[%c0_19, %c2_20, %c0_21, %c0_22] : memref<4x4x256x128xbf16, #tpu.memory_space<vmem>>, vector<1x1x256x128xbf16>
    %16 = vector.shape_cast %15 : vector<1x1x256x128xbf16> to vector<256x128xbf16>
    %cst_23 = arith.constant dense<0.000000e+00> : vector<12x128xf32>
    %17 = tpu.matmul %14, %16, %cst_23 {dimension_numbers = #tpu.dot_dimension_numbers<[1], [0], [0], [1], [0, 0, 1, 1], [], []>} : vector<12x256xbf16>, vector<256x128xbf16>, vector<12x128xf32> -> vector<12x128xf32>
    %18 = arith.addf %12, %17 : vector<12x128xf32>
    %c0_24 = arith.constant 0 : index
    %c0_25 = arith.constant 0 : index
    %c3 = arith.constant 3 : index
    %c0_26 = arith.constant 0 : index
    %19 = vector.load %arg3[%c0_24, %c0_25, %c3, %c0_26] : memref<1x1x15x256xbf16, #tpu.memory_space<vmem>>, vector<1x1x12x256xbf16>
    %20 = vector.shape_cast %19 : vector<1x1x12x256xbf16> to vector<12x256xbf16>
    %c0_27 = arith.constant 0 : index
    %c3_28 = arith.constant 3 : index
    %c0_29 = arith.constant 0 : index
    %c0_30 = arith.constant 0 : index
    %21 = vector.load %arg7[%c0_27, %c3_28, %c0_29, %c0_30] : memref<4x4x256x128xbf16, #tpu.memory_space<vmem>>, vector<1x1x256x128xbf16>
    %22 = vector.shape_cast %21 : vector<1x1x256x128xbf16> to vector<256x128xbf16>
    %cst_31 = arith.constant dense<0.000000e+00> : vector<12x128xf32>
    %23 = tpu.matmul %20, %22, %cst_31 {dimension_numbers = #tpu.dot_dimension_numbers<[1], [0], [0], [1], [0, 0, 1, 1], [], []>} : vector<12x256xbf16>, vector<256x128xbf16>, vector<12x128xf32> -> vector<12x128xf32>
    %24 = arith.addf %18, %23 : vector<12x128xf32>
    %c0_32 = arith.constant 0 : index
    %c0_33 = arith.constant 0 : index
    %c0_34 = arith.constant 0 : index
    %c0_35 = arith.constant 0 : index
    %25 = vector.load %arg4[%c0_32, %c0_33, %c0_34, %c0_35] : memref<1x1x15x256xbf16, #tpu.memory_space<vmem>>, vector<1x1x12x256xbf16>
    %26 = vector.shape_cast %25 : vector<1x1x12x256xbf16> to vector<12x256xbf16>
    %c1_36 = arith.constant 1 : index
    %c0_37 = arith.constant 0 : index
    %c0_38 = arith.constant 0 : index
    %c0_39 = arith.constant 0 : index
    %27 = vector.load %arg7[%c1_36, %c0_37, %c0_38, %c0_39] : memref<4x4x256x128xbf16, #tpu.memory_space<vmem>>, vector<1x1x256x128xbf16>
    %28 = vector.shape_cast %27 : vector<1x1x256x128xbf16> to vector<256x128xbf16>
    %cst_40 = arith.constant dense<0.000000e+00> : vector<12x128xf32>
    %29 = tpu.matmul %26, %28, %cst_40 {dimension_numbers = #tpu.dot_dimension_numbers<[1], [0], [0], [1], [0, 0, 1, 1], [], []>} : vector<12x256xbf16>, vector<256x128xbf16>, vector<12x128xf32> -> vector<12x128xf32>
    %30 = arith.addf %24, %29 : vector<12x128xf32>
    %c0_41 = arith.constant 0 : index
    %c0_42 = arith.constant 0 : index
    %c1_43 = arith.constant 1 : index
    %c0_44 = arith.constant 0 : index
    %31 = vector.load %arg4[%c0_41, %c0_42, %c1_43, %c0_44] : memref<1x1x15x256xbf16, #tpu.memory_space<vmem>>, vector<1x1x12x256xbf16>
    %32 = vector.shape_cast %31 : vector<1x1x12x256xbf16> to vector<12x256xbf16>
    %c1_45 = arith.constant 1 : index
    %c1_46 = arith.constant 1 : index
    %c0_47 = arith.constant 0 : index
    %c0_48 = arith.constant 0 : index
    %33 = vector.load %arg7[%c1_45, %c1_46, %c0_47, %c0_48] : memref<4x4x256x128xbf16, #tpu.memory_space<vmem>>, vector<1x1x256x128xbf16>
    %34 = vector.shape_cast %33 : vector<1x1x256x128xbf16> to vector<256x128xbf16>
    %cst_49 = arith.constant dense<0.000000e+00> : vector<12x128xf32>
    %35 = tpu.matmul %32, %34, %cst_49 {dimension_numbers = #tpu.dot_dimension_numbers<[1], [0], [0], [1], [0, 0, 1, 1], [], []>} : vector<12x256xbf16>, vector<256x128xbf16>, vector<12x128xf32> -> vector<12x128xf32>
    %36 = arith.addf %30, %35 : vector<12x128xf32>
    %c0_50 = arith.constant 0 : index
    %c0_51 = arith.constant 0 : index
    %c2_52 = arith.constant 2 : index
    %c0_53 = arith.constant 0 : index
    %37 = vector.load %arg4[%c0_50, %c0_51, %c2_52, %c0_53] : memref<1x1x15x256xbf16, #tpu.memory_space<vmem>>, vector<1x1x12x256xbf16>
    %38 = vector.shape_cast %37 : vector<1x1x12x256xbf16> to vector<12x256xbf16>
    %c1_54 = arith.constant 1 : index
    %c2_55 = arith.constant 2 : index
    %c0_56 = arith.constant 0 : index
    %c0_57 = arith.constant 0 : index
    %39 = vector.load %arg7[%c1_54, %c2_55, %c0_56, %c0_57] : memref<4x4x256x128xbf16, #tpu.memory_space<vmem>>, vector<1x1x256x128xbf16>
    %40 = vector.shape_cast %39 : vector<1x1x256x128xbf16> to vector<256x128xbf16>
    %cst_58 = arith.constant dense<0.000000e+00> : vector<12x128xf32>
    %41 = tpu.matmul %38, %40, %cst_58 {dimension_numbers = #tpu.dot_dimension_numbers<[1], [0], [0], [1], [0, 0, 1, 1], [], []>} : vector<12x256xbf16>, vector<256x128xbf16>, vector<12x128xf32> -> vector<12x128xf32>
    %42 = arith.addf %36, %41 : vector<12x128xf32>
    %c0_59 = arith.constant 0 : index
    %c0_60 = arith.constant 0 : index
    %c3_61 = arith.constant 3 : index
    %c0_62 = arith.constant 0 : index
    %43 = vector.load %arg4[%c0_59, %c0_60, %c3_61, %c0_62] : memref<1x1x15x256xbf16, #tpu.memory_space<vmem>>, vector<1x1x12x256xbf16>
    %44 = vector.shape_cast %43 : vector<1x1x12x256xbf16> to vector<12x256xbf16>
    %c1_63 = arith.constant 1 : index
    %c3_64 = arith.constant 3 : index
    %c0_65 = arith.constant 0 : index
    %c0_66 = arith.constant 0 : index
    %45 = vector.load %arg7[%c1_63, %c3_64, %c0_65, %c0_66] : memref<4x4x256x128xbf16, #tpu.memory_space<vmem>>, vector<1x1x256x128xbf16>
    %46 = vector.shape_cast %45 : vector<1x1x256x128xbf16> to vector<256x128xbf16>
    %cst_67 = arith.constant dense<0.000000e+00> : vector<12x128xf32>
    %47 = tpu.matmul %44, %46, %cst_67 {dimension_numbers = #tpu.dot_dimension_numbers<[1], [0], [0], [1], [0, 0, 1, 1], [], []>} : vector<12x256xbf16>, vector<256x128xbf16>, vector<12x128xf32> -> vector<12x128xf32>
    %48 = arith.addf %42, %47 : vector<12x128xf32>
    %c0_68 = arith.constant 0 : index
    %c0_69 = arith.constant 0 : index
    %c0_70 = arith.constant 0 : index
    %c0_71 = arith.constant 0 : index
    %49 = vector.load %arg5[%c0_68, %c0_69, %c0_70, %c0_71] : memref<1x1x15x256xbf16, #tpu.memory_space<vmem>>, vector<1x1x12x256xbf16>
    %50 = vector.shape_cast %49 : vector<1x1x12x256xbf16> to vector<12x256xbf16>
    %c2_72 = arith.constant 2 : index
    %c0_73 = arith.constant 0 : index
    %c0_74 = arith.constant 0 : index
    %c0_75 = arith.constant 0 : index
    %51 = vector.load %arg7[%c2_72, %c0_73, %c0_74, %c0_75] : memref<4x4x256x128xbf16, #tpu.memory_space<vmem>>, vector<1x1x256x128xbf16>
    %52 = vector.shape_cast %51 : vector<1x1x256x128xbf16> to vector<256x128xbf16>
    %cst_76 = arith.constant dense<0.000000e+00> : vector<12x128xf32>
    %53 = tpu.matmul %50, %52, %cst_76 {dimension_numbers = #tpu.dot_dimension_numbers<[1], [0], [0], [1], [0, 0, 1, 1], [], []>} : vector<12x256xbf16>, vector<256x128xbf16>, vector<12x128xf32> -> vector<12x128xf32>
    %54 = arith.addf %48, %53 : vector<12x128xf32>
    %c0_77 = arith.constant 0 : index
    %c0_78 = arith.constant 0 : index
    %c1_79 = arith.constant 1 : index
    %c0_80 = arith.constant 0 : index
    %55 = vector.load %arg5[%c0_77, %c0_78, %c1_79, %c0_80] : memref<1x1x15x256xbf16, #tpu.memory_space<vmem>>, vector<1x1x12x256xbf16>
    %56 = vector.shape_cast %55 : vector<1x1x12x256xbf16> to vector<12x256xbf16>
    %c2_81 = arith.constant 2 : index
    %c1_82 = arith.constant 1 : index
    %c0_83 = arith.constant 0 : index
    %c0_84 = arith.constant 0 : index
    %57 = vector.load %arg7[%c2_81, %c1_82, %c0_83, %c0_84] : memref<4x4x256x128xbf16, #tpu.memory_space<vmem>>, vector<1x1x256x128xbf16>
    %58 = vector.shape_cast %57 : vector<1x1x256x128xbf16> to vector<256x128xbf16>
    %cst_85 = arith.constant dense<0.000000e+00> : vector<12x128xf32>
    %59 = tpu.matmul %56, %58, %cst_85 {dimension_numbers = #tpu.dot_dimension_numbers<[1], [0], [0], [1], [0, 0, 1, 1], [], []>} : vector<12x256xbf16>, vector<256x128xbf16>, vector<12x128xf32> -> vector<12x128xf32>
    %60 = arith.addf %54, %59 : vector<12x128xf32>
    %c0_86 = arith.constant 0 : index
    %c0_87 = arith.constant 0 : index
    %c2_88 = arith.constant 2 : index
    %c0_89 = arith.constant 0 : index
    %61 = vector.load %arg5[%c0_86, %c0_87, %c2_88, %c0_89] : memref<1x1x15x256xbf16, #tpu.memory_space<vmem>>, vector<1x1x12x256xbf16>
    %62 = vector.shape_cast %61 : vector<1x1x12x256xbf16> to vector<12x256xbf16>
    %c2_90 = arith.constant 2 : index
    %c2_91 = arith.constant 2 : index
    %c0_92 = arith.constant 0 : index
    %c0_93 = arith.constant 0 : index
    %63 = vector.load %arg7[%c2_90, %c2_91, %c0_92, %c0_93] : memref<4x4x256x128xbf16, #tpu.memory_space<vmem>>, vector<1x1x256x128xbf16>
    %64 = vector.shape_cast %63 : vector<1x1x256x128xbf16> to vector<256x128xbf16>
    %cst_94 = arith.constant dense<0.000000e+00> : vector<12x128xf32>
    %65 = tpu.matmul %62, %64, %cst_94 {dimension_numbers = #tpu.dot_dimension_numbers<[1], [0], [0], [1], [0, 0, 1, 1], [], []>} : vector<12x256xbf16>, vector<256x128xbf16>, vector<12x128xf32> -> vector<12x128xf32>
    %66 = arith.addf %60, %65 : vector<12x128xf32>
    %c0_95 = arith.constant 0 : index
    %c0_96 = arith.constant 0 : index
    %c3_97 = arith.constant 3 : index
    %c0_98 = arith.constant 0 : index
    %67 = vector.load %arg5[%c0_95, %c0_96, %c3_97, %c0_98] : memref<1x1x15x256xbf16, #tpu.memory_space<vmem>>, vector<1x1x12x256xbf16>
    %68 = vector.shape_cast %67 : vector<1x1x12x256xbf16> to vector<12x256xbf16>
    %c2_99 = arith.constant 2 : index
    %c3_100 = arith.constant 3 : index
    %c0_101 = arith.constant 0 : index
    %c0_102 = arith.constant 0 : index
    %69 = vector.load %arg7[%c2_99, %c3_100, %c0_101, %c0_102] : memref<4x4x256x128xbf16, #tpu.memory_space<vmem>>, vector<1x1x256x128xbf16>
    %70 = vector.shape_cast %69 : vector<1x1x256x128xbf16> to vector<256x128xbf16>
    %cst_103 = arith.constant dense<0.000000e+00> : vector<12x128xf32>
    %71 = tpu.matmul %68, %70, %cst_103 {dimension_numbers = #tpu.dot_dimension_numbers<[1], [0], [0], [1], [0, 0, 1, 1], [], []>} : vector<12x256xbf16>, vector<256x128xbf16>, vector<12x128xf32> -> vector<12x128xf32>
    %72 = arith.addf %66, %71 : vector<12x128xf32>
    %c0_104 = arith.constant 0 : index
    %c0_105 = arith.constant 0 : index
    %c0_106 = arith.constant 0 : index
    %c0_107 = arith.constant 0 : index
    %73 = vector.load %arg6[%c0_104, %c0_105, %c0_106, %c0_107] : memref<1x1x15x256xbf16, #tpu.memory_space<vmem>>, vector<1x1x12x256xbf16>
    %74 = vector.shape_cast %73 : vector<1x1x12x256xbf16> to vector<12x256xbf16>
    %c3_108 = arith.constant 3 : index
    %c0_109 = arith.constant 0 : index
    %c0_110 = arith.constant 0 : index
    %c0_111 = arith.constant 0 : index
    %75 = vector.load %arg7[%c3_108, %c0_109, %c0_110, %c0_111] : memref<4x4x256x128xbf16, #tpu.memory_space<vmem>>, vector<1x1x256x128xbf16>
    %76 = vector.shape_cast %75 : vector<1x1x256x128xbf16> to vector<256x128xbf16>
    %cst_112 = arith.constant dense<0.000000e+00> : vector<12x128xf32>
    %77 = tpu.matmul %74, %76, %cst_112 {dimension_numbers = #tpu.dot_dimension_numbers<[1], [0], [0], [1], [0, 0, 1, 1], [], []>} : vector<12x256xbf16>, vector<256x128xbf16>, vector<12x128xf32> -> vector<12x128xf32>
    %78 = arith.addf %72, %77 : vector<12x128xf32>
    %c0_113 = arith.constant 0 : index
    %c0_114 = arith.constant 0 : index
    %c1_115 = arith.constant 1 : index
    %c0_116 = arith.constant 0 : index
    %79 = vector.load %arg6[%c0_113, %c0_114, %c1_115, %c0_116] : memref<1x1x15x256xbf16, #tpu.memory_space<vmem>>, vector<1x1x12x256xbf16>
    %80 = vector.shape_cast %79 : vector<1x1x12x256xbf16> to vector<12x256xbf16>
    %c3_117 = arith.constant 3 : index
    %c1_118 = arith.constant 1 : index
    %c0_119 = arith.constant 0 : index
    %c0_120 = arith.constant 0 : index
    %81 = vector.load %arg7[%c3_117, %c1_118, %c0_119, %c0_120] : memref<4x4x256x128xbf16, #tpu.memory_space<vmem>>, vector<1x1x256x128xbf16>
    %82 = vector.shape_cast %81 : vector<1x1x256x128xbf16> to vector<256x128xbf16>
    %cst_121 = arith.constant dense<0.000000e+00> : vector<12x128xf32>
    %83 = tpu.matmul %80, %82, %cst_121 {dimension_numbers = #tpu.dot_dimension_numbers<[1], [0], [0], [1], [0, 0, 1, 1], [], []>} : vector<12x256xbf16>, vector<256x128xbf16>, vector<12x128xf32> -> vector<12x128xf32>
    %84 = arith.addf %78, %83 : vector<12x128xf32>
    %c0_122 = arith.constant 0 : index
    %c0_123 = arith.constant 0 : index
    %c2_124 = arith.constant 2 : index
    %c0_125 = arith.constant 0 : index
    %85 = vector.load %arg6[%c0_122, %c0_123, %c2_124, %c0_125] : memref<1x1x15x256xbf16, #tpu.memory_space<vmem>>, vector<1x1x12x256xbf16>
    %86 = vector.shape_cast %85 : vector<1x1x12x256xbf16> to vector<12x256xbf16>
    %c3_126 = arith.constant 3 : index
    %c2_127 = arith.constant 2 : index
    %c0_128 = arith.constant 0 : index
    %c0_129 = arith.constant 0 : index
    %87 = vector.load %arg7[%c3_126, %c2_127, %c0_128, %c0_129] : memref<4x4x256x128xbf16, #tpu.memory_space<vmem>>, vector<1x1x256x128xbf16>
    %88 = vector.shape_cast %87 : vector<1x1x256x128xbf16> to vector<256x128xbf16>
    %cst_130 = arith.constant dense<0.000000e+00> : vector<12x128xf32>
    %89 = tpu.matmul %86, %88, %cst_130 {dimension_numbers = #tpu.dot_dimension_numbers<[1], [0], [0], [1], [0, 0, 1, 1], [], []>} : vector<12x256xbf16>, vector<256x128xbf16>, vector<12x128xf32> -> vector<12x128xf32>
    %90 = arith.addf %84, %89 : vector<12x128xf32>
    %c0_131 = arith.constant 0 : index
    %c0_132 = arith.constant 0 : index
    %c3_133 = arith.constant 3 : index
    %c0_134 = arith.constant 0 : index
    %91 = vector.load %arg6[%c0_131, %c0_132, %c3_133, %c0_134] : memref<1x1x15x256xbf16, #tpu.memory_space<vmem>>, vector<1x1x12x256xbf16>
    %92 = vector.shape_cast %91 : vector<1x1x12x256xbf16> to vector<12x256xbf16>
    %c3_135 = arith.constant 3 : index
    %c3_136 = arith.constant 3 : index
    %c0_137 = arith.constant 0 : index
    %c0_138 = arith.constant 0 : index
    %93 = vector.load %arg7[%c3_135, %c3_136, %c0_137, %c0_138] : memref<4x4x256x128xbf16, #tpu.memory_space<vmem>>, vector<1x1x256x128xbf16>
    %94 = vector.shape_cast %93 : vector<1x1x256x128xbf16> to vector<256x128xbf16>
    %cst_139 = arith.constant dense<0.000000e+00> : vector<12x128xf32>
    %95 = tpu.matmul %92, %94, %cst_139 {dimension_numbers = #tpu.dot_dimension_numbers<[1], [0], [0], [1], [0, 0, 1, 1], [], []>} : vector<12x256xbf16>, vector<256x128xbf16>, vector<12x128xf32> -> vector<12x128xf32>
    %96 = arith.addf %90, %95 : vector<12x128xf32>
    %c0_140 = arith.constant 0 : index
    %c0_141 = arith.constant 0 : index
    %97 = vector.load %arg8[%c0_140, %c0_141] : memref<1x128xf32, #tpu.memory_space<vmem>>, vector<1x128xf32>
    %98 = vector.broadcast %97 : vector<1x128xf32> to vector<12x128xf32>
    %99 = arith.addf %96, %98 : vector<12x128xf32>
    %cst_142 = arith.constant 0.000000e+00 : f32
    %100 = vector.broadcast %cst_142 : f32 to vector<12x128xf32>
    %101 = arith.subf %100, %99 : vector<12x128xf32>
    %102 = math.exp %101 : vector<12x128xf32>
    %cst_143 = arith.constant 1.000000e+00 : f32
    %103 = vector.broadcast %cst_143 : f32 to vector<12x128xf32>
    %104 = arith.addf %103, %102 : vector<12x128xf32>
    %cst_144 = arith.constant 1.000000e+00 : f32
    %105 = vector.broadcast %cst_144 : f32 to vector<12x128xf32>
    %106 = arith.divf %105, %104 : vector<12x128xf32>
    %c0_145 = arith.constant 0 : index
    %c0_146 = arith.constant 0 : index
    %c0_147 = arith.constant 0 : index
    %c0_148 = arith.constant 0 : index
    %107 = vector.load %arg9[%c0_145, %c0_146, %c0_147, %c0_148] : memref<1x1x12x128xf32, #tpu.memory_space<vmem>>, vector<1x1x12x128xf32>
    %108 = vector.shape_cast %107 : vector<1x1x12x128xf32> to vector<12x128xf32>
    %109 = vector.shape_cast %106 : vector<12x128xf32> to vector<1x1x12x128xf32>
    tpu.vector_store %arg9[%c0_145, %c0_146, %c0_147, %c0_148], %109 {strides = array<i32>} : memref<1x1x12x128xf32, #tpu.memory_space<vmem>>, vector<1x1x12x128xf32>,
    return
  }
  func.func @transform_0(%arg0: i32, %arg1: i32, %arg2: i32) -> (i32, i32, i32, i32) {
    %c0_i32 = arith.constant 0 : i32
    %0 = arith.addi %arg2, %c0_i32 : i32
    %c0_i32_0 = arith.constant 0 : i32
    %c0_i32_1 = arith.constant 0 : i32
    %c0_i32_2 = arith.constant 0 : i32
    return %arg1, %0, %c0_i32_0, %c0_i32_1 : i32, i32, i32, i32
  }
  func.func @transform_1(%arg0: i32, %arg1: i32, %arg2: i32) -> (i32, i32, i32, i32) {
    %c1_i32 = arith.constant 1 : i32
    %0 = arith.addi %arg2, %c1_i32 : i32
    %c0_i32 = arith.constant 0 : i32
    %c0_i32_0 = arith.constant 0 : i32
    %c0_i32_1 = arith.constant 0 : i32
    return %arg1, %0, %c0_i32, %c0_i32_0 : i32, i32, i32, i32
  }
  func.func @transform_2(%arg0: i32, %arg1: i32, %arg2: i32) -> (i32, i32, i32, i32) {
    %c2_i32 = arith.constant 2 : i32
    %0 = arith.addi %arg2, %c2_i32 : i32
    %c0_i32 = arith.constant 0 : i32
    %c0_i32_0 = arith.constant 0 : i32
    %c0_i32_1 = arith.constant 0 : i32
    return %arg1, %0, %c0_i32, %c0_i32_0 : i32, i32, i32, i32
  }
  func.func @transform_3(%arg0: i32, %arg1: i32, %arg2: i32) -> (i32, i32, i32, i32) {
    %c3_i32 = arith.constant 3 : i32
    %0 = arith.addi %arg2, %c3_i32 : i32
    %c0_i32 = arith.constant 0 : i32
    %c0_i32_0 = arith.constant 0 : i32
    %c0_i32_1 = arith.constant 0 : i32
    return %arg1, %0, %c0_i32, %c0_i32_0 : i32, i32, i32, i32
  }
  func.func @transform_4(%arg0: i32, %arg1: i32, %arg2: i32) -> (i32, i32, i32, i32) {
    %c0_i32 = arith.constant 0 : i32
    %c0_i32_0 = arith.constant 0 : i32
    %c0_i32_1 = arith.constant 0 : i32
    %c0_i32_2 = arith.constant 0 : i32
    return %c0_i32, %c0_i32_0, %c0_i32_1, %arg0 : i32, i32, i32, i32
  }
  func.func @transform_5(%arg0: i32, %arg1: i32, %arg2: i32) -> (i32, i32) {
    %c0_i32 = arith.constant 0 : i32
    %c0_i32_0 = arith.constant 0 : i32
    return %c0_i32, %arg0 : i32, i32
  }
  func.func @transform_6(%arg0: i32, %arg1: i32, %arg2: i32) -> (i32, i32, i32, i32) {
    %c0_i32 = arith.constant 0 : i32
    %c0_i32_0 = arith.constant 0 : i32
    return %arg1, %arg2, %c0_i32, %arg0 : i32, i32, i32, i32
  }
}

</mosaic_0001>

<bundles_post_ra>
// kernel: discriminator_wavelet_forward.7
= control target key start
LH: loop header
LB: loop body
LE: loop exit
PB: predicated region body
PF: predicated region fallthrough
CT: control target
= control target key end

     0   :  { %s787_s15 = smov 0   ;;  %s1054_s0 = inlined_call_operand.vmem [shape: f32[2,8,8,3], index: 0, kind: input, shape index: {}]   ;;  %s1055_s1 = inlined_call_operand.vmem [shape: f32[2,8,8,3], index: 1, kind: input, shape index: {}]   ;;  %s1056_s2 = inlined_call_operand.vmem [shape: f32[2,8,8,3], index: 2, kind: input, shape index: {}]   ;;  %s1057_s3 = inlined_call_operand.vmem [shape: f32[2,8,8,3], index: 3, kind: input, shape index: {}]   ;;  %s1058_s4 = inlined_call_operand.vmem [shape: bf16[2,8,8,9], index: 4, kind: output, shape index: {}]  }
   0x1 LB: > { %s688_s16 = sadd.s32 4294967295, %s758_s15   ;;  %p692_p0 = scmp.ge.s32.totalorder %s758_s15, 1  ;;  %s758_s15 = sphi %s787_s15, %s14_s15  }
   0x2   : > { %p192_p1 = scmp.lt.s32.totalorder %s758_s15, 3 }
   0x4   : > { %p193_p2 = pnand %p692_p0, %p192_p1 }
   0x5   : > { %p233_p3 = scmp.lt.s32.totalorder (!%p193_p2), %s688_s16, 1  ;;  %s760_s30 = smov (!%p193_p2), 6   ;;  %vm426_vm0 = vcmask (!%p193_p2), 19456   ;;  %vm507_vm1 = vcmask (!%p193_p2), 44056   ;;  %vm588_vm2 = vcmask (!%p193_p2), 68656  }
   0x6   : > { %196 = sbr.rel (%p193_p2) target bundleno = 181 (0xb5), region = 36  ;;  %s761_s5 = smov (!%p193_p2), 3  }
   0xd   : > { %s1060_s16 = smov (!%p233_p3, %s688_s16), 1 }
   0xe   : > { %s721_s17 = sshll.u32 %s1060_s16, 6  ;;  %s725_s6 = sshll.u32 %s1060_s16, 5 }
   0xf   : > { %s801_s20 = scalar_lea.vmem %s1054_s0, %s721_s17  ;;  %s806_s23 = scalar_lea.vmem %s1055_s1, %s721_s17 }
  0x10   : > { %s811_s26 = scalar_lea.vmem %s1056_s2, %s721_s17  ;;  %s816_s29 = scalar_lea.vmem %s1057_s3, %s721_s17  ;;  %v259_v0 = vld [vmem:[%s801_s20 + $0x8] sm:$0xff]  ;;  %v258_v2 = vld [vmem:[%s801_s20] sm:$0xff]  ;;  %v261_v13 = vld [vmem:[%s801_s20 + $0x18] sm:$0xff] }
  0x11   : > { %v275_v1 = vld [vmem:[%s806_s23 + $0x8] sm:$0xff]  ;;  %v821_v3 = vmul.f32 0.5, %v259_v0  ;;  %v266_v7 = vmul.f32 0.5, %v258_v2  ;;  %v274_v8 = vld [vmem:[%s806_s23] sm:$0xff]  ;;  %v277_v18 = vld [vmem:[%s806_s23 + $0x18] sm:$0xff]  ;;  %v838_v23 = vmul.f32 0.5, %v261_v13  ;;  %s982_s9 = scalar_lea.vmem %s1058_s4, %s725_s6 }
  0x12   : > { %v283_v4 = vmul.f32 0.5, %v275_v1  ;;  %v291_v5 = vld [vmem:[%s811_s26 + $0x8] sm:$0xff]  ;;  %v282_v10 = vmul.f32 0.5, %v274_v8  ;;  %v290_v11 = vld [vmem:[%s811_s26] sm:$0xff]  ;;  %v293_v19 = vld [vmem:[%s811_s26 + $0x18] sm:$0xff]  ;;  %v840_v24 = vmul.f32 0.5, %v277_v18 }
  0x13   : > { %v307_v6 = vld [vmem:[%s816_s29 + $0x8] sm:$0xff]  ;;  %v826_v9 = vmul.f32 0.5, %v291_v5  ;;  %v306_v12 = vld [vmem:[%s816_s29] sm:$0xff]  ;;  %v323_v16 = vsub.f32 0.0, %v821_v3  ;;  %v298_v17 = vmul.f32 0.5, %v290_v11  ;;  %v309_v20 = vld [vmem:[%s816_s29 + $0x18] sm:$0xff] }
  0x14   : > { %v831_v14 = vmul.f32 0.5, %v307_v6  ;;  %v379_v15 = vsub.f32 %v821_v3, %v283_v4  ;;  %v314_v21 = vmul.f32 0.5, %v306_v12  ;;  %v378_v22 = vsub.f32 %v266_v7, %v282_v10  ;;  %v260_v25 = vld [vmem:[%s801_s20 + $0x10] sm:$0xff]  ;;  %v263_v62 = vld [vmem:[%s801_s20 + $0x28] sm:$0xff] }
  0x15   : > { %v276_v26 = vld [vmem:[%s806_s23 + $0x10] sm:$0xff]  ;;  %v331_v29 = vsub.f32 %v323_v16, %v283_v4  ;;  %v322_v30 = vsub.f32 0.0, %v266_v7  ;;  %v846_v31 = vmul.f32 0.5, %v293_v19  ;;  %v848_v33 = vmul.f32 0.5, %v309_v20  ;;  %v279_v3 = vld [vmem:[%s806_s23 + $0x28] sm:$0xff]  ;;  %v262_v20 = vld [vmem:[%s801_s20 + $0x20] sm:$0xff] }
  0x16   : > { %v292_v27 = vld [vmem:[%s811_s26 + $0x10] sm:$0xff]  ;;  %v387_v28 = vsub.f32 %v379_v15, %v826_v9  ;;  %v386_v32 = vsub.f32 %v378_v22, %v298_v17  ;;  %v381_v34 = vsub.f32 %v838_v23, %v840_v24  ;;  %v852_v35 = vmul.f32 0.5, %v260_v25  ;;  %v311_v19 = vld [vmem:[%s816_s29 + $0x28] sm:$0xff] }
  0x17   : > { %v308_v36 = vld [vmem:[%s816_s29 + $0x10] sm:$0xff]  ;;  %v330_v38 = vsub.f32 %v322_v30, %v282_v10  ;;  %v856_v39 = vmul.f32 0.5, %v276_v26  ;;  %v858_v40 = vmul.f32 0.5, %v292_v27  ;;  %v339_v41 = vadd.f32 %v331_v29, %v826_v9 }
  0x18   : > { %v395_v37 = vadd.f32 %v387_v28, %v831_v14  ;;  %v394_v42 = vadd.f32 %v386_v32, %v314_v21  ;;  %v389_v43 = vsub.f32 %v381_v34, %v846_v31  ;;  %v862_v45 = vmul.f32 0.5, %v308_v36 }
  0x19   : > { %v380_v46 = vsub.f32 %v852_v35, %v856_v39  ;;  %v324_v47 = vsub.f32 0.0, %v852_v35  ;;  %v354_v50 = vadd.f32 %v322_v30, %v282_v10  ;;  %v338_v52 = vadd.f32 %v330_v38, %v298_v17  ;;  %v295_v10 = vld [vmem:[%s811_s26 + $0x28] sm:$0xff]  ;;  %v294_v30 = vld [vmem:[%s811_s26 + $0x20] sm:$0xff] }
  0x1a   : > { %v517_v44 = vmul.f32 0.5, %v395_v37  ;;  %v516_v48 = vmul.f32 0.5, %v394_v42  ;;  %v397_v49 = vadd.f32 %v389_v43, %v848_v33  ;;  %v347_v54 = vadd.f32 %v339_v41, %v831_v14  ;;  %v310_v43 = vld [vmem:[%s816_s29 + $0x20] sm:$0xff] }
  0x1b   : > { %v388_v53 = vsub.f32 %v380_v46, %v858_v40  ;;  %v356_v57 = vadd.f32 %v324_v47, %v856_v39  ;;  %v362_v60 = vsub.f32 %v354_v50, %v298_v17  ;;  %v325_v61 = vsub.f32 0.0, %v838_v23 }
  0x1c   : > { %v525_v51 = vadd.f32 0.5, %v517_v44  ;;  %v524_v55 = vadd.f32 0.5, %v516_v48  ;;  %v519_v56 = vmul.f32 0.5, %v397_v49  ;;  %v355_v2 = vadd.f32 %v323_v16, %v283_v4  ;;  %v281_v44 = vld [vmem:[%s806_s23 + $0x38] sm:$0xff] }
  0x1d   : > { %v396_v59 = vadd.f32 %v388_v53, %v862_v45  ;;  %v364_v1 = vsub.f32 %v356_v57, %v858_v40  ;;  %v346_v5 = vadd.f32 %v338_v52, %v314_v21  ;;  %v370_v7 = vadd.f32 %v362_v60, %v314_v21  ;;  %v280_v57 = vld [vmem:[%s806_s23 + $0x30] sm:$0xff]  ;;  %v313_v60 = vld [vmem:[%s816_s29 + $0x38] sm:$0xff] }
  0x1e   : > { %v735_v58 = vpack.c.bf16 %v525_v51, %v525_v51  ;;  %v734_v63 = vpack.c.bf16 %v524_v55, %v524_v55  ;;  %v527_v0 = vadd.f32 0.5, %v519_v56  ;;  %v357_v8 = vadd.f32 %v325_v61, %v840_v24  ;;  %v297_v55 = vld [vmem:[%s811_s26 + $0x38] sm:$0xff]  ;;  %v264_v56 = vld [vmem:[%s801_s20 + $0x30] sm:$0xff] }
  0x1f   : > { %v518_v6 = vmul.f32 0.5, %v396_v59  ;;  %v372_v12 = vadd.f32 %v364_v1, %v862_v45  ;;  %v363_v4 = vsub.f32 %v355_v2, %v826_v9  ;;  %v882_v13 = vmul.f32 0.5, %v263_v62  ;;  %v278_v9 = vld [vmem:[%s806_s23 + $0x20] sm:$0xff]  ;;  %v296_v2 = vld [vmem:[%s811_s26 + $0x30] sm:$0xff] }
  0x20   : > { %566 = vrot.lane.b32.xlu1 %v735_v58, %s760_s30  ;;  %564 = vrot.lane.b32.xlu0 %v734_v63, %s760_s30  ;;  %v737_v11 = vpack.c.bf16 %v527_v0, %v527_v0  ;;  %v435_v16 = vmul.f32 0.5, %v370_v7  ;;  %v365_v17 = vsub.f32 %v357_v8, %v846_v31  ;;  %v885_v18 = vmul.f32 0.5, %v279_v3 }
  0x21   : > { %v526_v15 = vadd.f32 0.5, %v518_v6  ;;  %v889_v21 = vmul.f32 0.5, %v347_v54  ;;  %v437_v22 = vmul.f32 0.5, %v372_v12  ;;  %v371_v23 = vadd.f32 %v363_v4, %v831_v14  ;;  %v265_v14 = vld [vmem:[%s801_s20 + $0x38] sm:$0xff] }
  0x22   : > { %v892_v25 = vmul.f32 0.5, %v295_v10  ;;  %v443_v27 = vadd.f32 0.5, %v435_v16  ;;  %v373_v28 = vadd.f32 %v365_v17, %v848_v33  ;;  %v327_v29 = vsub.f32 0.0, %v882_v13  ;;  %v312_v10 = vld [vmem:[%s816_s29 + $0x30] sm:$0xff] }
  0x23   : > { %v736_v26 = vpack.c.bf16 %v526_v15, %v526_v15  ;;  %v445_v32 = vadd.f32 0.5, %v437_v22  ;;  %v436_v34 = vmul.f32 0.5, %v371_v23  ;;  %v899_v35 = vmul.f32 0.5, %v311_v19 }
  0x24   : > { %570 = vrot.lane.b32.xlu1 %v737_v11, %s760_s30  ;;  %v901_v36 = vmul.f32 0.5, %v262_v20  ;;  %v726_v37 = vpack.c.bf16 %v443_v27, %v443_v27  ;;  %v438_v38 = vmul.f32 0.5, %v373_v28  ;;  %v359_v41 = vadd.f32 %v327_v29, %v885_v18 }
  0x25   : > { %568 = vrot.lane.b32.xlu0 %v736_v26, %s760_s30  ;;  %v908_v42 = vmul.f32 0.5, %v278_v9  ;;  %v332_v46 = vsub.f32 %v324_v47, %v856_v39  ;;  %v728_v48 = vpack.c.bf16 %v445_v32, %v445_v32  ;;  %v444_v49 = vadd.f32 0.5, %v436_v34 }
  0x26   : > { %v913_v50 = vmul.f32 0.5, %v294_v30  ;;  %v446_v51 = vadd.f32 0.5, %v438_v38  ;;  %v367_v52 = vsub.f32 %v359_v41, %v892_v25  ;;  %v326_v53 = vsub.f32 0.0, %v901_v36 }
  0x27   : > { %v917_v54 = vmul.f32 0.5, %v265_v14  ;;  %v922_v58 = vmul.f32 0.5, %v346_v5  ;;  %v926_v39 = vsub.f32 %v325_v61, %v840_v24  ;;  %v928_v47 = vmul.f32 0.5, %v310_v43 }
  0x28   : > { %487 = vrot.lane.b32.xlu1 %v728_v48, %s761_s5  ;;  %v289_v59 = vmul.f32 0.5, %v281_v44  ;;  %v729_v62 = vpack.c.bf16 %v446_v51, %v446_v51  ;;  %v727_v63 = vpack.c.bf16 %v444_v49, %v444_v49  ;;  %v375_v0 = vadd.f32 %v367_v52, %v899_v35 }
  0x29   : > { %483 = vrot.lane.b32.xlu0 %v726_v37, %s761_s5  ;;  %v358_v1 = vadd.f32 %v326_v53, %v908_v42  ;;  %v937_v3 = vmul.f32 0.5, %v297_v55  ;;  %v329_v24 = vsub.f32 0.0, %v917_v54  ;;  %v272_v61 = vmul.f32 0.5, %v264_v56 }
  0x2a   : > { %v288_v5 = vmul.f32 0.5, %v280_v57  ;;  %v440_v6 = vmul.f32 0.5, %v375_v0  ;;  %v941_v8 = vmul.f32 0.5, %v313_v60  ;;  %v383_v11 = vsub.f32 %v882_v13, %v885_v18 }
  0x2b   : > { %v366_v7 = vsub.f32 %v358_v1, %v913_v50  ;;  %v361_v12 = vadd.f32 %v329_v24, %v289_v59  ;;  %v947_v4 = vmul.f32 0.5, %v296_v2  ;;  %v328_v15 = vsub.f32 0.0, %v272_v61 }
  0x2c   : > { %489 = vrot.lane.b32.xlu1 %v729_v62, %s761_s5  ;;  %v382_v16 = vsub.f32 %v901_v36, %v908_v42  ;;  %v448_v17 = vadd.f32 0.5, %v440_v6  ;;  %v391_v20 = vsub.f32 %v383_v11, %v892_v25  ;;  %v385_v22 = vsub.f32 %v917_v54, %v289_v59 }
  0x2d   : > { %485 = vrot.lane.b32.xlu0 %v727_v63, %s761_s5  ;;  %v374_v19 = vadd.f32 %v366_v7, %v928_v47  ;;  %v369_v23 = vsub.f32 %v361_v12, %v937_v3  ;;  %v956_v9 = vmul.f32 0.5, %v312_v10  ;;  %v360_v26 = vadd.f32 %v328_v15, %v288_v5 }
  0x2e   : > { %v390_v27 = vsub.f32 %v382_v16, %v913_v50  ;;  %v731_v28 = vpack.c.bf16 %v448_v17, %v448_v17  ;;  %v399_v32 = vadd.f32 %v391_v20, %v899_v35  ;;  %v393_v34 = vsub.f32 %v385_v22, %v937_v3 }
  0x2f   : > { %v439_v30 = vmul.f32 0.5, %v374_v19  ;;  %v377_v14 = vadd.f32 %v369_v23, %v941_v8  ;;  %v368_v37 = vsub.f32 %v360_v26, %v947_v4  ;;  %v384_v41 = vsub.f32 %v272_v61, %v288_v5 }
  0x30   : > { %v398_v38 = vadd.f32 %v390_v27, %v928_v47  ;;  %493 = vrot.lane.b32.xlu1 %v731_v28, %s761_s5  ;;  %v521_v44 = vmul.f32 0.5, %v399_v32  ;;  %v401_v48 = vadd.f32 %v393_v34, %v941_v8  ;;  %v340_v49 = vadd.f32 %v332_v46, %v858_v40 }
  0x31   : > { %v447_v43 = vadd.f32 0.5, %v439_v30  ;;  %v442_v51 = vmul.f32 0.5, %v377_v14  ;;  %v376_v52 = vadd.f32 %v368_v37, %v956_v9  ;;  %v392_v55 = vsub.f32 %v384_v41, %v947_v4 }
  0x32   : > { %v520_v54 = vmul.f32 0.5, %v398_v38  ;;  %v529_v57 = vadd.f32 0.5, %v521_v44  ;;  %v523_v60 = vmul.f32 0.5, %v401_v48  ;;  %v348_v62 = vadd.f32 %v340_v49, %v862_v45 }
  0x33   : > { %v730_v56 = vpack.c.bf16 %v447_v43, %v447_v43  ;;  %v450_v63 = vadd.f32 0.5, %v442_v51  ;;  %v441_v0 = vmul.f32 0.5, %v376_v52  ;;  %v400_v2 = vadd.f32 %v392_v55, %v956_v9 }
  0x34   : > { %v528_v1 = vadd.f32 0.5, %v520_v54  ;;  %v335_v40 = vsub.f32 %v327_v29, %v885_v18  ;;  %v334_v46 = vsub.f32 %v326_v53, %v908_v42  ;;  %v337_v61 = vsub.f32 %v329_v24, %v289_v59 }
  0x35   : > { %491 = vrot.lane.b32.xlu0 %v730_v56, %s761_s5  ;;  %v404_v6 = vmul.f32 0.5, %v348_v62  ;;  %v733_v7 = vpack.c.bf16 %v450_v63, %v450_v63  ;;  %v336_v45 = vsub.f32 %v328_v15, %v288_v5  ;;  %v449_v10 = vadd.f32 0.5, %v441_v0 }
  0x36   : > { %v522_v11 = vmul.f32 0.5, %v400_v2  ;;  %v739_v12 = vpack.c.bf16 %v529_v57, %v529_v57  ;;  %v531_v16 = vadd.f32 0.5, %v523_v60  ;;  %v738_v18 = vpack.c.bf16 %v528_v1, %v528_v1 }
  0x37   : > { %v412_v17 = vadd.f32 0.5, %v404_v6  ;;  %497 = vrot.lane.b32.xlu1 %v733_v7, %s761_s5  ;;  %v732_v13 = vpack.c.bf16 %v449_v10, %v449_v10  ;;  %v410_v29 = vadd.f32 0.5, %v922_v58  ;;  %v341_v36 = vadd.f32 %v926_v39, %v846_v31 }
  0x38   : > { %v411_v53 = vadd.f32 0.5, %v889_v21  ;;  %v343_v59 = vadd.f32 %v335_v40, %v892_v25  ;;  %v342_v24 = vadd.f32 %v334_v46, %v913_v50  ;;  %v530_v5 = vadd.f32 0.5, %v522_v11 }
  0x39   : > { %v420_v42 = vpack.c.bf16 %v412_v17, %v412_v17  ;;  %495 = vrot.lane.b32.xlu0 %v732_v13, %s761_s5  ;;  %v418_v15 = vpack.c.bf16 %v410_v29, %v410_v29  ;;  %v349_v19 = vadd.f32 %v341_v36, %v848_v33  ;;  %v345_v58 = vadd.f32 %v337_v61, %v937_v3 }
  0x3a   : > { %v419_v31 = vpack.c.bf16 %v411_v53, %v411_v53  ;;  %v351_v39 = vadd.f32 %v343_v59, %v899_v35  ;;  %v350_v21 = vadd.f32 %v342_v24, %v928_v47  ;;  %v344_v25 = vadd.f32 %v336_v45, %v947_v4 }
  0x3b   : > { %429 = vst.msk [vmem:[%s982_s9 + $0x8] sm:$0xf] %vm426_vm0, %v420_v42  ;;  %574 = vrot.lane.b32.xlu1 %v739_v12, %s760_s30  ;;  %v741_v50 = vpack.c.bf16 %v531_v16, %v531_v16  ;;  %427 = vst.msk [vmem:[%s982_s9] sm:$0xf] %vm426_vm0, %v418_v15  ;;  %v405_v20 = vmul.f32 0.5, %v349_v19  ;;  %v353_v22 = vadd.f32 %v345_v58, %v941_v8 }
  0x3c   : > { %428 = vst.msk [vmem:[%s982_s9 + $0x4] sm:$0xf] %vm426_vm0, %v419_v31  ;;  %v407_v33 = vmul.f32 0.5, %v351_v39  ;;  %v406_v3 = vmul.f32 0.5, %v350_v21  ;;  %v352_v23 = vadd.f32 %v344_v25, %v956_v9  ;;  %v740_v35 = vpack.c.bf16 %v530_v5, %v530_v5 }
  0x3d   : > { %572 = vrot.lane.b32.xlu0 %v738_v18, %s760_s30  ;;  %v413_v47 = vadd.f32 0.5, %v405_v20  ;;  %v409_v4 = vmul.f32 0.5, %v353_v22 }
  0x3e   : > { %v415_v26 = vadd.f32 0.5, %v407_v33  ;;  %v414_v27 = vadd.f32 0.5, %v406_v3  ;;  %v408_v28 = vmul.f32 0.5, %v352_v23 }
  0x3f   : > { %578 = vrot.lane.b32.xlu1 %v741_v50, %s760_s30  ;;  %v421_v8 = vpack.c.bf16 %v413_v47, %v413_v47  ;;  %v417_v30 = vadd.f32 0.5, %v409_v4 }
  0x40   : > { %v423_v32 = vpack.c.bf16 %v415_v26, %v415_v26  ;;  %v422_v34 = vpack.c.bf16 %v414_v27, %v414_v27  ;;  %v416_v14 = vadd.f32 0.5, %v408_v28 }
  0x41   : > { %576 = vrot.lane.b32.xlu0 %v740_v35, %s760_s30  ;;  %430 = vst.msk [vmem:[%s982_s9 + $0xc] sm:$0xf] %vm426_vm0, %v421_v8  ;;  %v425_v9 = vpack.c.bf16 %v417_v30, %v417_v30 }
  0x42   : > { %432 = vst.msk [vmem:[%s982_s9 + $0x14] sm:$0xf] %vm426_vm0, %v423_v32  ;;  %431 = vst.msk [vmem:[%s982_s9 + $0x10] sm:$0xf] %vm426_vm0, %v422_v34  ;;  %v424_v37 = vpack.c.bf16 %v416_v14, %v416_v14 }
  0x43   : > { %434 = vst.msk [vmem:[%s982_s9 + $0x1c] sm:$0xf] %vm426_vm0, %v425_v9 }
  0x44   : > { %433 = vst.msk [vmem:[%s982_s9 + $0x18] sm:$0xf] %vm426_vm0, %v424_v37 }
  0x92   : > { %v567_v38 = vpop.permute.xlu1 %566  ;;  %v565_v41 = vpop.permute.xlu0 %564 }
  0x96   : > { %v571_v43 = vpop.permute.xlu1 %570 }
  0x97   : > { %v569_v44 = vpop.permute.xlu0 %568 }
  0x9a   : > { %v488_v48 = vpop.permute.xlu1 %487 }
  0x9b   : > { %510 = vst.msk [vmem:[%s982_s9 + $0x8] sm:$0xf] %vm507_vm1, %v488_v48  ;;  %v484_v49 = vpop.permute.xlu0 %483 }
  0x9c   : > { %591 = vst.msk [vmem:[%s982_s9 + $0x8] sm:$0xf] %vm588_vm2, %v569_v44 }
  0x9d   : > { %508 = vst.msk [vmem:[%s982_s9] sm:$0xf] %vm507_vm1, %v484_v49 }
  0x9e   : > { %589 = vst.msk [vmem:[%s982_s9] sm:$0xf] %vm588_vm2, %v565_v41  ;;  %v490_v51 = vpop.permute.xlu1 %489 }
  0x9f   : > { %511 = vst.msk [vmem:[%s982_s9 + $0xc] sm:$0xf] %vm507_vm1, %v490_v51  ;;  %v486_v52 = vpop.permute.xlu0 %485 }
  0xa0   : > { %592 = vst.msk [vmem:[%s982_s9 + $0xc] sm:$0xf] %vm588_vm2, %v571_v43 }
  0xa1   : > { %509 = vst.msk [vmem:[%s982_s9 + $0x4] sm:$0xf] %vm507_vm1, %v486_v52 }
  0xa2   : > { %590 = vst.msk [vmem:[%s982_s9 + $0x4] sm:$0xf] %vm588_vm2, %v567_v38  ;;  %v494_v54 = vpop.permute.xlu1 %493 }
  0xa3   : > { %513 = vst.msk [vmem:[%s982_s9 + $0x14] sm:$0xf] %vm507_vm1, %v494_v54 }
  0xa7   : > { %v492_v55 = vpop.permute.xlu0 %491 }
  0xa8   : > { %512 = vst.msk [vmem:[%s982_s9 + $0x10] sm:$0xf] %vm507_vm1, %v492_v55 }
  0xa9   : > { %v498_v56 = vpop.permute.xlu1 %497 }
  0xaa   : > { %515 = vst.msk [vmem:[%s982_s9 + $0x1c] sm:$0xf] %vm507_vm1, %v498_v56 }
  0xab   : > { %v496_v57 = vpop.permute.xlu0 %495 }
  0xac   : > { %514 = vst.msk [vmem:[%s982_s9 + $0x18] sm:$0xf] %vm507_vm1, %v496_v57 }
  0xad   : > { %v575_v60 = vpop.permute.xlu1 %574 }
  0xae   : > { %594 = vst.msk [vmem:[%s982_s9 + $0x14] sm:$0xf] %vm588_vm2, %v575_v60 }
  0xaf   : > { %v573_v62 = vpop.permute.xlu0 %572 }
  0xb0   : > { %593 = vst.msk [vmem:[%s982_s9 + $0x10] sm:$0xf] %vm588_vm2, %v573_v62 }
  0xb1   : > { %v579_v63 = vpop.permute.xlu1 %578 }
  0xb2   : > { %596 = vst.msk [vmem:[%s982_s9 + $0x1c] sm:$0xf] %vm588_vm2, %v579_v63 }
  0xb3   : > { %v577_v0 = vpop.permute.xlu0 %576 }
  0xb4   : > { %595 = vst.msk [vmem:[%s982_s9 + $0x18] sm:$0xf] %vm588_vm2, %v577_v0 }
  0xb5 PF: > { %s14_s15 = sadd.s32 1, %s758_s15  }
  0xb6   : > { %p11_p4 = scmp.ge.s32.totalorder %s14_s15, 4  }
  0xb8   :  { %13 = sbr.rel (!%p11_p4) target bundleno = 1 (0x1), region = 75 }

// kernel: discriminator_wavelet_forward.10
= control target key start
LH: loop header
LB: loop body
LE: loop exit
PB: predicated region body
PF: predicated region fallthrough
CT: control target
= control target key end

     0   :  { %s605_s6 = smov 0   ;;  %s607_s7 = smov 0   ;;  %s676_s0 = inlined_call_operand.vmem [shape: bf16[2,100,128], index: 0, kind: input, shape index: {}]   ;;  %s677_s1 = inlined_call_operand.vmem [shape: bf16[2,100,128], index: 1, kind: output, shape index: {}]  }
   0x1   :  { %s609_s8 = smov 0  }
   0x2 LB: > { %s23_s9 = sadd.s32 1, %s589_s7  ;;  %p449_p0 = scmp.ge.s32.totalorder %s593_s8, 1  ;;  %s593_s8 = sphi %s609_s8, %s11_s8   ;;  %s589_s7 = sphi %s607_s7, %s679_s7   ;;  %s585_s6 = sphi %s605_s6, %s678_s6  }
   0x3   : > { %p25_p1 = scmp.ge.s32.totalorder %s23_s9, 2  ;;  %p106_p2 = scmp.lt.s32.totalorder %s593_s8, 3 }
   0x5   : > { %s681_s9 = smov (%p25_p1, %s23_s9), 0  ;;  %p107_p3 = pnand %p449_p0, %p106_p2 }
   0x6   : > { %p132_p4 = scmp.lt.s32.totalorder (!%p107_p3), %s585_s6, 1  ;;  %vm185_vm0 = vcmask (!%p107_p3), 1043456  }
   0x7   : > { %110 = sbr.rel (%p107_p3) target bundleno = 133 (0x85), region = 24 }
   0xe   : > { %s683_s6 = smov (!%p132_p4, %s585_s6), 1 }
   0xf   : > { %s544_s10 = smul.u32 52, %s683_s6 }
  0x11   : > { %s139_s13 = scalar_lea.vmem %s676_s0, %s544_s10  ;;  %s654_s16 = scalar_lea.vmem %s677_s1, %s544_s10 }
  0x12   : > { %v481_v0 = vld [vmem:[%s139_s13] sm:$0xff]   ;;  %v534_v1 = vld [vmem:[%s139_s13 + $0x8] sm:$0xff]   ;;  %v535_v5 = vld [vmem:[%s139_s13 + $0x10] sm:$0xff]  }
  0x13   : > { %v482_v2 = vunpack.c.l.bf16 %v481_v0  ;;  %v483_v3 = vunpack.c.h.bf16 %v481_v0  ;;  %v486_v4 = vunpack.c.l.bf16 %v534_v1  ;;  %v487_v6 = vunpack.c.h.bf16 %v534_v1  ;;  %v536_v10 = vld [vmem:[%s139_s13 + $0x18] sm:$0xff]   ;;  %v537_v15 = vld [vmem:[%s139_s13 + $0x20] sm:$0xff]   ;;  %v538_v20 = vld [vmem:[%s139_s13 + $0x28] sm:$0xff]  }
  0x14   : > { %v490_v8 = vunpack.c.l.bf16 %v535_v5  ;;  %v491_v11 = vunpack.c.h.bf16 %v535_v5  ;;  %v494_v13 = vunpack.c.l.bf16 %v536_v10  ;;  %v495_v16 = vunpack.c.h.bf16 %v536_v10  ;;  %v160_v22 = vld [vmem:[%s139_s13 + $0x30] sm:$0x3] }
  0x15   : > { %v174_v7 = vadd.f32 %v483_v3, %v482_v2  ;;  %v498_v18 = vunpack.c.l.bf16 %v537_v15  ;;  %v499_v21 = vunpack.c.h.bf16 %v537_v15  ;;  %v502_v24 = vunpack.c.l.bf16 %v538_v20 }
  0x16   : > { %v173_v26 = vunpack.c.l.bf16 %v160_v22  ;;  %v503_v27 = vunpack.c.h.bf16 %v538_v20 }
  0x17   : > { %v175_v9 = vadd.f32 %v486_v4, %v174_v7 }
  0x18   : > { %v186_v30 = vsel %vm185_vm0, %v173_v26, 0.0 }
  0x19   : > { %v176_v12 = vadd.f32 %v487_v6, %v175_v9 }
  0x1b   : > { %v177_v14 = vadd.f32 %v490_v8, %v176_v12 }
  0x1d   : > { %v178_v17 = vadd.f32 %v491_v11, %v177_v14 }
  0x1f   : > { %v179_v19 = vadd.f32 %v494_v13, %v178_v17 }
  0x21   : > { %v180_v23 = vadd.f32 %v495_v16, %v179_v19 }
  0x23   : > { %v181_v25 = vadd.f32 %v498_v18, %v180_v23 }
  0x25   : > { %v182_v28 = vadd.f32 %v499_v21, %v181_v25 }
  0x27   : > { %v183_v29 = vadd.f32 %v502_v24, %v182_v28 }
  0x29   : > { %v184_v31 = vadd.f32 %v503_v27, %v183_v29 }
  0x2b   : > { %v187_v32 = vadd.f32 %v186_v30, %v184_v31 }
  0x2d   : > { %v188_v33 = vrot.slane %v187_v32, 4 }
  0x2f   : > { %v189_v34 = vadd.f32 %v188_v33, %v187_v32 }
  0x31   : > { %v190_v35 = vrot.slane %v189_v34, 2 }
  0x33   : > { %v191_v36 = vadd.f32 %v190_v35, %v189_v34 }
  0x35   : > { %v192_v37 = vrot.slane %v191_v36, 1 }
  0x37   : > { %v193_v38 = vadd.f32 %v192_v37, %v191_v36 }
  0x39   : > { %v195_v39 = vmul.f32 0.01, %v193_v38 }
  0x3b   : > { %v196_v40 = vsub.f32 %v482_v2, %v195_v39  ;;  %v197_v41 = vsub.f32 %v483_v3, %v195_v39  ;;  %v198_v42 = vsub.f32 %v486_v4, %v195_v39  ;;  %v199_v43 = vsub.f32 %v487_v6, %v195_v39 }
  0x3c   : > { %v200_v46 = vsub.f32 %v490_v8, %v195_v39  ;;  %v201_v48 = vsub.f32 %v491_v11, %v195_v39  ;;  %v202_v51 = vsub.f32 %v494_v13, %v195_v39  ;;  %v203_v54 = vsub.f32 %v495_v16, %v195_v39 }
  0x3d   : > { %v209_v44 = vmul.f32 %v196_v40, %v196_v40  ;;  %v210_v45 = vmul.f32 %v197_v41, %v197_v41  ;;  %v211_v47 = vmul.f32 %v198_v42, %v198_v42  ;;  %v212_v49 = vmul.f32 %v199_v43, %v199_v43 }
  0x3e   : > { %v213_v52 = vmul.f32 %v200_v46, %v200_v46  ;;  %v214_v55 = vmul.f32 %v201_v48, %v201_v48  ;;  %v632_v57 = vsub.f32 %v498_v18, %v195_v39  ;;  %v215_v58 = vmul.f32 %v202_v51, %v202_v51 }
  0x3f   : > { %v222_v50 = vadd.f32 %v210_v45, %v209_v44  ;;  %v634_v60 = vsub.f32 %v499_v21, %v195_v39  ;;  %v216_v61 = vmul.f32 %v203_v54, %v203_v54  ;;  %v636_v63 = vsub.f32 %v502_v24, %v195_v39 }
  0x40   : > { %v217_v0 = vmul.f32 %v632_v57, %v632_v57  ;;  %v640_v2 = vsub.f32 %v173_v26, %v195_v39  ;;  %v207_v3 = vsub.f32 %v503_v27, %v195_v39 }
  0x41   : > { %v223_v53 = vadd.f32 %v222_v50, %v211_v47  ;;  %v218_v4 = vmul.f32 %v634_v60, %v634_v60  ;;  %v219_v6 = vmul.f32 %v636_v63, %v636_v63 }
  0x42   : > { %v221_v8 = vmul.f32 %v640_v2, %v640_v2  ;;  %v220_v9 = vmul.f32 %v207_v3, %v207_v3 }
  0x43   : > { %v224_v56 = vadd.f32 %v223_v53, %v212_v49 }
  0x44   : > { %v233_v12 = vsel %vm185_vm0, %v221_v8, 0.0 }
  0x45   : > { %v225_v59 = vadd.f32 %v224_v56, %v213_v52 }
  0x47   : > { %v226_v62 = vadd.f32 %v225_v59, %v214_v55 }
  0x49   : > { %v227_v1 = vadd.f32 %v226_v62, %v215_v58 }
  0x4b   : > { %v228_v5 = vadd.f32 %v227_v1, %v216_v61 }
  0x4d   : > { %v229_v7 = vadd.f32 %v228_v5, %v217_v0 }
  0x4f   : > { %v230_v10 = vadd.f32 %v229_v7, %v218_v4 }
  0x51   : > { %v231_v11 = vadd.f32 %v230_v10, %v219_v6 }
  0x53   : > { %v232_v13 = vadd.f32 %v231_v11, %v220_v9 }
  0x55   : > { %v234_v14 = vadd.f32 %v233_v12, %v232_v13 }
  0x57   : > { %v235_v15 = vrot.slane %v234_v14, 4 }
  0x59   : > { %v236_v16 = vadd.f32 %v235_v15, %v234_v14 }
  0x5b   : > { %v237_v17 = vrot.slane %v236_v16, 2 }
  0x5d   : > { %v238_v18 = vadd.f32 %v237_v17, %v236_v16 }
  0x5f   : > { %v239_v19 = vrot.slane %v238_v18, 1 }
  0x61   : > { %v240_v20 = vadd.f32 %v239_v19, %v238_v18 }
  0x63   : > { %v241_v21 = vmul.f32 0.01, %v240_v20 }
  0x65   : > { %v242_v22 = vadd.f32 1e-05, %v241_v21 }
  0x67   : > { %569 = vrsqrt.f32 %v242_v22 }
  0x71   : > { %v570_v23 = vpop.eup %569 }
  0x72   : > { %v244_v24 = vmul.f32 %v570_v23, %v196_v40  ;;  %v245_v25 = vmul.f32 %v570_v23, %v197_v41  ;;  %v246_v26 = vmul.f32 %v570_v23, %v198_v42  ;;  %v247_v27 = vmul.f32 %v570_v23, %v199_v43 }
  0x73   : > { %v248_v28 = vmul.f32 %v570_v23, %v200_v46  ;;  %v249_v29 = vmul.f32 %v570_v23, %v201_v48  ;;  %v250_v30 = vmul.f32 %v570_v23, %v202_v51  ;;  %v251_v31 = vmul.f32 %v570_v23, %v203_v54 }
  0x74   : > { %vm257_vm1 = vcmp.ge.f32.partialorder %v244_v24, 0.0  ;;  %vm258_vm2 = vcmp.ge.f32.partialorder %v245_v25, 0.0  ;;  %v270_v32 = vmul.f32 0.2, %v244_v24  ;;  %v271_v33 = vmul.f32 0.2, %v245_v25 }
  0x75   : > { %vm259_vm3 = vcmp.ge.f32.partialorder %v246_v26, 0.0  ;;  %vm260_vm4 = vcmp.ge.f32.partialorder %v247_v27, 0.0  ;;  %v272_v34 = vmul.f32 0.2, %v246_v26  ;;  %v273_v35 = vmul.f32 0.2, %v247_v27 }
  0x76   : > { %v283_v36 = vsel %vm257_vm1, %v244_v24, %v270_v32  ;;  %v284_v37 = vsel %vm258_vm2, %v245_v25, %v271_v33  ;;  %vm261_vm5 = vcmp.ge.f32.partialorder %v248_v28, 0.0  ;;  %vm262_vm6 = vcmp.ge.f32.partialorder %v249_v29, 0.0 }
  0x77   : > { %v507_v38 = vpack.c.bf16 %v284_v37, %v283_v36  ;;  %v285_v39 = vsel %vm259_vm3, %v246_v26, %v272_v34  ;;  %v286_v40 = vsel %vm260_vm4, %v247_v27, %v273_v35  ;;  %v274_v41 = vmul.f32 0.2, %v248_v28 }
  0x78   : > { %v512_v42 = vpack.c.bf16 %v286_v40, %v285_v39  ;;  %v275_v43 = vmul.f32 0.2, %v249_v29  ;;  %vm263_vm7 = vcmp.ge.f32.partialorder %v250_v30, 0.0  ;;  %vm264_vm8 = vcmp.ge.f32.partialorder %v251_v31, 0.0 }
  0x79   : > { %508 = vst [vmem:[%s654_s16] sm:$0xff] %v507_v38   ;;  %v287_v44 = vsel %vm261_vm5, %v248_v28, %v274_v41  ;;  %v276_v45 = vmul.f32 0.2, %v250_v30  ;;  %v277_v46 = vmul.f32 0.2, %v251_v31  ;;  %v252_v47 = vmul.f32 %v570_v23, %v632_v57 }
  0x7a   : > { %539 = vst [vmem:[%s654_s16 + $0x8] sm:$0xff] %v512_v42   ;;  %v288_v48 = vsel %vm262_vm6, %v249_v29, %v275_v43  ;;  %v253_v49 = vmul.f32 %v570_v23, %v634_v60  ;;  %v254_v50 = vmul.f32 %v570_v23, %v636_v63  ;;  %v255_v51 = vmul.f32 %v570_v23, %v207_v3 }
  0x7b   : > { %v517_v52 = vpack.c.bf16 %v288_v48, %v287_v44  ;;  %v289_v53 = vsel %vm263_vm7, %v250_v30, %v276_v45  ;;  %v290_v54 = vsel %vm264_vm8, %v251_v31, %v277_v46  ;;  %vm265_vm9 = vcmp.ge.f32.partialorder %v252_v47, 0.0 }
  0x7c   : > { %v522_v55 = vpack.c.bf16 %v290_v54, %v289_v53  ;;  %vm266_vm10 = vcmp.ge.f32.partialorder %v253_v49, 0.0  ;;  %v278_v56 = vmul.f32 0.2, %v252_v47  ;;  %v279_v58 = vmul.f32 0.2, %v253_v49 }
  0x7d   : > { %540 = vst [vmem:[%s654_s16 + $0x10] sm:$0xff] %v517_v52   ;;  %vm267_vm11 = vcmp.ge.f32.partialorder %v254_v50, 0.0  ;;  %vm268_vm12 = vcmp.ge.f32.partialorder %v255_v51, 0.0  ;;  %v280_v57 = vmul.f32 0.2, %v254_v50  ;;  %v256_v62 = vmul.f32 %v570_v23, %v640_v2 }
  0x7e   : > { %v281_v59 = vmul.f32 0.2, %v255_v51  ;;  %541 = vst [vmem:[%s654_s16 + $0x18] sm:$0xff] %v522_v55   ;;  %v291_v60 = vsel %vm265_vm9, %v252_v47, %v278_v56  ;;  %v292_v61 = vsel %vm266_vm10, %v253_v49, %v279_v58 }
  0x7f   : > { %v527_v63 = vpack.c.bf16 %v292_v61, %v291_v60  ;;  %v293_v0 = vsel %vm267_vm11, %v254_v50, %v280_v57  ;;  %vm269_vm13 = vcmp.ge.f32.partialorder %v256_v62, 0.0  ;;  %v282_v4 = vmul.f32 0.2, %v256_v62 }
  0x80   : > { %v294_v1 = vsel %vm268_vm12, %v255_v51, %v281_v59 }
  0x81   : > { %v532_v3 = vpack.c.bf16 %v294_v1, %v293_v0  ;;  %542 = vst [vmem:[%s654_s16 + $0x20] sm:$0xff] %v527_v63   ;;  %v295_v5 = vsel %vm269_vm13, %v256_v62, %v282_v4 }
  0x82   : > { %v479_v6 = vpack.c.bf16 %v295_v5, %v295_v5 }
  0x83   : > { %543 = vst [vmem:[%s654_s16 + $0x28] sm:$0xff] %v532_v3  }
  0x84   : > { %361 = vst [vmem:[%s654_s16 + $0x30] sm:$0x3] %v479_v6 }
  0x85 PF: > { %s11_s8 = sadd.s32 1, %s593_s8   ;;  %s678_s6 = smov %s589_s7 }
  0x86   : > { %p8_p5 = scmp.ge.s32.totalorder %s11_s8, 4   ;;  %s679_s7 = smov %s681_s9 }
  0x88   :  { %10 = sbr.rel (!%p8_p5) target bundleno = 2 (0x2), region = 54 }

// kernel: discriminator_wavelet_forward.8
= control target key start
LH: loop header
LB: loop body
LE: loop exit
PB: predicated region body
PF: predicated region fallthrough
CT: control target
= control target key end

     0   :  { %s2084_s21 = smov 0   ;;  %s2086_s22 = smov 0   ;;  %s2319_s0 = inlined_call_operand.vmem [shape: bf16[2,12,12,9], index: 0, kind: input, shape index: {}, may-alias: {0,1,2,3}]   ;;  %s2320_s1 = inlined_call_operand.vmem [shape: bf16[2,12,12,9], index: 1, kind: input, shape index: {}, may-alias: {0,1,2,3}]   ;;  %s2321_s2 = inlined_call_operand.vmem [shape: bf16[2,12,12,9], index: 2, kind: input, shape index: {}, may-alias: {0,1,2,3}]   ;;  %s2322_s3 = inlined_call_operand.vmem [shape: bf16[2,12,12,9], index: 3, kind: input, shape index: {}, may-alias: {0,1,2,3}]   ;;  %s2323_s4 = inlined_call_operand.vmem [shape: bf16[4,4,9,128], index: 4, kind: input, shape index: {}]   ;;  %s2324_s5 = inlined_call_operand.vmem [shape: f32[1,128], index: 5, kind: input, shape index: {}]   ;;  %s2325_s6 = inlined_call_operand.vmem [shape: bf16[2,9,9,128], index: 6, kind: output, shape index: {}]  }
   0x1   :  { %s2088_s23 = smov 0   ;;  %s2090_s24 = smov 0  }
   0x2   :  { %s2092_s25 = smov 0  }
   0x3 LB: > { %s28_s26 = sadd.s32 1, %s2036_s23  ;;  %s31_s27 = sadd.s32 1, %s2040_s24  ;;  %s2044_s25 = sphi %s2092_s25, %s16_s25   ;;  %s2040_s24 = sphi %s2090_s24, %s2330_s24   ;;  %s2036_s23 = sphi %s2088_s23, %s2329_s23   ;;  %s2032_s22 = sphi %s2086_s22, %s2328_s22   ;;  %s2028_s21 = sphi %s2084_s21, %s2327_s21  }
   0x4   : > { %p29_p0 = scmp.ge.s32.totalorder %s28_s26, 9  ;;  %p1721_p1 = scmp.ge.s32.totalorder %s2044_s25, 1 }
   0x5   : > { %p318_p2 = scmp.lt.s32.totalorder %s2044_s25, 19 }
   0x6   : > { %s2332_s26 = smov (%p29_p0, %s28_s26), 0  ;;  %s2334_s27 = smov (!%p29_p0, %s31_s27), %s2040_s24 }
   0x7   : > { %p319_p3 = pnand %p1721_p1, %p318_p2  ;;  %p33_p4 = scmp.ge.s32.totalorder %s2334_s27, 2 }
   0x8   : > { %vm486_vm0 = vcmask (!%p319_p3), 1043456   ;;  %v2046_v0 = vmov (!%p319_p3), 0.0   ;;  %v1982_v1 = vld [vmem:[%s2323_s4 + $0x8] sm:$0x1f] (!%p319_p3)   ;;  %vm487_vm1 = vcmask (!%p319_p3), 1044480   ;;  %v2047_v2 = vmov (!%p319_p3), 65535  }
   0x9   : > { %s2336_s27 = smov (%p33_p4, %s2334_s27), 0  ;;  %322 = sbr.rel (%p319_p3) target bundleno = 313 (0x139), region = 44 }
   0xa   : > { %1841 = vmatprep.subr.bf16.mxu0 (!%p319_p3), %v2046_v0  ;;  %1847 = vmatprep.subr.bf16.mxu1 (!%p319_p3), %v2046_v0  ;;  %v488_v3 = vsel (!%p319_p3), %vm486_vm0, 4294967295, %v2047_v2  ;;  %v1983_v4 = vld [vmem:[%s2323_s4] sm:$0x1f] (!%p319_p3)   ;;  %vm2048_vm2 = vmmov (!%p319_p3), 0   ;;  %p396_p5 = scmp.lt.s32.totalorder (!%p319_p3), %s2032_s22, 1  ;;  %p398_p6 = scmp.lt.s32.totalorder (!%p319_p3), %s2028_s21, 11 }
   0xb   : > { %v2126_v5 = vsel (!%p319_p3), %vm487_vm1, %v488_v3, 0  ;;  %1849 = vmatprep.mubr.msk.bf16.mxu1 (!%p319_p3), %vm2048_vm2, %v2046_v0  ;;  %1843 = vmatprep.mubr.msk.bf16.mxu0 (!%p319_p3), %vm2048_vm2, %v2046_v0  ;;  %v1987_v8 = vld [vmem:[%s2323_s4 + $0x18] sm:$0x1f] (!%p319_p3)   ;;  %s405_s12 = sadd.s32 (!%p319_p3), 1, %s2028_s21  ;;  %vm482_vm3 = vcmask (!%p319_p3), 72704   ;;  %s416_s30 = sadd.s32 (!%p319_p3), 2, %s2028_s21 }
   0xc   : > { %v491_v6 = vand.u32 (!%p319_p3), %v1982_v1, %v2126_v5  ;;  %v542_v7 = vand.u32 (!%p319_p3), %v1983_v4, %v2126_v5  ;;  %p408_p7 = scmp.lt.s32.totalorder (!%p319_p3), %s405_s12, 11  ;;  %v1986_v9 = vld [vmem:[%s2323_s4 + $0x10] sm:$0x1f] (!%p319_p3)   ;;  %v670_v10 = vand.u32 (!%p319_p3), %v1987_v8, %v2126_v5  ;;  %v1989_v15 = vld [vmem:[%s2323_s4 + $0x28] sm:$0x1f] (!%p319_p3)   ;;  %p2167_p8 = scmp.lt.s32.totalorder (!%p319_p3), %s416_s30, 11 }
   0xd   : > { %v605_v19 = vand.u32 (!%p319_p3), %v1986_v9, %v2126_v5  ;;  %v1988_v24 = vld [vmem:[%s2323_s4 + $0x20] sm:$0x1f] (!%p319_p3)   ;;  %v797_v25 = vand.u32 (!%p319_p3), %v1989_v15, %v2126_v5  ;;  %v1992_v31 = vld [vmem:[%s2323_s4 + $0x38] sm:$0x1f] (!%p319_p3)   ;;  %s427_s19 = sadd.s32 (!%p319_p3), 3, %s2028_s21  ;;  %p447_p10 = scmp.lt.s32.totalorder (!%p319_p3), %s2028_s21, 8 }
   0xe   : > { %1842 = vmatpush3.bf16.msra.mxu0 (!%p319_p3), %v491_v6  ;;  %1848 = vmatpush3.bf16.msra.mxu1 (!%p319_p3), %v542_v7  ;;  %v734_v33 = vand.u32 (!%p319_p3), %v1988_v24, %v2126_v5  ;;  %p430_p9 = scmp.lt.s32.totalorder (!%p319_p3), %s427_s19, 11  ;;  %v927_v37 = vand.u32 (!%p319_p3), %v1992_v31, %v2126_v5  ;;  %v1991_v38 = vld [vmem:[%s2323_s4 + $0x30] sm:$0x1f] (!%p319_p3)   ;;  %v1995_v42 = vld [vmem:[%s2323_s4 + $0x48] sm:$0x1f] (!%p319_p3)   ;;  %vm1510_vm5 = vcmask (!%p319_p3), 1040384  }
   0xf   : > { %1853 = vmatprep.subr.bf16.mxu0 (!%p319_p3), %v2046_v0  ;;  %1859 = vmatprep.subr.bf16.mxu1 (!%p319_p3), %v2046_v0  ;;  %v862_v43 = vand.u32 (!%p319_p3), %v1991_v38, %v2126_v5  ;;  %v1054_v46 = vand.u32 (!%p319_p3), %v1995_v42, %v2126_v5  ;;  %v1994_v47 = vld [vmem:[%s2323_s4 + $0x40] sm:$0x1f] (!%p319_p3)   ;;  %v1998_v51 = vld [vmem:[%s2323_s4 + $0x58] sm:$0x1f] (!%p319_p3)   ;;  %v1997_v58 = vld [vmem:[%s2323_s4 + $0x50] sm:$0x1f] (!%p319_p3)  }
  0x10   : > { %s2338_s22 = smov (!%p396_p5, %s2032_s22), 1  ;;  %s2340_s12 = smov (!%p408_p7, %s405_s12), 11  ;;  %v991_v53 = vand.u32 %v1994_v47, %v2126_v5  ;;  %v1184_v57 = vand.u32 %v1998_v51, %v2126_v5  ;;  %v2001_v62 = vld [vmem:[%s2323_s4 + $0x68] sm:$0x1f]   ;;  %v1119_v63 = vand.u32 %v1997_v58, %v2126_v5  ;;  %v2000_v4 = vld [vmem:[%s2323_s4 + $0x60] sm:$0x1f]  }
  0x11   : > { %s399_s8 = scalar_select %p398_p6, %s2028_s21, 11  ;;  %v1311_v3 = vand.u32 %v2001_v62, %v2126_v5  ;;  %v2004_v9 = vld [vmem:[%s2323_s4 + $0x78] sm:$0x1f]   ;;  %vm1511_vm6 = vsmask.f32 256 }
  0x12   : > { %s2141_s9 = smul.u32 24, %s2338_s22  ;;  %s1724_s7 = sshll.u32 %s2340_s12, 1  ;;  %v1441_v15 = vand.u32 %v2004_v9, %v2126_v5  ;;  %vm1512_vm8 = vmand %vm1510_vm5, %vm1511_vm6 }
  0x13   : > { %s1722_s13 = sshll.u32 %s399_s8, 1  ;;  %s2342_s30 = smov (!%p2167_p8, %s416_s30), 11 }
  0x14   : > { %s402_s14 = sadd.s32 %s2141_s9, %s1722_s13  ;;  %s412_s8 = sadd.s32 %s2141_s9, %s1724_s7 }
  0x15   : > { %s1723_s15 = sshll.u32 %s402_s14, 2  ;;  %s1725_s10 = sshll.u32 %s412_s8, 2 }
  0x16   : > { %s404_s18 = scalar_lea.vmem %s2319_s0, %s1723_s15  ;;  %s414_s16 = scalar_lea.vmem %s2320_s1, %s1725_s10 }
  0x17   : > { %v1984_v11 = vld [vmem:[%s404_s18] sm:$0x1f]   ;;  %s1726_s20 = sshll.u32 %s2342_s30, 1  ;;  %s2344_s19 = smov (!%p430_p9, %s427_s19), 11 }
  0x18   : > { %v1985_v12 = vld [vmem:[%s404_s18] sm:$0x3e]   ;;  %1850 = vmatmul.mubr.msk.bf16.vlgmr.msra.gmra.mrb[0].mxu1 %vm482_vm3, %v1984_v11  ;;  %v471_v13 = vshrl.u32 %v1984_v11, 16  ;;  %v473_v14 = vshll.u32 %v1984_v11, 16  ;;  %s423_s28 = sadd.s32 %s2141_s9, %s1726_s20  ;;  %s1728_s12 = sshll.u32 %s2344_s19, 1  ;;  %v1248_v11 = vand.u32 %v2000_v4, %v2126_v5 }
  0x19   : > { %1860 = vmatpush3.bf16.msra.mxu1 %v670_v10  ;;  %1861 = vmatprep.mubr.msk.bf16.mxu1 %vm2048_vm2, %v2046_v0  ;;  %v654_v16 = vshrl.u32 %v1985_v12, 16  ;;  %v657_v17 = vshll.u32 %v1985_v12, 16  ;;  %v1990_v26 = vld [vmem:[%s414_s16] sm:$0x1f]   ;;  %v595_v30 = vrot.slane %v1985_v12, 1  ;;  %s1727_s29 = sshll.u32 %s423_s28, 2  ;;  %s434_s15 = sadd.s32 %s2141_s9, %s1728_s12 }
  0x1a   : > { %v475_v18 = vrot.slane %v473_v14, 1  ;;  %1871 = vmatprep.subr.bf16.mxu1 %v2046_v0  ;;  %v2181_v27 = vld [vmem:[%s414_s16] sm:$0x3e]   ;;  %v782_v28 = vshrl.u32 %v1990_v26, 16  ;;  %v784_v29 = vshll.u32 %v1990_v26, 16  ;;  %s2202_s10 = scalar_lea.vmem %s2321_s2, %s1727_s29  ;;  %s1729_s16 = sshll.u32 %s434_s15, 2 }
  0x1b   : > { %v656_v20 = vrot.slane %v654_v16, 1  ;;  %v659_v21 = vrot.slane %v657_v17, 2  ;;  %v911_v35 = vshrl.u32 %v2181_v27, 16  ;;  %v914_v36 = vshll.u32 %v2181_v27, 16  ;;  %v1996_v41 = vld [vmem:[%s2202_s10] sm:$0x1f]   ;;  %s2225_s20 = scalar_lea.vmem %s2322_s3, %s1729_s16 }
  0x1c   : > { %v476_v22 = vor.u32 %v475_v18, %v471_v13  ;;  %v786_v32 = vrot.slane %v784_v29, 1  ;;  %v1041_v45 = vshll.u32 %v1996_v41, 16  ;;  %v1039_v48 = vshrl.u32 %v1996_v41, 16  ;;  %v1999_v50 = vld [vmem:[%s2202_s10] sm:$0x3e]   ;;  %s2346_s21 = smov (!%p447_p10, %s2028_s21), 8 }
  0x1d   : > { %v660_v23 = vor.u32 %v659_v21, %v656_v20  ;;  %v913_v39 = vrot.slane %v911_v35, 1  ;;  %v916_v40 = vrot.slane %v914_v36, 2  ;;  %v852_v52 = vrot.slane %v2181_v27, 1  ;;  %v2002_v61 = vld [vmem:[%s2225_s20] sm:$0x1f]   ;;  %s1938_s17 = smul.u32 18, %s2338_s22 }
  0x1e   : > { %1844 = vmatmul.mubr.msk.bf16.vlgmr.msra.gmra.mrb[0].mxu0 %vm482_vm3, %v476_v22  ;;  %v787_v34 = vor.u32 %v786_v32, %v782_v28  ;;  %v1043_v49 = vrot.slane %v1041_v45, 1  ;;  %v1168_v55 = vshrl.u32 %v1999_v50, 16  ;;  %v1171_v56 = vshll.u32 %v1999_v50, 16  ;;  %v2005_v8 = vld [vmem:[%s2225_s20] sm:$0x3e]   ;;  %s1730_s18 = sshll.u32 %s2346_s21, 1 }
  0x1f   : > { %1854 = vmatpush3.bf16.msra.mxu0 %v605_v19  ;;  %1855 = vmatprep.mubr.msk.bf16.mxu0 %vm2048_vm2, %v2046_v0  ;;  %v917_v44 = vor.u32 %v916_v40, %v913_v39  ;;  %v1298_v2 = vshll.u32 %v2002_v61, 16  ;;  %v1296_v6 = vshrl.u32 %v2002_v61, 16  ;;  %v1109_v10 = vrot.slane %v1999_v50, 1  ;;  %v2003_v16 = vld [vmem:[%s2323_s4 + $0x70] sm:$0x1f]   ;;  %s454_s20 = sadd.s32 %s1938_s17, %s1730_s18 }
  0x20   : > { %1862 = vmatmul.mubr.msk.bf16.vlgmr.msra.gmra.mrb[4].mxu1 %vm482_vm3, %v660_v23  ;;  %1865 = vmatprep.subr.bf16.mxu0 %v2046_v0  ;;  %v1044_v54 = vor.u32 %v1043_v49, %v1039_v48  ;;  %v1170_v59 = vrot.slane %v1168_v55, 1  ;;  %v1173_v60 = vrot.slane %v1171_v56, 2  ;;  %v1425_v13 = vshrl.u32 %v2005_v8, 16  ;;  %s1731_s9 = sshll.u32 %s454_s20, 2 }
  0x21   : > { %1872 = vmatpush3.bf16.msra.mxu1 %v797_v25  ;;  %1873 = vmatprep.mubr.msk.bf16.mxu1 %vm2048_vm2, %v2046_v0  ;;  %v1300_v7 = vrot.slane %v1298_v2, 1  ;;  %v1428_v14 = vshll.u32 %v2005_v8, 16  ;;  %v1376_v19 = vand.u32 %v2003_v16, %v2126_v5  ;;  %v1366_v21 = vrot.slane %v2005_v8, 1  ;;  %s456_s29 = scalar_lea.vmem %s2325_s6, %s1731_s9 }
  0x22   : > { %1883 = vmatprep.subr.bf16.mxu1 %v2046_v0  ;;  %v1174_v1 = vor.u32 %v1173_v60, %v1170_v59  ;;  %v1427_v17 = vrot.slane %v1425_v13, 1 }
  0x23   : > { %v1301_v12 = vor.u32 %v1300_v7, %v1296_v6  ;;  %v1430_v18 = vrot.slane %v1428_v14, 2 }
  0x25   : > { %v1431_v20 = vor.u32 %v1430_v18, %v1427_v17 }
  0x26   : > { %1856 = vmatmul.mubr.msk.bf16.vlgmr.msra.gmra.mrb[4].mxu0 %vm482_vm3, %v595_v30 }
  0x27   : > { %1866 = vmatpush3.bf16.msra.mxu0 %v734_v33  ;;  %1867 = vmatprep.mubr.msk.bf16.mxu0 %vm2048_vm2, %v2046_v0 }
  0x28   : > { %1874 = vmatmul.mubr.msk.bf16.vlgmr.msra.gmra.mrb[8].mxu1 %vm482_vm3, %v787_v34  ;;  %1877 = vmatprep.subr.bf16.mxu0 %v2046_v0 }
  0x29   : > { %1884 = vmatpush3.bf16.msra.mxu1 %v927_v37  ;;  %1885 = vmatprep.mubr.msk.bf16.mxu1 %vm2048_vm2, %v2046_v0 }
  0x2a   : > { %1895 = vmatprep.subr.bf16.mxu1 %v2046_v0 }
  0x2e   : > { %1868 = vmatmul.mubr.msk.bf16.vlgmr.msra.gmra.mrb[8].mxu0 %vm482_vm3, %v1990_v26 }
  0x2f   : > { %1878 = vmatpush3.bf16.msra.mxu0 %v862_v43  ;;  %1879 = vmatprep.mubr.msk.bf16.mxu0 %vm2048_vm2, %v2046_v0 }
  0x30   : > { %1886 = vmatmul.mubr.msk.bf16.vlgmr.msra.gmra.mrb[12].mxu1 %vm482_vm3, %v917_v44  ;;  %1889 = vmatprep.subr.bf16.mxu0 %v2046_v0 }
  0x31   : > { %1896 = vmatpush3.bf16.msra.mxu1 %v1054_v46  ;;  %1897 = vmatprep.mubr.msk.bf16.mxu1 %vm2048_vm2, %v2046_v0 }
  0x32   : > { %1907 = vmatprep.subr.bf16.mxu1 %v2046_v0 }
  0x36   : > { %1880 = vmatmul.mubr.msk.bf16.vlgmr.msra.gmra.mrb[12].mxu0 %vm482_vm3, %v852_v52 }
  0x37   : > { %1890 = vmatpush3.bf16.msra.mxu0 %v991_v53  ;;  %1891 = vmatprep.mubr.msk.bf16.mxu0 %vm2048_vm2, %v2046_v0 }
  0x38   : > { %1898 = vmatmul.mubr.msk.bf16.vlgmr.msra.gmra.mrb[16].mxu1 %vm482_vm3, %v1044_v54  ;;  %1901 = vmatprep.subr.bf16.mxu0 %v2046_v0 }
  0x39   : > { %1908 = vmatpush3.bf16.msra.mxu1 %v1184_v57  ;;  %1909 = vmatprep.mubr.msk.bf16.mxu1 %vm2048_vm2, %v2046_v0 }
  0x3a   : > { %1919 = vmatprep.subr.bf16.mxu1 %v2046_v0 }
  0x3e   : > { %1892 = vmatmul.mubr.msk.bf16.vlgmr.msra.gmra.mrb[16].mxu0 %vm482_vm3, %v1996_v41 }
  0x3f   : > { %1902 = vmatpush3.bf16.msra.mxu0 %v1119_v63  ;;  %1903 = vmatprep.mubr.msk.bf16.mxu0 %vm2048_vm2, %v2046_v0 }
  0x40   : > { %1910 = vmatmul.mubr.msk.bf16.vlgmr.msra.gmra.mrb[20].mxu1 %vm482_vm3, %v1174_v1  ;;  %1913 = vmatprep.subr.bf16.mxu0 %v2046_v0 }
  0x41   : > { %1920 = vmatpush3.bf16.msra.mxu1 %v1311_v3  ;;  %1921 = vmatprep.mubr.msk.bf16.mxu1 %vm2048_vm2, %v2046_v0 }
  0x42   : > { %1931 = vmatprep.subr.bf16.mxu1 %v2046_v0 }
  0x46   : > { %1904 = vmatmul.mubr.msk.bf16.vlgmr.msra.gmra.mrb[20].mxu0 %vm482_vm3, %v1109_v10 }
  0x47   : > { %1914 = vmatpush3.bf16.msra.mxu0 %v1248_v11  ;;  %1915 = vmatprep.mubr.msk.bf16.mxu0 %vm2048_vm2, %v2046_v0 }
  0x48   : > { %1922 = vmatmul.mubr.msk.bf16.vlgmr.msra.gmra.mrb[24].mxu1 %vm482_vm3, %v1301_v12  ;;  %1925 = vmatprep.subr.bf16.mxu0 %v2046_v0 }
  0x49   : > { %1932 = vmatpush3.bf16.msra.mxu1 %v1441_v15  ;;  %1933 = vmatprep.mubr.msk.bf16.mxu1 %vm2048_vm2, %v2046_v0 }
  0x4e   : > { %1916 = vmatmul.mubr.msk.bf16.vlgmr.msra.gmra.mrb[24].mxu0 %vm482_vm3, %v2002_v61 }
  0x4f   : > { %1926 = vmatpush3.bf16.msra.mxu0 %v1376_v19  ;;  %1927 = vmatprep.mubr.msk.bf16.mxu0 %vm2048_vm2, %v2046_v0 }
  0x50   : > { %1934 = vmatmul.mubr.msk.bf16.vlgmr.msra.gmra.mrb[28].mxu1 %vm482_vm3, %v1431_v20 }
  0x56   : > { %1928 = vmatmul.mubr.msk.bf16.vlgmr.msra.gmra.mrb[28].mxu0 %vm482_vm3, %v1366_v21 }
  0xeb   : > { %v578_v22 = vpop.f32.mrb[0].mxu1 }
  0xec   : > { %v1851_v23 = vpop.f32.mrb[1].mxu1 }
  0xed   : > { %v581_v24 = vpop.f32.mrb[2].mxu1 }
  0xee   : > { %v1852_v25 = vpop.f32.mrb[3].mxu1 }
  0xf1   : > { %v527_v26 = vpop.f32.mrb[0].mxu0 }
  0xf2   : > { %v579_v27 = vadd.f32 %v578_v22, %v527_v26  ;;  %v1845_v28 = vpop.f32.mrb[1].mxu0 }
  0xf3   : > { %v530_v5 = vpop.f32.mrb[2].mxu0  ;;  %v706_v29 = vpop.f32.mrb[4].mxu1 }
  0xf4   : > { %v582_v30 = vadd.f32 %v581_v24, %v530_v5  ;;  %v1846_v31 = vpop.f32.mrb[3].mxu0  ;;  %v1863_v32 = vpop.f32.mrb[5].mxu1 }
  0xf5   : > { %v709_v33 = vpop.f32.mrb[6].mxu1 }
  0xf6   : > { %v1864_v34 = vpop.f32.mrb[7].mxu1 }
  0xf9   : > { %v641_v0 = vpop.f32.mrb[4].mxu0 }
  0xfa   : > { %v648_v35 = vadd.f32 %v641_v0, %v579_v27  ;;  %v1857_v36 = vpop.f32.mrb[5].mxu0 }
  0xfb   : > { %v644_v37 = vpop.f32.mrb[6].mxu0  ;;  %v833_v38 = vpop.f32.mrb[8].mxu1 }
  0xfc   : > { %v649_v39 = vadd.f32 %v644_v37, %v582_v30  ;;  %v1858_v40 = vpop.f32.mrb[7].mxu0  ;;  %v713_v41 = vadd.f32 %v706_v29, %v648_v35  ;;  %v1875_v42 = vpop.f32.mrb[9].mxu1 }
  0xfd   : > { %v836_v43 = vpop.f32.mrb[10].mxu1 }
  0xfe   : > { %v714_v44 = vadd.f32 %v709_v33, %v649_v39  ;;  %v1876_v45 = vpop.f32.mrb[11].mxu1 }
  0xff   : > { %v1802_v45 = vld [vmem:[%s2324_s5] ss:$0 sm:$0xff] }
 0x101   : > { %v770_v46 = vpop.f32.mrb[8].mxu0 }
 0x102   : > { %v777_v47 = vadd.f32 %v770_v46, %v713_v41  ;;  %v1869_v48 = vpop.f32.mrb[9].mxu0 }
 0x103   : > { %v773_v49 = vpop.f32.mrb[10].mxu0  ;;  %v963_v50 = vpop.f32.mrb[12].mxu1 }
 0x104   : > { %v778_v51 = vadd.f32 %v773_v49, %v714_v44  ;;  %v1870_v52 = vpop.f32.mrb[11].mxu0  ;;  %v840_v53 = vadd.f32 %v833_v38, %v777_v47  ;;  %v1887_v54 = vpop.f32.mrb[13].mxu1 }
 0x105   : > { %v966_v55 = vpop.f32.mrb[14].mxu1 }
 0x106   : > { %v841_v56 = vadd.f32 %v836_v43, %v778_v51  ;;  %v1888_v57 = vpop.f32.mrb[15].mxu1 }
 0x107   : > { %v1513_v57 = vld [vmem:[%s456_s29 + $0x4] sm:$0x1] }
 0x109   : > { %v898_v58 = vpop.f32.mrb[12].mxu0 }
 0x10a   : > { %v905_v59 = vadd.f32 %v898_v58, %v840_v53  ;;  %v1881_v60 = vpop.f32.mrb[13].mxu0 }
 0x10b   : > { %v901_v61 = vpop.f32.mrb[14].mxu0  ;;  %v1090_v62 = vpop.f32.mrb[16].mxu1 }
 0x10c   : > { %v906_v63 = vadd.f32 %v901_v61, %v841_v56  ;;  %v1882_v1 = vpop.f32.mrb[15].mxu0  ;;  %v970_v2 = vadd.f32 %v963_v50, %v905_v59  ;;  %v1899_v3 = vpop.f32.mrb[17].mxu1 }
 0x10d   : > { %v1093_v4 = vpop.f32.mrb[18].mxu1 }
 0x10e   : > { %v971_v6 = vadd.f32 %v966_v55, %v906_v63  ;;  %v1900_v7 = vpop.f32.mrb[19].mxu1 }
 0x111   : > { %v1027_v8 = vpop.f32.mrb[16].mxu0 }
 0x112   : > { %v1034_v9 = vadd.f32 %v1027_v8, %v970_v2  ;;  %v1893_v10 = vpop.f32.mrb[17].mxu0 }
 0x113   : > { %v1030_v11 = vpop.f32.mrb[18].mxu0  ;;  %v1220_v12 = vpop.f32.mrb[20].mxu1 }
 0x114   : > { %v1035_v13 = vadd.f32 %v1030_v11, %v971_v6  ;;  %v1894_v14 = vpop.f32.mrb[19].mxu0  ;;  %v1097_v15 = vadd.f32 %v1090_v62, %v1034_v9  ;;  %v1911_v16 = vpop.f32.mrb[21].mxu1 }
 0x115   : > { %v1223_v17 = vpop.f32.mrb[22].mxu1 }
 0x116   : > { %v1098_v18 = vadd.f32 %v1093_v4, %v1035_v13  ;;  %v1912_v19 = vpop.f32.mrb[23].mxu1 }
 0x119   : > { %v1155_v20 = vpop.f32.mrb[20].mxu0 }
 0x11a   : > { %v1162_v21 = vadd.f32 %v1155_v20, %v1097_v15  ;;  %v1905_v22 = vpop.f32.mrb[21].mxu0 }
 0x11b   : > { %v1158_v23 = vpop.f32.mrb[22].mxu0  ;;  %v1347_v24 = vpop.f32.mrb[24].mxu1 }
 0x11c   : > { %v1163_v25 = vadd.f32 %v1158_v23, %v1098_v18  ;;  %v1906_v26 = vpop.f32.mrb[23].mxu0  ;;  %v1227_v27 = vadd.f32 %v1220_v12, %v1162_v21  ;;  %v1923_v28 = vpop.f32.mrb[25].mxu1 }
 0x11d   : > { %v1350_v5 = vpop.f32.mrb[26].mxu1 }
 0x11e   : > { %v1228_v29 = vadd.f32 %v1223_v17, %v1163_v25  ;;  %v1924_v30 = vpop.f32.mrb[27].mxu1 }
 0x121   : > { %v1284_v31 = vpop.f32.mrb[24].mxu0 }
 0x122   : > { %v1291_v32 = vadd.f32 %v1284_v31, %v1227_v27  ;;  %v1917_v33 = vpop.f32.mrb[25].mxu0 }
 0x123   : > { %v1287_v34 = vpop.f32.mrb[26].mxu0  ;;  %v1477_v0 = vpop.f32.mrb[28].mxu1 }
 0x124   : > { %v1292_v35 = vadd.f32 %v1287_v34, %v1228_v29  ;;  %v1918_v36 = vpop.f32.mrb[27].mxu0  ;;  %v1354_v37 = vadd.f32 %v1347_v24, %v1291_v32  ;;  %v1935_v38 = vpop.f32.mrb[29].mxu1 }
 0x125   : > { %v1480_v39 = vpop.f32.mrb[30].mxu1 }
 0x126   : > { %v1355_v40 = vadd.f32 %v1350_v5, %v1292_v35  ;;  %v1936_v41 = vpop.f32.mrb[31].mxu1 }
 0x129   : > { %v1412_v42 = vpop.f32.mrb[28].mxu0 }
 0x12a   : > { %v1419_v43 = vadd.f32 %v1412_v42, %v1354_v37  ;;  %v1929_v44 = vpop.f32.mrb[29].mxu0 }
 0x12b   : > { %v1415_v46 = vpop.f32.mrb[30].mxu0 }
 0x12c   : > { %v1484_v47 = vadd.f32 %v1477_v0, %v1419_v43  ;;  %v1420_v48 = vadd.f32 %v1415_v46, %v1355_v40  ;;  %v1930_v49 = vpop.f32.mrb[31].mxu0 }
 0x12e   : > { %v1493_v50 = vadd.f32 %v1802_v45, %v1484_v47  ;;  %v1485_v51 = vadd.f32 %v1480_v39, %v1420_v48 }
 0x130   : > { %vm1495_vm4 = vcmp.ge.f32.partialorder %v1493_v50, 0.0  ;;  %v1497_v52 = vmul.f32 0.2, %v1493_v50  ;;  %v1494_v53 = vadd.f32 %v1802_v45, %v1485_v51 }
 0x132   : > { %v1499_v54 = vsel %vm1495_vm4, %v1493_v50, %v1497_v52  ;;  %vm1496_vm7 = vcmp.ge.f32.partialorder %v1494_v53, 0.0  ;;  %v1498_v55 = vmul.f32 0.2, %v1494_v53 }
 0x133   : > { %v1807_v56 = vpack.c.bf16 %v1499_v54, %v1499_v54 }
 0x134   : > { %v1500_v58 = vsel %vm1496_vm7, %v1494_v53, %v1498_v55 }
 0x135   : > { %1509 = vst [vmem:[%s456_s29] sm:$0xf] %v1807_v56  ;;  %v1808_v59 = vpack.c.bf16 %v1500_v58, %v1500_v58 }
 0x137   : > { %v1514_v60 = vsel %vm1512_vm8, %v1808_v59, %v1513_v57 }
 0x138   : > { %1515 = vst [vmem:[%s456_s29 + $0x4] sm:$0x1] %v1514_v60 }
 0x139 PF: > { %s16_s25 = sadd.s32 1, %s2044_s25   ;;  %s2327_s21 = smov %s2036_s23 }
 0x13a   : > { %p13_p11 = scmp.ge.s32.totalorder %s16_s25, 20   ;;  %s2328_s22 = smov %s2040_s24 }
 0x13b   : > { %s2329_s23 = smov %s2332_s26  ;;  %s2330_s24 = smov %s2336_s27 }
 0x13c   :  { %15 = sbr.rel (!%p13_p11) target bundleno = 3 (0x3), region = 104 }

// kernel: discriminator_wavelet_forward.9
= control target key start
LH: loop header
LB: loop body
LE: loop exit
PB: predicated region body
PF: predicated region fallthrough
CT: control target
= control target key end

     0   :  { %s3692_s21 = smov 0   ;;  %s3694_s22 = smov 0   ;;  %s4372_s0 = inlined_call_operand.vmem [shape: bf16[2,13,13,128], index: 0, kind: input, shape index: {}, may-alias: {0,1,2,3}]   ;;  %s4373_s1 = inlined_call_operand.vmem [shape: bf16[2,13,13,128], index: 1, kind: input, shape index: {}, may-alias: {0,1,2,3}]   ;;  %s4374_s2 = inlined_call_operand.vmem [shape: bf16[2,13,13,128], index: 2, kind: input, shape index: {}, may-alias: {0,1,2,3}]   ;;  %s4375_s3 = inlined_call_operand.vmem [shape: bf16[2,13,13,128], index: 3, kind: input, shape index: {}, may-alias: {0,1,2,3}]   ;;  %s4376_s4 = inlined_call_operand.vmem [shape: bf16[4,4,128,128], index: 4, kind: input, shape index: {}]   ;;  %s4377_s5 = inlined_call_operand.vmem [shape: f32[1,128], index: 5, kind: input, shape index: {}]   ;;  %s4378_s6 = inlined_call_operand.vmem [shape: bf16[2,10,10,128], index: 6, kind: output, shape index: {}]  }
   0x1   :  { %s3696_s23 = smov 0   ;;  %s3698_s24 = smov 0  }
   0x2   :  { %s3700_s25 = smov 0  }
   0x3 LB: > { %s28_s26 = sadd.s32 1, %s3645_s23  ;;  %s31_s27 = sadd.s32 1, %s3649_s24  ;;  %s3653_s25 = sphi %s3700_s25, %s16_s25   ;;  %s3649_s24 = sphi %s3698_s24, %s4383_s24   ;;  %s3645_s23 = sphi %s3696_s23, %s4382_s23   ;;  %s3641_s22 = sphi %s3694_s22, %s4381_s22   ;;  %s3637_s21 = sphi %s3692_s21, %s4380_s21  }
   0x4   : > { %p29_p0 = scmp.ge.s32.totalorder %s28_s26, 10  ;;  %p2561_p1 = scmp.ge.s32.totalorder %s3653_s25, 1 }
   0x5   : > { %p318_p2 = scmp.lt.s32.totalorder %s3653_s25, 21 }
   0x6   : > { %s4385_s26 = smov (%p29_p0, %s28_s26), 0  ;;  %s4387_s27 = smov (!%p29_p0, %s31_s27), %s3649_s24 }
   0x7   : > { %p319_p3 = pnand %p2561_p1, %p318_p2  ;;  %p33_p4 = scmp.ge.s32.totalorder %s4387_s27, 2 }
   0x8   : > { %v3471_v0 = vld [vmem:[%s4376_s4 + $0x40] sm:$0xff] (!%p319_p3)   ;;  %v3655_v1 = vmov (!%p319_p3), 0.0   ;;  %v3473_v3 = vld [vmem:[%s4376_s4 + $0x48] sm:$0xff] (!%p319_p3)   ;;  %vm3656_vm0 = vmmov (!%p319_p3), 0   ;;  %p396_p5 = scmp.lt.s32.totalorder (!%p319_p3), %s3641_s22, 1  ;;  %p398_p6 = scmp.lt.s32.totalorder (!%p319_p3), %s3637_s21, 12 }
   0x9   : > { %s4389_s27 = smov (%p33_p4, %s4387_s27), 0  ;;  %322 = sbr.rel (%p319_p3) target bundleno = 489 (0x1e9), region = 44 }
   0xa   : > { %3107 = vmatprep.subr.bf16.mxu0 (!%p319_p3), %v3655_v1  ;;  %3127 = vmatprep.subr.bf16.mxu1 (!%p319_p3), %v3655_v1  ;;  %v3472_v2 = vld [vmem:[%s4376_s4] sm:$0xff] (!%p319_p3)   ;;  %v3474_v4 = vld [vmem:[%s4376_s4 + $0x8] sm:$0xff] (!%p319_p3)   ;;  %v3475_v5 = vld [vmem:[%s4376_s4 + $0x50] sm:$0xff] (!%p319_p3)   ;;  %s416_s16 = sadd.s32 (!%p319_p3), 2, %s3637_s21  ;;  %s427_s11 = sadd.s32 (!%p319_p3), 3, %s3637_s21 }
   0xb   : > { %3108 = vmatpush3.bf16.msra.mxu0 (!%p319_p3), %v3471_v0  ;;  %3123 = vmatprep.mubr.msk.bf16.mxu0 (!%p319_p3), %vm3656_vm0, %v3655_v1  ;;  %v3476_v6 = vld [vmem:[%s4376_s4 + $0x10] sm:$0xff] (!%p319_p3)   ;;  %v3477_v7 = vld [vmem:[%s4376_s4 + $0x58] sm:$0xff] (!%p319_p3)   ;;  %v3479_v9 = vld [vmem:[%s4376_s4 + $0x60] sm:$0xff] (!%p319_p3)   ;;  %p4031_p8 = scmp.lt.s32.totalorder (!%p319_p3), %s416_s16, 12  ;;  %p430_p9 = scmp.lt.s32.totalorder (!%p319_p3), %s427_s11, 12 }
   0xc   : > { %3128 = vmatpush3.bf16.msra.mxu1 (!%p319_p3), %v3472_v2  ;;  %3109 = vmatprep.subr.bf16.mxu0 (!%p319_p3), %v3655_v1  ;;  %v3478_v8 = vld [vmem:[%s4376_s4 + $0x18] sm:$0xff] (!%p319_p3)   ;;  %v3480_v10 = vld [vmem:[%s4376_s4 + $0x20] sm:$0xff] (!%p319_p3)   ;;  %v3481_v14 = vld [vmem:[%s4376_s4 + $0x68] sm:$0xff] (!%p319_p3)   ;;  %p447_p10 = scmp.lt.s32.totalorder (!%p319_p3), %s3637_s21, 9 }
   0xd   : > { %3129 = vmatprep.subr.bf16.mxu1 (!%p319_p3), %v3655_v1  ;;  %3143 = vmatprep.mubr.msk.bf16.mxu1 (!%p319_p3), %vm3656_vm0, %v3655_v1  ;;  %v3482_v15 = vld [vmem:[%s4376_s4 + $0x28] sm:$0xff] (!%p319_p3)   ;;  %v3483_v17 = vld [vmem:[%s4376_s4 + $0x70] sm:$0xff] (!%p319_p3)   ;;  %v3485_v19 = vld [vmem:[%s4376_s4 + $0x78] sm:$0xff] (!%p319_p3)  }
   0xe   : > { %v3484_v18 = vld [vmem:[%s4376_s4 + $0x30] sm:$0xff] (!%p319_p3)   ;;  %v3486_v22 = vld [vmem:[%s4376_s4 + $0x38] sm:$0xff] (!%p319_p3)   ;;  %v3489_v26 = vld [vmem:[%s4376_s4 + $0x80] sm:$0xff] (!%p319_p3)  }
   0xf   : > { %3110 = vmatpush3.bf16.msra.mxu0 (!%p319_p3), %v3473_v3  ;;  %v3490_v27 = vld [vmem:[%s4376_s4 + $0xc0] sm:$0xff] (!%p319_p3)   ;;  %v3491_v28 = vld [vmem:[%s4376_s4 + $0x88] sm:$0xff] (!%p319_p3)   ;;  %v3493_v30 = vld [vmem:[%s4376_s4 + $0x90] sm:$0xff] (!%p319_p3)  }
  0x10   : > { %s4391_s22 = smov (!%p396_p5, %s3641_s22), 1  ;;  %3130 = vmatpush3.bf16.msra.mxu1 %v3474_v4  ;;  %3111 = vmatprep.subr.bf16.mxu0 %v3655_v1  ;;  %v3492_v29 = vld [vmem:[%s4376_s4 + $0xc8] sm:$0xff]   ;;  %v3494_v31 = vld [vmem:[%s4376_s4 + $0xd0] sm:$0xff]   ;;  %v3495_v32 = vld [vmem:[%s4376_s4 + $0x98] sm:$0xff]   ;;  %s4395_s16 = smov (!%p4031_p8, %s416_s16), 12 }
  0x11   : > { %s399_s12 = scalar_select %p398_p6, %s3637_s21, 12  ;;  %3131 = vmatprep.subr.bf16.mxu1 %v3655_v1  ;;  %v3496_v33 = vld [vmem:[%s4376_s4 + $0xd8] sm:$0xff]   ;;  %v3497_v34 = vld [vmem:[%s4376_s4 + $0xa0] sm:$0xff]   ;;  %v3499_v38 = vld [vmem:[%s4376_s4 + $0xa8] sm:$0xff]  }
  0x12   : > { %s3756_s15 = smul.u32 26, %s4391_s22  ;;  %v3498_v35 = vld [vmem:[%s4376_s4 + $0xe0] sm:$0xff]   ;;  %v3500_v40 = vld [vmem:[%s4376_s4 + $0xe8] sm:$0xff]   ;;  %v3501_v41 = vld [vmem:[%s4376_s4 + $0xb0] sm:$0xff]   ;;  %s2566_s17 = sshll.u32 %s4395_s16, 1 }
  0x13   : > { %s2562_s18 = sshll.u32 %s399_s12, 1  ;;  %3112 = vmatpush3.bf16.msra.mxu0 %v3475_v5  ;;  %v3502_v42 = vld [vmem:[%s4376_s4 + $0xf0] sm:$0xff]   ;;  %v3503_v45 = vld [vmem:[%s4376_s4 + $0xb8] sm:$0xff]   ;;  %v3507_v52 = vld [vmem:[%s4376_s4 + $0x100] sm:$0xff]   ;;  %s4397_s11 = smov (!%p430_p9, %s427_s11), 12 }
  0x14   : > { %s402_s19 = sadd.s32 %s3756_s15, %s2562_s18  ;;  %3132 = vmatpush3.bf16.msra.mxu1 %v3476_v6  ;;  %3113 = vmatprep.subr.bf16.mxu0 %v3655_v1  ;;  %v3504_v49 = vld [vmem:[%s4376_s4 + $0xf8] sm:$0xff]   ;;  %v3508_v53 = vld [vmem:[%s4376_s4 + $0x140] sm:$0xff]   ;;  %v3509_v54 = vld [vmem:[%s4376_s4 + $0x108] sm:$0xff]   ;;  %s2568_s8 = sshll.u32 %s4397_s11, 1 }
  0x15   : > { %s2563_s29 = sshll.u32 %s402_s19, 2  ;;  %3133 = vmatprep.subr.bf16.mxu1 %v3655_v1  ;;  %v3510_v55 = vld [vmem:[%s4376_s4 + $0x148] sm:$0xff]   ;;  %v3511_v56 = vld [vmem:[%s4376_s4 + $0x110] sm:$0xff]   ;;  %v3513_v58 = vld [vmem:[%s4376_s4 + $0x118] sm:$0xff]  }
  0x16   : > { %s3775_s10 = scalar_lea.vmem %s4372_s0, %s2563_s29  ;;  %s405_s29 = sadd.s32 1, %s3637_s21  ;;  %v3512_v57 = vld [vmem:[%s4376_s4 + $0x150] sm:$0xff]   ;;  %v3514_v59 = vld [vmem:[%s4376_s4 + $0x158] sm:$0xff]   ;;  %v3515_v60 = vld [vmem:[%s4376_s4 + $0x120] sm:$0xff]  }
  0x17   : > { %3114 = vmatpush3.bf16.msra.mxu0 %v3477_v7  ;;  %v458_v11 = vld [vmem:[%s3775_s10] sm:$0xf]  ;;  %v3787_v12 = vld [vmem:[%s3775_s10 + $0x4] sm:$0x3]  ;;  %p408_p7 = scmp.lt.s32.totalorder %s405_s29, 12  ;;  %v3517_v0 = vld [vmem:[%s4376_s4 + $0x128] sm:$0xff]  }
  0x18   : > { %3134 = vmatpush3.bf16.msra.mxu1 %v3478_v8  ;;  %3115 = vmatprep.subr.bf16.mxu0 %v3655_v1  ;;  %v2588_v13 = vcombine.low %v458_v11, %v3787_v12  ;;  %v459_v23 = vld [vmem:[%s3775_s10 + $0x4] sm:$0x1]  ;;  %v689_v36 = vld [vmem:[%s3775_s10] sm:$0xe]  ;;  %v3518_v3 = vld [vmem:[%s4376_s4 + $0x168] sm:$0xff]   ;;  %s4399_s21 = smov (!%p447_p10, %s3637_s21), 9 }
  0x19   : > { %3135 = vmatprep.subr.bf16.mxu1 %v3655_v1  ;;  %v2597_v25 = vcombine.low %v458_v11, %v459_v23  ;;  %v803_v37 = vld [vmem:[%s3775_s10 + $0x4] sm:$0x7]  ;;  %v2622_v46 = vcombine.low %v689_v36, %v3787_v12  ;;  %s4393_s29 = smov (!%p408_p7, %s405_s29), 12  ;;  %v3519_v4 = vld [vmem:[%s4376_s4 + $0x130] sm:$0xff]   ;;  %v3521_v7 = vld [vmem:[%s4376_s4 + $0x138] sm:$0xff]   ;;  %s3428_s10 = smul.u32 20, %s4391_s22 }
  0x1a   : > { %v502_v16 = vshll.u32 %v2588_v13, 16  ;;  %v500_v20 = vshrl.u32 %v2588_v13, 16  ;;  %v2647_v39 = vcombine.low %v689_v36, %v803_v37  ;;  %s2564_s28 = sshll.u32 %s4393_s29, 1  ;;  %v3516_v61 = vld [vmem:[%s4376_s4 + $0x160] sm:$0xff]   ;;  %v3520_v6 = vld [vmem:[%s4376_s4 + $0x170] sm:$0xff]   ;;  %v3522_v11 = vld [vmem:[%s4376_s4 + $0x178] sm:$0xff]  }
  0x1b   : > { %3116 = vmatpush3.bf16.msra.mxu0 %v3479_v9  ;;  %v710_v50 = vrot.slane %v2622_v46, 1  ;;  %s412_s7 = sadd.s32 %s3756_s15, %s2564_s28  ;;  %v3534_v23 = vld [vmem:[%s4376_s4 + $0x1e0] sm:$0xff]   ;;  %s423_s28 = sadd.s32 %s3756_s15, %s2566_s17  ;;  %v3549_v46 = vld [vmem:[%s4376_s4 + $0x218] sm:$0xff]  }
  0x1c   : > { %3136 = vmatpush3.bf16.msra.mxu1 %v3480_v10  ;;  %3117 = vmatprep.subr.bf16.mxu0 %v3655_v1  ;;  %v504_v21 = vrot.slane %v502_v16, 1  ;;  %v825_v43 = vshrl.u32 %v2647_v39, 16  ;;  %v828_v44 = vshll.u32 %v2647_v39, 16  ;;  %s2565_s12 = sshll.u32 %s412_s7, 2  ;;  %v3527_v16 = vld [vmem:[%s4376_s4 + $0x188] sm:$0xff]   ;;  %s2567_s16 = sshll.u32 %s423_s28, 2 }
  0x1d   : > { %3137 = vmatprep.subr.bf16.mxu1 %v3655_v1  ;;  %s3926_s20 = scalar_lea.vmem %s4373_s1, %s2565_s12  ;;  %s4085_s13 = scalar_lea.vmem %s4374_s2, %s2567_s16 }
  0x1e   : > { %v505_v24 = vor.u32 %v504_v21, %v500_v20  ;;  %v827_v47 = vrot.slane %v825_v43, 1  ;;  %v830_v48 = vrot.slane %v828_v44, 2  ;;  %v924_v62 = vld [vmem:[%s3926_s20] sm:$0xf]  ;;  %v3938_v63 = vld [vmem:[%s3926_s20 + $0x4] sm:$0x3]  ;;  %s434_s12 = sadd.s32 %s3756_s15, %s2568_s8 }
  0x1f   : > { %3118 = vmatpush3.bf16.msra.mxu0 %v3481_v14  ;;  %v2697_v2 = vcombine.low %v924_v62, %v3938_v63  ;;  %v925_v8 = vld [vmem:[%s3926_s20 + $0x4] sm:$0x1]  ;;  %v3531_v20 = vld [vmem:[%s4376_s4 + $0x198] sm:$0xff]   ;;  %v3546_v43 = vld [vmem:[%s4376_s4 + $0x248] sm:$0xff]   ;;  %s2569_s11 = sshll.u32 %s434_s12, 2  ;;  %s2570_s16 = sshll.u32 %s4399_s21, 1 }
  0x20   : > { %3138 = vmatpush3.bf16.msra.mxu1 %v3482_v15  ;;  %3119 = vmatprep.subr.bf16.mxu0 %v3655_v1  ;;  %v831_v51 = vor.u32 %v830_v48, %v827_v47  ;;  %v2672_v12 = vcombine.low %v924_v62, %v925_v8  ;;  %v3525_v14 = vld [vmem:[%s4376_s4 + $0x180] sm:$0xff]   ;;  %v3532_v21 = vld [vmem:[%s4376_s4 + $0x1d8] sm:$0xff]   ;;  %v3547_v44 = vld [vmem:[%s4376_s4 + $0x210] sm:$0xff]   ;;  %s4237_s30 = scalar_lea.vmem %s4375_s3, %s2569_s11  ;;  %s454_s7 = sadd.s32 %s3428_s10, %s2570_s16 }
  0x21   : > { %3139 = vmatprep.subr.bf16.mxu1 %v3655_v1  ;;  %v1064_v5 = vshll.u32 %v2697_v2, 16  ;;  %v1062_v9 = vshrl.u32 %v2697_v2, 16  ;;  %v3526_v15 = vld [vmem:[%s4376_s4 + $0x1c0] sm:$0xff]   ;;  %v3550_v47 = vld [vmem:[%s4376_s4 + $0x258] sm:$0xff]   ;;  %s2571_s9 = sshll.u32 %s454_s7, 2 }
  0x22   : > { %v3551_v48 = vld [vmem:[%s4376_s4 + $0x220] sm:$0xff]   ;;  %v3558_v62 = vld [vmem:[%s4376_s4 + $0x278] sm:$0xff]   ;;  %s456_s29 = scalar_lea.vmem %s4378_s6, %s2571_s9 }
  0x23   : > { %3120 = vmatpush3.bf16.msra.mxu0 %v3483_v17  ;;  %v1066_v10 = vrot.slane %v1064_v5, 1  ;;  %v3528_v17 = vld [vmem:[%s4376_s4 + $0x1c8] sm:$0xff]   ;;  %v3561_v2 = vld [vmem:[%s4376_s4 + $0x280] sm:$0xff]   ;;  %v3567_v8 = vld [vmem:[%s4376_s4 + $0x298] sm:$0xff]  }
  0x24   : > { %3140 = vmatpush3.bf16.msra.mxu1 %v3484_v18  ;;  %3121 = vmatprep.subr.bf16.mxu0 %v3655_v1  ;;  %v3529_v18 = vld [vmem:[%s4376_s4 + $0x190] sm:$0xff]   ;;  %v3564_v5 = vld [vmem:[%s4376_s4 + $0x2c8] sm:$0xff]  }
  0x25   : > { %3141 = vmatprep.subr.bf16.mxu1 %v3655_v1  ;;  %v1067_v13 = vor.u32 %v1066_v10, %v1062_v9  ;;  %v3568_v9 = vld [vmem:[%s4376_s4 + $0x2d8] sm:$0xff]   ;;  %v3569_v10 = vld [vmem:[%s4376_s4 + $0x2a0] sm:$0xff]  }
  0x27   : > { %3122 = vmatpush3.bf16.msra.mxu0 %v3485_v19  ;;  %v3530_v19 = vld [vmem:[%s4376_s4 + $0x1d0] sm:$0xff]  }
  0x28   : > { %3142 = vmatpush3.bf16.msra.mxu1 %v3486_v22  ;;  %3147 = vmatprep.subr.bf16.mxu0 %v3655_v1  ;;  %v3533_v22 = vld [vmem:[%s4376_s4 + $0x1a0] sm:$0xff]  }
  0x29   : > { %3167 = vmatprep.subr.bf16.mxu1 %v3655_v1 }
  0x2a   : > { %3124 = vmatmul.mubr.bf16.vlgmr.msra.gmra.mrb[0].mxu0 %v505_v24  ;;  %v1160_v24 = vld [vmem:[%s3926_s20] sm:$0xe] }
  0x2b   : > { %3144 = vmatmul.mubr.bf16.vlgmr.msra.gmra.mrb[0].mxu1 %v2597_v25  ;;  %3148 = vmatpush3.bf16.msra.mxu0 %v3489_v26  ;;  %v1274_v25 = vld [vmem:[%s3926_s20 + $0x4] sm:$0x7]  ;;  %v3535_v26 = vld [vmem:[%s4376_s4 + $0x1a8] sm:$0xff]  }
  0x2c   : > { %3168 = vmatpush3.bf16.msra.mxu1 %v3490_v27  ;;  %3149 = vmatprep.subr.bf16.mxu0 %v3655_v1  ;;  %v2747_v27 = vcombine.low %v1160_v24, %v1274_v25  ;;  %v3576_v25 = vld [vmem:[%s4376_s4 + $0x2f8] sm:$0xff]  }
  0x2d   : > { %3169 = vmatprep.subr.bf16.mxu1 %v3655_v1  ;;  %3163 = vmatprep.mubr.msk.bf16.mxu0 %vm3656_vm0, %v3655_v1 }
  0x2e   : > { %3183 = vmatprep.mubr.msk.bf16.mxu1 %vm3656_vm0, %v3655_v1 }
  0x2f   : > { %3150 = vmatpush3.bf16.msra.mxu0 %v3491_v28  ;;  %v3536_v28 = vld [vmem:[%s4376_s4 + $0x1e8] sm:$0xff]  }
  0x30   : > { %3170 = vmatpush3.bf16.msra.mxu1 %v3492_v29  ;;  %3151 = vmatprep.subr.bf16.mxu0 %v3655_v1  ;;  %v3537_v29 = vld [vmem:[%s4376_s4 + $0x1b0] sm:$0xff]  }
  0x31   : > { %3171 = vmatprep.subr.bf16.mxu1 %v3655_v1 }
  0x33   : > { %3152 = vmatpush3.bf16.msra.mxu0 %v3493_v30  ;;  %v1296_v30 = vshrl.u32 %v2747_v27, 16 }
  0x34   : > { %3172 = vmatpush3.bf16.msra.mxu1 %v3494_v31  ;;  %3153 = vmatprep.subr.bf16.mxu0 %v3655_v1  ;;  %v1299_v31 = vshll.u32 %v2747_v27, 16 }
  0x35   : > { %3173 = vmatprep.subr.bf16.mxu1 %v3655_v1  ;;  %v1298_v36 = vrot.slane %v1296_v30, 1  ;;  %v3581_v30 = vld [vmem:[%s4376_s4 + $0x308] sm:$0xff]  }
  0x36   : > { %v1301_v37 = vrot.slane %v1299_v31, 2  ;;  %v3582_v31 = vld [vmem:[%s4376_s4 + $0x348] sm:$0xff]  }
  0x37   : > { %3154 = vmatpush3.bf16.msra.mxu0 %v3495_v32  ;;  %v3538_v32 = vld [vmem:[%s4376_s4 + $0x1f0] sm:$0xff]  }
  0x38   : > { %3174 = vmatpush3.bf16.msra.mxu1 %v3496_v33  ;;  %3155 = vmatprep.subr.bf16.mxu0 %v3655_v1  ;;  %v2722_v33 = vcombine.low %v1160_v24, %v3938_v63  ;;  %v1302_v39 = vor.u32 %v1301_v37, %v1298_v36  ;;  %v3587_v36 = vld [vmem:[%s4376_s4 + $0x320] sm:$0xff]  }
  0x39   : > { %3175 = vmatprep.subr.bf16.mxu1 %v3655_v1  ;;  %v3588_v37 = vld [vmem:[%s4376_s4 + $0x360] sm:$0xff]  }
  0x3b   : > { %3156 = vmatpush3.bf16.msra.mxu0 %v3497_v34  ;;  %v3539_v34 = vld [vmem:[%s4376_s4 + $0x1b8] sm:$0xff]  }
  0x3c   : > { %3176 = vmatpush3.bf16.msra.mxu1 %v3498_v35  ;;  %3157 = vmatprep.subr.bf16.mxu0 %v3655_v1  ;;  %v3540_v35 = vld [vmem:[%s4376_s4 + $0x1f8] sm:$0xff]  }
  0x3d   : > { %3177 = vmatprep.subr.bf16.mxu1 %v3655_v1 }
  0x3f   : > { %3158 = vmatpush3.bf16.msra.mxu0 %v3499_v38  ;;  %v1181_v38 = vrot.slane %v2722_v33, 1  ;;  %v3584_v33 = vld [vmem:[%s4376_s4 + $0x350] sm:$0xff]  }
  0x40   : > { %3178 = vmatpush3.bf16.msra.mxu1 %v3500_v40  ;;  %3159 = vmatprep.subr.bf16.mxu0 %v3655_v1  ;;  %v3543_v40 = vld [vmem:[%s4376_s4 + $0x200] sm:$0xff]  }
  0x41   : > { %3179 = vmatprep.subr.bf16.mxu1 %v3655_v1 }
  0x43   : > { %3160 = vmatpush3.bf16.msra.mxu0 %v3501_v41  ;;  %v3544_v41 = vld [vmem:[%s4376_s4 + $0x240] sm:$0xff]  }
  0x44   : > { %3180 = vmatpush3.bf16.msra.mxu1 %v3502_v42  ;;  %3161 = vmatprep.subr.bf16.mxu0 %v3655_v1  ;;  %v3545_v42 = vld [vmem:[%s4376_s4 + $0x208] sm:$0xff]  }
  0x45   : > { %3181 = vmatprep.subr.bf16.mxu1 %v3655_v1 }
  0x47   : > { %3162 = vmatpush3.bf16.msra.mxu0 %v3503_v45  ;;  %v3548_v45 = vld [vmem:[%s4376_s4 + $0x250] sm:$0xff]  }
  0x48   : > { %3182 = vmatpush3.bf16.msra.mxu1 %v3504_v49  ;;  %3187 = vmatprep.subr.bf16.mxu0 %v3655_v1  ;;  %v3552_v49 = vld [vmem:[%s4376_s4 + $0x260] sm:$0xff]  }
  0x49   : > { %3207 = vmatprep.subr.bf16.mxu1 %v3655_v1 }
  0x4a   : > { %3164 = vmatmul.mubr.bf16.vlgmr.msra.gmra.mrb[4].mxu0 %v710_v50  ;;  %v1395_v50 = vld [vmem:[%s4085_s13] sm:$0xf] }
  0x4b   : > { %3184 = vmatmul.mubr.bf16.vlgmr.msra.gmra.mrb[4].mxu1 %v831_v51  ;;  %3188 = vmatpush3.bf16.msra.mxu0 %v3507_v52  ;;  %v4096_v51 = vld [vmem:[%s4085_s13 + $0x4] sm:$0x3]  ;;  %v3553_v52 = vld [vmem:[%s4376_s4 + $0x228] sm:$0xff]  }
  0x4c   : > { %3208 = vmatpush3.bf16.msra.mxu1 %v3508_v53  ;;  %3189 = vmatprep.subr.bf16.mxu0 %v3655_v1  ;;  %v2797_v53 = vcombine.low %v1395_v50, %v4096_v51 }
  0x4d   : > { %3209 = vmatprep.subr.bf16.mxu1 %v3655_v1  ;;  %3203 = vmatprep.mubr.msk.bf16.mxu0 %vm3656_vm0, %v3655_v1 }
  0x4e   : > { %3223 = vmatprep.mubr.msk.bf16.mxu1 %vm3656_vm0, %v3655_v1 }
  0x4f   : > { %3190 = vmatpush3.bf16.msra.mxu0 %v3509_v54  ;;  %v3554_v54 = vld [vmem:[%s4376_s4 + $0x268] sm:$0xff]  }
  0x50   : > { %3210 = vmatpush3.bf16.msra.mxu1 %v3510_v55  ;;  %3191 = vmatprep.subr.bf16.mxu0 %v3655_v1  ;;  %v3555_v55 = vld [vmem:[%s4376_s4 + $0x230] sm:$0xff]  }
  0x51   : > { %3211 = vmatprep.subr.bf16.mxu1 %v3655_v1 }
  0x53   : > { %3192 = vmatpush3.bf16.msra.mxu0 %v3511_v56  ;;  %v1535_v56 = vshll.u32 %v2797_v53, 16 }
  0x54   : > { %3212 = vmatpush3.bf16.msra.mxu1 %v3512_v57  ;;  %3193 = vmatprep.subr.bf16.mxu0 %v3655_v1  ;;  %v3556_v57 = vld [vmem:[%s4376_s4 + $0x270] sm:$0xff]  }
  0x55   : > { %3213 = vmatprep.subr.bf16.mxu1 %v3655_v1 }
  0x57   : > { %3194 = vmatpush3.bf16.msra.mxu0 %v3513_v58  ;;  %v3557_v58 = vld [vmem:[%s4376_s4 + $0x238] sm:$0xff]  }
  0x58   : > { %3214 = vmatpush3.bf16.msra.mxu1 %v3514_v59  ;;  %3195 = vmatprep.subr.bf16.mxu0 %v3655_v1  ;;  %v1396_v59 = vld [vmem:[%s4085_s13 + $0x4] sm:$0x1] }
  0x59   : > { %3215 = vmatprep.subr.bf16.mxu1 %v3655_v1  ;;  %v2772_v63 = vcombine.low %v1395_v50, %v1396_v59  ;;  %v3594_v50 = vld [vmem:[%s4376_s4 + $0x378] sm:$0xff]  }
  0x5a   : > { %v3603_v59 = vld [vmem:[%s4376_s4 + $0x398] sm:$0xff]  }
  0x5b   : > { %3196 = vmatpush3.bf16.msra.mxu0 %v3515_v60  ;;  %v1533_v60 = vshrl.u32 %v2797_v53, 16  ;;  %v3597_v53 = vld [vmem:[%s4376_s4 + $0x380] sm:$0xff]  }
  0x5c   : > { %3216 = vmatpush3.bf16.msra.mxu1 %v3516_v61  ;;  %3197 = vmatprep.subr.bf16.mxu0 %v3655_v1  ;;  %v1537_v61 = vrot.slane %v1535_v56, 1  ;;  %v3600_v56 = vld [vmem:[%s4376_s4 + $0x3c8] sm:$0xff]  }
  0x5d   : > { %3217 = vmatprep.subr.bf16.mxu1 %v3655_v1 }
  0x5f   : > { %3198 = vmatpush3.bf16.msra.mxu0 %v3517_v0  ;;  %v1538_v0 = vor.u32 %v1537_v61, %v1533_v60  ;;  %v3604_v60 = vld [vmem:[%s4376_s4 + $0x3d8] sm:$0xff]   ;;  %v3605_v61 = vld [vmem:[%s4376_s4 + $0x3a0] sm:$0xff]  }
  0x60   : > { %3218 = vmatpush3.bf16.msra.mxu1 %v3518_v3  ;;  %3199 = vmatprep.subr.bf16.mxu0 %v3655_v1  ;;  %v3562_v3 = vld [vmem:[%s4376_s4 + $0x2c0] sm:$0xff]  }
  0x61   : > { %3219 = vmatprep.subr.bf16.mxu1 %v3655_v1 }
  0x63   : > { %3200 = vmatpush3.bf16.msra.mxu0 %v3519_v4  ;;  %v3563_v4 = vld [vmem:[%s4376_s4 + $0x288] sm:$0xff]  }
  0x64   : > { %3220 = vmatpush3.bf16.msra.mxu1 %v3520_v6  ;;  %3201 = vmatprep.subr.bf16.mxu0 %v3655_v1  ;;  %v3565_v6 = vld [vmem:[%s4376_s4 + $0x290] sm:$0xff]  }
  0x65   : > { %3221 = vmatprep.subr.bf16.mxu1 %v3655_v1 }
  0x67   : > { %3202 = vmatpush3.bf16.msra.mxu0 %v3521_v7  ;;  %v3566_v7 = vld [vmem:[%s4376_s4 + $0x2d0] sm:$0xff]  }
  0x68   : > { %3222 = vmatpush3.bf16.msra.mxu1 %v3522_v11  ;;  %3227 = vmatprep.subr.bf16.mxu0 %v3655_v1  ;;  %v3570_v11 = vld [vmem:[%s4376_s4 + $0x2e0] sm:$0xff]  }
  0x69   : > { %3247 = vmatprep.subr.bf16.mxu1 %v3655_v1 }
  0x6a   : > { %3204 = vmatmul.mubr.bf16.vlgmr.msra.gmra.mrb[8].mxu0 %v2672_v12  ;;  %v1631_v12 = vld [vmem:[%s4085_s13] sm:$0xe] }
  0x6b   : > { %3224 = vmatmul.mubr.bf16.vlgmr.msra.gmra.mrb[8].mxu1 %v1067_v13  ;;  %3228 = vmatpush3.bf16.msra.mxu0 %v3525_v14  ;;  %v1745_v13 = vld [vmem:[%s4085_s13 + $0x4] sm:$0x7]  ;;  %v3571_v14 = vld [vmem:[%s4376_s4 + $0x2a8] sm:$0xff]  }
  0x6c   : > { %3248 = vmatpush3.bf16.msra.mxu1 %v3526_v15  ;;  %3229 = vmatprep.subr.bf16.mxu0 %v3655_v1  ;;  %v2847_v15 = vcombine.low %v1631_v12, %v1745_v13 }
  0x6d   : > { %3249 = vmatprep.subr.bf16.mxu1 %v3655_v1  ;;  %3243 = vmatprep.mubr.msk.bf16.mxu0 %vm3656_vm0, %v3655_v1 }
  0x6e   : > { %3263 = vmatprep.mubr.msk.bf16.mxu1 %vm3656_vm0, %v3655_v1 }
  0x6f   : > { %3230 = vmatpush3.bf16.msra.mxu0 %v3527_v16  ;;  %v3572_v16 = vld [vmem:[%s4376_s4 + $0x2e8] sm:$0xff]  }
  0x70   : > { %3250 = vmatpush3.bf16.msra.mxu1 %v3528_v17  ;;  %3231 = vmatprep.subr.bf16.mxu0 %v3655_v1  ;;  %v3573_v17 = vld [vmem:[%s4376_s4 + $0x2b0] sm:$0xff]  }
  0x71   : > { %3251 = vmatprep.subr.bf16.mxu1 %v3655_v1 }
  0x73   : > { %3232 = vmatpush3.bf16.msra.mxu0 %v3529_v18  ;;  %v1767_v18 = vshrl.u32 %v2847_v15, 16 }
  0x74   : > { %3252 = vmatpush3.bf16.msra.mxu1 %v3530_v19  ;;  %3233 = vmatprep.subr.bf16.mxu0 %v3655_v1  ;;  %v1770_v19 = vshll.u32 %v2847_v15, 16 }
  0x75   : > { %3253 = vmatprep.subr.bf16.mxu1 %v3655_v1 }
  0x76   : > { %v1772_v24 = vrot.slane %v1770_v19, 2 }
  0x77   : > { %3234 = vmatpush3.bf16.msra.mxu0 %v3531_v20  ;;  %v3574_v20 = vld [vmem:[%s4376_s4 + $0x2f0] sm:$0xff]  }
  0x78   : > { %3254 = vmatpush3.bf16.msra.mxu1 %v3532_v21  ;;  %3235 = vmatprep.subr.bf16.mxu0 %v3655_v1  ;;  %v2822_v21 = vcombine.low %v1631_v12, %v4096_v51 }
  0x79   : > { %3255 = vmatprep.subr.bf16.mxu1 %v3655_v1 }
  0x7b   : > { %3236 = vmatpush3.bf16.msra.mxu0 %v3533_v22  ;;  %v3575_v22 = vld [vmem:[%s4376_s4 + $0x2b8] sm:$0xff]  }
  0x7c   : > { %3256 = vmatpush3.bf16.msra.mxu1 %v3534_v23  ;;  %3237 = vmatprep.subr.bf16.mxu0 %v3655_v1  ;;  %v1769_v23 = vrot.slane %v1767_v18, 1 }
  0x7d   : > { %3257 = vmatprep.subr.bf16.mxu1 %v3655_v1 }
  0x7e   : > { %v1773_v27 = vor.u32 %v1772_v24, %v1769_v23  ;;  %v3612_v23 = vld [vmem:[%s4376_s4 + $0x3f8] sm:$0xff]  }
  0x7f   : > { %3238 = vmatpush3.bf16.msra.mxu0 %v3535_v26  ;;  %v1652_v26 = vrot.slane %v2822_v21, 1 }
  0x80   : > { %3258 = vmatpush3.bf16.msra.mxu1 %v3536_v28  ;;  %3239 = vmatprep.subr.bf16.mxu0 %v3655_v1  ;;  %v3579_v28 = vld [vmem:[%s4376_s4 + $0x300] sm:$0xff]  }
  0x81   : > { %3259 = vmatprep.subr.bf16.mxu1 %v3655_v1 }
  0x83   : > { %3240 = vmatpush3.bf16.msra.mxu0 %v3537_v29  ;;  %v3580_v29 = vld [vmem:[%s4376_s4 + $0x340] sm:$0xff]  }
  0x84   : > { %3260 = vmatpush3.bf16.msra.mxu1 %v3538_v32  ;;  %3241 = vmatprep.subr.bf16.mxu0 %v3655_v1  ;;  %v3583_v32 = vld [vmem:[%s4376_s4 + $0x310] sm:$0xff]  }
  0x85   : > { %3261 = vmatprep.subr.bf16.mxu1 %v3655_v1 }
  0x87   : > { %3242 = vmatpush3.bf16.msra.mxu0 %v3539_v34  ;;  %v3585_v34 = vld [vmem:[%s4376_s4 + $0x318] sm:$0xff]  }
  0x88   : > { %3262 = vmatpush3.bf16.msra.mxu1 %v3540_v35  ;;  %3267 = vmatprep.subr.bf16.mxu0 %v3655_v1  ;;  %v3586_v35 = vld [vmem:[%s4376_s4 + $0x358] sm:$0xff]  }
  0x89   : > { %3287 = vmatprep.subr.bf16.mxu1 %v3655_v1 }
  0x8a   : > { %3244 = vmatmul.mubr.bf16.vlgmr.msra.gmra.mrb[12].mxu0 %v1181_v38  ;;  %v1866_v38 = vld [vmem:[%s4237_s30] sm:$0xf] }
  0x8b   : > { %3264 = vmatmul.mubr.bf16.vlgmr.msra.gmra.mrb[12].mxu1 %v1302_v39  ;;  %3268 = vmatpush3.bf16.msra.mxu0 %v3543_v40  ;;  %v4248_v39 = vld [vmem:[%s4237_s30 + $0x4] sm:$0x3]  ;;  %v3589_v40 = vld [vmem:[%s4376_s4 + $0x328] sm:$0xff]  }
  0x8c   : > { %3288 = vmatpush3.bf16.msra.mxu1 %v3544_v41  ;;  %3269 = vmatprep.subr.bf16.mxu0 %v3655_v1  ;;  %v2897_v41 = vcombine.low %v1866_v38, %v4248_v39 }
  0x8d   : > { %3289 = vmatprep.subr.bf16.mxu1 %v3655_v1  ;;  %3283 = vmatprep.mubr.msk.bf16.mxu0 %vm3656_vm0, %v3655_v1 }
  0x8e   : > { %3303 = vmatprep.mubr.msk.bf16.mxu1 %vm3656_vm0, %v3655_v1 }
  0x8f   : > { %3270 = vmatpush3.bf16.msra.mxu0 %v3545_v42  ;;  %v3590_v42 = vld [vmem:[%s4376_s4 + $0x368] sm:$0xff]  }
  0x90   : > { %3290 = vmatpush3.bf16.msra.mxu1 %v3546_v43  ;;  %3271 = vmatprep.subr.bf16.mxu0 %v3655_v1  ;;  %v3591_v43 = vld [vmem:[%s4376_s4 + $0x330] sm:$0xff]  }
  0x91   : > { %3291 = vmatprep.subr.bf16.mxu1 %v3655_v1 }
  0x93   : > { %3272 = vmatpush3.bf16.msra.mxu0 %v3547_v44  ;;  %v2006_v44 = vshll.u32 %v2897_v41, 16 }
  0x94   : > { %3292 = vmatpush3.bf16.msra.mxu1 %v3548_v45  ;;  %3273 = vmatprep.subr.bf16.mxu0 %v3655_v1  ;;  %v3592_v45 = vld [vmem:[%s4376_s4 + $0x370] sm:$0xff]  }
  0x95   : > { %3293 = vmatprep.subr.bf16.mxu1 %v3655_v1 }
  0x97   : > { %3274 = vmatpush3.bf16.msra.mxu0 %v3549_v46  ;;  %v3593_v46 = vld [vmem:[%s4376_s4 + $0x338] sm:$0xff]  }
  0x98   : > { %3294 = vmatpush3.bf16.msra.mxu1 %v3550_v47  ;;  %3275 = vmatprep.subr.bf16.mxu0 %v3655_v1  ;;  %v1867_v47 = vld [vmem:[%s4237_s30 + $0x4] sm:$0x1] }
  0x99   : > { %3295 = vmatprep.subr.bf16.mxu1 %v3655_v1  ;;  %v2872_v51 = vcombine.low %v1866_v38, %v1867_v47 }
  0x9b   : > { %3276 = vmatpush3.bf16.msra.mxu0 %v3551_v48  ;;  %v2004_v48 = vshrl.u32 %v2897_v41, 16 }
  0x9c   : > { %3296 = vmatpush3.bf16.msra.mxu1 %v3552_v49  ;;  %3277 = vmatprep.subr.bf16.mxu0 %v3655_v1  ;;  %v2008_v49 = vrot.slane %v2006_v44, 1 }
  0x9d   : > { %3297 = vmatprep.subr.bf16.mxu1 %v3655_v1 }
  0x9f   : > { %3278 = vmatpush3.bf16.msra.mxu0 %v3553_v52  ;;  %v2009_v52 = vor.u32 %v2008_v49, %v2004_v48 }
  0xa0   : > { %3298 = vmatpush3.bf16.msra.mxu1 %v3554_v54  ;;  %3279 = vmatprep.subr.bf16.mxu0 %v3655_v1  ;;  %v3598_v54 = vld [vmem:[%s4376_s4 + $0x3c0] sm:$0xff]  }
  0xa1   : > { %3299 = vmatprep.subr.bf16.mxu1 %v3655_v1 }
  0xa3   : > { %3280 = vmatpush3.bf16.msra.mxu0 %v3555_v55  ;;  %v3599_v55 = vld [vmem:[%s4376_s4 + $0x388] sm:$0xff]  }
  0xa4   : > { %3300 = vmatpush3.bf16.msra.mxu1 %v3556_v57  ;;  %3281 = vmatprep.subr.bf16.mxu0 %v3655_v1  ;;  %v3601_v57 = vld [vmem:[%s4376_s4 + $0x390] sm:$0xff]  }
  0xa5   : > { %3301 = vmatprep.subr.bf16.mxu1 %v3655_v1 }
  0xa7   : > { %3282 = vmatpush3.bf16.msra.mxu0 %v3557_v58  ;;  %v3602_v58 = vld [vmem:[%s4376_s4 + $0x3d0] sm:$0xff]  }
  0xa8   : > { %3302 = vmatpush3.bf16.msra.mxu1 %v3558_v62  ;;  %3307 = vmatprep.subr.bf16.mxu0 %v3655_v1  ;;  %v3606_v62 = vld [vmem:[%s4376_s4 + $0x3e0] sm:$0xff]  }
  0xa9   : > { %3327 = vmatprep.subr.bf16.mxu1 %v3655_v1 }
  0xaa   : > { %3284 = vmatmul.mubr.bf16.vlgmr.msra.gmra.mrb[16].mxu0 %v2772_v63  ;;  %v2102_v63 = vld [vmem:[%s4237_s30] sm:$0xe] }
  0xab   : > { %3304 = vmatmul.mubr.bf16.vlgmr.msra.gmra.mrb[16].mxu1 %v1538_v0  ;;  %3308 = vmatpush3.bf16.msra.mxu0 %v3561_v2  ;;  %v2216_v0 = vld [vmem:[%s4237_s30 + $0x4] sm:$0x7]  ;;  %v3607_v2 = vld [vmem:[%s4376_s4 + $0x3a8] sm:$0xff]   ;;  %v2922_v19 = vcombine.low %v2102_v63, %v4248_v39 }
  0xac   : > { %3328 = vmatpush3.bf16.msra.mxu1 %v3562_v3  ;;  %3309 = vmatprep.subr.bf16.mxu0 %v3655_v1  ;;  %v2947_v3 = vcombine.low %v2102_v63, %v2216_v0 }
  0xad   : > { %3329 = vmatprep.subr.bf16.mxu1 %v3655_v1  ;;  %3323 = vmatprep.mubr.msk.bf16.mxu0 %vm3656_vm0, %v3655_v1  ;;  %v2123_v24 = vrot.slane %v2922_v19, 1 }
  0xae   : > { %3343 = vmatprep.mubr.msk.bf16.mxu1 %vm3656_vm0, %v3655_v1  ;;  %v2238_v12 = vshrl.u32 %v2947_v3, 16  ;;  %v2241_v13 = vshll.u32 %v2947_v3, 16 }
  0xaf   : > { %3310 = vmatpush3.bf16.msra.mxu0 %v3563_v4  ;;  %v3608_v4 = vld [vmem:[%s4376_s4 + $0x3e8] sm:$0xff]  }
  0xb0   : > { %3330 = vmatpush3.bf16.msra.mxu1 %v3564_v5  ;;  %3311 = vmatprep.subr.bf16.mxu0 %v3655_v1  ;;  %v2240_v21 = vrot.slane %v2238_v12, 1 }
  0xb1   : > { %3331 = vmatprep.subr.bf16.mxu1 %v3655_v1 }
  0xb3   : > { %3312 = vmatpush3.bf16.msra.mxu0 %v3565_v6 }
  0xb4   : > { %3332 = vmatpush3.bf16.msra.mxu1 %v3566_v7  ;;  %3313 = vmatprep.subr.bf16.mxu0 %v3655_v1 }
  0xb5   : > { %3333 = vmatprep.subr.bf16.mxu1 %v3655_v1 }
  0xb7   : > { %3314 = vmatpush3.bf16.msra.mxu0 %v3567_v8 }
  0xb8   : > { %3334 = vmatpush3.bf16.msra.mxu1 %v3568_v9  ;;  %3315 = vmatprep.subr.bf16.mxu0 %v3655_v1 }
  0xb9   : > { %3335 = vmatprep.subr.bf16.mxu1 %v3655_v1 }
  0xbb   : > { %3316 = vmatpush3.bf16.msra.mxu0 %v3569_v10 }
  0xbc   : > { %3336 = vmatpush3.bf16.msra.mxu1 %v3570_v11  ;;  %3317 = vmatprep.subr.bf16.mxu0 %v3655_v1  ;;  %v3609_v11 = vld [vmem:[%s4376_s4 + $0x3b0] sm:$0xff]  }
  0xbd   : > { %3337 = vmatprep.subr.bf16.mxu1 %v3655_v1 }
  0xbf   : > { %3318 = vmatpush3.bf16.msra.mxu0 %v3571_v14 }
  0xc0   : > { %3338 = vmatpush3.bf16.msra.mxu1 %v3572_v16  ;;  %3319 = vmatprep.subr.bf16.mxu0 %v3655_v1  ;;  %v3610_v16 = vld [vmem:[%s4376_s4 + $0x3f0] sm:$0xff]  }
  0xc1   : > { %3339 = vmatprep.subr.bf16.mxu1 %v3655_v1 }
  0xc3   : > { %3320 = vmatpush3.bf16.msra.mxu0 %v3573_v17 }
  0xc4   : > { %3340 = vmatpush3.bf16.msra.mxu1 %v3574_v20  ;;  %3321 = vmatprep.subr.bf16.mxu0 %v3655_v1  ;;  %v3611_v20 = vld [vmem:[%s4376_s4 + $0x3b8] sm:$0xff]  }
  0xc5   : > { %3341 = vmatprep.subr.bf16.mxu1 %v3655_v1 }
  0xc7   : > { %3322 = vmatpush3.bf16.msra.mxu0 %v3575_v22  ;;  %v2243_v22 = vrot.slane %v2241_v13, 2 }
  0xc8   : > { %3342 = vmatpush3.bf16.msra.mxu1 %v3576_v25  ;;  %3347 = vmatprep.subr.bf16.mxu0 %v3655_v1 }
  0xc9   : > { %3367 = vmatprep.subr.bf16.mxu1 %v3655_v1  ;;  %v2244_v25 = vor.u32 %v2243_v22, %v2240_v21 }
  0xca   : > { %3324 = vmatmul.mubr.bf16.vlgmr.msra.gmra.mrb[20].mxu0 %v1652_v26 }
  0xcb   : > { %3344 = vmatmul.mubr.bf16.vlgmr.msra.gmra.mrb[20].mxu1 %v1773_v27  ;;  %3348 = vmatpush3.bf16.msra.mxu0 %v3579_v28 }
  0xcc   : > { %3368 = vmatpush3.bf16.msra.mxu1 %v3580_v29  ;;  %3349 = vmatprep.subr.bf16.mxu0 %v3655_v1 }
  0xcd   : > { %3369 = vmatprep.subr.bf16.mxu1 %v3655_v1  ;;  %3363 = vmatprep.mubr.msk.bf16.mxu0 %vm3656_vm0, %v3655_v1 }
  0xce   : > { %3383 = vmatprep.mubr.msk.bf16.mxu1 %vm3656_vm0, %v3655_v1 }
  0xcf   : > { %3350 = vmatpush3.bf16.msra.mxu0 %v3581_v30 }
  0xd0   : > { %3370 = vmatpush3.bf16.msra.mxu1 %v3582_v31  ;;  %3351 = vmatprep.subr.bf16.mxu0 %v3655_v1 }
  0xd1   : > { %3371 = vmatprep.subr.bf16.mxu1 %v3655_v1 }
  0xd3   : > { %3352 = vmatpush3.bf16.msra.mxu0 %v3583_v32 }
  0xd4   : > { %3372 = vmatpush3.bf16.msra.mxu1 %v3584_v33  ;;  %3353 = vmatprep.subr.bf16.mxu0 %v3655_v1 }
  0xd5   : > { %3373 = vmatprep.subr.bf16.mxu1 %v3655_v1 }
  0xd7   : > { %3354 = vmatpush3.bf16.msra.mxu0 %v3585_v34 }
  0xd8   : > { %3374 = vmatpush3.bf16.msra.mxu1 %v3586_v35  ;;  %3355 = vmatprep.subr.bf16.mxu0 %v3655_v1 }
  0xd9   : > { %3375 = vmatprep.subr.bf16.mxu1 %v3655_v1 }
  0xdb   : > { %3356 = vmatpush3.bf16.msra.mxu0 %v3587_v36 }
  0xdc   : > { %3376 = vmatpush3.bf16.msra.mxu1 %v3588_v37  ;;  %3357 = vmatprep.subr.bf16.mxu0 %v3655_v1 }
  0xdd   : > { %3377 = vmatprep.subr.bf16.mxu1 %v3655_v1 }
  0xdf   : > { %3358 = vmatpush3.bf16.msra.mxu0 %v3589_v40 }
  0xe0   : > { %3378 = vmatpush3.bf16.msra.mxu1 %v3590_v42  ;;  %3359 = vmatprep.subr.bf16.mxu0 %v3655_v1 }
  0xe1   : > { %3379 = vmatprep.subr.bf16.mxu1 %v3655_v1 }
  0xe3   : > { %3360 = vmatpush3.bf16.msra.mxu0 %v3591_v43 }
  0xe4   : > { %3380 = vmatpush3.bf16.msra.mxu1 %v3592_v45  ;;  %3361 = vmatprep.subr.bf16.mxu0 %v3655_v1 }
  0xe5   : > { %3381 = vmatprep.subr.bf16.mxu1 %v3655_v1 }
  0xe7   : > { %3362 = vmatpush3.bf16.msra.mxu0 %v3593_v46 }
  0xe8   : > { %3382 = vmatpush3.bf16.msra.mxu1 %v3594_v50  ;;  %3387 = vmatprep.subr.bf16.mxu0 %v3655_v1 }
  0xe9   : > { %3407 = vmatprep.subr.bf16.mxu1 %v3655_v1 }
  0xea   : > { %3364 = vmatmul.mubr.bf16.vlgmr.msra.gmra.mrb[24].mxu0 %v2872_v51 }
  0xeb   : > { %3384 = vmatmul.mubr.bf16.vlgmr.msra.gmra.mrb[24].mxu1 %v2009_v52  ;;  %3388 = vmatpush3.bf16.msra.mxu0 %v3597_v53 }
  0xec   : > { %3408 = vmatpush3.bf16.msra.mxu1 %v3598_v54  ;;  %3389 = vmatprep.subr.bf16.mxu0 %v3655_v1 }
  0xed   : > { %3409 = vmatprep.subr.bf16.mxu1 %v3655_v1  ;;  %3403 = vmatprep.mubr.msk.bf16.mxu0 %vm3656_vm0, %v3655_v1 }
  0xee   : > { %3423 = vmatprep.mubr.msk.bf16.mxu1 %vm3656_vm0, %v3655_v1 }
  0xef   : > { %3390 = vmatpush3.bf16.msra.mxu0 %v3599_v55 }
  0xf0   : > { %3410 = vmatpush3.bf16.msra.mxu1 %v3600_v56  ;;  %3391 = vmatprep.subr.bf16.mxu0 %v3655_v1 }
  0xf1   : > { %3411 = vmatprep.subr.bf16.mxu1 %v3655_v1 }
  0xf3   : > { %3392 = vmatpush3.bf16.msra.mxu0 %v3601_v57 }
  0xf4   : > { %3412 = vmatpush3.bf16.msra.mxu1 %v3602_v58  ;;  %3393 = vmatprep.subr.bf16.mxu0 %v3655_v1 }
  0xf5   : > { %3413 = vmatprep.subr.bf16.mxu1 %v3655_v1 }
  0xf7   : > { %3394 = vmatpush3.bf16.msra.mxu0 %v3603_v59 }
  0xf8   : > { %3414 = vmatpush3.bf16.msra.mxu1 %v3604_v60  ;;  %3395 = vmatprep.subr.bf16.mxu0 %v3655_v1 }
  0xf9   : > { %3415 = vmatprep.subr.bf16.mxu1 %v3655_v1 }
  0xfb   : > { %3396 = vmatpush3.bf16.msra.mxu0 %v3605_v61 }
  0xfc   : > { %3416 = vmatpush3.bf16.msra.mxu1 %v3606_v62  ;;  %3397 = vmatprep.subr.bf16.mxu0 %v3655_v1 }
  0xfd   : > { %v589_v5 = vpop.f32.mrb[0].mxu0  ;;  %3417 = vmatprep.subr.bf16.mxu1 %v3655_v1 }
  0xfe   : > { %v682_v6 = vpop.f32.mrb[0].mxu1  ;;  %v3125_v7 = vpop.f32.mrb[1].mxu0 }
  0xff   : > { %v683_v8 = vadd.f32 %v682_v6, %v589_v5  ;;  %v3145_v9 = vpop.f32.mrb[1].mxu1  ;;  %v592_v10 = vpop.f32.mrb[2].mxu0  ;;  %3398 = vmatpush3.bf16.msra.mxu0 %v3607_v2 }
 0x100   : > { %v685_v14 = vpop.f32.mrb[2].mxu1  ;;  %3418 = vmatpush3.bf16.msra.mxu1 %v3608_v4  ;;  %v3126_v15 = vpop.f32.mrb[3].mxu0  ;;  %3399 = vmatprep.subr.bf16.mxu0 %v3655_v1 }
 0x101   : > { %v686_v17 = vadd.f32 %v685_v14, %v592_v10  ;;  %v3146_v18 = vpop.f32.mrb[3].mxu1  ;;  %3419 = vmatprep.subr.bf16.mxu1 %v3655_v1 }
 0x103   : > { %3400 = vmatpush3.bf16.msra.mxu0 %v3609_v11 }
 0x104   : > { %3420 = vmatpush3.bf16.msra.mxu1 %v3610_v16  ;;  %3401 = vmatprep.subr.bf16.mxu0 %v3655_v1 }
 0x105   : > { %3421 = vmatprep.subr.bf16.mxu1 %v3655_v1 }
 0x107   : > { %3402 = vmatpush3.bf16.msra.mxu0 %v3611_v20 }
 0x108   : > { %3422 = vmatpush3.bf16.msra.mxu1 %v3612_v23 }
 0x10a   : > { %3404 = vmatmul.mubr.bf16.vlgmr.msra.gmra.mrb[28].mxu0 %v2123_v24 }
 0x10b   : > { %3424 = vmatmul.mubr.bf16.vlgmr.msra.gmra.mrb[28].mxu1 %v2244_v25 }
 0x11d   : > { %v794_v26 = vpop.f32.mrb[4].mxu0 }
 0x11e   : > { %v801_v27 = vadd.f32 %v794_v26, %v683_v8  ;;  %v915_v28 = vpop.f32.mrb[4].mxu1  ;;  %v3165_v29 = vpop.f32.mrb[5].mxu0 }
 0x11f   : > { %v3185_v30 = vpop.f32.mrb[5].mxu1  ;;  %v797_v31 = vpop.f32.mrb[6].mxu0 }
 0x120   : > { %v922_v32 = vadd.f32 %v915_v28, %v801_v27  ;;  %v802_v33 = vadd.f32 %v797_v31, %v686_v17  ;;  %v918_v34 = vpop.f32.mrb[6].mxu1  ;;  %v3166_v35 = vpop.f32.mrb[7].mxu0 }
 0x121   : > { %v3186_v36 = vpop.f32.mrb[7].mxu1 }
 0x122   : > { %v923_v37 = vadd.f32 %v918_v34, %v802_v33 }
 0x13d   : > { %v1031_v38 = vpop.f32.mrb[8].mxu0 }
 0x13e   : > { %v1038_v1 = vadd.f32 %v1031_v38, %v922_v32  ;;  %v1151_v39 = vpop.f32.mrb[8].mxu1  ;;  %v3205_v40 = vpop.f32.mrb[9].mxu0  ;;  %v2956_v38 = vld [vmem:[%s4377_s5] ss:$0 sm:$0xff] }
 0x13f   : > { %v3225_v41 = vpop.f32.mrb[9].mxu1  ;;  %v1034_v42 = vpop.f32.mrb[10].mxu0 }
 0x140   : > { %v1158_v43 = vadd.f32 %v1151_v39, %v1038_v1  ;;  %v1039_v44 = vadd.f32 %v1034_v42, %v923_v37  ;;  %v1154_v45 = vpop.f32.mrb[10].mxu1  ;;  %v3206_v46 = vpop.f32.mrb[11].mxu0 }
 0x141   : > { %v3226_v47 = vpop.f32.mrb[11].mxu1 }
 0x142   : > { %v1159_v48 = vadd.f32 %v1154_v45, %v1039_v44 }
 0x15d   : > { %v1265_v49 = vpop.f32.mrb[12].mxu0 }
 0x15e   : > { %v1272_v50 = vadd.f32 %v1265_v49, %v1158_v43  ;;  %v1386_v51 = vpop.f32.mrb[12].mxu1  ;;  %v3245_v52 = vpop.f32.mrb[13].mxu0 }
 0x15f   : > { %v3265_v53 = vpop.f32.mrb[13].mxu1  ;;  %v1268_v54 = vpop.f32.mrb[14].mxu0 }
 0x160   : > { %v1393_v55 = vadd.f32 %v1386_v51, %v1272_v50  ;;  %v1273_v56 = vadd.f32 %v1268_v54, %v1159_v48  ;;  %v1389_v57 = vpop.f32.mrb[14].mxu1  ;;  %v3246_v58 = vpop.f32.mrb[15].mxu0 }
 0x161   : > { %v3266_v59 = vpop.f32.mrb[15].mxu1 }
 0x162   : > { %v1394_v60 = vadd.f32 %v1389_v57, %v1273_v56 }
 0x17d   : > { %v1502_v61 = vpop.f32.mrb[16].mxu0 }
 0x17e   : > { %v1509_v62 = vadd.f32 %v1502_v61, %v1393_v55  ;;  %v1622_v63 = vpop.f32.mrb[16].mxu1  ;;  %v3285_v0 = vpop.f32.mrb[17].mxu0 }
 0x17f   : > { %v3305_v2 = vpop.f32.mrb[17].mxu1  ;;  %v1505_v3 = vpop.f32.mrb[18].mxu0 }
 0x180   : > { %v1629_v4 = vadd.f32 %v1622_v63, %v1509_v62  ;;  %v1510_v5 = vadd.f32 %v1505_v3, %v1394_v60  ;;  %v1625_v6 = vpop.f32.mrb[18].mxu1  ;;  %v3286_v7 = vpop.f32.mrb[19].mxu0 }
 0x181   : > { %v3306_v8 = vpop.f32.mrb[19].mxu1 }
 0x182   : > { %v1630_v9 = vadd.f32 %v1625_v6, %v1510_v5 }
 0x19d   : > { %v1736_v10 = vpop.f32.mrb[20].mxu0 }
 0x19e   : > { %v1743_v11 = vadd.f32 %v1736_v10, %v1629_v4  ;;  %v1857_v12 = vpop.f32.mrb[20].mxu1  ;;  %v3325_v13 = vpop.f32.mrb[21].mxu0 }
 0x19f   : > { %v3345_v14 = vpop.f32.mrb[21].mxu1  ;;  %v1739_v15 = vpop.f32.mrb[22].mxu0 }
 0x1a0   : > { %v1864_v16 = vadd.f32 %v1857_v12, %v1743_v11  ;;  %v1744_v17 = vadd.f32 %v1739_v15, %v1630_v9  ;;  %v1860_v18 = vpop.f32.mrb[22].mxu1  ;;  %v3326_v19 = vpop.f32.mrb[23].mxu0 }
 0x1a1   : > { %v3346_v20 = vpop.f32.mrb[23].mxu1 }
 0x1a2   : > { %v1865_v21 = vadd.f32 %v1860_v18, %v1744_v17 }
 0x1bd   : > { %v1973_v22 = vpop.f32.mrb[24].mxu0 }
 0x1be   : > { %v1980_v23 = vadd.f32 %v1973_v22, %v1864_v16  ;;  %v2093_v24 = vpop.f32.mrb[24].mxu1  ;;  %v3365_v25 = vpop.f32.mrb[25].mxu0 }
 0x1bf   : > { %v3385_v26 = vpop.f32.mrb[25].mxu1  ;;  %v1976_v27 = vpop.f32.mrb[26].mxu0 }
 0x1c0   : > { %v2100_v28 = vadd.f32 %v2093_v24, %v1980_v23  ;;  %v1981_v29 = vadd.f32 %v1976_v27, %v1865_v21  ;;  %v2096_v30 = vpop.f32.mrb[26].mxu1  ;;  %v3366_v31 = vpop.f32.mrb[27].mxu0 }
 0x1c1   : > { %v3386_v32 = vpop.f32.mrb[27].mxu1 }
 0x1c2   : > { %v2101_v33 = vadd.f32 %v2096_v30, %v1981_v29 }
 0x1dd   : > { %v2207_v34 = vpop.f32.mrb[28].mxu0 }
 0x1de   : > { %v2214_v35 = vadd.f32 %v2207_v34, %v2100_v28  ;;  %v2328_v36 = vpop.f32.mrb[28].mxu1  ;;  %v3405_v37 = vpop.f32.mrb[29].mxu0 }
 0x1df   : > { %v3425_v1 = vpop.f32.mrb[29].mxu1  ;;  %v2210_v39 = vpop.f32.mrb[30].mxu0 }
 0x1e0   : > { %v2335_v40 = vadd.f32 %v2328_v36, %v2214_v35  ;;  %v2215_v41 = vadd.f32 %v2210_v39, %v2101_v33  ;;  %v2331_v42 = vpop.f32.mrb[30].mxu1  ;;  %v3406_v43 = vpop.f32.mrb[31].mxu0 }
 0x1e1   : > { %v3426_v44 = vpop.f32.mrb[31].mxu1 }
 0x1e2   : > { %v2344_v45 = vadd.f32 %v2956_v38, %v2335_v40  ;;  %v2336_v46 = vadd.f32 %v2331_v42, %v2215_v41 }
 0x1e4   : > { %v2961_v47 = vpack.c.bf16 %v2344_v45, %v2344_v45  ;;  %v2345_v48 = vadd.f32 %v2956_v38, %v2336_v46 }
 0x1e6   : > { %2354 = vst [vmem:[%s456_s29] sm:$0xf] %v2961_v47  ;;  %v2962_v49 = vpack.c.bf16 %v2345_v48, %v2345_v48 }
 0x1e8   : > { %2355 = vst [vmem:[%s456_s29 + $0x4] sm:$0x1] %v2962_v49 }
 0x1e9 PF: > { %s16_s25 = sadd.s32 1, %s3653_s25   ;;  %s4380_s21 = smov %s3645_s23 }
 0x1ea   : > { %p13_p11 = scmp.ge.s32.totalorder %s16_s25, 22   ;;  %s4381_s22 = smov %s3649_s24 }
 0x1eb   : > { %s4382_s23 = smov %s4385_s26  ;;  %s4383_s24 = smov %s4389_s27 }
 0x1ec   :  { %15 = sbr.rel (!%p13_p11) target bundleno = 3 (0x3), region = 104 }

// kernel: discriminator_wavelet_forward.11
= control target key start
LH: loop header
LB: loop body
LE: loop exit
PB: predicated region body
PF: predicated region fallthrough
CT: control target
= control target key end

     0   :  { %s4832_s21 = smov 0   ;;  %s4834_s22 = smov 0   ;;  %s5831_s0 = inlined_call_operand.vmem [shape: bf16[2,14,14,128], index: 0, kind: input, shape index: {}, may-alias: {0,1,2,3}]   ;;  %s5832_s1 = inlined_call_operand.vmem [shape: bf16[2,14,14,128], index: 1, kind: input, shape index: {}, may-alias: {0,1,2,3}]   ;;  %s5833_s2 = inlined_call_operand.vmem [shape: bf16[2,14,14,128], index: 2, kind: input, shape index: {}, may-alias: {0,1,2,3}]   ;;  %s5834_s3 = inlined_call_operand.vmem [shape: bf16[2,14,14,128], index: 3, kind: input, shape index: {}, may-alias: {0,1,2,3}]   ;;  %s5835_s4 = inlined_call_operand.vmem [shape: bf16[4,4,128,256], index: 4, kind: input, shape index: {}]   ;;  %s5836_s5 = inlined_call_operand.vmem [shape: f32[1,256], index: 5, kind: input, shape index: {}]   ;;  %s5837_s6 = inlined_call_operand.vmem [shape: bf16[2,11,11,256], index: 6, kind: output, shape index: {}]  }
   0x1   :  { %s4836_s23 = smov 0   ;;  %s4838_s24 = smov 0  }
   0x2   :  { %s4840_s25 = smov 0   ;;  %s4842_s26 = smov 0  }
   0x3   :  { %s4844_s27 = smov 0   ;;  %s4846_s28 = smov 0  }
   0x4   :  { %s4848_s29 = smov 0   ;;  %s4850_s30 = smov 0  }
   0x5   :  { %s4852_s7 = smov 0  }
   0x6 LB: > { %5842 = sst [smem:[#allocation4_spill]] %s4785_s29  ;;  %s28_s8 = sadd.s32 1, %s4781_s28  ;;  %s4793_s7 = sphi %s4852_s7, %s16_s7   ;;  %s4789_s30 = sphi %s4850_s30, %s5859_s30   ;;  %s4785_s29 = sphi %s4848_s29, %s5850_s29   ;;  %s4781_s28 = sphi %s4846_s28, %s5858_s28   ;;  %s4777_s27 = sphi %s4844_s27, %s5857_s27   ;;  %s4773_s26 = sphi %s4842_s26, %s5848_s26   ;;  %s4769_s25 = sphi %s4840_s25, %s5856_s25   ;;  %s4765_s24 = sphi %s4838_s24, %s5855_s24   ;;  %s4761_s23 = sphi %s4836_s23, %s5854_s23   ;;  %s4757_s22 = sphi %s4834_s22, %s5853_s22   ;;  %s4753_s21 = sphi %s4832_s21, %s5852_s21  }
   0x7   : > { %p29_p0 = scmp.ge.s32.totalorder %s28_s8, 11  ;;  %s31_s9 = sadd.s32 1, %s4785_s29 }
   0x8   : > { %s3612_s10 = sadd.s32 4294967295, %s4793_s7   ;;  %p167_p1 = scmp.ne.s32.totalorder %s4765_s24, %s4761_s23 }
   0x9   : > { %s5861_s8 = smov (%p29_p0, %s28_s8), 0  ;;  %s5863_s9 = smov (!%p29_p0, %s31_s9), %s4785_s29 }
   0xa   : > { %5843 = sst [smem:[#allocation5_spill]] %s5861_s8  ;;  %p168_p2 = scmp.eq.s32.totalorder %s4793_s7, 0 }
   0xb   : > { %p33_p3 = scmp.ge.s32.totalorder %s5863_s9, 2  ;;  %s35_s11 = sadd.s32 1, %s4789_s30 }
   0xc   : > { %p4897_p4 = por %p168_p2, %p167_p1  ;;  %s210_s13 = ssub.s32 %s4781_s28, %s5861_s8 }
   0xd   : > { %s5865_s9 = smov (%p33_p3, %s5863_s9), 0  ;;  %s5867_s11 = smov (!%p33_p3, %s35_s11), %s4789_s30 }
   0xe   : > { %5845 = sst [smem:[#allocation6_spill]] %s5865_s9  ;;  %s209_s14 = ssub.s32 %s4785_s29, %s5865_s9 }
   0xf   : > { %p226_p5 = scmp.ne.s32.totalorder %s4757_s22, %s4753_s21  ;;  %p37_p6 = scmp.ge.s32.totalorder %s5867_s11, 2 }
  0x10   : > { %s211_s15 = sor.u32 %s210_s13, %s209_s14  ;;  %p227_p7 = scmp.eq.s32.totalorder %s3612_s10, 43 }
  0x11   : > { %s5869_s11 = smov (%p37_p6, %s5867_s11), 0  ;;  %s160_s16 = sadd.s32 1, %s4765_s24 }
  0x12   : > { %5846 = sst [smem:[#allocation7_spill]] %s5869_s11  ;;  %p4913_p8 = por %p227_p7, %p226_p5 }
  0x13   : > { %s157_s18 = ssub.s32 %s4789_s30, %s5869_s11  ;;  %s216_s19 = sadd.s32 1, %s4757_s22 }
  0x14   : > { %p158_p9 = scmp.eq.s32.totalorder %s157_s18, 0  ;;  %s213_s20 = sor.u32 %s211_s15, %s157_s18 }
  0x15   : > { %p214_p10 = scmp.eq.s32.totalorder %s213_s20, 0  ;;  %p3615_p11 = scmp.ge.s32.totalorder %s4793_s7, 44 }
  0x16   : > { %s4921_s8 = scalar_select %p158_p9, %s4765_s24, %s160_s16  }
  0x17   : > { %s4924_s9 = scalar_select %p214_p10, %s4757_s22, %s216_s19  }
  0x18   : > { %249 = sbr.rel (%p3615_p11) target bundleno = 205 (0xcd), region = 16 }
  0x1f   : > { %306 = sbr.rel (!%p4897_p4) target bundleno = 205 (0xcd), region = 36  ;;  %s308_s10 = sand.u32 (%p4897_p4), 1, %s4765_s24  }
  0x20   : > { %s3617_s13 = sshll.u32 (%p4897_p4), %s4789_s30, 2  ;;  %s3616_s14 = sshll.u32 (%p4897_p4), %s308_s10, 10 }
  0x21   : > { %s4934_s15 = scalar_lea.vmem (%p4897_p4), %s5835_s4, %s3617_s13  ;;  %s4938_s12 = scalar_lea.vmem (%p4897_p4), [#allocation2], %s3616_s14 }
  0x22   : > { %v328_v0 = vld [vmem:[%s4934_s15] sm:$0xf] (%p4897_p4)  ;;  %v330_v1 = vld [vmem:[%s4934_s15 + $0x8] sm:$0xf] (%p4897_p4)  ;;  %v332_v2 = vld [vmem:[%s4934_s15 + $0x10] sm:$0xf] (%p4897_p4) }
  0x23   : > { %329 = vst [vmem:[%s4938_s12] sm:$0xf] (%p4897_p4), %v328_v0  ;;  %331 = vst [vmem:[%s4938_s12 + $0x4] sm:$0xf] (%p4897_p4), %v330_v1  ;;  %v334_v3 = vld [vmem:[%s4934_s15 + $0x18] sm:$0xf] (%p4897_p4) }
  0x24   : > { %v336_v4 = vld [vmem:[%s4934_s15 + $0x20] sm:$0xf] (%p4897_p4)  ;;  %333 = vst [vmem:[%s4938_s12 + $0x8] sm:$0xf] (%p4897_p4), %v332_v2  ;;  %335 = vst [vmem:[%s4938_s12 + $0xc] sm:$0xf] (%p4897_p4), %v334_v3 }
  0x25   : > { %337 = vst [vmem:[%s4938_s12 + $0x10] sm:$0xf] (%p4897_p4), %v336_v4  ;;  %v338_v5 = vld [vmem:[%s4934_s15 + $0x28] sm:$0xf] (%p4897_p4)  ;;  %v340_v6 = vld [vmem:[%s4934_s15 + $0x30] sm:$0xf] (%p4897_p4) }
  0x26   : > { %v342_v7 = vld [vmem:[%s4934_s15 + $0x38] sm:$0xf]  ;;  %339 = vst [vmem:[%s4938_s12 + $0x14] sm:$0xf] %v338_v5  ;;  %341 = vst [vmem:[%s4938_s12 + $0x18] sm:$0xf] %v340_v6 }
  0x27   : > { %343 = vst [vmem:[%s4938_s12 + $0x1c] sm:$0xf] %v342_v7  ;;  %v344_v8 = vld [vmem:[%s4934_s15 + $0x40] sm:$0xf]  ;;  %v346_v9 = vld [vmem:[%s4934_s15 + $0x48] sm:$0xf] }
  0x28   : > { %v348_v10 = vld [vmem:[%s4934_s15 + $0x50] sm:$0xf]  ;;  %345 = vst [vmem:[%s4938_s12 + $0x20] sm:$0xf] %v344_v8  ;;  %347 = vst [vmem:[%s4938_s12 + $0x24] sm:$0xf] %v346_v9 }
  0x29   : > { %349 = vst [vmem:[%s4938_s12 + $0x28] sm:$0xf] %v348_v10  ;;  %v350_v11 = vld [vmem:[%s4934_s15 + $0x58] sm:$0xf]  ;;  %v352_v12 = vld [vmem:[%s4934_s15 + $0x60] sm:$0xf] }
  0x2a   : > { %v354_v13 = vld [vmem:[%s4934_s15 + $0x68] sm:$0xf]  ;;  %351 = vst [vmem:[%s4938_s12 + $0x2c] sm:$0xf] %v350_v11  ;;  %353 = vst [vmem:[%s4938_s12 + $0x30] sm:$0xf] %v352_v12 }
  0x2b   : > { %355 = vst [vmem:[%s4938_s12 + $0x34] sm:$0xf] %v354_v13  ;;  %v356_v14 = vld [vmem:[%s4934_s15 + $0x70] sm:$0xf]  ;;  %v358_v15 = vld [vmem:[%s4934_s15 + $0x78] sm:$0xf] }
  0x2c   : > { %v360_v16 = vld [vmem:[%s4934_s15 + $0x80] sm:$0xf]  ;;  %357 = vst [vmem:[%s4938_s12 + $0x38] sm:$0xf] %v356_v14  ;;  %359 = vst [vmem:[%s4938_s12 + $0x3c] sm:$0xf] %v358_v15 }
  0x2d   : > { %361 = vst [vmem:[%s4938_s12 + $0x40] sm:$0xf] %v360_v16  ;;  %v362_v17 = vld [vmem:[%s4934_s15 + $0x88] sm:$0xf]  ;;  %v364_v18 = vld [vmem:[%s4934_s15 + $0x90] sm:$0xf] }
  0x2e   : > { %v366_v19 = vld [vmem:[%s4934_s15 + $0x98] sm:$0xf]  ;;  %363 = vst [vmem:[%s4938_s12 + $0x44] sm:$0xf] %v362_v17  ;;  %365 = vst [vmem:[%s4938_s12 + $0x48] sm:$0xf] %v364_v18 }
  0x2f   : > { %367 = vst [vmem:[%s4938_s12 + $0x4c] sm:$0xf] %v366_v19  ;;  %v368_v20 = vld [vmem:[%s4934_s15 + $0xa0] sm:$0xf]  ;;  %v370_v21 = vld [vmem:[%s4934_s15 + $0xa8] sm:$0xf] }
  0x30   : > { %v372_v22 = vld [vmem:[%s4934_s15 + $0xb0] sm:$0xf]  ;;  %369 = vst [vmem:[%s4938_s12 + $0x50] sm:$0xf] %v368_v20  ;;  %371 = vst [vmem:[%s4938_s12 + $0x54] sm:$0xf] %v370_v21 }
  0x31   : > { %373 = vst [vmem:[%s4938_s12 + $0x58] sm:$0xf] %v372_v22  ;;  %v374_v23 = vld [vmem:[%s4934_s15 + $0xb8] sm:$0xf]  ;;  %v376_v24 = vld [vmem:[%s4934_s15 + $0xc0] sm:$0xf] }
  0x32   : > { %v378_v25 = vld [vmem:[%s4934_s15 + $0xc8] sm:$0xf]  ;;  %375 = vst [vmem:[%s4938_s12 + $0x5c] sm:$0xf] %v374_v23  ;;  %377 = vst [vmem:[%s4938_s12 + $0x60] sm:$0xf] %v376_v24 }
  0x33   : > { %379 = vst [vmem:[%s4938_s12 + $0x64] sm:$0xf] %v378_v25  ;;  %v380_v26 = vld [vmem:[%s4934_s15 + $0xd0] sm:$0xf]  ;;  %v382_v27 = vld [vmem:[%s4934_s15 + $0xd8] sm:$0xf] }
  0x34   : > { %v384_v28 = vld [vmem:[%s4934_s15 + $0xe0] sm:$0xf]  ;;  %381 = vst [vmem:[%s4938_s12 + $0x68] sm:$0xf] %v380_v26  ;;  %383 = vst [vmem:[%s4938_s12 + $0x6c] sm:$0xf] %v382_v27 }
  0x35   : > { %385 = vst [vmem:[%s4938_s12 + $0x70] sm:$0xf] %v384_v28  ;;  %v386_v29 = vld [vmem:[%s4934_s15 + $0xe8] sm:$0xf]  ;;  %v388_v30 = vld [vmem:[%s4934_s15 + $0xf0] sm:$0xf] }
  0x36   : > { %v390_v31 = vld [vmem:[%s4934_s15 + $0xf8] sm:$0xf]  ;;  %387 = vst [vmem:[%s4938_s12 + $0x74] sm:$0xf] %v386_v29  ;;  %389 = vst [vmem:[%s4938_s12 + $0x78] sm:$0xf] %v388_v30 }
  0x37   : > { %391 = vst [vmem:[%s4938_s12 + $0x7c] sm:$0xf] %v390_v31  ;;  %v392_v32 = vld [vmem:[%s4934_s15 + $0x100] sm:$0xf]  ;;  %v394_v33 = vld [vmem:[%s4934_s15 + $0x108] sm:$0xf] }
  0x38   : > { %v396_v34 = vld [vmem:[%s4934_s15 + $0x110] sm:$0xf]  ;;  %393 = vst [vmem:[%s4938_s12 + $0x80] sm:$0xf] %v392_v32  ;;  %395 = vst [vmem:[%s4938_s12 + $0x84] sm:$0xf] %v394_v33 }
  0x39   : > { %397 = vst [vmem:[%s4938_s12 + $0x88] sm:$0xf] %v396_v34  ;;  %v398_v35 = vld [vmem:[%s4934_s15 + $0x118] sm:$0xf]  ;;  %v400_v36 = vld [vmem:[%s4934_s15 + $0x120] sm:$0xf] }
  0x3a   : > { %v402_v37 = vld [vmem:[%s4934_s15 + $0x128] sm:$0xf]  ;;  %399 = vst [vmem:[%s4938_s12 + $0x8c] sm:$0xf] %v398_v35  ;;  %401 = vst [vmem:[%s4938_s12 + $0x90] sm:$0xf] %v400_v36 }
  0x3b   : > { %403 = vst [vmem:[%s4938_s12 + $0x94] sm:$0xf] %v402_v37  ;;  %v404_v38 = vld [vmem:[%s4934_s15 + $0x130] sm:$0xf]  ;;  %v406_v39 = vld [vmem:[%s4934_s15 + $0x138] sm:$0xf] }
  0x3c   : > { %v408_v40 = vld [vmem:[%s4934_s15 + $0x140] sm:$0xf]  ;;  %405 = vst [vmem:[%s4938_s12 + $0x98] sm:$0xf] %v404_v38  ;;  %407 = vst [vmem:[%s4938_s12 + $0x9c] sm:$0xf] %v406_v39 }
  0x3d   : > { %409 = vst [vmem:[%s4938_s12 + $0xa0] sm:$0xf] %v408_v40  ;;  %v410_v41 = vld [vmem:[%s4934_s15 + $0x148] sm:$0xf]  ;;  %v412_v42 = vld [vmem:[%s4934_s15 + $0x150] sm:$0xf] }
  0x3e   : > { %v414_v43 = vld [vmem:[%s4934_s15 + $0x158] sm:$0xf]  ;;  %411 = vst [vmem:[%s4938_s12 + $0xa4] sm:$0xf] %v410_v41  ;;  %413 = vst [vmem:[%s4938_s12 + $0xa8] sm:$0xf] %v412_v42 }
  0x3f   : > { %415 = vst [vmem:[%s4938_s12 + $0xac] sm:$0xf] %v414_v43  ;;  %v416_v44 = vld [vmem:[%s4934_s15 + $0x160] sm:$0xf]  ;;  %v418_v45 = vld [vmem:[%s4934_s15 + $0x168] sm:$0xf] }
  0x40   : > { %v420_v46 = vld [vmem:[%s4934_s15 + $0x170] sm:$0xf]  ;;  %417 = vst [vmem:[%s4938_s12 + $0xb0] sm:$0xf] %v416_v44  ;;  %419 = vst [vmem:[%s4938_s12 + $0xb4] sm:$0xf] %v418_v45 }
  0x41   : > { %421 = vst [vmem:[%s4938_s12 + $0xb8] sm:$0xf] %v420_v46  ;;  %v422_v47 = vld [vmem:[%s4934_s15 + $0x178] sm:$0xf]  ;;  %v424_v48 = vld [vmem:[%s4934_s15 + $0x180] sm:$0xf] }
  0x42   : > { %v426_v49 = vld [vmem:[%s4934_s15 + $0x188] sm:$0xf]  ;;  %423 = vst [vmem:[%s4938_s12 + $0xbc] sm:$0xf] %v422_v47  ;;  %425 = vst [vmem:[%s4938_s12 + $0xc0] sm:$0xf] %v424_v48 }
  0x43   : > { %427 = vst [vmem:[%s4938_s12 + $0xc4] sm:$0xf] %v426_v49  ;;  %v428_v50 = vld [vmem:[%s4934_s15 + $0x190] sm:$0xf]  ;;  %v430_v51 = vld [vmem:[%s4934_s15 + $0x198] sm:$0xf] }
  0x44   : > { %v432_v52 = vld [vmem:[%s4934_s15 + $0x1a0] sm:$0xf]  ;;  %429 = vst [vmem:[%s4938_s12 + $0xc8] sm:$0xf] %v428_v50  ;;  %431 = vst [vmem:[%s4938_s12 + $0xcc] sm:$0xf] %v430_v51 }
  0x45   : > { %433 = vst [vmem:[%s4938_s12 + $0xd0] sm:$0xf] %v432_v52  ;;  %v434_v53 = vld [vmem:[%s4934_s15 + $0x1a8] sm:$0xf]  ;;  %v436_v54 = vld [vmem:[%s4934_s15 + $0x1b0] sm:$0xf] }
  0x46   : > { %v438_v55 = vld [vmem:[%s4934_s15 + $0x1b8] sm:$0xf]  ;;  %435 = vst [vmem:[%s4938_s12 + $0xd4] sm:$0xf] %v434_v53  ;;  %437 = vst [vmem:[%s4938_s12 + $0xd8] sm:$0xf] %v436_v54 }
  0x47   : > { %439 = vst [vmem:[%s4938_s12 + $0xdc] sm:$0xf] %v438_v55  ;;  %v440_v56 = vld [vmem:[%s4934_s15 + $0x1c0] sm:$0xf]  ;;  %v442_v57 = vld [vmem:[%s4934_s15 + $0x1c8] sm:$0xf] }
  0x48   : > { %v444_v58 = vld [vmem:[%s4934_s15 + $0x1d0] sm:$0xf]  ;;  %441 = vst [vmem:[%s4938_s12 + $0xe0] sm:$0xf] %v440_v56  ;;  %443 = vst [vmem:[%s4938_s12 + $0xe4] sm:$0xf] %v442_v57 }
  0x49   : > { %445 = vst [vmem:[%s4938_s12 + $0xe8] sm:$0xf] %v444_v58  ;;  %v446_v59 = vld [vmem:[%s4934_s15 + $0x1d8] sm:$0xf]  ;;  %v448_v60 = vld [vmem:[%s4934_s15 + $0x1e0] sm:$0xf] }
  0x4a   : > { %v450_v61 = vld [vmem:[%s4934_s15 + $0x1e8] sm:$0xf]  ;;  %447 = vst [vmem:[%s4938_s12 + $0xec] sm:$0xf] %v446_v59  ;;  %449 = vst [vmem:[%s4938_s12 + $0xf0] sm:$0xf] %v448_v60 }
  0x4b   : > { %451 = vst [vmem:[%s4938_s12 + $0xf4] sm:$0xf] %v450_v61  ;;  %v452_v62 = vld [vmem:[%s4934_s15 + $0x1f0] sm:$0xf]  ;;  %v454_v63 = vld [vmem:[%s4934_s15 + $0x1f8] sm:$0xf] }
  0x4c   : > { %v456_v0 = vld [vmem:[%s4934_s15 + $0x200] sm:$0xf]  ;;  %453 = vst [vmem:[%s4938_s12 + $0xf8] sm:$0xf] %v452_v62  ;;  %455 = vst [vmem:[%s4938_s12 + $0xfc] sm:$0xf] %v454_v63 }
  0x4d   : > { %457 = vst [vmem:[%s4938_s12 + $0x100] sm:$0xf] %v456_v0  ;;  %v458_v1 = vld [vmem:[%s4934_s15 + $0x208] sm:$0xf]  ;;  %v460_v2 = vld [vmem:[%s4934_s15 + $0x210] sm:$0xf] }
  0x4e   : > { %v462_v3 = vld [vmem:[%s4934_s15 + $0x218] sm:$0xf]  ;;  %459 = vst [vmem:[%s4938_s12 + $0x104] sm:$0xf] %v458_v1  ;;  %461 = vst [vmem:[%s4938_s12 + $0x108] sm:$0xf] %v460_v2 }
  0x4f   : > { %463 = vst [vmem:[%s4938_s12 + $0x10c] sm:$0xf] %v462_v3  ;;  %v464_v4 = vld [vmem:[%s4934_s15 + $0x220] sm:$0xf]  ;;  %v466_v5 = vld [vmem:[%s4934_s15 + $0x228] sm:$0xf] }
  0x50   : > { %v468_v6 = vld [vmem:[%s4934_s15 + $0x230] sm:$0xf]  ;;  %465 = vst [vmem:[%s4938_s12 + $0x110] sm:$0xf] %v464_v4  ;;  %467 = vst [vmem:[%s4938_s12 + $0x114] sm:$0xf] %v466_v5 }
  0x51   : > { %469 = vst [vmem:[%s4938_s12 + $0x118] sm:$0xf] %v468_v6  ;;  %v470_v7 = vld [vmem:[%s4934_s15 + $0x238] sm:$0xf]  ;;  %v472_v8 = vld [vmem:[%s4934_s15 + $0x240] sm:$0xf] }
  0x52   : > { %v474_v9 = vld [vmem:[%s4934_s15 + $0x248] sm:$0xf]  ;;  %471 = vst [vmem:[%s4938_s12 + $0x11c] sm:$0xf] %v470_v7  ;;  %473 = vst [vmem:[%s4938_s12 + $0x120] sm:$0xf] %v472_v8 }
  0x53   : > { %475 = vst [vmem:[%s4938_s12 + $0x124] sm:$0xf] %v474_v9  ;;  %v476_v10 = vld [vmem:[%s4934_s15 + $0x250] sm:$0xf]  ;;  %v478_v11 = vld [vmem:[%s4934_s15 + $0x258] sm:$0xf] }
  0x54   : > { %v480_v12 = vld [vmem:[%s4934_s15 + $0x260] sm:$0xf]  ;;  %477 = vst [vmem:[%s4938_s12 + $0x128] sm:$0xf] %v476_v10  ;;  %479 = vst [vmem:[%s4938_s12 + $0x12c] sm:$0xf] %v478_v11 }
  0x55   : > { %481 = vst [vmem:[%s4938_s12 + $0x130] sm:$0xf] %v480_v12  ;;  %v482_v13 = vld [vmem:[%s4934_s15 + $0x268] sm:$0xf]  ;;  %v484_v14 = vld [vmem:[%s4934_s15 + $0x270] sm:$0xf] }
  0x56   : > { %v486_v15 = vld [vmem:[%s4934_s15 + $0x278] sm:$0xf]  ;;  %483 = vst [vmem:[%s4938_s12 + $0x134] sm:$0xf] %v482_v13  ;;  %485 = vst [vmem:[%s4938_s12 + $0x138] sm:$0xf] %v484_v14 }
  0x57   : > { %487 = vst [vmem:[%s4938_s12 + $0x13c] sm:$0xf] %v486_v15  ;;  %v488_v16 = vld [vmem:[%s4934_s15 + $0x280] sm:$0xf]  ;;  %v490_v17 = vld [vmem:[%s4934_s15 + $0x288] sm:$0xf] }
  0x58   : > { %v492_v18 = vld [vmem:[%s4934_s15 + $0x290] sm:$0xf]  ;;  %489 = vst [vmem:[%s4938_s12 + $0x140] sm:$0xf] %v488_v16  ;;  %491 = vst [vmem:[%s4938_s12 + $0x144] sm:$0xf] %v490_v17 }
  0x59   : > { %493 = vst [vmem:[%s4938_s12 + $0x148] sm:$0xf] %v492_v18  ;;  %v494_v19 = vld [vmem:[%s4934_s15 + $0x298] sm:$0xf]  ;;  %v496_v20 = vld [vmem:[%s4934_s15 + $0x2a0] sm:$0xf] }
  0x5a   : > { %v498_v21 = vld [vmem:[%s4934_s15 + $0x2a8] sm:$0xf]  ;;  %495 = vst [vmem:[%s4938_s12 + $0x14c] sm:$0xf] %v494_v19  ;;  %497 = vst [vmem:[%s4938_s12 + $0x150] sm:$0xf] %v496_v20 }
  0x5b   : > { %499 = vst [vmem:[%s4938_s12 + $0x154] sm:$0xf] %v498_v21  ;;  %v500_v22 = vld [vmem:[%s4934_s15 + $0x2b0] sm:$0xf]  ;;  %v502_v23 = vld [vmem:[%s4934_s15 + $0x2b8] sm:$0xf] }
  0x5c   : > { %v504_v24 = vld [vmem:[%s4934_s15 + $0x2c0] sm:$0xf]  ;;  %501 = vst [vmem:[%s4938_s12 + $0x158] sm:$0xf] %v500_v22  ;;  %503 = vst [vmem:[%s4938_s12 + $0x15c] sm:$0xf] %v502_v23 }
  0x5d   : > { %505 = vst [vmem:[%s4938_s12 + $0x160] sm:$0xf] %v504_v24  ;;  %v506_v25 = vld [vmem:[%s4934_s15 + $0x2c8] sm:$0xf]  ;;  %v508_v26 = vld [vmem:[%s4934_s15 + $0x2d0] sm:$0xf] }
  0x5e   : > { %v510_v27 = vld [vmem:[%s4934_s15 + $0x2d8] sm:$0xf]  ;;  %507 = vst [vmem:[%s4938_s12 + $0x164] sm:$0xf] %v506_v25  ;;  %509 = vst [vmem:[%s4938_s12 + $0x168] sm:$0xf] %v508_v26 }
  0x5f   : > { %511 = vst [vmem:[%s4938_s12 + $0x16c] sm:$0xf] %v510_v27  ;;  %v512_v28 = vld [vmem:[%s4934_s15 + $0x2e0] sm:$0xf]  ;;  %v514_v29 = vld [vmem:[%s4934_s15 + $0x2e8] sm:$0xf] }
  0x60   : > { %v516_v30 = vld [vmem:[%s4934_s15 + $0x2f0] sm:$0xf]  ;;  %513 = vst [vmem:[%s4938_s12 + $0x170] sm:$0xf] %v512_v28  ;;  %515 = vst [vmem:[%s4938_s12 + $0x174] sm:$0xf] %v514_v29 }
  0x61   : > { %517 = vst [vmem:[%s4938_s12 + $0x178] sm:$0xf] %v516_v30  ;;  %v518_v31 = vld [vmem:[%s4934_s15 + $0x2f8] sm:$0xf]  ;;  %v520_v32 = vld [vmem:[%s4934_s15 + $0x300] sm:$0xf] }
  0x62   : > { %v522_v33 = vld [vmem:[%s4934_s15 + $0x308] sm:$0xf]  ;;  %519 = vst [vmem:[%s4938_s12 + $0x17c] sm:$0xf] %v518_v31  ;;  %521 = vst [vmem:[%s4938_s12 + $0x180] sm:$0xf] %v520_v32 }
  0x63   : > { %523 = vst [vmem:[%s4938_s12 + $0x184] sm:$0xf] %v522_v33  ;;  %v524_v34 = vld [vmem:[%s4934_s15 + $0x310] sm:$0xf]  ;;  %v526_v35 = vld [vmem:[%s4934_s15 + $0x318] sm:$0xf] }
  0x64   : > { %v528_v36 = vld [vmem:[%s4934_s15 + $0x320] sm:$0xf]  ;;  %525 = vst [vmem:[%s4938_s12 + $0x188] sm:$0xf] %v524_v34  ;;  %527 = vst [vmem:[%s4938_s12 + $0x18c] sm:$0xf] %v526_v35 }
  0x65   : > { %529 = vst [vmem:[%s4938_s12 + $0x190] sm:$0xf] %v528_v36  ;;  %v530_v37 = vld [vmem:[%s4934_s15 + $0x328] sm:$0xf]  ;;  %v532_v38 = vld [vmem:[%s4934_s15 + $0x330] sm:$0xf] }
  0x66   : > { %v534_v39 = vld [vmem:[%s4934_s15 + $0x338] sm:$0xf]  ;;  %531 = vst [vmem:[%s4938_s12 + $0x194] sm:$0xf] %v530_v37  ;;  %533 = vst [vmem:[%s4938_s12 + $0x198] sm:$0xf] %v532_v38 }
  0x67   : > { %535 = vst [vmem:[%s4938_s12 + $0x19c] sm:$0xf] %v534_v39  ;;  %v536_v40 = vld [vmem:[%s4934_s15 + $0x340] sm:$0xf]  ;;  %v538_v41 = vld [vmem:[%s4934_s15 + $0x348] sm:$0xf] }
  0x68   : > { %v540_v42 = vld [vmem:[%s4934_s15 + $0x350] sm:$0xf]  ;;  %537 = vst [vmem:[%s4938_s12 + $0x1a0] sm:$0xf] %v536_v40  ;;  %539 = vst [vmem:[%s4938_s12 + $0x1a4] sm:$0xf] %v538_v41 }
  0x69   : > { %541 = vst [vmem:[%s4938_s12 + $0x1a8] sm:$0xf] %v540_v42  ;;  %v542_v43 = vld [vmem:[%s4934_s15 + $0x358] sm:$0xf]  ;;  %v544_v44 = vld [vmem:[%s4934_s15 + $0x360] sm:$0xf] }
  0x6a   : > { %v546_v45 = vld [vmem:[%s4934_s15 + $0x368] sm:$0xf]  ;;  %543 = vst [vmem:[%s4938_s12 + $0x1ac] sm:$0xf] %v542_v43  ;;  %545 = vst [vmem:[%s4938_s12 + $0x1b0] sm:$0xf] %v544_v44 }
  0x6b   : > { %547 = vst [vmem:[%s4938_s12 + $0x1b4] sm:$0xf] %v546_v45  ;;  %v548_v46 = vld [vmem:[%s4934_s15 + $0x370] sm:$0xf]  ;;  %v550_v47 = vld [vmem:[%s4934_s15 + $0x378] sm:$0xf] }
  0x6c   : > { %v552_v48 = vld [vmem:[%s4934_s15 + $0x380] sm:$0xf]  ;;  %549 = vst [vmem:[%s4938_s12 + $0x1b8] sm:$0xf] %v548_v46  ;;  %551 = vst [vmem:[%s4938_s12 + $0x1bc] sm:$0xf] %v550_v47 }
  0x6d   : > { %553 = vst [vmem:[%s4938_s12 + $0x1c0] sm:$0xf] %v552_v48  ;;  %v554_v49 = vld [vmem:[%s4934_s15 + $0x388] sm:$0xf]  ;;  %v556_v50 = vld [vmem:[%s4934_s15 + $0x390] sm:$0xf] }
  0x6e   : > { %v558_v51 = vld [vmem:[%s4934_s15 + $0x398] sm:$0xf]  ;;  %555 = vst [vmem:[%s4938_s12 + $0x1c4] sm:$0xf] %v554_v49  ;;  %557 = vst [vmem:[%s4938_s12 + $0x1c8] sm:$0xf] %v556_v50 }
  0x6f   : > { %559 = vst [vmem:[%s4938_s12 + $0x1cc] sm:$0xf] %v558_v51  ;;  %v560_v52 = vld [vmem:[%s4934_s15 + $0x3a0] sm:$0xf]  ;;  %v562_v53 = vld [vmem:[%s4934_s15 + $0x3a8] sm:$0xf] }
  0x70   : > { %v564_v54 = vld [vmem:[%s4934_s15 + $0x3b0] sm:$0xf]  ;;  %561 = vst [vmem:[%s4938_s12 + $0x1d0] sm:$0xf] %v560_v52  ;;  %563 = vst [vmem:[%s4938_s12 + $0x1d4] sm:$0xf] %v562_v53 }
  0x71   : > { %565 = vst [vmem:[%s4938_s12 + $0x1d8] sm:$0xf] %v564_v54  ;;  %v566_v55 = vld [vmem:[%s4934_s15 + $0x3b8] sm:$0xf]  ;;  %v568_v56 = vld [vmem:[%s4934_s15 + $0x3c0] sm:$0xf] }
  0x72   : > { %v570_v57 = vld [vmem:[%s4934_s15 + $0x3c8] sm:$0xf]  ;;  %567 = vst [vmem:[%s4938_s12 + $0x1dc] sm:$0xf] %v566_v55  ;;  %569 = vst [vmem:[%s4938_s12 + $0x1e0] sm:$0xf] %v568_v56 }
  0x73   : > { %571 = vst [vmem:[%s4938_s12 + $0x1e4] sm:$0xf] %v570_v57  ;;  %v572_v58 = vld [vmem:[%s4934_s15 + $0x3d0] sm:$0xf]  ;;  %v574_v59 = vld [vmem:[%s4934_s15 + $0x3d8] sm:$0xf] }
  0x74   : > { %v576_v60 = vld [vmem:[%s4934_s15 + $0x3e0] sm:$0xf]  ;;  %573 = vst [vmem:[%s4938_s12 + $0x1e8] sm:$0xf] %v572_v58  ;;  %575 = vst [vmem:[%s4938_s12 + $0x1ec] sm:$0xf] %v574_v59 }
  0x75   : > { %577 = vst [vmem:[%s4938_s12 + $0x1f0] sm:$0xf] %v576_v60  ;;  %v578_v61 = vld [vmem:[%s4934_s15 + $0x3e8] sm:$0xf]  ;;  %v580_v62 = vld [vmem:[%s4934_s15 + $0x3f0] sm:$0xf] }
  0x76   : > { %v582_v63 = vld [vmem:[%s4934_s15 + $0x3f8] sm:$0xf]  ;;  %579 = vst [vmem:[%s4938_s12 + $0x1f4] sm:$0xf] %v578_v61  ;;  %581 = vst [vmem:[%s4938_s12 + $0x1f8] sm:$0xf] %v580_v62 }
  0x77   : > { %583 = vst [vmem:[%s4938_s12 + $0x1fc] sm:$0xf] %v582_v63  ;;  %v584_v0 = vld [vmem:[%s4934_s15 + $0x400] sm:$0xf]  ;;  %v586_v1 = vld [vmem:[%s4934_s15 + $0x408] sm:$0xf] }
  0x78   : > { %v588_v2 = vld [vmem:[%s4934_s15 + $0x410] sm:$0xf]  ;;  %585 = vst [vmem:[%s4938_s12 + $0x200] sm:$0xf] %v584_v0  ;;  %587 = vst [vmem:[%s4938_s12 + $0x204] sm:$0xf] %v586_v1 }
  0x79   : > { %589 = vst [vmem:[%s4938_s12 + $0x208] sm:$0xf] %v588_v2  ;;  %v590_v3 = vld [vmem:[%s4934_s15 + $0x418] sm:$0xf]  ;;  %v592_v4 = vld [vmem:[%s4934_s15 + $0x420] sm:$0xf] }
  0x7a   : > { %v594_v5 = vld [vmem:[%s4934_s15 + $0x428] sm:$0xf]  ;;  %591 = vst [vmem:[%s4938_s12 + $0x20c] sm:$0xf] %v590_v3  ;;  %593 = vst [vmem:[%s4938_s12 + $0x210] sm:$0xf] %v592_v4 }
  0x7b   : > { %595 = vst [vmem:[%s4938_s12 + $0x214] sm:$0xf] %v594_v5  ;;  %v596_v6 = vld [vmem:[%s4934_s15 + $0x430] sm:$0xf]  ;;  %v598_v7 = vld [vmem:[%s4934_s15 + $0x438] sm:$0xf] }
  0x7c   : > { %v600_v8 = vld [vmem:[%s4934_s15 + $0x440] sm:$0xf]  ;;  %597 = vst [vmem:[%s4938_s12 + $0x218] sm:$0xf] %v596_v6  ;;  %599 = vst [vmem:[%s4938_s12 + $0x21c] sm:$0xf] %v598_v7 }
  0x7d   : > { %601 = vst [vmem:[%s4938_s12 + $0x220] sm:$0xf] %v600_v8  ;;  %v602_v9 = vld [vmem:[%s4934_s15 + $0x448] sm:$0xf]  ;;  %v604_v10 = vld [vmem:[%s4934_s15 + $0x450] sm:$0xf] }
  0x7e   : > { %v606_v11 = vld [vmem:[%s4934_s15 + $0x458] sm:$0xf]  ;;  %603 = vst [vmem:[%s4938_s12 + $0x224] sm:$0xf] %v602_v9  ;;  %605 = vst [vmem:[%s4938_s12 + $0x228] sm:$0xf] %v604_v10 }
  0x7f   : > { %607 = vst [vmem:[%s4938_s12 + $0x22c] sm:$0xf] %v606_v11  ;;  %v608_v12 = vld [vmem:[%s4934_s15 + $0x460] sm:$0xf]  ;;  %v610_v13 = vld [vmem:[%s4934_s15 + $0x468] sm:$0xf] }
  0x80   : > { %v612_v14 = vld [vmem:[%s4934_s15 + $0x470] sm:$0xf]  ;;  %609 = vst [vmem:[%s4938_s12 + $0x230] sm:$0xf] %v608_v12  ;;  %611 = vst [vmem:[%s4938_s12 + $0x234] sm:$0xf] %v610_v13 }
  0x81   : > { %613 = vst [vmem:[%s4938_s12 + $0x238] sm:$0xf] %v612_v14  ;;  %v614_v15 = vld [vmem:[%s4934_s15 + $0x478] sm:$0xf]  ;;  %v616_v16 = vld [vmem:[%s4934_s15 + $0x480] sm:$0xf] }
  0x82   : > { %v618_v17 = vld [vmem:[%s4934_s15 + $0x488] sm:$0xf]  ;;  %615 = vst [vmem:[%s4938_s12 + $0x23c] sm:$0xf] %v614_v15  ;;  %617 = vst [vmem:[%s4938_s12 + $0x240] sm:$0xf] %v616_v16 }
  0x83   : > { %619 = vst [vmem:[%s4938_s12 + $0x244] sm:$0xf] %v618_v17  ;;  %v620_v18 = vld [vmem:[%s4934_s15 + $0x490] sm:$0xf]  ;;  %v622_v19 = vld [vmem:[%s4934_s15 + $0x498] sm:$0xf] }
  0x84   : > { %v624_v20 = vld [vmem:[%s4934_s15 + $0x4a0] sm:$0xf]  ;;  %621 = vst [vmem:[%s4938_s12 + $0x248] sm:$0xf] %v620_v18  ;;  %623 = vst [vmem:[%s4938_s12 + $0x24c] sm:$0xf] %v622_v19 }
  0x85   : > { %625 = vst [vmem:[%s4938_s12 + $0x250] sm:$0xf] %v624_v20  ;;  %v626_v21 = vld [vmem:[%s4934_s15 + $0x4a8] sm:$0xf]  ;;  %v628_v22 = vld [vmem:[%s4934_s15 + $0x4b0] sm:$0xf] }
  0x86   : > { %v630_v23 = vld [vmem:[%s4934_s15 + $0x4b8] sm:$0xf]  ;;  %627 = vst [vmem:[%s4938_s12 + $0x254] sm:$0xf] %v626_v21  ;;  %629 = vst [vmem:[%s4938_s12 + $0x258] sm:$0xf] %v628_v22 }
  0x87   : > { %631 = vst [vmem:[%s4938_s12 + $0x25c] sm:$0xf] %v630_v23  ;;  %v632_v24 = vld [vmem:[%s4934_s15 + $0x4c0] sm:$0xf]  ;;  %v634_v25 = vld [vmem:[%s4934_s15 + $0x4c8] sm:$0xf] }
  0x88   : > { %v636_v26 = vld [vmem:[%s4934_s15 + $0x4d0] sm:$0xf]  ;;  %633 = vst [vmem:[%s4938_s12 + $0x260] sm:$0xf] %v632_v24  ;;  %635 = vst [vmem:[%s4938_s12 + $0x264] sm:$0xf] %v634_v25 }
  0x89   : > { %637 = vst [vmem:[%s4938_s12 + $0x268] sm:$0xf] %v636_v26  ;;  %v638_v27 = vld [vmem:[%s4934_s15 + $0x4d8] sm:$0xf]  ;;  %v640_v28 = vld [vmem:[%s4934_s15 + $0x4e0] sm:$0xf] }
  0x8a   : > { %v642_v29 = vld [vmem:[%s4934_s15 + $0x4e8] sm:$0xf]  ;;  %639 = vst [vmem:[%s4938_s12 + $0x26c] sm:$0xf] %v638_v27  ;;  %641 = vst [vmem:[%s4938_s12 + $0x270] sm:$0xf] %v640_v28 }
  0x8b   : > { %643 = vst [vmem:[%s4938_s12 + $0x274] sm:$0xf] %v642_v29  ;;  %v644_v30 = vld [vmem:[%s4934_s15 + $0x4f0] sm:$0xf]  ;;  %v646_v31 = vld [vmem:[%s4934_s15 + $0x4f8] sm:$0xf] }
  0x8c   : > { %v648_v32 = vld [vmem:[%s4934_s15 + $0x500] sm:$0xf]  ;;  %645 = vst [vmem:[%s4938_s12 + $0x278] sm:$0xf] %v644_v30  ;;  %647 = vst [vmem:[%s4938_s12 + $0x27c] sm:$0xf] %v646_v31 }
  0x8d   : > { %649 = vst [vmem:[%s4938_s12 + $0x280] sm:$0xf] %v648_v32  ;;  %v650_v33 = vld [vmem:[%s4934_s15 + $0x508] sm:$0xf]  ;;  %v652_v34 = vld [vmem:[%s4934_s15 + $0x510] sm:$0xf] }
  0x8e   : > { %v654_v35 = vld [vmem:[%s4934_s15 + $0x518] sm:$0xf]  ;;  %651 = vst [vmem:[%s4938_s12 + $0x284] sm:$0xf] %v650_v33  ;;  %653 = vst [vmem:[%s4938_s12 + $0x288] sm:$0xf] %v652_v34 }
  0x8f   : > { %655 = vst [vmem:[%s4938_s12 + $0x28c] sm:$0xf] %v654_v35  ;;  %v656_v36 = vld [vmem:[%s4934_s15 + $0x520] sm:$0xf]  ;;  %v658_v37 = vld [vmem:[%s4934_s15 + $0x528] sm:$0xf] }
  0x90   : > { %v660_v38 = vld [vmem:[%s4934_s15 + $0x530] sm:$0xf]  ;;  %657 = vst [vmem:[%s4938_s12 + $0x290] sm:$0xf] %v656_v36  ;;  %659 = vst [vmem:[%s4938_s12 + $0x294] sm:$0xf] %v658_v37 }
  0x91   : > { %661 = vst [vmem:[%s4938_s12 + $0x298] sm:$0xf] %v660_v38  ;;  %v662_v39 = vld [vmem:[%s4934_s15 + $0x538] sm:$0xf]  ;;  %v664_v40 = vld [vmem:[%s4934_s15 + $0x540] sm:$0xf] }
  0x92   : > { %v666_v41 = vld [vmem:[%s4934_s15 + $0x548] sm:$0xf]  ;;  %663 = vst [vmem:[%s4938_s12 + $0x29c] sm:$0xf] %v662_v39  ;;  %665 = vst [vmem:[%s4938_s12 + $0x2a0] sm:$0xf] %v664_v40 }
  0x93   : > { %667 = vst [vmem:[%s4938_s12 + $0x2a4] sm:$0xf] %v666_v41  ;;  %v668_v42 = vld [vmem:[%s4934_s15 + $0x550] sm:$0xf]  ;;  %v670_v43 = vld [vmem:[%s4934_s15 + $0x558] sm:$0xf] }
  0x94   : > { %v672_v44 = vld [vmem:[%s4934_s15 + $0x560] sm:$0xf]  ;;  %669 = vst [vmem:[%s4938_s12 + $0x2a8] sm:$0xf] %v668_v42  ;;  %671 = vst [vmem:[%s4938_s12 + $0x2ac] sm:$0xf] %v670_v43 }
  0x95   : > { %673 = vst [vmem:[%s4938_s12 + $0x2b0] sm:$0xf] %v672_v44  ;;  %v674_v45 = vld [vmem:[%s4934_s15 + $0x568] sm:$0xf]  ;;  %v676_v46 = vld [vmem:[%s4934_s15 + $0x570] sm:$0xf] }
  0x96   : > { %v678_v47 = vld [vmem:[%s4934_s15 + $0x578] sm:$0xf]  ;;  %675 = vst [vmem:[%s4938_s12 + $0x2b4] sm:$0xf] %v674_v45  ;;  %677 = vst [vmem:[%s4938_s12 + $0x2b8] sm:$0xf] %v676_v46 }
  0x97   : > { %679 = vst [vmem:[%s4938_s12 + $0x2bc] sm:$0xf] %v678_v47  ;;  %v680_v48 = vld [vmem:[%s4934_s15 + $0x580] sm:$0xf]  ;;  %v682_v49 = vld [vmem:[%s4934_s15 + $0x588] sm:$0xf] }
  0x98   : > { %v684_v50 = vld [vmem:[%s4934_s15 + $0x590] sm:$0xf]  ;;  %681 = vst [vmem:[%s4938_s12 + $0x2c0] sm:$0xf] %v680_v48  ;;  %683 = vst [vmem:[%s4938_s12 + $0x2c4] sm:$0xf] %v682_v49 }
  0x99   : > { %685 = vst [vmem:[%s4938_s12 + $0x2c8] sm:$0xf] %v684_v50  ;;  %v686_v51 = vld [vmem:[%s4934_s15 + $0x598] sm:$0xf]  ;;  %v688_v52 = vld [vmem:[%s4934_s15 + $0x5a0] sm:$0xf] }
  0x9a   : > { %v690_v53 = vld [vmem:[%s4934_s15 + $0x5a8] sm:$0xf]  ;;  %687 = vst [vmem:[%s4938_s12 + $0x2cc] sm:$0xf] %v686_v51  ;;  %689 = vst [vmem:[%s4938_s12 + $0x2d0] sm:$0xf] %v688_v52 }
  0x9b   : > { %691 = vst [vmem:[%s4938_s12 + $0x2d4] sm:$0xf] %v690_v53  ;;  %v692_v54 = vld [vmem:[%s4934_s15 + $0x5b0] sm:$0xf]  ;;  %v694_v55 = vld [vmem:[%s4934_s15 + $0x5b8] sm:$0xf] }
  0x9c   : > { %v696_v56 = vld [vmem:[%s4934_s15 + $0x5c0] sm:$0xf]  ;;  %693 = vst [vmem:[%s4938_s12 + $0x2d8] sm:$0xf] %v692_v54  ;;  %695 = vst [vmem:[%s4938_s12 + $0x2dc] sm:$0xf] %v694_v55 }
  0x9d   : > { %697 = vst [vmem:[%s4938_s12 + $0x2e0] sm:$0xf] %v696_v56  ;;  %v698_v57 = vld [vmem:[%s4934_s15 + $0x5c8] sm:$0xf]  ;;  %v700_v58 = vld [vmem:[%s4934_s15 + $0x5d0] sm:$0xf] }
  0x9e   : > { %v702_v59 = vld [vmem:[%s4934_s15 + $0x5d8] sm:$0xf]  ;;  %699 = vst [vmem:[%s4938_s12 + $0x2e4] sm:$0xf] %v698_v57  ;;  %701 = vst [vmem:[%s4938_s12 + $0x2e8] sm:$0xf] %v700_v58 }
  0x9f   : > { %703 = vst [vmem:[%s4938_s12 + $0x2ec] sm:$0xf] %v702_v59  ;;  %v704_v60 = vld [vmem:[%s4934_s15 + $0x5e0] sm:$0xf]  ;;  %v706_v61 = vld [vmem:[%s4934_s15 + $0x5e8] sm:$0xf] }
  0xa0   : > { %v708_v62 = vld [vmem:[%s4934_s15 + $0x5f0] sm:$0xf]  ;;  %705 = vst [vmem:[%s4938_s12 + $0x2f0] sm:$0xf] %v704_v60  ;;  %707 = vst [vmem:[%s4938_s12 + $0x2f4] sm:$0xf] %v706_v61 }
  0xa1   : > { %709 = vst [vmem:[%s4938_s12 + $0x2f8] sm:$0xf] %v708_v62  ;;  %v710_v63 = vld [vmem:[%s4934_s15 + $0x5f8] sm:$0xf]  ;;  %v712_v0 = vld [vmem:[%s4934_s15 + $0x600] sm:$0xf] }
  0xa2   : > { %v714_v1 = vld [vmem:[%s4934_s15 + $0x608] sm:$0xf]  ;;  %711 = vst [vmem:[%s4938_s12 + $0x2fc] sm:$0xf] %v710_v63  ;;  %713 = vst [vmem:[%s4938_s12 + $0x300] sm:$0xf] %v712_v0 }
  0xa3   : > { %715 = vst [vmem:[%s4938_s12 + $0x304] sm:$0xf] %v714_v1  ;;  %v716_v2 = vld [vmem:[%s4934_s15 + $0x610] sm:$0xf]  ;;  %v718_v3 = vld [vmem:[%s4934_s15 + $0x618] sm:$0xf] }
  0xa4   : > { %v720_v4 = vld [vmem:[%s4934_s15 + $0x620] sm:$0xf]  ;;  %717 = vst [vmem:[%s4938_s12 + $0x308] sm:$0xf] %v716_v2  ;;  %719 = vst [vmem:[%s4938_s12 + $0x30c] sm:$0xf] %v718_v3 }
  0xa5   : > { %721 = vst [vmem:[%s4938_s12 + $0x310] sm:$0xf] %v720_v4  ;;  %v722_v5 = vld [vmem:[%s4934_s15 + $0x628] sm:$0xf]  ;;  %v724_v6 = vld [vmem:[%s4934_s15 + $0x630] sm:$0xf] }
  0xa6   : > { %v726_v7 = vld [vmem:[%s4934_s15 + $0x638] sm:$0xf]  ;;  %723 = vst [vmem:[%s4938_s12 + $0x314] sm:$0xf] %v722_v5  ;;  %725 = vst [vmem:[%s4938_s12 + $0x318] sm:$0xf] %v724_v6 }
  0xa7   : > { %727 = vst [vmem:[%s4938_s12 + $0x31c] sm:$0xf] %v726_v7  ;;  %v728_v8 = vld [vmem:[%s4934_s15 + $0x640] sm:$0xf]  ;;  %v730_v9 = vld [vmem:[%s4934_s15 + $0x648] sm:$0xf] }
  0xa8   : > { %v732_v10 = vld [vmem:[%s4934_s15 + $0x650] sm:$0xf]  ;;  %729 = vst [vmem:[%s4938_s12 + $0x320] sm:$0xf] %v728_v8  ;;  %731 = vst [vmem:[%s4938_s12 + $0x324] sm:$0xf] %v730_v9 }
  0xa9   : > { %733 = vst [vmem:[%s4938_s12 + $0x328] sm:$0xf] %v732_v10  ;;  %v734_v11 = vld [vmem:[%s4934_s15 + $0x658] sm:$0xf]  ;;  %v736_v12 = vld [vmem:[%s4934_s15 + $0x660] sm:$0xf] }
  0xaa   : > { %v738_v13 = vld [vmem:[%s4934_s15 + $0x668] sm:$0xf]  ;;  %735 = vst [vmem:[%s4938_s12 + $0x32c] sm:$0xf] %v734_v11  ;;  %737 = vst [vmem:[%s4938_s12 + $0x330] sm:$0xf] %v736_v12 }
  0xab   : > { %739 = vst [vmem:[%s4938_s12 + $0x334] sm:$0xf] %v738_v13  ;;  %v740_v14 = vld [vmem:[%s4934_s15 + $0x670] sm:$0xf]  ;;  %v742_v15 = vld [vmem:[%s4934_s15 + $0x678] sm:$0xf] }
  0xac   : > { %v744_v16 = vld [vmem:[%s4934_s15 + $0x680] sm:$0xf]  ;;  %741 = vst [vmem:[%s4938_s12 + $0x338] sm:$0xf] %v740_v14  ;;  %743 = vst [vmem:[%s4938_s12 + $0x33c] sm:$0xf] %v742_v15 }
  0xad   : > { %745 = vst [vmem:[%s4938_s12 + $0x340] sm:$0xf] %v744_v16  ;;  %v746_v17 = vld [vmem:[%s4934_s15 + $0x688] sm:$0xf]  ;;  %v748_v18 = vld [vmem:[%s4934_s15 + $0x690] sm:$0xf] }
  0xae   : > { %v750_v19 = vld [vmem:[%s4934_s15 + $0x698] sm:$0xf]  ;;  %747 = vst [vmem:[%s4938_s12 + $0x344] sm:$0xf] %v746_v17  ;;  %749 = vst [vmem:[%s4938_s12 + $0x348] sm:$0xf] %v748_v18 }
  0xaf   : > { %751 = vst [vmem:[%s4938_s12 + $0x34c] sm:$0xf] %v750_v19  ;;  %v752_v20 = vld [vmem:[%s4934_s15 + $0x6a0] sm:$0xf]  ;;  %v754_v21 = vld [vmem:[%s4934_s15 + $0x6a8] sm:$0xf] }
  0xb0   : > { %v756_v22 = vld [vmem:[%s4934_s15 + $0x6b0] sm:$0xf]  ;;  %753 = vst [vmem:[%s4938_s12 + $0x350] sm:$0xf] %v752_v20  ;;  %755 = vst [vmem:[%s4938_s12 + $0x354] sm:$0xf] %v754_v21 }
  0xb1   : > { %757 = vst [vmem:[%s4938_s12 + $0x358] sm:$0xf] %v756_v22  ;;  %v758_v23 = vld [vmem:[%s4934_s15 + $0x6b8] sm:$0xf]  ;;  %v760_v24 = vld [vmem:[%s4934_s15 + $0x6c0] sm:$0xf] }
  0xb2   : > { %v762_v25 = vld [vmem:[%s4934_s15 + $0x6c8] sm:$0xf]  ;;  %759 = vst [vmem:[%s4938_s12 + $0x35c] sm:$0xf] %v758_v23  ;;  %761 = vst [vmem:[%s4938_s12 + $0x360] sm:$0xf] %v760_v24 }
  0xb3   : > { %763 = vst [vmem:[%s4938_s12 + $0x364] sm:$0xf] %v762_v25  ;;  %v764_v26 = vld [vmem:[%s4934_s15 + $0x6d0] sm:$0xf]  ;;  %v766_v27 = vld [vmem:[%s4934_s15 + $0x6d8] sm:$0xf] }
  0xb4   : > { %v768_v28 = vld [vmem:[%s4934_s15 + $0x6e0] sm:$0xf]  ;;  %765 = vst [vmem:[%s4938_s12 + $0x368] sm:$0xf] %v764_v26  ;;  %767 = vst [vmem:[%s4938_s12 + $0x36c] sm:$0xf] %v766_v27 }
  0xb5   : > { %769 = vst [vmem:[%s4938_s12 + $0x370] sm:$0xf] %v768_v28  ;;  %v770_v29 = vld [vmem:[%s4934_s15 + $0x6e8] sm:$0xf]  ;;  %v772_v30 = vld [vmem:[%s4934_s15 + $0x6f0] sm:$0xf] }
  0xb6   : > { %v774_v31 = vld [vmem:[%s4934_s15 + $0x6f8] sm:$0xf]  ;;  %771 = vst [vmem:[%s4938_s12 + $0x374] sm:$0xf] %v770_v29  ;;  %773 = vst [vmem:[%s4938_s12 + $0x378] sm:$0xf] %v772_v30 }
  0xb7   : > { %775 = vst [vmem:[%s4938_s12 + $0x37c] sm:$0xf] %v774_v31  ;;  %v776_v32 = vld [vmem:[%s4934_s15 + $0x700] sm:$0xf]  ;;  %v778_v33 = vld [vmem:[%s4934_s15 + $0x708] sm:$0xf] }
  0xb8   : > { %v780_v34 = vld [vmem:[%s4934_s15 + $0x710] sm:$0xf]  ;;  %777 = vst [vmem:[%s4938_s12 + $0x380] sm:$0xf] %v776_v32  ;;  %779 = vst [vmem:[%s4938_s12 + $0x384] sm:$0xf] %v778_v33 }
  0xb9   : > { %781 = vst [vmem:[%s4938_s12 + $0x388] sm:$0xf] %v780_v34  ;;  %v782_v35 = vld [vmem:[%s4934_s15 + $0x718] sm:$0xf]  ;;  %v784_v36 = vld [vmem:[%s4934_s15 + $0x720] sm:$0xf] }
  0xba   : > { %v786_v37 = vld [vmem:[%s4934_s15 + $0x728] sm:$0xf]  ;;  %783 = vst [vmem:[%s4938_s12 + $0x38c] sm:$0xf] %v782_v35  ;;  %785 = vst [vmem:[%s4938_s12 + $0x390] sm:$0xf] %v784_v36 }
  0xbb   : > { %787 = vst [vmem:[%s4938_s12 + $0x394] sm:$0xf] %v786_v37  ;;  %v788_v38 = vld [vmem:[%s4934_s15 + $0x730] sm:$0xf]  ;;  %v790_v39 = vld [vmem:[%s4934_s15 + $0x738] sm:$0xf] }
  0xbc   : > { %v792_v40 = vld [vmem:[%s4934_s15 + $0x740] sm:$0xf]  ;;  %789 = vst [vmem:[%s4938_s12 + $0x398] sm:$0xf] %v788_v38  ;;  %791 = vst [vmem:[%s4938_s12 + $0x39c] sm:$0xf] %v790_v39 }
  0xbd   : > { %793 = vst [vmem:[%s4938_s12 + $0x3a0] sm:$0xf] %v792_v40  ;;  %v794_v41 = vld [vmem:[%s4934_s15 + $0x748] sm:$0xf]  ;;  %v796_v42 = vld [vmem:[%s4934_s15 + $0x750] sm:$0xf] }
  0xbe   : > { %v798_v43 = vld [vmem:[%s4934_s15 + $0x758] sm:$0xf]  ;;  %795 = vst [vmem:[%s4938_s12 + $0x3a4] sm:$0xf] %v794_v41  ;;  %797 = vst [vmem:[%s4938_s12 + $0x3a8] sm:$0xf] %v796_v42 }
  0xbf   : > { %799 = vst [vmem:[%s4938_s12 + $0x3ac] sm:$0xf] %v798_v43  ;;  %v800_v44 = vld [vmem:[%s4934_s15 + $0x760] sm:$0xf]  ;;  %v802_v45 = vld [vmem:[%s4934_s15 + $0x768] sm:$0xf] }
  0xc0   : > { %v804_v46 = vld [vmem:[%s4934_s15 + $0x770] sm:$0xf]  ;;  %801 = vst [vmem:[%s4938_s12 + $0x3b0] sm:$0xf] %v800_v44  ;;  %803 = vst [vmem:[%s4938_s12 + $0x3b4] sm:$0xf] %v802_v45 }
  0xc1   : > { %805 = vst [vmem:[%s4938_s12 + $0x3b8] sm:$0xf] %v804_v46  ;;  %v806_v47 = vld [vmem:[%s4934_s15 + $0x778] sm:$0xf]  ;;  %v808_v48 = vld [vmem:[%s4934_s15 + $0x780] sm:$0xf] }
  0xc2   : > { %v810_v49 = vld [vmem:[%s4934_s15 + $0x788] sm:$0xf]  ;;  %807 = vst [vmem:[%s4938_s12 + $0x3bc] sm:$0xf] %v806_v47  ;;  %809 = vst [vmem:[%s4938_s12 + $0x3c0] sm:$0xf] %v808_v48 }
  0xc3   : > { %811 = vst [vmem:[%s4938_s12 + $0x3c4] sm:$0xf] %v810_v49  ;;  %v812_v50 = vld [vmem:[%s4934_s15 + $0x790] sm:$0xf]  ;;  %v814_v51 = vld [vmem:[%s4934_s15 + $0x798] sm:$0xf] }
  0xc4   : > { %v816_v52 = vld [vmem:[%s4934_s15 + $0x7a0] sm:$0xf]  ;;  %813 = vst [vmem:[%s4938_s12 + $0x3c8] sm:$0xf] %v812_v50  ;;  %815 = vst [vmem:[%s4938_s12 + $0x3cc] sm:$0xf] %v814_v51 }
  0xc5   : > { %817 = vst [vmem:[%s4938_s12 + $0x3d0] sm:$0xf] %v816_v52  ;;  %v818_v53 = vld [vmem:[%s4934_s15 + $0x7a8] sm:$0xf]  ;;  %v820_v54 = vld [vmem:[%s4934_s15 + $0x7b0] sm:$0xf] }
  0xc6   : > { %v822_v55 = vld [vmem:[%s4934_s15 + $0x7b8] sm:$0xf]  ;;  %819 = vst [vmem:[%s4938_s12 + $0x3d4] sm:$0xf] %v818_v53  ;;  %821 = vst [vmem:[%s4938_s12 + $0x3d8] sm:$0xf] %v820_v54 }
  0xc7   : > { %823 = vst [vmem:[%s4938_s12 + $0x3dc] sm:$0xf] %v822_v55  ;;  %v824_v56 = vld [vmem:[%s4934_s15 + $0x7c0] sm:$0xf]  ;;  %v826_v57 = vld [vmem:[%s4934_s15 + $0x7c8] sm:$0xf] }
  0xc8   : > { %v828_v58 = vld [vmem:[%s4934_s15 + $0x7d0] sm:$0xf]  ;;  %825 = vst [vmem:[%s4938_s12 + $0x3e0] sm:$0xf] %v824_v56  ;;  %827 = vst [vmem:[%s4938_s12 + $0x3e4] sm:$0xf] %v826_v57 }
  0xc9   : > { %829 = vst [vmem:[%s4938_s12 + $0x3e8] sm:$0xf] %v828_v58  ;;  %v830_v59 = vld [vmem:[%s4934_s15 + $0x7d8] sm:$0xf]  ;;  %v832_v60 = vld [vmem:[%s4934_s15 + $0x7e0] sm:$0xf] }
  0xca   : > { %v834_v61 = vld [vmem:[%s4934_s15 + $0x7e8] sm:$0xf]  ;;  %831 = vst [vmem:[%s4938_s12 + $0x3ec] sm:$0xf] %v830_v59  ;;  %833 = vst [vmem:[%s4938_s12 + $0x3f0] sm:$0xf] %v832_v60 }
  0xcb   : > { %835 = vst [vmem:[%s4938_s12 + $0x3f4] sm:$0xf] %v834_v61  ;;  %v836_v62 = vld [vmem:[%s4934_s15 + $0x7f0] sm:$0xf]  ;;  %v838_v63 = vld [vmem:[%s4934_s15 + $0x7f8] sm:$0xf] }
  0xcc   : > { %837 = vst [vmem:[%s4938_s12 + $0x3f8] sm:$0xf] %v836_v62  ;;  %839 = vst [vmem:[%s4938_s12 + $0x3fc] sm:$0xf] %v838_v63 }
  0xcd PF: > { %p3618_p12 = scmp.ge.s32.totalorder %s4793_s7, 1  ;;  %p1379_p13 = scmp.lt.s32.totalorder %s4793_s7, 45 }
  0xcf   : > { %p1380_p0 = pnand %p3618_p12, %p1379_p13 }
  0xd0   : > { %s1386_s29 = sand.u32 (!%p1380_p0), 1, %s4761_s23   ;;  %p1456_p1 = scmp.lt.s32.totalorder (!%p1380_p0), %s4773_s26, 1  ;;  %v4795_v0 = vmov (!%p1380_p0), 0.0   ;;  %vm4796_vm0 = vmmov (!%p1380_p0), 0   ;;  %vm3379_vm1 = vcmask (!%p1380_p0), 1041408  }
  0xd1   : > { %1383 = sbr.rel (%p1380_p0) target bundleno = 699 (0x2bb), region = 81  ;;  %4159 = vmatprep.subr.bf16.mxu0 (!%p1380_p0), %v4795_v0  ;;  %4179 = vmatprep.subr.bf16.mxu1 (!%p1380_p0), %v4795_v0  ;;  %s3619_s11 = sshll.u32 (!%p1380_p0), %s1386_s29, 10  ;;  %vm3380_vm2 = vsmask.f32 (!%p1380_p0), 1280 }
  0xd2   : > { %p1458_p2 = scmp.lt.s32.totalorder (!%p1380_p0), %s4769_s25, 13  ;;  %4175 = vmatprep.mubr.msk.bf16.mxu0 (!%p1380_p0), %vm4796_vm0, %v4795_v0  ;;  %4195 = vmatprep.mubr.msk.bf16.mxu1 (!%p1380_p0), %vm4796_vm0, %v4795_v0  ;;  %s5461_s16 = scalar_lea.vmem (!%p1380_p0), [#allocation2], %s3619_s11  ;;  %vm3381_vm3 = vmand (!%p1380_p0), %vm3379_vm1, %vm3380_vm2 }
  0xd3   : > { %v4571_v1 = vld [vmem:[%s5461_s16 + $0x40] sm:$0xff] (!%p1380_p0)   ;;  %v4573_v3 = vld [vmem:[%s5461_s16 + $0x48] sm:$0xff] (!%p1380_p0)   ;;  %v4575_v5 = vld [vmem:[%s5461_s16 + $0x50] sm:$0xff] (!%p1380_p0)   ;;  %s1465_s29 = sadd.s32 (!%p1380_p0), 1, %s4769_s25  ;;  %s1476_s14 = sadd.s32 (!%p1380_p0), 2, %s4769_s25 }
  0xd4   : > { %v4572_v2 = vld [vmem:[%s5461_s16] sm:$0xff] (!%p1380_p0)   ;;  %4160 = vmatpush3.bf16.msra.mxu0 (!%p1380_p0), %v4571_v1  ;;  %v4574_v4 = vld [vmem:[%s5461_s16 + $0x8] sm:$0xff] (!%p1380_p0)   ;;  %v4576_v6 = vld [vmem:[%s5461_s16 + $0x10] sm:$0xff] (!%p1380_p0)   ;;  %p1468_p3 = scmp.lt.s32.totalorder (!%p1380_p0), %s1465_s29, 13  ;;  %p1479_p4 = scmp.lt.s32.totalorder (!%p1380_p0), %s1476_s14, 13 }
  0xd5   : > { %4180 = vmatpush3.bf16.msra.mxu1 (!%p1380_p0), %v4572_v2  ;;  %4161 = vmatprep.subr.bf16.mxu0 (!%p1380_p0), %v4795_v0  ;;  %v4577_v7 = vld [vmem:[%s5461_s16 + $0x58] sm:$0xff] (!%p1380_p0)   ;;  %v4579_v9 = vld [vmem:[%s5461_s16 + $0x60] sm:$0xff] (!%p1380_p0)   ;;  %v4581_v12 = vld [vmem:[%s5461_s16 + $0x68] sm:$0xff] (!%p1380_p0)   ;;  %p1498_p6 = scmp.lt.s32.totalorder (!%p1380_p0), %s4777_s27, 1 }
  0xd6   : > { %4181 = vmatprep.subr.bf16.mxu1 (!%p1380_p0), %v4795_v0  ;;  %v4578_v8 = vld [vmem:[%s5461_s16 + $0x18] sm:$0xff] (!%p1380_p0)   ;;  %v4580_v10 = vld [vmem:[%s5461_s16 + $0x20] sm:$0xff] (!%p1380_p0)   ;;  %v4582_v13 = vld [vmem:[%s5461_s16 + $0x28] sm:$0xff] (!%p1380_p0)  }
  0xd7   : > { %v4583_v15 = vld [vmem:[%s5461_s16 + $0x70] sm:$0xff] (!%p1380_p0)   ;;  %v4585_v19 = vld [vmem:[%s5461_s16 + $0x78] sm:$0xff] (!%p1380_p0)   ;;  %v4588_v22 = vld [vmem:[%s5461_s16 + $0x80] sm:$0xff] (!%p1380_p0)  }
  0xd8   : > { %s1457_s23 = scalar_select %p1456_p1, %s4773_s26, 1  ;;  %4162 = vmatpush3.bf16.msra.mxu0 %v4573_v3  ;;  %v4584_v16 = vld [vmem:[%s5461_s16 + $0x30] sm:$0xff]   ;;  %v4586_v20 = vld [vmem:[%s5461_s16 + $0x38] sm:$0xff]   ;;  %v4589_v23 = vld [vmem:[%s5461_s16 + $0xc0] sm:$0xff]  }
  0xd9   : > { %s1459_s18 = scalar_select %p1458_p2, %s4769_s25, 13  ;;  %4182 = vmatpush3.bf16.msra.mxu1 %v4574_v4  ;;  %4163 = vmatprep.subr.bf16.mxu0 %v4795_v0  ;;  %v4590_v24 = vld [vmem:[%s5461_s16 + $0x88] sm:$0xff]   ;;  %v4592_v26 = vld [vmem:[%s5461_s16 + $0x90] sm:$0xff]   ;;  %v4594_v28 = vld [vmem:[%s5461_s16 + $0x98] sm:$0xff]  }
  0xda   : > { %s5471_s19 = smul.u32 28, %s1457_s23  ;;  %4183 = vmatprep.subr.bf16.mxu1 %v4795_v0  ;;  %v4591_v25 = vld [vmem:[%s5461_s16 + $0xc8] sm:$0xff]   ;;  %s5871_s29 = smov (!%p1468_p3, %s1465_s29), 13  ;;  %v4593_v27 = vld [vmem:[%s5461_s16 + $0xd0] sm:$0xff]   ;;  %v4595_v29 = vld [vmem:[%s5461_s16 + $0xd8] sm:$0xff]  }
  0xdb   : > { %s3621_s20 = sshll.u32 %s1459_s18, 1  ;;  %s3623_s11 = sshll.u32 %s5871_s29, 1  ;;  %v4596_v30 = vld [vmem:[%s5461_s16 + $0xa0] sm:$0xff]   ;;  %v4598_v33 = vld [vmem:[%s5461_s16 + $0xa8] sm:$0xff]   ;;  %v4600_v35 = vld [vmem:[%s5461_s16 + $0xb0] sm:$0xff]  }
  0xdc   : > { %s1462_s10 = sadd.s32 %s5471_s19, %s3621_s20  ;;  %4164 = vmatpush3.bf16.msra.mxu0 %v4575_v5  ;;  %s1472_s23 = sadd.s32 %s5471_s19, %s3623_s11  ;;  %v4597_v31 = vld [vmem:[%s5461_s16 + $0xe0] sm:$0xff]   ;;  %v4599_v34 = vld [vmem:[%s5461_s16 + $0xe8] sm:$0xff]   ;;  %v4601_v38 = vld [vmem:[%s5461_s16 + $0xf0] sm:$0xff]  }
  0xdd   : > { %4184 = vmatpush3.bf16.msra.mxu1 %v4576_v6  ;;  %4165 = vmatprep.subr.bf16.mxu0 %v4795_v0  ;;  %s3622_s13 = sshll.u32 %s1462_s10, 2  ;;  %s3624_s18 = sshll.u32 %s1472_s23, 2  ;;  %v4602_v39 = vld [vmem:[%s5461_s16 + $0xb8] sm:$0xff]   ;;  %v4605_v45 = vld [vmem:[%s5461_s16 + $0x100] sm:$0xff]   ;;  %v4607_v47 = vld [vmem:[%s5461_s16 + $0x108] sm:$0xff]  }
  0xde   : > { %4185 = vmatprep.subr.bf16.mxu1 %v4795_v0  ;;  %s5486_s12 = scalar_lea.vmem %s5831_s0, %s3622_s13  ;;  %s5534_s13 = scalar_lea.vmem %s5832_s1, %s3624_s18  ;;  %v4603_v42 = vld [vmem:[%s5461_s16 + $0xf8] sm:$0xff]   ;;  %v4606_v46 = vld [vmem:[%s5461_s16 + $0x140] sm:$0xff]   ;;  %v4608_v48 = vld [vmem:[%s5461_s16 + $0x148] sm:$0xff]  }
  0xdf   : > { %v4587_v11 = vld [vmem:[%s5486_s12] sm:$0x3f]   ;;  %v4609_v49 = vld [vmem:[%s5461_s16 + $0x110] sm:$0xff]   ;;  %s5873_s14 = smov (!%p1479_p4, %s1476_s14), 13  ;;  %v4611_v51 = vld [vmem:[%s5461_s16 + $0x118] sm:$0xff]   ;;  %s1487_s20 = sadd.s32 3, %s4769_s25 }
  0xe0   : > { %4166 = vmatpush3.bf16.msra.mxu0 %v4577_v7  ;;  %v1545_v14 = vshll.u32 %v4587_v11, 16  ;;  %v1543_v17 = vshrl.u32 %v4587_v11, 16  ;;  %v4604_v32 = vld [vmem:[%s5486_s12] sm:$0x7e]   ;;  %v4610_v50 = vld [vmem:[%s5461_s16 + $0x150] sm:$0xff]   ;;  %v4612_v52 = vld [vmem:[%s5461_s16 + $0x158] sm:$0xff]  }
  0xe1   : > { %4186 = vmatpush3.bf16.msra.mxu1 %v4578_v8  ;;  %4167 = vmatprep.subr.bf16.mxu0 %v4795_v0  ;;  %v1864_v36 = vshrl.u32 %v4604_v32, 16  ;;  %v1867_v37 = vshll.u32 %v4604_v32, 16  ;;  %v1753_v43 = vrot.slane %v4604_v32, 1  ;;  %s3625_s15 = sshll.u32 %s5873_s14, 1  ;;  %v4613_v53 = vld [vmem:[%s5461_s16 + $0x120] sm:$0xff]   ;;  %v4615_v55 = vld [vmem:[%s5461_s16 + $0x128] sm:$0xff]  }
  0xe2   : > { %4187 = vmatprep.subr.bf16.mxu1 %v4795_v0  ;;  %v1547_v18 = vrot.slane %v1545_v14, 1  ;;  %s1483_s12 = sadd.s32 %s5471_s19, %s3625_s15  ;;  %v4614_v54 = vld [vmem:[%s5461_s16 + $0x160] sm:$0xff]   ;;  %v4616_v57 = vld [vmem:[%s5461_s16 + $0x168] sm:$0xff]   ;;  %v4617_v58 = vld [vmem:[%s5461_s16 + $0x130] sm:$0xff]   ;;  %p1490_p5 = scmp.lt.s32.totalorder %s1487_s20, 13 }
  0xe3   : > { %v1866_v40 = vrot.slane %v1864_v36, 1  ;;  %v1869_v41 = vrot.slane %v1867_v37, 2  ;;  %s3626_s29 = sshll.u32 %s1483_s12, 2  ;;  %v4621_v56 = vld [vmem:[%s5534_s13] sm:$0x3f]   ;;  %v4618_v60 = vld [vmem:[%s5461_s16 + $0x170] sm:$0xff]  }
  0xe4   : > { %4168 = vmatpush3.bf16.msra.mxu0 %v4579_v9  ;;  %v1548_v21 = vor.u32 %v1547_v18, %v1543_v17  ;;  %s5582_s18 = scalar_lea.vmem %s5833_s2, %s3626_s29  ;;  %v2099_v59 = vshll.u32 %v4621_v56, 16  ;;  %v4619_v61 = vld [vmem:[%s5461_s16 + $0x138] sm:$0xff]   ;;  %v2097_v62 = vshrl.u32 %v4621_v56, 16  ;;  %v4622_v3 = vld [vmem:[%s5461_s16 + $0x180] sm:$0xff]   ;;  %v4624_v5 = vld [vmem:[%s5461_s16 + $0x188] sm:$0xff]   ;;  %s5875_s20 = smov (!%p1490_p5, %s1487_s20), 13 }
  0xe5   : > { %4188 = vmatpush3.bf16.msra.mxu1 %v4580_v10  ;;  %4169 = vmatprep.subr.bf16.mxu0 %v4795_v0  ;;  %v1870_v44 = vor.u32 %v1869_v41, %v1866_v40  ;;  %v4620_v1 = vld [vmem:[%s5461_s16 + $0x178] sm:$0xff]   ;;  %v4623_v4 = vld [vmem:[%s5461_s16 + $0x1c0] sm:$0xff]   ;;  %v4625_v6 = vld [vmem:[%s5461_s16 + $0x1c8] sm:$0xff]   ;;  %s3627_s10 = sshll.u32 %s5875_s20, 1 }
  0xe6   : > { %4189 = vmatprep.subr.bf16.mxu1 %v4795_v0  ;;  %v2101_v63 = vrot.slane %v2099_v59, 1  ;;  %v4626_v7 = vld [vmem:[%s5461_s16 + $0x190] sm:$0xff]   ;;  %v4628_v9 = vld [vmem:[%s5461_s16 + $0x198] sm:$0xff]   ;;  %s1494_s14 = sadd.s32 %s5471_s19, %s3627_s10  ;;  %v4638_v14 = vld [vmem:[%s5534_s13] sm:$0x7e]   ;;  %s1453_s13 = sand.u32 1, %s4753_s21  }
  0xe7   : > { %v4627_v8 = vld [vmem:[%s5461_s16 + $0x1d0] sm:$0xff]   ;;  %v4629_v10 = vld [vmem:[%s5461_s16 + $0x1d8] sm:$0xff]   ;;  %s3628_s15 = sshll.u32 %s1494_s14, 2  ;;  %v2330_v17 = vshrl.u32 %v4638_v14, 16  ;;  %v2333_v18 = vshll.u32 %v4638_v14, 16  ;;  %v4649_v36 = vld [vmem:[%s5461_s16 + $0x228] sm:$0xff]  }
  0xe8   : > { %4170 = vmatpush3.bf16.msra.mxu0 %v4581_v12  ;;  %v2102_v2 = vor.u32 %v2101_v63, %v2097_v62  ;;  %v4631_v12 = vld [vmem:[%s5461_s16 + $0x1e0] sm:$0xff]   ;;  %s5627_s19 = scalar_lea.vmem %s5834_s3, %s3628_s15  ;;  %v4645_v32 = vld [vmem:[%s5461_s16 + $0x218] sm:$0xff]   ;;  %v4652_v41 = vld [vmem:[%s5461_s16 + $0x270] sm:$0xff]   ;;  %s3620_s20 = sshll.u32 %s1453_s13, 3 }
  0xe9   : > { %4190 = vmatpush3.bf16.msra.mxu1 %v4582_v13  ;;  %4171 = vmatprep.subr.bf16.mxu0 %v4795_v0  ;;  %v4632_v13 = vld [vmem:[%s5461_s16 + $0x1a8] sm:$0xff]   ;;  %v4655_v37 = vld [vmem:[%s5582_s18] sm:$0x3f]   ;;  %v4669_v63 = vld [vmem:[%s5461_s16 + $0x2f0] sm:$0xff]   ;;  %s1455_s21 = scalar_lea.vmem [#allocation3], %s3620_s20  ;;  %s4009_s10 = sshll.u32 (%p4913_p8), %s4769_s25, 2 }
  0xea   : > { %4191 = vmatprep.subr.bf16.mxu1 %v4795_v0  ;;  %v2565_v40 = vshll.u32 %v4655_v37, 16  ;;  %v4667_v59 = vld [vmem:[%s5461_s16 + $0x2e8] sm:$0xff]   ;;  %s4480_s14 = smul.u32 (%p4913_p8), 44, %s4773_s26  ;;  %s3393_s15 = sadd.s32 (%p4913_p8), %s4777_s27, %s4009_s10 }
  0xec   : > { %4172 = vmatpush3.bf16.msra.mxu0 %v4583_v15  ;;  %v4633_v15 = vld [vmem:[%s5461_s16 + $0x1e8] sm:$0xff]   ;;  %s3395_s12 = sadd.s32 (%p4913_p8), %s4480_s14, %s3393_s15 }
  0xed   : > { %4192 = vmatpush3.bf16.msra.mxu1 %v4584_v16  ;;  %4173 = vmatprep.subr.bf16.mxu0 %v4795_v0  ;;  %v4634_v16 = vld [vmem:[%s5461_s16 + $0x1b0] sm:$0xff]   ;;  %s4010_s29 = sshll.u32 (%p4913_p8), %s3395_s12, 2 }
  0xee   : > { %4193 = vmatprep.subr.bf16.mxu1 %v4795_v0  ;;  %s3397_s13 = scalar_lea.vmem (%p4913_p8), %s5837_s6, %s4010_s29 }
  0xf0   : > { %4174 = vmatpush3.bf16.msra.mxu0 %v4585_v19  ;;  %v4635_v19 = vld [vmem:[%s5461_s16 + $0x1f0] sm:$0xff]  }
  0xf1   : > { %4194 = vmatpush3.bf16.msra.mxu1 %v4586_v20  ;;  %4199 = vmatprep.subr.bf16.mxu0 %v4795_v0  ;;  %v4636_v20 = vld [vmem:[%s5461_s16 + $0x1b8] sm:$0xff]  }
  0xf2   : > { %4219 = vmatprep.subr.bf16.mxu1 %v4795_v0 }
  0xf3   : > { %4176 = vmatmul.mubr.bf16.vlgmr.msra.gmra.mrb[0].mxu0 %v1548_v21  ;;  %v4637_v21 = vld [vmem:[%s5461_s16 + $0x1f8] sm:$0xff]  }
  0xf4   : > { %4196 = vmatmul.mubr.bf16.vlgmr.msra.gmra.mrb[0].mxu1 %v4587_v11  ;;  %4200 = vmatpush3.bf16.msra.mxu0 %v4588_v22  ;;  %v4630_v11 = vld [vmem:[%s5461_s16 + $0x1a0] sm:$0xff]   ;;  %v2332_v22 = vrot.slane %v2330_v17, 1  ;;  %v4683_v17 = vld [vmem:[%s5461_s16 + $0x328] sm:$0xff]  }
  0xf5   : > { %4220 = vmatpush3.bf16.msra.mxu1 %v4589_v23  ;;  %4201 = vmatprep.subr.bf16.mxu0 %v4795_v0  ;;  %v2335_v23 = vrot.slane %v2333_v18, 2  ;;  %v4689_v18 = vld [vmem:[%s5627_s19] sm:$0x3f]  }
  0xf6   : > { %4221 = vmatprep.subr.bf16.mxu1 %v4795_v0  ;;  %4215 = vmatprep.mubr.msk.bf16.mxu0 %vm4796_vm0, %v4795_v0 }
  0xf7   : > { %4235 = vmatprep.mubr.msk.bf16.mxu1 %vm4796_vm0, %v4795_v0 }
  0xf8   : > { %4202 = vmatpush3.bf16.msra.mxu0 %v4590_v24  ;;  %v2219_v24 = vrot.slane %v4638_v14, 1  ;;  %v4680_v14 = vld [vmem:[%s5461_s16 + $0x358] sm:$0xff]  }
  0xf9   : > { %4222 = vmatpush3.bf16.msra.mxu1 %v4591_v25  ;;  %4203 = vmatprep.subr.bf16.mxu0 %v4795_v0  ;;  %v2336_v25 = vor.u32 %v2335_v23, %v2332_v22  ;;  %v4686_v22 = vld [vmem:[%s5461_s16 + $0x370] sm:$0xff]   ;;  %v4687_v23 = vld [vmem:[%s5461_s16 + $0x338] sm:$0xff]  }
  0xfa   : > { %4223 = vmatprep.subr.bf16.mxu1 %v4795_v0 }
  0xfc   : > { %4204 = vmatpush3.bf16.msra.mxu0 %v4592_v26  ;;  %v4639_v26 = vld [vmem:[%s5461_s16 + $0x200] sm:$0xff]  }
  0xfd   : > { %4224 = vmatpush3.bf16.msra.mxu1 %v4593_v27  ;;  %4205 = vmatprep.subr.bf16.mxu0 %v4795_v0  ;;  %v4640_v27 = vld [vmem:[%s5461_s16 + $0x240] sm:$0xff]  }
  0xfe   : > { %4225 = vmatprep.subr.bf16.mxu1 %v4795_v0 }
 0x100   : > { %4206 = vmatpush3.bf16.msra.mxu0 %v4594_v28  ;;  %v4641_v28 = vld [vmem:[%s5461_s16 + $0x208] sm:$0xff]  }
 0x101   : > { %4226 = vmatpush3.bf16.msra.mxu1 %v4595_v29  ;;  %4207 = vmatprep.subr.bf16.mxu0 %v4795_v0  ;;  %v4642_v29 = vld [vmem:[%s5461_s16 + $0x248] sm:$0xff]  }
 0x102   : > { %4227 = vmatprep.subr.bf16.mxu1 %v4795_v0 }
 0x104   : > { %4208 = vmatpush3.bf16.msra.mxu0 %v4596_v30  ;;  %v4643_v30 = vld [vmem:[%s5461_s16 + $0x210] sm:$0xff]  }
 0x105   : > { %4228 = vmatpush3.bf16.msra.mxu1 %v4597_v31  ;;  %4209 = vmatprep.subr.bf16.mxu0 %v4795_v0  ;;  %v4644_v31 = vld [vmem:[%s5461_s16 + $0x250] sm:$0xff]  }
 0x106   : > { %4229 = vmatprep.subr.bf16.mxu1 %v4795_v0 }
 0x108   : > { %4210 = vmatpush3.bf16.msra.mxu0 %v4598_v33  ;;  %v4646_v33 = vld [vmem:[%s5461_s16 + $0x258] sm:$0xff]  }
 0x109   : > { %4230 = vmatpush3.bf16.msra.mxu1 %v4599_v34  ;;  %4211 = vmatprep.subr.bf16.mxu0 %v4795_v0  ;;  %v4647_v34 = vld [vmem:[%s5461_s16 + $0x220] sm:$0xff]  }
 0x10a   : > { %4231 = vmatprep.subr.bf16.mxu1 %v4795_v0 }
 0x10c   : > { %4212 = vmatpush3.bf16.msra.mxu0 %v4600_v35  ;;  %v4648_v35 = vld [vmem:[%s5461_s16 + $0x260] sm:$0xff]  }
 0x10d   : > { %4232 = vmatpush3.bf16.msra.mxu1 %v4601_v38  ;;  %4213 = vmatprep.subr.bf16.mxu0 %v4795_v0  ;;  %v4650_v38 = vld [vmem:[%s5461_s16 + $0x268] sm:$0xff]  }
 0x10e   : > { %4233 = vmatprep.subr.bf16.mxu1 %v4795_v0 }
 0x110   : > { %4214 = vmatpush3.bf16.msra.mxu0 %v4602_v39  ;;  %v4651_v39 = vld [vmem:[%s5461_s16 + $0x230] sm:$0xff]  }
 0x111   : > { %4234 = vmatpush3.bf16.msra.mxu1 %v4603_v42  ;;  %4239 = vmatprep.subr.bf16.mxu0 %v4795_v0  ;;  %v4653_v42 = vld [vmem:[%s5461_s16 + $0x238] sm:$0xff]  }
 0x112   : > { %4259 = vmatprep.subr.bf16.mxu1 %v4795_v0 }
 0x113   : > { %4216 = vmatmul.mubr.bf16.vlgmr.msra.gmra.mrb[4].mxu0 %v1753_v43  ;;  %v2563_v43 = vshrl.u32 %v4655_v37, 16 }
 0x114   : > { %4236 = vmatmul.mubr.bf16.vlgmr.msra.gmra.mrb[4].mxu1 %v1870_v44  ;;  %4240 = vmatpush3.bf16.msra.mxu0 %v4605_v45  ;;  %v2567_v44 = vrot.slane %v2565_v40, 1  ;;  %v4654_v45 = vld [vmem:[%s5461_s16 + $0x278] sm:$0xff]   ;;  %v4701_v40 = vld [vmem:[%s5461_s16 + $0x3e8] sm:$0xff]  }
 0x115   : > { %4260 = vmatpush3.bf16.msra.mxu1 %v4606_v46  ;;  %4241 = vmatprep.subr.bf16.mxu0 %v4795_v0 }
 0x116   : > { %4261 = vmatprep.subr.bf16.mxu1 %v4795_v0  ;;  %4255 = vmatprep.mubr.msk.bf16.mxu0 %vm4796_vm0, %v4795_v0  ;;  %v2568_v46 = vor.u32 %v2567_v44, %v2563_v43 }
 0x117   : > { %4275 = vmatprep.mubr.msk.bf16.mxu1 %vm4796_vm0, %v4795_v0 }
 0x118   : > { %4242 = vmatpush3.bf16.msra.mxu0 %v4607_v47  ;;  %v4656_v47 = vld [vmem:[%s5461_s16 + $0x280] sm:$0xff]  }
 0x119   : > { %4262 = vmatpush3.bf16.msra.mxu1 %v4608_v48  ;;  %4243 = vmatprep.subr.bf16.mxu0 %v4795_v0  ;;  %v4657_v48 = vld [vmem:[%s5461_s16 + $0x2c0] sm:$0xff]  }
 0x11a   : > { %4263 = vmatprep.subr.bf16.mxu1 %v4795_v0 }
 0x11c   : > { %4244 = vmatpush3.bf16.msra.mxu0 %v4609_v49  ;;  %v4658_v49 = vld [vmem:[%s5461_s16 + $0x288] sm:$0xff]  }
 0x11d   : > { %4264 = vmatpush3.bf16.msra.mxu1 %v4610_v50  ;;  %4245 = vmatprep.subr.bf16.mxu0 %v4795_v0  ;;  %v4659_v50 = vld [vmem:[%s5461_s16 + $0x2c8] sm:$0xff]  }
 0x11e   : > { %4265 = vmatprep.subr.bf16.mxu1 %v4795_v0 }
 0x120   : > { %4246 = vmatpush3.bf16.msra.mxu0 %v4611_v51  ;;  %v4660_v51 = vld [vmem:[%s5461_s16 + $0x290] sm:$0xff]  }
 0x121   : > { %4266 = vmatpush3.bf16.msra.mxu1 %v4612_v52  ;;  %4247 = vmatprep.subr.bf16.mxu0 %v4795_v0  ;;  %v4661_v52 = vld [vmem:[%s5461_s16 + $0x2d0] sm:$0xff]  }
 0x122   : > { %4267 = vmatprep.subr.bf16.mxu1 %v4795_v0 }
 0x124   : > { %4248 = vmatpush3.bf16.msra.mxu0 %v4613_v53  ;;  %v4662_v53 = vld [vmem:[%s5461_s16 + $0x298] sm:$0xff]  }
 0x125   : > { %4268 = vmatpush3.bf16.msra.mxu1 %v4614_v54  ;;  %4249 = vmatprep.subr.bf16.mxu0 %v4795_v0  ;;  %v4663_v54 = vld [vmem:[%s5461_s16 + $0x2d8] sm:$0xff]  }
 0x126   : > { %4269 = vmatprep.subr.bf16.mxu1 %v4795_v0 }
 0x128   : > { %4250 = vmatpush3.bf16.msra.mxu0 %v4615_v55  ;;  %v4664_v55 = vld [vmem:[%s5461_s16 + $0x2a0] sm:$0xff]  }
 0x129   : > { %4270 = vmatpush3.bf16.msra.mxu1 %v4616_v57  ;;  %4251 = vmatprep.subr.bf16.mxu0 %v4795_v0  ;;  %v4666_v57 = vld [vmem:[%s5461_s16 + $0x2a8] sm:$0xff]  }
 0x12a   : > { %4271 = vmatprep.subr.bf16.mxu1 %v4795_v0 }
 0x12c   : > { %4252 = vmatpush3.bf16.msra.mxu0 %v4617_v58  ;;  %v4672_v58 = vld [vmem:[%s5582_s18] sm:$0x7e]  }
 0x12d   : > { %4272 = vmatpush3.bf16.msra.mxu1 %v4618_v60  ;;  %4253 = vmatprep.subr.bf16.mxu0 %v4795_v0  ;;  %v4668_v60 = vld [vmem:[%s5461_s16 + $0x2b0] sm:$0xff]   ;;  %v2799_v62 = vshll.u32 %v4672_v58, 16 }
 0x12e   : > { %4273 = vmatprep.subr.bf16.mxu1 %v4795_v0 }
 0x130   : > { %4254 = vmatpush3.bf16.msra.mxu0 %v4619_v61  ;;  %v2796_v61 = vshrl.u32 %v4672_v58, 16 }
 0x131   : > { %4274 = vmatpush3.bf16.msra.mxu1 %v4620_v1  ;;  %4279 = vmatprep.subr.bf16.mxu0 %v4795_v0  ;;  %v4670_v1 = vld [vmem:[%s5461_s16 + $0x2b8] sm:$0xff]  }
 0x132   : > { %4299 = vmatprep.subr.bf16.mxu1 %v4795_v0 }
 0x133   : > { %4256 = vmatmul.mubr.bf16.vlgmr.msra.gmra.mrb[8].mxu0 %v4621_v56  ;;  %v4665_v56 = vld [vmem:[%s5461_s16 + $0x2e0] sm:$0xff]  }
 0x134   : > { %4276 = vmatmul.mubr.bf16.vlgmr.msra.gmra.mrb[8].mxu1 %v2102_v2  ;;  %4280 = vmatpush3.bf16.msra.mxu0 %v4622_v3  ;;  %v2798_v2 = vrot.slane %v2796_v61, 1  ;;  %v2801_v3 = vrot.slane %v2799_v62, 2 }
 0x135   : > { %4300 = vmatpush3.bf16.msra.mxu1 %v4623_v4  ;;  %4281 = vmatprep.subr.bf16.mxu0 %v4795_v0  ;;  %v4671_v4 = vld [vmem:[%s5461_s16 + $0x2f8] sm:$0xff]  }
 0x136   : > { %4301 = vmatprep.subr.bf16.mxu1 %v4795_v0  ;;  %4295 = vmatprep.mubr.msk.bf16.mxu0 %vm4796_vm0, %v4795_v0 }
 0x137   : > { %4315 = vmatprep.mubr.msk.bf16.mxu1 %vm4796_vm0, %v4795_v0 }
 0x138   : > { %4282 = vmatpush3.bf16.msra.mxu0 %v4624_v5  ;;  %v2685_v5 = vrot.slane %v4672_v58, 1  ;;  %v4705_v58 = vld [vmem:[%s5461_s16 + $0x3f8] sm:$0xff]  }
 0x139   : > { %4302 = vmatpush3.bf16.msra.mxu1 %v4625_v6  ;;  %4283 = vmatprep.subr.bf16.mxu0 %v4795_v0  ;;  %v2802_v6 = vor.u32 %v2801_v3, %v2798_v2 }
 0x13a   : > { %4303 = vmatprep.subr.bf16.mxu1 %v4795_v0 }
 0x13c   : > { %4284 = vmatpush3.bf16.msra.mxu0 %v4626_v7  ;;  %v4673_v7 = vld [vmem:[%s5461_s16 + $0x300] sm:$0xff]  }
 0x13d   : > { %4304 = vmatpush3.bf16.msra.mxu1 %v4627_v8  ;;  %4285 = vmatprep.subr.bf16.mxu0 %v4795_v0  ;;  %v4674_v8 = vld [vmem:[%s5461_s16 + $0x340] sm:$0xff]  }
 0x13e   : > { %4305 = vmatprep.subr.bf16.mxu1 %v4795_v0 }
 0x140   : > { %4286 = vmatpush3.bf16.msra.mxu0 %v4628_v9  ;;  %v4675_v9 = vld [vmem:[%s5461_s16 + $0x308] sm:$0xff]  }
 0x141   : > { %4306 = vmatpush3.bf16.msra.mxu1 %v4629_v10  ;;  %4287 = vmatprep.subr.bf16.mxu0 %v4795_v0  ;;  %v4676_v10 = vld [vmem:[%s5461_s16 + $0x348] sm:$0xff]  }
 0x142   : > { %4307 = vmatprep.subr.bf16.mxu1 %v4795_v0 }
 0x144   : > { %4288 = vmatpush3.bf16.msra.mxu0 %v4630_v11  ;;  %v4677_v11 = vld [vmem:[%s5461_s16 + $0x310] sm:$0xff]  }
 0x145   : > { %4308 = vmatpush3.bf16.msra.mxu1 %v4631_v12  ;;  %4289 = vmatprep.subr.bf16.mxu0 %v4795_v0  ;;  %v4678_v12 = vld [vmem:[%s5461_s16 + $0x350] sm:$0xff]  }
 0x146   : > { %4309 = vmatprep.subr.bf16.mxu1 %v4795_v0 }
 0x148   : > { %4290 = vmatpush3.bf16.msra.mxu0 %v4632_v13  ;;  %v4679_v13 = vld [vmem:[%s5461_s16 + $0x318] sm:$0xff]  }
 0x149   : > { %4310 = vmatpush3.bf16.msra.mxu1 %v4633_v15  ;;  %4291 = vmatprep.subr.bf16.mxu0 %v4795_v0  ;;  %v4681_v15 = vld [vmem:[%s5461_s16 + $0x320] sm:$0xff]  }
 0x14a   : > { %4311 = vmatprep.subr.bf16.mxu1 %v4795_v0 }
 0x14c   : > { %4292 = vmatpush3.bf16.msra.mxu0 %v4634_v16  ;;  %v4682_v16 = vld [vmem:[%s5461_s16 + $0x360] sm:$0xff]  }
 0x14d   : > { %4312 = vmatpush3.bf16.msra.mxu1 %v4635_v19  ;;  %4293 = vmatprep.subr.bf16.mxu0 %v4795_v0  ;;  %v4684_v19 = vld [vmem:[%s5461_s16 + $0x368] sm:$0xff]  }
 0x14e   : > { %4313 = vmatprep.subr.bf16.mxu1 %v4795_v0 }
 0x150   : > { %4294 = vmatpush3.bf16.msra.mxu0 %v4636_v20  ;;  %v4685_v20 = vld [vmem:[%s5461_s16 + $0x330] sm:$0xff]  }
 0x151   : > { %4314 = vmatpush3.bf16.msra.mxu1 %v4637_v21  ;;  %4319 = vmatprep.subr.bf16.mxu0 %v4795_v0  ;;  %v3031_v21 = vshll.u32 %v4689_v18, 16 }
 0x152   : > { %4339 = vmatprep.subr.bf16.mxu1 %v4795_v0 }
 0x153   : > { %4296 = vmatmul.mubr.bf16.vlgmr.msra.gmra.mrb[12].mxu0 %v2219_v24  ;;  %v3029_v24 = vshrl.u32 %v4689_v18, 16 }
 0x154   : > { %4316 = vmatmul.mubr.bf16.vlgmr.msra.gmra.mrb[12].mxu1 %v2336_v25  ;;  %4320 = vmatpush3.bf16.msra.mxu0 %v4639_v26  ;;  %v3033_v25 = vrot.slane %v3031_v21, 1  ;;  %v4688_v26 = vld [vmem:[%s5461_s16 + $0x378] sm:$0xff]  }
 0x155   : > { %4340 = vmatpush3.bf16.msra.mxu1 %v4640_v27  ;;  %4321 = vmatprep.subr.bf16.mxu0 %v4795_v0 }
 0x156   : > { %4341 = vmatprep.subr.bf16.mxu1 %v4795_v0  ;;  %4335 = vmatprep.mubr.msk.bf16.mxu0 %vm4796_vm0, %v4795_v0  ;;  %v3034_v27 = vor.u32 %v3033_v25, %v3029_v24 }
 0x157   : > { %4355 = vmatprep.mubr.msk.bf16.mxu1 %vm4796_vm0, %v4795_v0 }
 0x158   : > { %4322 = vmatpush3.bf16.msra.mxu0 %v4641_v28  ;;  %v4690_v28 = vld [vmem:[%s5461_s16 + $0x380] sm:$0xff]  }
 0x159   : > { %4342 = vmatpush3.bf16.msra.mxu1 %v4642_v29  ;;  %4323 = vmatprep.subr.bf16.mxu0 %v4795_v0  ;;  %v4691_v29 = vld [vmem:[%s5461_s16 + $0x3c0] sm:$0xff]  }
 0x15a   : > { %4343 = vmatprep.subr.bf16.mxu1 %v4795_v0 }
 0x15c   : > { %4324 = vmatpush3.bf16.msra.mxu0 %v4643_v30  ;;  %v4692_v30 = vld [vmem:[%s5461_s16 + $0x388] sm:$0xff]  }
 0x15d   : > { %4344 = vmatpush3.bf16.msra.mxu1 %v4644_v31  ;;  %4325 = vmatprep.subr.bf16.mxu0 %v4795_v0  ;;  %v4693_v31 = vld [vmem:[%s5461_s16 + $0x3c8] sm:$0xff]  }
 0x15e   : > { %4345 = vmatprep.subr.bf16.mxu1 %v4795_v0 }
 0x160   : > { %4326 = vmatpush3.bf16.msra.mxu0 %v4645_v32  ;;  %v4694_v32 = vld [vmem:[%s5461_s16 + $0x390] sm:$0xff]  }
 0x161   : > { %4346 = vmatpush3.bf16.msra.mxu1 %v4646_v33  ;;  %4327 = vmatprep.subr.bf16.mxu0 %v4795_v0  ;;  %v4695_v33 = vld [vmem:[%s5461_s16 + $0x3d0] sm:$0xff]  }
 0x162   : > { %4347 = vmatprep.subr.bf16.mxu1 %v4795_v0 }
 0x164   : > { %4328 = vmatpush3.bf16.msra.mxu0 %v4647_v34  ;;  %v4696_v34 = vld [vmem:[%s5461_s16 + $0x398] sm:$0xff]  }
 0x165   : > { %4348 = vmatpush3.bf16.msra.mxu1 %v4648_v35  ;;  %4329 = vmatprep.subr.bf16.mxu0 %v4795_v0  ;;  %v4697_v35 = vld [vmem:[%s5461_s16 + $0x3d8] sm:$0xff]  }
 0x166   : > { %4349 = vmatprep.subr.bf16.mxu1 %v4795_v0 }
 0x168   : > { %4330 = vmatpush3.bf16.msra.mxu0 %v4649_v36  ;;  %v4698_v36 = vld [vmem:[%s5461_s16 + $0x3a0] sm:$0xff]  }
 0x169   : > { %4350 = vmatpush3.bf16.msra.mxu1 %v4650_v38  ;;  %4331 = vmatprep.subr.bf16.mxu0 %v4795_v0  ;;  %v4700_v38 = vld [vmem:[%s5461_s16 + $0x3a8] sm:$0xff]  }
 0x16a   : > { %4351 = vmatprep.subr.bf16.mxu1 %v4795_v0 }
 0x16c   : > { %4332 = vmatpush3.bf16.msra.mxu0 %v4651_v39  ;;  %v4706_v39 = vld [vmem:[%s5627_s19] sm:$0x7e]  }
 0x16d   : > { %4352 = vmatpush3.bf16.msra.mxu1 %v4652_v41  ;;  %4333 = vmatprep.subr.bf16.mxu0 %v4795_v0 }
 0x16e   : > { %4353 = vmatprep.subr.bf16.mxu1 %v4795_v0 }
 0x170   : > { %4334 = vmatpush3.bf16.msra.mxu0 %v4653_v42 }
 0x171   : > { %4354 = vmatpush3.bf16.msra.mxu1 %v4654_v45  ;;  %4359 = vmatprep.subr.bf16.mxu0 %v4795_v0 }
 0x172   : > { %4379 = vmatprep.subr.bf16.mxu1 %v4795_v0 }
 0x173   : > { %4336 = vmatmul.mubr.bf16.vlgmr.msra.gmra.mrb[16].mxu0 %v4655_v37  ;;  %v4699_v37 = vld [vmem:[%s5461_s16 + $0x3e0] sm:$0xff]  }
 0x174   : > { %4356 = vmatmul.mubr.bf16.vlgmr.msra.gmra.mrb[16].mxu1 %v2568_v46  ;;  %4360 = vmatpush3.bf16.msra.mxu0 %v4656_v47  ;;  %v4702_v47 = vld [vmem:[%s5461_s16 + $0x3b0] sm:$0xff]  }
 0x175   : > { %4380 = vmatpush3.bf16.msra.mxu1 %v4657_v48  ;;  %4361 = vmatprep.subr.bf16.mxu0 %v4795_v0  ;;  %v3262_v48 = vshrl.u32 %v4706_v39, 16 }
 0x176   : > { %4381 = vmatprep.subr.bf16.mxu1 %v4795_v0  ;;  %4375 = vmatprep.mubr.msk.bf16.mxu0 %vm4796_vm0, %v4795_v0 }
 0x177   : > { %4395 = vmatprep.mubr.msk.bf16.mxu1 %vm4796_vm0, %v4795_v0 }
 0x178   : > { %4362 = vmatpush3.bf16.msra.mxu0 %v4658_v49  ;;  %v3265_v49 = vshll.u32 %v4706_v39, 16 }
 0x179   : > { %4382 = vmatpush3.bf16.msra.mxu1 %v4659_v50  ;;  %4363 = vmatprep.subr.bf16.mxu0 %v4795_v0 }
 0x17a   : > { %4383 = vmatprep.subr.bf16.mxu1 %v4795_v0 }
 0x17c   : > { %4364 = vmatpush3.bf16.msra.mxu0 %v4660_v51 }
 0x17d   : > { %4384 = vmatpush3.bf16.msra.mxu1 %v4661_v52  ;;  %4365 = vmatprep.subr.bf16.mxu0 %v4795_v0  ;;  %v4703_v52 = vld [vmem:[%s5461_s16 + $0x3f0] sm:$0xff]  }
 0x17e   : > { %4385 = vmatprep.subr.bf16.mxu1 %v4795_v0 }
 0x180   : > { %4366 = vmatpush3.bf16.msra.mxu0 %v4662_v53 }
 0x181   : > { %4386 = vmatpush3.bf16.msra.mxu1 %v4663_v54  ;;  %4367 = vmatprep.subr.bf16.mxu0 %v4795_v0 }
 0x182   : > { %4387 = vmatprep.subr.bf16.mxu1 %v4795_v0 }
 0x184   : > { %4368 = vmatpush3.bf16.msra.mxu0 %v4664_v55  ;;  %v4704_v55 = vld [vmem:[%s5461_s16 + $0x3b8] sm:$0xff]   ;;  %s1499_s16 = scalar_select %p1498_p6, %s4777_s27, 1 }
 0x185   : > { %4388 = vmatpush3.bf16.msra.mxu1 %v4665_v56  ;;  %4369 = vmatprep.subr.bf16.mxu0 %v4795_v0  ;;  %v3264_v56 = vrot.slane %v3262_v48, 1 }
 0x186   : > { %4389 = vmatprep.subr.bf16.mxu1 %v4795_v0  ;;  %s1500_s18 = scalar_lea.vmem %s5836_s5, %s1499_s16 }
 0x188   : > { %4370 = vmatpush3.bf16.msra.mxu0 %v4666_v57  ;;  %v3267_v57 = vrot.slane %v3265_v49, 2 }
 0x189   : > { %4390 = vmatpush3.bf16.msra.mxu1 %v4667_v59  ;;  %4371 = vmatprep.subr.bf16.mxu0 %v4795_v0  ;;  %v3151_v59 = vrot.slane %v4706_v39, 1 }
 0x18a   : > { %4391 = vmatprep.subr.bf16.mxu1 %v4795_v0 }
 0x18c   : > { %4372 = vmatpush3.bf16.msra.mxu0 %v4668_v60  ;;  %v3268_v60 = vor.u32 %v3267_v57, %v3264_v56 }
 0x18d   : > { %4392 = vmatpush3.bf16.msra.mxu1 %v4669_v63  ;;  %4373 = vmatprep.subr.bf16.mxu0 %v4795_v0 }
 0x18e   : > { %4393 = vmatprep.subr.bf16.mxu1 %v4795_v0 }
 0x190   : > { %4374 = vmatpush3.bf16.msra.mxu0 %v4670_v1 }
 0x191   : > { %4394 = vmatpush3.bf16.msra.mxu1 %v4671_v4  ;;  %4399 = vmatprep.subr.bf16.mxu0 %v4795_v0 }
 0x192   : > { %4419 = vmatprep.subr.bf16.mxu1 %v4795_v0 }
 0x193   : > { %4376 = vmatmul.mubr.bf16.vlgmr.msra.gmra.mrb[20].mxu0 %v2685_v5 }
 0x194   : > { %4396 = vmatmul.mubr.bf16.vlgmr.msra.gmra.mrb[20].mxu1 %v2802_v6  ;;  %4400 = vmatpush3.bf16.msra.mxu0 %v4673_v7 }
 0x195   : > { %4420 = vmatpush3.bf16.msra.mxu1 %v4674_v8  ;;  %4401 = vmatprep.subr.bf16.mxu0 %v4795_v0 }
 0x196   : > { %4421 = vmatprep.subr.bf16.mxu1 %v4795_v0  ;;  %4415 = vmatprep.mubr.msk.bf16.mxu0 %vm4796_vm0, %v4795_v0 }
 0x197   : > { %4435 = vmatprep.mubr.msk.bf16.mxu1 %vm4796_vm0, %v4795_v0 }
 0x198   : > { %4402 = vmatpush3.bf16.msra.mxu0 %v4675_v9 }
 0x199   : > { %4422 = vmatpush3.bf16.msra.mxu1 %v4676_v10  ;;  %4403 = vmatprep.subr.bf16.mxu0 %v4795_v0 }
 0x19a   : > { %4423 = vmatprep.subr.bf16.mxu1 %v4795_v0 }
 0x19c   : > { %4404 = vmatpush3.bf16.msra.mxu0 %v4677_v11 }
 0x19d   : > { %4424 = vmatpush3.bf16.msra.mxu1 %v4678_v12  ;;  %4405 = vmatprep.subr.bf16.mxu0 %v4795_v0 }
 0x19e   : > { %4425 = vmatprep.subr.bf16.mxu1 %v4795_v0 }
 0x1a0   : > { %4406 = vmatpush3.bf16.msra.mxu0 %v4679_v13 }
 0x1a1   : > { %4426 = vmatpush3.bf16.msra.mxu1 %v4680_v14  ;;  %4407 = vmatprep.subr.bf16.mxu0 %v4795_v0 }
 0x1a2   : > { %4427 = vmatprep.subr.bf16.mxu1 %v4795_v0 }
 0x1a4   : > { %4408 = vmatpush3.bf16.msra.mxu0 %v4681_v15 }
 0x1a5   : > { %4428 = vmatpush3.bf16.msra.mxu1 %v4682_v16  ;;  %4409 = vmatprep.subr.bf16.mxu0 %v4795_v0 }
 0x1a6   : > { %4429 = vmatprep.subr.bf16.mxu1 %v4795_v0 }
 0x1a8   : > { %4410 = vmatpush3.bf16.msra.mxu0 %v4683_v17 }
 0x1a9   : > { %4430 = vmatpush3.bf16.msra.mxu1 %v4684_v19  ;;  %4411 = vmatprep.subr.bf16.mxu0 %v4795_v0 }
 0x1aa   : > { %4431 = vmatprep.subr.bf16.mxu1 %v4795_v0 }
 0x1ac   : > { %4412 = vmatpush3.bf16.msra.mxu0 %v4685_v20 }
 0x1ad   : > { %4432 = vmatpush3.bf16.msra.mxu1 %v4686_v22  ;;  %4413 = vmatprep.subr.bf16.mxu0 %v4795_v0 }
 0x1ae   : > { %4433 = vmatprep.subr.bf16.mxu1 %v4795_v0 }
 0x1b0   : > { %4414 = vmatpush3.bf16.msra.mxu0 %v4687_v23 }
 0x1b1   : > { %4434 = vmatpush3.bf16.msra.mxu1 %v4688_v26  ;;  %4439 = vmatprep.subr.bf16.mxu0 %v4795_v0 }
 0x1b2   : > { %4459 = vmatprep.subr.bf16.mxu1 %v4795_v0 }
 0x1b3   : > { %4416 = vmatmul.mubr.bf16.vlgmr.msra.gmra.mrb[24].mxu0 %v4689_v18 }
 0x1b4   : > { %4436 = vmatmul.mubr.bf16.vlgmr.msra.gmra.mrb[24].mxu1 %v3034_v27  ;;  %4440 = vmatpush3.bf16.msra.mxu0 %v4690_v28 }
 0x1b5   : > { %4460 = vmatpush3.bf16.msra.mxu1 %v4691_v29  ;;  %4441 = vmatprep.subr.bf16.mxu0 %v4795_v0 }
 0x1b6   : > { %4461 = vmatprep.subr.bf16.mxu1 %v4795_v0  ;;  %4455 = vmatprep.mubr.msk.bf16.mxu0 %vm4796_vm0, %v4795_v0 }
 0x1b7   : > { %4475 = vmatprep.mubr.msk.bf16.mxu1 %vm4796_vm0, %v4795_v0 }
 0x1b8   : > { %4442 = vmatpush3.bf16.msra.mxu0 %v4692_v30 }
 0x1b9   : > { %4462 = vmatpush3.bf16.msra.mxu1 %v4693_v31  ;;  %4443 = vmatprep.subr.bf16.mxu0 %v4795_v0 }
 0x1ba   : > { %4463 = vmatprep.subr.bf16.mxu1 %v4795_v0 }
 0x1bc   : > { %4444 = vmatpush3.bf16.msra.mxu0 %v4694_v32 }
 0x1bd   : > { %4464 = vmatpush3.bf16.msra.mxu1 %v4695_v33  ;;  %4445 = vmatprep.subr.bf16.mxu0 %v4795_v0 }
 0x1be   : > { %4465 = vmatprep.subr.bf16.mxu1 %v4795_v0 }
 0x1c0   : > { %4446 = vmatpush3.bf16.msra.mxu0 %v4696_v34 }
 0x1c1   : > { %4466 = vmatpush3.bf16.msra.mxu1 %v4697_v35  ;;  %4447 = vmatprep.subr.bf16.mxu0 %v4795_v0 }
 0x1c2   : > { %4467 = vmatprep.subr.bf16.mxu1 %v4795_v0 }
 0x1c4   : > { %4448 = vmatpush3.bf16.msra.mxu0 %v4698_v36 }
 0x1c5   : > { %4468 = vmatpush3.bf16.msra.mxu1 %v4699_v37  ;;  %4449 = vmatprep.subr.bf16.mxu0 %v4795_v0 }
 0x1c6   : > { %v1632_v41 = vpop.f32.mrb[0].mxu0  ;;  %4469 = vmatprep.subr.bf16.mxu1 %v4795_v0 }
 0x1c7   : > { %v1722_v42 = vpop.f32.mrb[0].mxu1  ;;  %v4177_v43 = vpop.f32.mrb[1].mxu0 }
 0x1c8   : > { %v1723_v44 = vadd.f32 %v1722_v42, %v1632_v41  ;;  %v4197_v45 = vpop.f32.mrb[1].mxu1  ;;  %v1635_v46 = vpop.f32.mrb[2].mxu0  ;;  %4450 = vmatpush3.bf16.msra.mxu0 %v4700_v38 }
 0x1c9   : > { %v1725_v50 = vpop.f32.mrb[2].mxu1  ;;  %4470 = vmatpush3.bf16.msra.mxu1 %v4701_v40  ;;  %v4178_v51 = vpop.f32.mrb[3].mxu0  ;;  %4451 = vmatprep.subr.bf16.mxu0 %v4795_v0 }
 0x1ca   : > { %v1726_v53 = vadd.f32 %v1725_v50, %v1635_v46  ;;  %v4198_v54 = vpop.f32.mrb[3].mxu1  ;;  %4471 = vmatprep.subr.bf16.mxu1 %v4795_v0 }
 0x1cc   : > { %4452 = vmatpush3.bf16.msra.mxu0 %v4702_v47 }
 0x1cd   : > { %4472 = vmatpush3.bf16.msra.mxu1 %v4703_v52  ;;  %4453 = vmatprep.subr.bf16.mxu0 %v4795_v0 }
 0x1ce   : > { %4473 = vmatprep.subr.bf16.mxu1 %v4795_v0 }
 0x1d0   : > { %4454 = vmatpush3.bf16.msra.mxu0 %v4704_v55 }
 0x1d1   : > { %4474 = vmatpush3.bf16.msra.mxu1 %v4705_v58 }
 0x1d3   : > { %4456 = vmatmul.mubr.bf16.vlgmr.msra.gmra.mrb[28].mxu0 %v3151_v59 }
 0x1d4   : > { %4476 = vmatmul.mubr.bf16.vlgmr.msra.gmra.mrb[28].mxu1 %v3268_v60 }
 0x1e6   : > { %v1837_v61 = vpop.f32.mrb[4].mxu0 }
 0x1e7   : > { %v1844_v62 = vadd.f32 %v1837_v61, %v1723_v44  ;;  %v1954_v63 = vpop.f32.mrb[4].mxu1  ;;  %v4217_v1 = vpop.f32.mrb[5].mxu0 }
 0x1e8   : > { %v4237_v2 = vpop.f32.mrb[5].mxu1  ;;  %v1840_v3 = vpop.f32.mrb[6].mxu0 }
 0x1e9   : > { %v1961_v4 = vadd.f32 %v1954_v63, %v1844_v62  ;;  %v1845_v5 = vadd.f32 %v1840_v3, %v1726_v53  ;;  %v1957_v6 = vpop.f32.mrb[6].mxu1  ;;  %v4218_v7 = vpop.f32.mrb[7].mxu0 }
 0x1ea   : > { %v4238_v8 = vpop.f32.mrb[7].mxu1 }
 0x1eb   : > { %v1962_v9 = vadd.f32 %v1957_v6, %v1845_v5 }
 0x206   : > { %v2070_v10 = vpop.f32.mrb[8].mxu0 }
 0x207   : > { %v2077_v0 = vadd.f32 %v2070_v10, %v1961_v4  ;;  %v2186_v11 = vpop.f32.mrb[8].mxu1  ;;  %v4257_v12 = vpop.f32.mrb[9].mxu0  ;;  %v4005_v10 = vld [vmem:[%s1500_s18] ss:$0 sm:$0xff] }
 0x208   : > { %v4277_v13 = vpop.f32.mrb[9].mxu1  ;;  %v2073_v14 = vpop.f32.mrb[10].mxu0 }
 0x209   : > { %v2193_v15 = vadd.f32 %v2186_v11, %v2077_v0  ;;  %v2078_v16 = vadd.f32 %v2073_v14, %v1962_v9  ;;  %v2189_v17 = vpop.f32.mrb[10].mxu1  ;;  %v4258_v18 = vpop.f32.mrb[11].mxu0 }
 0x20a   : > { %v4278_v19 = vpop.f32.mrb[11].mxu1 }
 0x20b   : > { %v2194_v20 = vadd.f32 %v2189_v17, %v2078_v16 }
 0x226   : > { %v2303_v21 = vpop.f32.mrb[12].mxu0 }
 0x227   : > { %v2310_v22 = vadd.f32 %v2303_v21, %v2193_v15  ;;  %v2420_v23 = vpop.f32.mrb[12].mxu1  ;;  %v4297_v24 = vpop.f32.mrb[13].mxu0  ;;  %v3382_v21 = vld [vmem:[%s1455_s21 + $0x4] sm:$0x3] }
 0x228   : > { %v4317_v25 = vpop.f32.mrb[13].mxu1  ;;  %v2306_v26 = vpop.f32.mrb[14].mxu0 }
 0x229   : > { %v2427_v27 = vadd.f32 %v2420_v23, %v2310_v22  ;;  %v2311_v28 = vadd.f32 %v2306_v26, %v2194_v20  ;;  %v2423_v29 = vpop.f32.mrb[14].mxu1  ;;  %v4298_v30 = vpop.f32.mrb[15].mxu0 }
 0x22a   : > { %v4318_v31 = vpop.f32.mrb[15].mxu1 }
 0x22b   : > { %v2428_v32 = vadd.f32 %v2423_v29, %v2311_v28 }
 0x246   : > { %v2536_v33 = vpop.f32.mrb[16].mxu0 }
 0x247   : > { %v2543_v34 = vadd.f32 %v2536_v33, %v2427_v27  ;;  %v2652_v35 = vpop.f32.mrb[16].mxu1  ;;  %v4337_v36 = vpop.f32.mrb[17].mxu0 }
 0x248   : > { %v4357_v37 = vpop.f32.mrb[17].mxu1  ;;  %v2539_v38 = vpop.f32.mrb[18].mxu0 }
 0x249   : > { %v2659_v39 = vadd.f32 %v2652_v35, %v2543_v34  ;;  %v2544_v40 = vadd.f32 %v2539_v38, %v2428_v32  ;;  %v2655_v41 = vpop.f32.mrb[18].mxu1  ;;  %v4338_v42 = vpop.f32.mrb[19].mxu0 }
 0x24a   : > { %v4358_v43 = vpop.f32.mrb[19].mxu1 }
 0x24b   : > { %v2660_v44 = vadd.f32 %v2655_v41, %v2544_v40 }
 0x266   : > { %v2769_v45 = vpop.f32.mrb[20].mxu0 }
 0x267   : > { %v2776_v46 = vadd.f32 %v2769_v45, %v2659_v39  ;;  %v2886_v47 = vpop.f32.mrb[20].mxu1  ;;  %v4377_v48 = vpop.f32.mrb[21].mxu0 }
 0x268   : > { %v4397_v49 = vpop.f32.mrb[21].mxu1  ;;  %v2772_v50 = vpop.f32.mrb[22].mxu0 }
 0x269   : > { %v2893_v51 = vadd.f32 %v2886_v47, %v2776_v46  ;;  %v2777_v52 = vadd.f32 %v2772_v50, %v2660_v44  ;;  %v2889_v53 = vpop.f32.mrb[22].mxu1  ;;  %v4378_v54 = vpop.f32.mrb[23].mxu0 }
 0x26a   : > { %v4398_v55 = vpop.f32.mrb[23].mxu1 }
 0x26b   : > { %v2894_v56 = vadd.f32 %v2889_v53, %v2777_v52 }
 0x286   : > { %v3002_v57 = vpop.f32.mrb[24].mxu0 }
 0x287   : > { %v3009_v58 = vadd.f32 %v3002_v57, %v2893_v51  ;;  %v3118_v59 = vpop.f32.mrb[24].mxu1  ;;  %v4417_v60 = vpop.f32.mrb[25].mxu0 }
 0x288   : > { %v4437_v61 = vpop.f32.mrb[25].mxu1  ;;  %v3005_v62 = vpop.f32.mrb[26].mxu0 }
 0x289   : > { %v3125_v63 = vadd.f32 %v3118_v59, %v3009_v58  ;;  %v3010_v1 = vadd.f32 %v3005_v62, %v2894_v56  ;;  %v3121_v2 = vpop.f32.mrb[26].mxu1  ;;  %v4418_v3 = vpop.f32.mrb[27].mxu0 }
 0x28a   : > { %v4438_v4 = vpop.f32.mrb[27].mxu1 }
 0x28b   : > { %v3126_v5 = vadd.f32 %v3121_v2, %v3010_v1 }
 0x2a6   : > { %v3235_v6 = vpop.f32.mrb[28].mxu0 }
 0x2a7   : > { %v3242_v7 = vadd.f32 %v3235_v6, %v3125_v63  ;;  %v3352_v8 = vpop.f32.mrb[28].mxu1  ;;  %v4457_v9 = vpop.f32.mrb[29].mxu0 }
 0x2a8   : > { %v4477_v0 = vpop.f32.mrb[29].mxu1  ;;  %v3238_v11 = vpop.f32.mrb[30].mxu0 }
 0x2a9   : > { %v3359_v12 = vadd.f32 %v3352_v8, %v3242_v7  ;;  %v3243_v13 = vadd.f32 %v3238_v11, %v3126_v5  ;;  %v3355_v14 = vpop.f32.mrb[30].mxu1  ;;  %v4458_v15 = vpop.f32.mrb[31].mxu0 }
 0x2aa   : > { %v4478_v16 = vpop.f32.mrb[31].mxu1 }
 0x2ab   : > { %v3368_v17 = vadd.f32 %v4005_v10, %v3359_v12  ;;  %v3360_v18 = vadd.f32 %v3355_v14, %v3243_v13 }
 0x2ac   : > { %3391 = sbr.rel (!%p4913_p8) target bundleno = 699 (0x2bb), region = 89 }
 0x2ad   : > { %v4013_v19 = vpack.c.bf16 %v3368_v17, %v3368_v17  ;;  %v3369_v20 = vadd.f32 %v4005_v10, %v3360_v18 }
 0x2af   : > { %3378 = vst [vmem:[%s1455_s21] sm:$0xf] %v4013_v19  ;;  %v4014_v22 = vpack.c.bf16 %v3369_v20, %v3369_v20 }
 0x2b1   : > { %v3383_v23 = vsel %vm3381_vm3, %v4014_v22, %v3382_v21 }
 0x2b2   : > { %3384 = vst [vmem:[%s1455_s21 + $0x4] sm:$0x3] %v3383_v23 }
 0x2b6   : > { %v3413_v24 = vld [vmem:[%s1455_s21] sm:$0xf] }
 0x2b7   : > { %3414 = vst [vmem:[%s3397_s13] sm:$0xf] %v3413_v24 }
 0x2b9   : > { %v3415_v25 = vld [vmem:[%s1455_s21 + $0x4] sm:$0xf] }
 0x2ba   : > { %3416 = vst [vmem:[%s3397_s13 + $0x8] sm:$0xf] %v3415_v25 }
 0x2bb PF: > { %s16_s7 = sadd.s32 1, %s4793_s7   ;;  %s5848_s26 = sld [smem:[#allocation4_spill]] }
 0x2bc   : > { %p13_p7 = scmp.ge.s32.totalorder %s16_s7, 46   ;;  %s5849_s17 = sld [smem:[#allocation5_spill]] }
 0x2bd   : > { %s5850_s29 = sld [smem:[#allocation6_spill]]  ;;  %s5851_s11 = sld [smem:[#allocation7_spill]] }
 0x2be   : > { %s5852_s21 = smov %s4757_s22  ;;  %s5853_s22 = smov %s4924_s9 }
 0x2bf   : > { %s5854_s23 = smov %s4765_s24  ;;  %s5855_s24 = smov %s4921_s8 }
 0x2c0   : > { %s5856_s25 = smov %s4781_s28  ;;  %s5857_s27 = smov %s4789_s30 }
 0x2c1   :  { %15 = sbr.rel (!%p13_p7) target bundleno = 6 (0x6), region = 191 }
 0x2c2   : > { %s5858_s28 = smov %s5849_s17 }
 0x2c3   : > { %s5859_s30 = smov %s5851_s11 }

// kernel: discriminator_wavelet_forward.12
= control target key start
LH: loop header
LB: loop body
LE: loop exit
PB: predicated region body
PF: predicated region fallthrough
CT: control target
= control target key end

     0   :  { %s921_s6 = smov 0   ;;  %s923_s7 = smov 0   ;;  %s1140_s0 = inlined_call_operand.vmem [shape: bf16[2,121,256], index: 0, kind: input, shape index: {}]   ;;  %s1141_s1 = inlined_call_operand.vmem [shape: bf16[2,121,256], index: 1, kind: output, shape index: {}]  }
   0x1   :  { %s925_s8 = smov 0   ;;  %s927_s9 = smov 0  }
   0x2   :  { %s929_s10 = smov 0   ;;  %s931_s11 = smov 0  }
   0x3   :  { %s933_s12 = smov 0  }
   0x4 LB: > { %s20_s13 = sadd.s32 1, %s901_s10  ;;  %s23_s14 = sadd.s32 1, %s905_s11  ;;  %s909_s12 = sphi %s933_s12, %s11_s12   ;;  %s905_s11 = sphi %s931_s11, %s1148_s11   ;;  %s901_s10 = sphi %s929_s10, %s1147_s10   ;;  %s897_s9 = sphi %s927_s9, %s1146_s9   ;;  %s893_s8 = sphi %s925_s8, %s1145_s8   ;;  %s889_s7 = sphi %s923_s7, %s1144_s7   ;;  %s885_s6 = sphi %s921_s6, %s1143_s6  }
   0x5   : > { %p21_p0 = scmp.ge.s32.totalorder %s20_s13, 2  ;;  %s675_s15 = sadd.s32 4294967295, %s909_s12  }
   0x6   : > { %p39_p1 = scmp.ne.s32.totalorder %s889_s7, %s885_s6  ;;  %p40_p2 = scmp.eq.s32.totalorder %s909_s12, 0 }
   0x7   : > { %s1150_s13 = smov (%p21_p0, %s20_s13), 0  ;;  %s1152_s14 = smov (!%p21_p0, %s23_s14), %s905_s11 }
   0x8   : > { %p25_p3 = scmp.ge.s32.totalorder %s1152_s14, 2  ;;  %p71_p4 = scmp.eq.s32.totalorder %s675_s15, 3 }
   0x9   : > { %s28_s16 = ssub.s32 %s901_s10, %s1150_s13  ;;  %p41_p5 = por %p40_p2, %p39_p1 }
   0xa   : > { %s1154_s14 = smov (%p25_p3, %s1152_s14), 0  ;;  %p969_p6 = por %p71_p4, %p39_p1 }
   0xb   : > { %s27_s18 = ssub.s32 %s905_s11, %s1154_s14  ;;  %s32_s20 = sadd.s32 1, %s889_s7 }
   0xc   : > { %s29_s19 = sor.u32 %s28_s16, %s27_s18  ;;  %p678_p8 = scmp.ge.s32.totalorder %s909_s12, 4 }
   0xd   : > { %p30_p7 = scmp.eq.s32.totalorder %s29_s19, 0 }
   0xe   : > { %93 = sbr.rel (%p678_p8) target bundleno = 37 (0x25), region = 16 }
   0xf   : > { %s977_s21 = scalar_select %p30_p7, %s889_s7, %s32_s20  }
  0x15   : > { %96 = sbr.rel (!%p41_p5) target bundleno = 37 (0x25), region = 20  ;;  %s98_s22 = sand.u32 (%p41_p5), 1, %s889_s7  }
  0x16   : > { %s680_s23 = sshll.u32 (%p41_p5), %s905_s11, 5  ;;  %s679_s24 = sshll.u32 (%p41_p5), %s98_s22, 6 }
  0x17   : > { %s102_s25 = sadd.s32 (%p41_p5), %s901_s10, %s680_s23  ;;  %s100_s30 = scalar_lea.vmem (%p41_p5), [#allocation2], %s679_s24 }
  0x18   : > { %s681_s26 = sshll.u32 (%p41_p5), %s102_s25, 2 }
  0x19   : > { %s986_s29 = scalar_lea.vmem (%p41_p5), %s1140_s0, %s681_s26 }
  0x1a   : > { %v120_v0 = vld [vmem:[%s986_s29] sm:$0xf] (%p41_p5)  ;;  %v122_v1 = vld [vmem:[%s986_s29 + $0x8] sm:$0xf] (%p41_p5)  ;;  %v124_v2 = vld [vmem:[%s986_s29 + $0x10] sm:$0xf] (%p41_p5) }
  0x1b   : > { %121 = vst [vmem:[%s100_s30] sm:$0xf] (%p41_p5), %v120_v0  ;;  %123 = vst [vmem:[%s100_s30 + $0x4] sm:$0xf] (%p41_p5), %v122_v1  ;;  %v126_v3 = vld [vmem:[%s986_s29 + $0x18] sm:$0xf] (%p41_p5) }
  0x1c   : > { %125 = vst [vmem:[%s100_s30 + $0x8] sm:$0xf] %v124_v2  ;;  %v128_v4 = vld [vmem:[%s986_s29 + $0x20] sm:$0xf]  ;;  %v130_v5 = vld [vmem:[%s986_s29 + $0x28] sm:$0xf] }
  0x1d   : > { %127 = vst [vmem:[%s100_s30 + $0xc] sm:$0xf] %v126_v3  ;;  %129 = vst [vmem:[%s100_s30 + $0x10] sm:$0xf] %v128_v4  ;;  %v132_v6 = vld [vmem:[%s986_s29 + $0x30] sm:$0xf] }
  0x1e   : > { %131 = vst [vmem:[%s100_s30 + $0x14] sm:$0xf] %v130_v5  ;;  %v134_v7 = vld [vmem:[%s986_s29 + $0x38] sm:$0xf]  ;;  %v136_v8 = vld [vmem:[%s986_s29 + $0x40] sm:$0xf] }
  0x1f   : > { %133 = vst [vmem:[%s100_s30 + $0x18] sm:$0xf] %v132_v6  ;;  %135 = vst [vmem:[%s100_s30 + $0x1c] sm:$0xf] %v134_v7  ;;  %v138_v9 = vld [vmem:[%s986_s29 + $0x48] sm:$0xf] }
  0x20   : > { %137 = vst [vmem:[%s100_s30 + $0x20] sm:$0xf] %v136_v8  ;;  %v140_v10 = vld [vmem:[%s986_s29 + $0x50] sm:$0xf]  ;;  %v142_v11 = vld [vmem:[%s986_s29 + $0x58] sm:$0xf] }
  0x21   : > { %139 = vst [vmem:[%s100_s30 + $0x24] sm:$0xf] %v138_v9  ;;  %141 = vst [vmem:[%s100_s30 + $0x28] sm:$0xf] %v140_v10  ;;  %v144_v12 = vld [vmem:[%s986_s29 + $0x60] sm:$0xf] }
  0x22   : > { %143 = vst [vmem:[%s100_s30 + $0x2c] sm:$0xf] %v142_v11  ;;  %v146_v13 = vld [vmem:[%s986_s29 + $0x68] sm:$0xf]  ;;  %v148_v14 = vld [vmem:[%s986_s29 + $0x70] sm:$0xf] }
  0x23   : > { %145 = vst [vmem:[%s100_s30 + $0x30] sm:$0xf] %v144_v12  ;;  %147 = vst [vmem:[%s100_s30 + $0x34] sm:$0xf] %v146_v13  ;;  %v150_v15 = vld [vmem:[%s986_s29 + $0x78] sm:$0xf] }
  0x24   : > { %149 = vst [vmem:[%s100_s30 + $0x38] sm:$0xf] %v148_v14  ;;  %151 = vst [vmem:[%s100_s30 + $0x3c] sm:$0xf] %v150_v15 }
  0x25 PF: > { %p682_p9 = scmp.ge.s32.totalorder %s909_s12, 1  ;;  %p205_p10 = scmp.lt.s32.totalorder %s909_s12, 5 }
  0x27   : > { %p206_p11 = pnand %p682_p9, %p205_p10 }
  0x28   : > { %s212_s2 = sand.u32 (!%p206_p11), 1, %s885_s6   ;;  %vm276_vm0 = vcmask (!%p206_p11), 1040384  }
  0x29   : > { %209 = sbr.rel (%p206_p11) target bundleno = 183 (0xb7), region = 61  ;;  %s1007_s3 = sshll.u32 (!%p206_p11), %s212_s2, 6 }
  0x2a   : > { %s1010_s4 = scalar_lea.vmem (!%p206_p11), [#allocation2], %s1007_s3  ;;  %s1066_s5 = scalar_lea.vmem (!%p206_p11), [#allocation3], %s1007_s3 }
  0x2b   : > { %v723_v16 = vld [vmem:[%s1010_s4] sm:$0xff] (!%p206_p11)   ;;  %v785_v17 = vld [vmem:[%s1010_s4 + $0x8] sm:$0xff] (!%p206_p11)   ;;  %v786_v21 = vld [vmem:[%s1010_s4 + $0x10] sm:$0xff] (!%p206_p11)  }
  0x2c   : > { %v724_v18 = vunpack.c.l.bf16 (!%p206_p11), %v723_v16  ;;  %v725_v19 = vunpack.c.h.bf16 (!%p206_p11), %v723_v16  ;;  %v728_v20 = vunpack.c.l.bf16 (!%p206_p11), %v785_v17  ;;  %v729_v22 = vunpack.c.h.bf16 (!%p206_p11), %v785_v17  ;;  %v787_v26 = vld [vmem:[%s1010_s4 + $0x18] sm:$0xff] (!%p206_p11)   ;;  %v788_v31 = vld [vmem:[%s1010_s4 + $0x20] sm:$0xff] (!%p206_p11)   ;;  %v789_v36 = vld [vmem:[%s1010_s4 + $0x28] sm:$0xff] (!%p206_p11)  }
  0x2d   : > { %v732_v24 = vunpack.c.l.bf16 (!%p206_p11), %v786_v21  ;;  %v733_v27 = vunpack.c.h.bf16 (!%p206_p11), %v786_v21  ;;  %v736_v29 = vunpack.c.l.bf16 (!%p206_p11), %v787_v26  ;;  %v737_v32 = vunpack.c.h.bf16 (!%p206_p11), %v787_v26  ;;  %v790_v41 = vld [vmem:[%s1010_s4 + $0x30] sm:$0xff] (!%p206_p11)   ;;  %v245_v45 = vld [vmem:[%s1010_s4 + $0x3c] sm:$0x1] (!%p206_p11)  ;;  %v244_v47 = vld [vmem:[%s1010_s4 + $0x38] sm:$0xf] (!%p206_p11) }
  0x2e   : > { %v262_v23 = vadd.f32 (!%p206_p11), %v725_v19, %v724_v18  ;;  %v740_v34 = vunpack.c.l.bf16 (!%p206_p11), %v788_v31  ;;  %v741_v37 = vunpack.c.h.bf16 (!%p206_p11), %v788_v31  ;;  %v744_v39 = vunpack.c.l.bf16 (!%p206_p11), %v789_v36 }
  0x2f   : > { %v745_v42 = vunpack.c.h.bf16 (!%p206_p11), %v789_v36  ;;  %v748_v44 = vunpack.c.l.bf16 (!%p206_p11), %v790_v41  ;;  %v749_v48 = vunpack.c.h.bf16 (!%p206_p11), %v790_v41  ;;  %v261_v50 = vunpack.c.l.bf16 (!%p206_p11), %v245_v45 }
  0x30   : > { %v263_v25 = vadd.f32 %v728_v20, %v262_v23  ;;  %v260_v51 = vunpack.c.l.bf16 %v244_v47  ;;  %s702_s6 = sshll.u32 (%p969_p6), %s897_s9, 5 }
  0x31   : > { %v277_v54 = vsel %vm276_vm0, %v261_v50, 0.0  ;;  %s501_s15 = sadd.s32 (%p969_p6), %s893_s8, %s702_s6 }
  0x32   : > { %v264_v28 = vadd.f32 %v729_v22, %v263_v25  ;;  %s703_s16 = sshll.u32 (%p969_p6), %s501_s15, 2 }
  0x33   : > { %s503_s19 = scalar_lea.vmem (%p969_p6), %s1141_s1, %s703_s16 }
  0x34   : > { %v265_v30 = vadd.f32 %v732_v24, %v264_v28 }
  0x36   : > { %v266_v33 = vadd.f32 %v733_v27, %v265_v30 }
  0x38   : > { %v267_v35 = vadd.f32 %v736_v29, %v266_v33 }
  0x3a   : > { %v268_v38 = vadd.f32 %v737_v32, %v267_v35 }
  0x3c   : > { %v269_v40 = vadd.f32 %v740_v34, %v268_v38 }
  0x3e   : > { %v270_v43 = vadd.f32 %v741_v37, %v269_v40 }
  0x40   : > { %v271_v46 = vadd.f32 %v744_v39, %v270_v43 }
  0x42   : > { %v272_v49 = vadd.f32 %v745_v42, %v271_v46 }
  0x44   : > { %v273_v52 = vadd.f32 %v748_v44, %v272_v49 }
  0x46   : > { %v274_v53 = vadd.f32 %v749_v48, %v273_v52 }
  0x48   : > { %v275_v55 = vadd.f32 %v274_v53, %v260_v51 }
  0x4a   : > { %v278_v56 = vadd.f32 %v277_v54, %v275_v55 }
  0x4c   : > { %v279_v57 = vrot.slane %v278_v56, 4 }
  0x4e   : > { %v280_v58 = vadd.f32 %v279_v57, %v278_v56 }
  0x50   : > { %v281_v59 = vrot.slane %v280_v58, 2 }
  0x52   : > { %v282_v60 = vadd.f32 %v281_v59, %v280_v58 }
  0x54   : > { %v283_v61 = vrot.slane %v282_v60, 1 }
  0x56   : > { %v284_v62 = vadd.f32 %v283_v61, %v282_v60 }
  0x58   : > { %v286_v63 = vmul.f32 0.008264462, %v284_v62 }
  0x5a   : > { %v287_v0 = vsub.f32 %v724_v18, %v286_v63  ;;  %v288_v1 = vsub.f32 %v725_v19, %v286_v63  ;;  %v289_v2 = vsub.f32 %v728_v20, %v286_v63  ;;  %v290_v3 = vsub.f32 %v729_v22, %v286_v63 }
  0x5b   : > { %v291_v6 = vsub.f32 %v732_v24, %v286_v63  ;;  %v292_v8 = vsub.f32 %v733_v27, %v286_v63  ;;  %v293_v11 = vsub.f32 %v736_v29, %v286_v63  ;;  %v294_v14 = vsub.f32 %v737_v32, %v286_v63 }
  0x5c   : > { %v303_v4 = vmul.f32 %v287_v0, %v287_v0  ;;  %v304_v5 = vmul.f32 %v288_v1, %v288_v1  ;;  %v305_v7 = vmul.f32 %v289_v2, %v289_v2  ;;  %v306_v9 = vmul.f32 %v290_v3, %v290_v3 }
  0x5d   : > { %v307_v12 = vmul.f32 %v291_v6, %v291_v6  ;;  %v308_v15 = vmul.f32 %v292_v8, %v292_v8  ;;  %v1022_v17 = vsub.f32 %v740_v34, %v286_v63  ;;  %v309_v21 = vmul.f32 %v293_v11, %v293_v11 }
  0x5e   : > { %v319_v10 = vadd.f32 %v304_v5, %v303_v4  ;;  %v1024_v19 = vsub.f32 %v741_v37, %v286_v63  ;;  %v310_v20 = vmul.f32 %v294_v14, %v294_v14  ;;  %v1026_v23 = vsub.f32 %v744_v39, %v286_v63 }
  0x5f   : > { %v311_v24 = vmul.f32 %v1022_v17, %v1022_v17  ;;  %v1030_v26 = vsub.f32 %v745_v42, %v286_v63  ;;  %v1034_v29 = vsub.f32 %v748_v44, %v286_v63  ;;  %v1038_v32 = vsub.f32 %v749_v48, %v286_v63 }
  0x60   : > { %v320_v13 = vadd.f32 %v319_v10, %v305_v7  ;;  %v312_v27 = vmul.f32 %v1024_v19, %v1024_v19  ;;  %v313_v30 = vmul.f32 %v1026_v23, %v1026_v23  ;;  %v1042_v35 = vsub.f32 %v261_v50, %v286_v63 }
  0x61   : > { %v314_v33 = vmul.f32 %v1030_v26, %v1030_v26  ;;  %v1044_v36 = vsub.f32 %v260_v51, %v286_v63  ;;  %v315_v37 = vmul.f32 %v1034_v29, %v1034_v29  ;;  %v316_v39 = vmul.f32 %v1038_v32, %v1038_v32 }
  0x62   : > { %v321_v16 = vadd.f32 %v320_v13, %v306_v9  ;;  %v318_v41 = vmul.f32 %v1042_v35, %v1042_v35 }
  0x63   : > { %v317_v42 = vmul.f32 %v1044_v36, %v1044_v36 }
  0x64   : > { %v322_v18 = vadd.f32 %v321_v16, %v307_v12  ;;  %v333_v45 = vsel %vm276_vm0, %v318_v41, 0.0 }
  0x66   : > { %v323_v22 = vadd.f32 %v322_v18, %v308_v15 }
  0x68   : > { %v324_v25 = vadd.f32 %v323_v22, %v309_v21 }
  0x6a   : > { %v325_v28 = vadd.f32 %v324_v25, %v310_v20 }
  0x6c   : > { %v326_v31 = vadd.f32 %v325_v28, %v311_v24 }
  0x6e   : > { %v327_v34 = vadd.f32 %v326_v31, %v312_v27 }
  0x70   : > { %v328_v38 = vadd.f32 %v327_v34, %v313_v30 }
  0x72   : > { %v329_v40 = vadd.f32 %v328_v38, %v314_v33 }
  0x74   : > { %v330_v43 = vadd.f32 %v329_v40, %v315_v37 }
  0x76   : > { %v331_v44 = vadd.f32 %v330_v43, %v316_v39 }
  0x78   : > { %v332_v46 = vadd.f32 %v331_v44, %v317_v42 }
  0x7a   : > { %v334_v47 = vadd.f32 %v333_v45, %v332_v46 }
  0x7c   : > { %v335_v48 = vrot.slane %v334_v47, 4 }
  0x7e   : > { %v336_v49 = vadd.f32 %v335_v48, %v334_v47 }
  0x80   : > { %v337_v50 = vrot.slane %v336_v49, 2 }
  0x82   : > { %v338_v51 = vadd.f32 %v337_v50, %v336_v49  ;;  %v490_v50 = vld [vmem:[%s1066_s5 + $0x3c] sm:$0x1] }
  0x84   : > { %v339_v52 = vrot.slane %v338_v51, 1 }
  0x86   : > { %v340_v53 = vadd.f32 %v339_v52, %v338_v51 }
  0x88   : > { %v341_v54 = vmul.f32 0.008264462, %v340_v53 }
  0x8a   : > { %v342_v55 = vadd.f32 1e-05, %v341_v54 }
  0x8c   : > { %853 = vrsqrt.f32 %v342_v55 }
  0x96   : > { %v1055_v56 = vpop.eup %853 }
  0x97   : > { %v344_v57 = vmul.f32 %v1055_v56, %v287_v0  ;;  %v345_v58 = vmul.f32 %v1055_v56, %v288_v1  ;;  %v346_v59 = vmul.f32 %v1055_v56, %v289_v2  ;;  %v347_v60 = vmul.f32 %v1055_v56, %v290_v3 }
  0x98   : > { %v348_v61 = vmul.f32 %v1055_v56, %v291_v6  ;;  %v349_v62 = vmul.f32 %v1055_v56, %v292_v8  ;;  %v350_v63 = vmul.f32 %v1055_v56, %v293_v11  ;;  %v351_v4 = vmul.f32 %v1055_v56, %v294_v14 }
  0x99   : > { %vm360_vm1 = vcmp.ge.f32.partialorder %v344_v57, 0.0  ;;  %vm361_vm2 = vcmp.ge.f32.partialorder %v345_v58, 0.0  ;;  %v376_v5 = vmul.f32 0.2, %v344_v57  ;;  %v377_v7 = vmul.f32 0.2, %v345_v58 }
  0x9a   : > { %vm362_vm3 = vcmp.ge.f32.partialorder %v346_v59, 0.0  ;;  %vm363_vm4 = vcmp.ge.f32.partialorder %v347_v60, 0.0  ;;  %v378_v0 = vmul.f32 0.2, %v346_v59  ;;  %v379_v1 = vmul.f32 0.2, %v347_v60 }
  0x9b   : > { %v392_v2 = vsel %vm360_vm1, %v344_v57, %v376_v5  ;;  %v393_v9 = vsel %vm361_vm2, %v345_v58, %v377_v7  ;;  %vm364_vm5 = vcmp.ge.f32.partialorder %v348_v61, 0.0  ;;  %vm365_vm6 = vcmp.ge.f32.partialorder %v349_v62, 0.0 }
  0x9c   : > { %v753_v3 = vpack.c.bf16 %v393_v9, %v392_v2  ;;  %v394_v6 = vsel %vm362_vm3, %v346_v59, %v378_v0  ;;  %v395_v8 = vsel %vm363_vm4, %v347_v60, %v379_v1  ;;  %v380_v10 = vmul.f32 0.2, %v348_v61 }
  0x9d   : > { %v758_v11 = vpack.c.bf16 %v395_v8, %v394_v6  ;;  %v381_v12 = vmul.f32 0.2, %v349_v62  ;;  %vm366_vm7 = vcmp.ge.f32.partialorder %v350_v63, 0.0  ;;  %vm367_vm8 = vcmp.ge.f32.partialorder %v351_v4, 0.0 }
  0x9e   : > { %754 = vst [vmem:[%s1066_s5] sm:$0xff] %v753_v3   ;;  %v396_v13 = vsel %vm364_vm5, %v348_v61, %v380_v10  ;;  %v382_v14 = vmul.f32 0.2, %v350_v63  ;;  %v383_v15 = vmul.f32 0.2, %v351_v4  ;;  %v352_v16 = vmul.f32 %v1055_v56, %v1022_v17 }
  0x9f   : > { %791 = vst [vmem:[%s1066_s5 + $0x8] sm:$0xff] %v758_v11   ;;  %v397_v21 = vsel %vm365_vm6, %v349_v62, %v381_v12  ;;  %v353_v18 = vmul.f32 %v1055_v56, %v1024_v19  ;;  %v354_v20 = vmul.f32 %v1055_v56, %v1026_v23  ;;  %v355_v22 = vmul.f32 %v1055_v56, %v1030_v26 }
  0xa0   : > { %v763_v24 = vpack.c.bf16 %v397_v21, %v396_v13  ;;  %v398_v25 = vsel %vm366_vm7, %v350_v63, %v382_v14  ;;  %v399_v27 = vsel %vm367_vm8, %v351_v4, %v383_v15  ;;  %vm368_vm9 = vcmp.ge.f32.partialorder %v352_v16, 0.0 }
  0xa1   : > { %v768_v28 = vpack.c.bf16 %v399_v27, %v398_v25  ;;  %vm369_vm10 = vcmp.ge.f32.partialorder %v353_v18, 0.0  ;;  %v384_v17 = vmul.f32 0.2, %v352_v16  ;;  %v385_v30 = vmul.f32 0.2, %v353_v18 }
  0xa2   : > { %792 = vst [vmem:[%s1066_s5 + $0x10] sm:$0xff] %v763_v24   ;;  %vm370_vm11 = vcmp.ge.f32.partialorder %v354_v20, 0.0  ;;  %vm371_vm12 = vcmp.ge.f32.partialorder %v355_v22, 0.0  ;;  %v386_v19 = vmul.f32 0.2, %v354_v20  ;;  %v356_v26 = vmul.f32 %v1055_v56, %v1034_v29 }
  0xa3   : > { %v387_v31 = vmul.f32 0.2, %v355_v22  ;;  %793 = vst [vmem:[%s1066_s5 + $0x18] sm:$0xff] %v768_v28   ;;  %v400_v33 = vsel %vm368_vm9, %v352_v16, %v384_v17  ;;  %v401_v23 = vsel %vm369_vm10, %v353_v18, %v385_v30  ;;  %v357_v34 = vmul.f32 %v1055_v56, %v1038_v32 }
  0xa4   : > { %v773_v37 = vpack.c.bf16 %v401_v23, %v400_v33  ;;  %v402_v38 = vsel %vm370_vm11, %v354_v20, %v386_v19  ;;  %v358_v40 = vmul.f32 %v1055_v56, %v1044_v36  ;;  %vm372_vm13 = vcmp.ge.f32.partialorder %v356_v26, 0.0 }
  0xa5   : > { %v403_v39 = vsel %vm371_vm12, %v355_v22, %v387_v31  ;;  %vm373_vm14 = vcmp.ge.f32.partialorder %v357_v34, 0.0  ;;  %v388_v42 = vmul.f32 0.2, %v356_v26  ;;  %v389_v43 = vmul.f32 0.2, %v357_v34 }
  0xa6   : > { %v778_v41 = vpack.c.bf16 %v403_v39, %v402_v38  ;;  %794 = vst [vmem:[%s1066_s5 + $0x20] sm:$0xff] %v773_v37   ;;  %vm374_vm15 = vcmp.ge.f32.partialorder %v358_v40, 0.0  ;;  %v390_v29 = vmul.f32 0.2, %v358_v40  ;;  %v359_v32 = vmul.f32 %v1055_v56, %v1042_v35  ;;  %v519_v35 = vld [vmem:[%s1066_s5] sm:$0xf] (%p969_p6) }
  0xa7   : > { %v404_v44 = vsel %vm372_vm13, %v356_v26, %v388_v42  ;;  %vm488_vm1 = vsmask.f32 256  ;;  %v405_v45 = vsel %vm373_vm14, %v357_v34, %v389_v43  ;;  %v521_v53 = vld [vmem:[%s1066_s5 + $0x4] sm:$0xf] (%p969_p6)  ;;  %v523_v54 = vld [vmem:[%s1066_s5 + $0x8] sm:$0xf] (%p969_p6) }
  0xa8   : > { %795 = vst [vmem:[%s1066_s5 + $0x28] sm:$0xff] %v778_v41   ;;  %v406_v36 = vsel %vm374_vm15, %v358_v40, %v390_v29  ;;  %vm375_vm2 = vcmp.ge.f32.partialorder %v359_v32, 0.0  ;;  %v391_v46 = vmul.f32 0.2, %v359_v32  ;;  %v783_v47 = vpack.c.bf16 %v405_v45, %v404_v44  ;;  %vm489_vm3 = vmand %vm276_vm0, %vm488_vm1  ;;  %499 = sbr.rel (!%p969_p6) target bundleno = 183 (0xb7), region = 69 }
  0xa9   : > { %v720_v48 = vpack.c.bf16 %v406_v36, %v406_v36  ;;  %v525_v55 = vld [vmem:[%s1066_s5 + $0xc] sm:$0xf] (%p969_p6)  ;;  %v527_v56 = vld [vmem:[%s1066_s5 + $0x10] sm:$0xf] (%p969_p6)  ;;  %v529_v57 = vld [vmem:[%s1066_s5 + $0x14] sm:$0xf] (%p969_p6) }
  0xaa   : > { %v407_v49 = vsel %vm375_vm2, %v359_v32, %v391_v46  ;;  %796 = vst [vmem:[%s1066_s5 + $0x30] sm:$0xff] %v783_v47   ;;  %v531_v58 = vld [vmem:[%s1066_s5 + $0x18] sm:$0xf] (%p969_p6)  ;;  %v533_v59 = vld [vmem:[%s1066_s5 + $0x1c] sm:$0xf] (%p969_p6)  ;;  %520 = vst [vmem:[%s503_s19] sm:$0xf] (%p969_p6), %v519_v35 }
  0xab   : > { %486 = vst [vmem:[%s1066_s5 + $0x38] sm:$0xf] %v720_v48  ;;  %v721_v51 = vpack.c.bf16 %v407_v49, %v407_v49  ;;  %522 = vst [vmem:[%s503_s19 + $0x8] sm:$0xf] (%p969_p6), %v521_v53 }
  0xac   : > { %524 = vst [vmem:[%s503_s19 + $0x10] sm:$0xf] (%p969_p6), %v523_v54  ;;  %526 = vst [vmem:[%s503_s19 + $0x18] sm:$0xf] (%p969_p6), %v525_v55 }
  0xad   : > { %v491_v52 = vsel %vm489_vm3, %v721_v51, %v490_v50  ;;  %v535_v60 = vld [vmem:[%s1066_s5 + $0x20] sm:$0xf] (%p969_p6)  ;;  %v537_v61 = vld [vmem:[%s1066_s5 + $0x24] sm:$0xf] (%p969_p6)  ;;  %528 = vst [vmem:[%s503_s19 + $0x20] sm:$0xf] (%p969_p6), %v527_v56 }
  0xae   : > { %492 = vst [vmem:[%s1066_s5 + $0x3c] sm:$0x1] %v491_v52  ;;  %530 = vst [vmem:[%s503_s19 + $0x28] sm:$0xf] (%p969_p6), %v529_v57 }
  0xaf   : > { %532 = vst [vmem:[%s503_s19 + $0x30] sm:$0xf] %v531_v58  ;;  %534 = vst [vmem:[%s503_s19 + $0x38] sm:$0xf] %v533_v59  ;;  %v539_v62 = vld [vmem:[%s1066_s5 + $0x28] sm:$0xf] }
  0xb0   : > { %536 = vst [vmem:[%s503_s19 + $0x40] sm:$0xf] %v535_v60  ;;  %538 = vst [vmem:[%s503_s19 + $0x48] sm:$0xf] %v537_v61  ;;  %v541_v63 = vld [vmem:[%s1066_s5 + $0x2c] sm:$0xf] }
  0xb1   : > { %v543_v4 = vld [vmem:[%s1066_s5 + $0x30] sm:$0xf]  ;;  %540 = vst [vmem:[%s503_s19 + $0x50] sm:$0xf] %v539_v62  ;;  %542 = vst [vmem:[%s503_s19 + $0x58] sm:$0xf] %v541_v63 }
  0xb2   : > { %544 = vst [vmem:[%s503_s19 + $0x60] sm:$0xf] %v543_v4  ;;  %v545_v5 = vld [vmem:[%s1066_s5 + $0x34] sm:$0xf]  ;;  %v547_v7 = vld [vmem:[%s1066_s5 + $0x38] sm:$0xf] }
  0xb3   : > { %546 = vst [vmem:[%s503_s19 + $0x68] sm:$0xf] %v545_v5  ;;  %548 = vst [vmem:[%s503_s19 + $0x70] sm:$0xf] %v547_v7 }
  0xb5   : > { %v549_v0 = vld [vmem:[%s1066_s5 + $0x3c] sm:$0xf] }
  0xb6   : > { %550 = vst [vmem:[%s503_s19 + $0x78] sm:$0xf] %v549_v0 }
  0xb7 PF: > { %s11_s12 = sadd.s32 1, %s909_s12   ;;  %s1143_s6 = smov %s889_s7 }
  0xb8   : > { %p8_p12 = scmp.ge.s32.totalorder %s11_s12, 6   ;;  %s1144_s7 = smov %s977_s21 }
  0xb9   : > { %s1145_s8 = smov %s901_s10  ;;  %s1146_s9 = smov %s905_s11 }
  0xba   : > { %s1147_s10 = smov %s1150_s13  ;;  %s1148_s11 = smov %s1154_s14 }
  0xbb   :  { %10 = sbr.rel (!%p8_p12) target bundleno = 4 (0x4), region = 141 }

// kernel: discriminator_wavelet_forward.13
= control target key start
LH: loop header
LB: loop body
LE: loop exit
PB: predicated region body
PF: predicated region fallthrough
CT: control target
= control target key end

     0   :  { %s5252_s21 = smov 0   ;;  %s5254_s22 = smov 0   ;;  %s6158_s0 = inlined_call_operand.vmem [shape: bf16[2,15,15,256], index: 0, kind: input, shape index: {}, may-alias: {0,1,2,3}]   ;;  %s6159_s1 = inlined_call_operand.vmem [shape: bf16[2,15,15,256], index: 1, kind: input, shape index: {}, may-alias: {0,1,2,3}]   ;;  %s6160_s2 = inlined_call_operand.vmem [shape: bf16[2,15,15,256], index: 2, kind: input, shape index: {}, may-alias: {0,1,2,3}]   ;;  %s6161_s3 = inlined_call_operand.vmem [shape: bf16[2,15,15,256], index: 3, kind: input, shape index: {}, may-alias: {0,1,2,3}]   ;;  %s6162_s4 = inlined_call_operand.vmem [shape: bf16[4,4,256,128], index: 4, kind: input, shape index: {}]   ;;  %s6163_s5 = inlined_call_operand.vmem [shape: f32[1,128], index: 5, kind: input, shape index: {}]   ;;  %s6164_s6 = inlined_call_operand.vmem [shape: f32[2,12,12,128], index: 6, kind: output, shape index: {}]  }
   0x1   :  { %s5256_s23 = smov 0   ;;  %s5258_s24 = smov 0  }
   0x2   :  { %s5260_s25 = smov 0  }
   0x3 LB: > { %s28_s26 = sadd.s32 1, %s5207_s23  ;;  %s31_s27 = sadd.s32 1, %s5211_s24  ;;  %s5215_s25 = sphi %s5260_s25, %s16_s25   ;;  %s5211_s24 = sphi %s5258_s24, %s6168_s24   ;;  %s5207_s23 = sphi %s5256_s23, %s6167_s23   ;;  %s5203_s22 = sphi %s5254_s22, %s6166_s22   ;;  %s5199_s21 = sphi %s5252_s21, %s6165_s21  }
   0x4   : > { %p29_p0 = scmp.ge.s32.totalorder %s28_s26, 12  ;;  %p3705_p1 = scmp.ge.s32.totalorder %s5215_s25, 1 }
   0x5   : > { %p318_p2 = scmp.lt.s32.totalorder %s5215_s25, 25 }
   0x6   : > { %s6170_s26 = smov (%p29_p0, %s28_s26), 0  ;;  %s6172_s27 = smov (!%p29_p0, %s31_s27), %s5211_s24 }
   0x7   : > { %p319_p3 = pnand %p3705_p1, %p318_p2  ;;  %p33_p4 = scmp.ge.s32.totalorder %s6172_s27, 2 }
   0x8   : > { %v4881_v0 = vld [vmem:[%s6162_s4 + $0xc0] sm:$0xff] (!%p319_p3)   ;;  %v4885_v4 = vld [vmem:[%s6162_s4 + $0xc8] sm:$0xff] (!%p319_p3)   ;;  %v4889_v8 = vld [vmem:[%s6162_s4 + $0xd0] sm:$0xff] (!%p319_p3)   ;;  %p396_p5 = scmp.lt.s32.totalorder (!%p319_p3), %s5203_s22, 1  ;;  %p398_p6 = scmp.lt.s32.totalorder (!%p319_p3), %s5199_s21, 14 }
   0x9   : > { %s6174_s27 = smov (%p33_p4, %s6172_s27), 0  ;;  %322 = sbr.rel (%p319_p3) target bundleno = 519 (0x207), region = 44 }
   0xa   : > { %v4882_v1 = vld [vmem:[%s6162_s4 + $0x40] sm:$0xff] (!%p319_p3)   ;;  %4487 = vmatprep.subr.bf16.mxu0 (!%p319_p3), %v4881_v0  ;;  %v4886_v5 = vld [vmem:[%s6162_s4 + $0x48] sm:$0xff] (!%p319_p3)   ;;  %v4890_v9 = vld [vmem:[%s6162_s4 + $0x50] sm:$0xff] (!%p319_p3)   ;;  %s405_s16 = sadd.s32 (!%p319_p3), 1, %s5199_s21  ;;  %s427_s8 = sadd.s32 (!%p319_p3), 3, %s5199_s21 }
   0xb   : > { %v4883_v2 = vld [vmem:[%s6162_s4 + $0x80] sm:$0xff] (!%p319_p3)   ;;  %4509 = vmatprep.subr.bf16.mxu1 (!%p319_p3), %v4882_v1  ;;  %v4887_v6 = vld [vmem:[%s6162_s4 + $0x88] sm:$0xff] (!%p319_p3)   ;;  %v4891_v10 = vld [vmem:[%s6162_s4 + $0x90] sm:$0xff] (!%p319_p3)   ;;  %p408_p7 = scmp.lt.s32.totalorder (!%p319_p3), %s405_s16, 14  ;;  %p430_p9 = scmp.lt.s32.totalorder (!%p319_p3), %s427_s8, 14 }
   0xc   : > { %v4884_v3 = vld [vmem:[%s6162_s4] sm:$0xff] (!%p319_p3)   ;;  %4488 = vmatpush3.bf16.msra.mxu0 (!%p319_p3), %v4883_v2  ;;  %v4888_v7 = vld [vmem:[%s6162_s4 + $0x8] sm:$0xff] (!%p319_p3)   ;;  %v4892_v11 = vld [vmem:[%s6162_s4 + $0x10] sm:$0xff] (!%p319_p3)   ;;  %p447_p10 = scmp.lt.s32.totalorder (!%p319_p3), %s5199_s21, 11 }
   0xd   : > { %4510 = vmatpush3.bf16.msra.mxu1 (!%p319_p3), %v4884_v3  ;;  %4489 = vmatprep.subr.bf16.mxu0 (!%p319_p3), %v4885_v4  ;;  %v4893_v12 = vld [vmem:[%s6162_s4 + $0xd8] sm:$0xff] (!%p319_p3)   ;;  %v4897_v16 = vld [vmem:[%s6162_s4 + $0xe0] sm:$0xff] (!%p319_p3)   ;;  %v4901_v20 = vld [vmem:[%s6162_s4 + $0xe8] sm:$0xff] (!%p319_p3)  }
   0xe   : > { %4511 = vmatprep.subr.bf16.mxu1 (!%p319_p3), %v4886_v5  ;;  %v4894_v13 = vld [vmem:[%s6162_s4 + $0x58] sm:$0xff] (!%p319_p3)   ;;  %v4898_v17 = vld [vmem:[%s6162_s4 + $0x60] sm:$0xff] (!%p319_p3)   ;;  %v4902_v21 = vld [vmem:[%s6162_s4 + $0x68] sm:$0xff] (!%p319_p3)  }
   0xf   : > { %v4895_v14 = vld [vmem:[%s6162_s4 + $0x98] sm:$0xff] (!%p319_p3)   ;;  %v4899_v18 = vld [vmem:[%s6162_s4 + $0xa0] sm:$0xff] (!%p319_p3)   ;;  %v4903_v22 = vld [vmem:[%s6162_s4 + $0xa8] sm:$0xff] (!%p319_p3)  }
  0x10   : > { %4490 = vmatpush3.bf16.msra.mxu0 %v4887_v6  ;;  %v4896_v15 = vld [vmem:[%s6162_s4 + $0x18] sm:$0xff]   ;;  %s6176_s22 = smov (!%p396_p5, %s5203_s22), 1  ;;  %v4900_v19 = vld [vmem:[%s6162_s4 + $0x20] sm:$0xff]   ;;  %v4904_v23 = vld [vmem:[%s6162_s4 + $0x28] sm:$0xff]   ;;  %s6178_s16 = smov (!%p408_p7, %s405_s16), 14 }
  0x11   : > { %4512 = vmatpush3.bf16.msra.mxu1 %v4888_v7  ;;  %4491 = vmatprep.subr.bf16.mxu0 %v4889_v8  ;;  %s399_s28 = scalar_select %p398_p6, %s5199_s21, 14  ;;  %v4905_v24 = vld [vmem:[%s6162_s4 + $0xf0] sm:$0xff]   ;;  %v4909_v28 = vld [vmem:[%s6162_s4 + $0xf8] sm:$0xff]   ;;  %v4917_v39 = vld [vmem:[%s6162_s4 + $0x140] sm:$0xff]  }
  0x12   : > { %4513 = vmatprep.subr.bf16.mxu1 %v4890_v9  ;;  %s5353_s11 = smul.u32 60, %s6176_s22  ;;  %v4906_v25 = vld [vmem:[%s6162_s4 + $0x70] sm:$0xff]   ;;  %v4910_v29 = vld [vmem:[%s6162_s4 + $0x78] sm:$0xff]   ;;  %v4918_v40 = vld [vmem:[%s6162_s4 + $0x1c0] sm:$0xff]   ;;  %s6182_s8 = smov (!%p430_p9, %s427_s8), 14 }
  0x13   : > { %s3706_s14 = sshll.u32 %s399_s28, 2  ;;  %v4907_v26 = vld [vmem:[%s6162_s4 + $0xb0] sm:$0xff]   ;;  %v4911_v30 = vld [vmem:[%s6162_s4 + $0xb8] sm:$0xff]   ;;  %v4919_v47 = vld [vmem:[%s6162_s4 + $0x100] sm:$0xff]   ;;  %s3708_s28 = sshll.u32 %s6178_s16, 2 }
  0x14   : > { %4492 = vmatpush3.bf16.msra.mxu0 %v4891_v10  ;;  %s402_s29 = sadd.s32 %s5353_s11, %s3706_s14  ;;  %v4908_v27 = vld [vmem:[%s6162_s4 + $0x30] sm:$0xff]   ;;  %v4912_v31 = vld [vmem:[%s6162_s4 + $0x38] sm:$0xff]   ;;  %v4920_v48 = vld [vmem:[%s6162_s4 + $0x180] sm:$0xff]   ;;  %s412_s14 = sadd.s32 %s5353_s11, %s3708_s28 }
  0x15   : > { %4514 = vmatpush3.bf16.msra.mxu1 %v4892_v11  ;;  %4493 = vmatprep.subr.bf16.mxu0 %v4893_v12  ;;  %s3707_s12 = sshll.u32 %s402_s29, 2  ;;  %v4922_v51 = vld [vmem:[%s6162_s4 + $0x1c8] sm:$0xff]   ;;  %v4926_v55 = vld [vmem:[%s6162_s4 + $0x1d0] sm:$0xff]   ;;  %v4930_v59 = vld [vmem:[%s6162_s4 + $0x1d8] sm:$0xff]   ;;  %s3709_s29 = sshll.u32 %s412_s14, 2 }
  0x16   : > { %4515 = vmatprep.subr.bf16.mxu1 %v4894_v13  ;;  %s5389_s30 = scalar_lea.vmem %s6158_s0, %s3707_s12  ;;  %v4921_v52 = vld [vmem:[%s6162_s4 + $0x148] sm:$0xff]   ;;  %v4925_v56 = vld [vmem:[%s6162_s4 + $0x150] sm:$0xff]   ;;  %v4929_v60 = vld [vmem:[%s6162_s4 + $0x158] sm:$0xff]   ;;  %s5596_s17 = scalar_lea.vmem %s6159_s1, %s3709_s29 }
  0x17   : > { %v458_v32 = vld [vmem:[%s5389_s30] sm:$0xff]  ;;  %v5399_v33 = vld [vmem:[%s5389_s30 + $0x8] sm:$0x77]  ;;  %v4928_v57 = vld [vmem:[%s6162_s4 + $0x190] sm:$0xff]   ;;  %s416_s12 = sadd.s32 2, %s5199_s21  ;;  %s3712_s14 = sshll.u32 %s6182_s8, 2 }
  0x18   : > { %4494 = vmatpush3.bf16.msra.mxu0 %v4895_v14  ;;  %v459_v34 = vld [vmem:[%s5389_s30 + $0x8] sm:$0x33]  ;;  %v3749_v35 = vcombine.high %v458_v32, %v5399_v33  ;;  %v3748_v38 = vcombine.low %v458_v32, %v5399_v33  ;;  %v4927_v58 = vld [vmem:[%s6162_s4 + $0x110] sm:$0xff]   ;;  %v4932_v61 = vld [vmem:[%s6162_s4 + $0x198] sm:$0xff]   ;;  %p419_p8 = scmp.lt.s32.totalorder %s416_s12, 14  ;;  %s434_s7 = sadd.s32 %s5353_s11, %s3712_s14 }
  0x19   : > { %4516 = vmatpush3.bf16.msra.mxu1 %v4896_v15  ;;  %4495 = vmatprep.subr.bf16.mxu0 %v4897_v16  ;;  %v3766_v36 = vcombine.low %v458_v32, %v459_v34  ;;  %v3767_v37 = vcombine.high %v458_v32, %v459_v34  ;;  %v4924_v53 = vld [vmem:[%s6162_s4 + $0x188] sm:$0xff]   ;;  %v4931_v62 = vld [vmem:[%s6162_s4 + $0x118] sm:$0xff]   ;;  %v4934_v63 = vld [vmem:[%s6162_s4 + $0x1e0] sm:$0xff]   ;;  %s6184_s21 = smov (!%p447_p10, %s5199_s21), 11 }
  0x1a   : > { %4517 = vmatprep.subr.bf16.mxu1 %v4898_v17  ;;  %v542_v41 = vshrl.u32 %v3749_v35, 16  ;;  %v544_v42 = vshll.u32 %v3749_v35, 16  ;;  %v535_v43 = vshrl.u32 %v3748_v38, 16  ;;  %v537_v44 = vshll.u32 %v3748_v38, 16  ;;  %v4923_v54 = vld [vmem:[%s6162_s4 + $0x108] sm:$0xff]   ;;  %v4933_v0 = vld [vmem:[%s6162_s4 + $0x160] sm:$0xff]  }
  0x1b   : > { %822 = vmatprep.mubr.bf16.mxu1 %v3767_v37  ;;  %v4936_v1 = vld [vmem:[%s6162_s4 + $0x1a0] sm:$0xff]   ;;  %v4938_v3 = vld [vmem:[%s6162_s4 + $0x1e8] sm:$0xff]   ;;  %v4942_v7 = vld [vmem:[%s6162_s4 + $0x1f0] sm:$0xff]   ;;  %s6180_s12 = smov (!%p419_p8, %s416_s12), 14  ;;  %s3714_s15 = sshll.u32 %s6184_s21, 1 }
  0x1c   : > { %4496 = vmatpush3.bf16.msra.mxu0 %v4899_v18  ;;  %v546_v45 = vrot.slane %v544_v42, 1  ;;  %v539_v46 = vrot.slane %v537_v44, 1  ;;  %v4935_v2 = vld [vmem:[%s6162_s4 + $0x120] sm:$0xff]   ;;  %v4937_v4 = vld [vmem:[%s6162_s4 + $0x168] sm:$0xff]   ;;  %v4941_v8 = vld [vmem:[%s6162_s4 + $0x170] sm:$0xff]   ;;  %s3710_s19 = sshll.u32 %s6180_s12, 2 }
  0x1d   : > { %4518 = vmatpush3.bf16.msra.mxu1 %v4900_v19  ;;  %4497 = vmatprep.subr.bf16.mxu0 %v4901_v20  ;;  %v4940_v5 = vld [vmem:[%s6162_s4 + $0x1a8] sm:$0xff]   ;;  %v4944_v9 = vld [vmem:[%s6162_s4 + $0x1b0] sm:$0xff]   ;;  %v4946_v11 = vld [vmem:[%s6162_s4 + $0x1f8] sm:$0xff]   ;;  %s423_s10 = sadd.s32 %s5353_s11, %s3710_s19  ;;  %s3713_s12 = sshll.u32 %s434_s7, 2 }
  0x1e   : > { %4519 = vmatprep.subr.bf16.mxu1 %v4902_v21  ;;  %v547_v49 = vor.u32 %v546_v45, %v542_v41  ;;  %v540_v50 = vor.u32 %v539_v46, %v535_v43  ;;  %v4939_v6 = vld [vmem:[%s6162_s4 + $0x128] sm:$0xff]   ;;  %v4943_v10 = vld [vmem:[%s6162_s4 + $0x130] sm:$0xff]   ;;  %v4945_v12 = vld [vmem:[%s6162_s4 + $0x178] sm:$0xff]   ;;  %s3711_s16 = sshll.u32 %s423_s10, 2  ;;  %s6016_s29 = scalar_lea.vmem %s6161_s3, %s3713_s12 }
  0x1f   : > { %v4948_v13 = vld [vmem:[%s6162_s4 + $0x1b8] sm:$0xff]   ;;  %v831_v14 = vld [vmem:[%s5389_s30] sm:$0xee]  ;;  %v1013_v16 = vld [vmem:[%s5389_s30 + $0x8] sm:$0xff]  ;;  %s5806_s13 = scalar_lea.vmem %s6160_s2, %s3711_s16  ;;  %s4840_s12 = smul.u32 24, %s6176_s22 }
  0x20   : > { %4498 = vmatpush3.bf16.msra.mxu0 %v4903_v22  ;;  %678 = vmatprep.mubr.bf16.mxu0 %v547_v49  ;;  %v3817_v15 = vcombine.high %v831_v14, %v5399_v33  ;;  %v3816_v17 = vcombine.low %v831_v14, %v5399_v33  ;;  %v4947_v18 = vld [vmem:[%s6162_s4 + $0x138] sm:$0xff]   ;;  %v3866_v19 = vcombine.low %v831_v14, %v1013_v16  ;;  %v4953_v22 = vld [vmem:[%s6162_s4 + $0x240] sm:$0xff]   ;;  %v4957_v35 = vld [vmem:[%s6162_s4 + $0x248] sm:$0xff]  }
  0x21   : > { %4520 = vmatpush3.bf16.msra.mxu1 %v4904_v23  ;;  %4499 = vmatprep.subr.bf16.mxu0 %v4905_v24  ;;  %v3867_v20 = vcombine.high %v831_v14, %v1013_v16  ;;  %v4954_v23 = vld [vmem:[%s6162_s4 + $0x2c0] sm:$0xff]   ;;  %v4958_v38 = vld [vmem:[%s6162_s4 + $0x2c8] sm:$0xff]   ;;  %v4961_v41 = vld [vmem:[%s6162_s4 + $0x250] sm:$0xff]   ;;  %s454_s30 = sadd.s32 %s4840_s12, %s3714_s15 }
  0x22   : > { %4521 = vmatprep.subr.bf16.mxu1 %v4906_v25  ;;  %v871_v21 = vrot.slane %v3817_v15, 1  ;;  %v4956_v34 = vld [vmem:[%s6162_s4 + $0x280] sm:$0xff]   ;;  %v4962_v42 = vld [vmem:[%s6162_s4 + $0x2d0] sm:$0xff]   ;;  %v4965_v45 = vld [vmem:[%s6162_s4 + $0x258] sm:$0xff]   ;;  %s3715_s11 = sshll.u32 %s454_s30, 3 }
  0x23   : > { %v1061_v24 = vshrl.u32 %v3867_v20, 16  ;;  %v1064_v25 = vshll.u32 %v3867_v20, 16  ;;  %v4963_v43 = vld [vmem:[%s6162_s4 + $0x210] sm:$0xff]   ;;  %v4966_v46 = vld [vmem:[%s6162_s4 + $0x2d8] sm:$0xff]   ;;  %v4969_v49 = vld [vmem:[%s6162_s4 + $0x260] sm:$0xff]   ;;  %s456_s18 = scalar_lea.vmem %s6164_s6, %s3715_s11 }
  0x24   : > { %4500 = vmatpush3.bf16.msra.mxu0 %v4907_v26  ;;  %v1053_v26 = vshrl.u32 %v3866_v19, 16  ;;  %v4964_v44 = vld [vmem:[%s6162_s4 + $0x290] sm:$0xff]   ;;  %v4991_v14 = vld [vmem:[%s6162_s4 + $0x300] sm:$0xff]  }
  0x25   : > { %4522 = vmatpush3.bf16.msra.mxu1 %v4908_v27  ;;  %4501 = vmatprep.subr.bf16.mxu0 %v4909_v28  ;;  %v1056_v27 = vshll.u32 %v3866_v19, 16  ;;  %v870_v28 = vrot.slane %v3816_v17, 1  ;;  %v4992_v17 = vld [vmem:[%s6162_s4 + $0x380] sm:$0xff]  }
  0x26   : > { %4523 = vmatprep.subr.bf16.mxu1 %v4910_v29  ;;  %v4955_v29 = vld [vmem:[%s6162_s4 + $0x200] sm:$0xff]   ;;  %v1055_v32 = vrot.slane %v1053_v26, 1  ;;  %v4999_v26 = vld [vmem:[%s6162_s4 + $0x310] sm:$0xff]  }
  0x27   : > { %v1058_v33 = vrot.slane %v1056_v27, 2  ;;  %v5000_v27 = vld [vmem:[%s6162_s4 + $0x390] sm:$0xff]  }
  0x28   : > { %4502 = vmatpush3.bf16.msra.mxu0 %v4911_v30  ;;  %v1063_v30 = vrot.slane %v1061_v24, 1  ;;  %v4997_v24 = vld [vmem:[%s6162_s4 + $0x350] sm:$0xff]  }
  0x29   : > { %4524 = vmatpush3.bf16.msra.mxu1 %v4912_v31  ;;  %4531 = vmatprep.subr.bf16.mxu0 %v4917_v39  ;;  %v1066_v31 = vrot.slane %v1064_v25, 2  ;;  %v1059_v37 = vor.u32 %v1058_v33, %v1055_v32  ;;  %v4959_v39 = vld [vmem:[%s6162_s4 + $0x208] sm:$0xff]   ;;  %v4998_v25 = vld [vmem:[%s6162_s4 + $0x3d0] sm:$0xff]   ;;  %v5005_v32 = vld [vmem:[%s6162_s4 + $0x360] sm:$0xff]  }
  0x2a   : > { %4553 = vmatprep.subr.bf16.mxu1 %v4918_v40  ;;  %v4960_v40 = vld [vmem:[%s6162_s4 + $0x288] sm:$0xff]   ;;  %v5006_v33 = vld [vmem:[%s6162_s4 + $0x3e0] sm:$0xff]  }
  0x2b   : > { %679 = vmatmul.mubr.bf16.vlgmr.msra.gmra.mrb[0].mxu0 %v540_v50  ;;  %v4970_v50 = vld [vmem:[%s6162_s4 + $0x2e0] sm:$0xff]  }
  0x2c   : > { %823 = vmatmul.mubr.bf16.vlgmr.msra.gmra.mrb[0].mxu1 %v3766_v36  ;;  %4532 = vmatpush3.bf16.msra.mxu0 %v4919_v47  ;;  %v1067_v36 = vor.u32 %v1066_v31, %v1063_v30  ;;  %v4967_v47 = vld [vmem:[%s6162_s4 + $0x218] sm:$0xff]  }
  0x2d   : > { %4554 = vmatpush3.bf16.msra.mxu1 %v4920_v48  ;;  %4533 = vmatprep.subr.bf16.mxu0 %v4921_v52  ;;  %v4968_v48 = vld [vmem:[%s6162_s4 + $0x298] sm:$0xff]   ;;  %v4972_v52 = vld [vmem:[%s6162_s4 + $0x2a0] sm:$0xff]  }
  0x2e   : > { %4555 = vmatprep.subr.bf16.mxu1 %v4922_v51  ;;  %1002 = vmatprep.mubr.bf16.mxu0 %v871_v21  ;;  %v4971_v51 = vld [vmem:[%s6162_s4 + $0x220] sm:$0xff]   ;;  %v4994_v21 = vld [vmem:[%s6162_s4 + $0x3c8] sm:$0xff]   ;;  %v5003_v30 = vld [vmem:[%s6162_s4 + $0x318] sm:$0xff]  }
  0x2f   : > { %1198 = vmatprep.mubr.bf16.mxu1 %v1067_v36  ;;  %v5004_v31 = vld [vmem:[%s6162_s4 + $0x398] sm:$0xff]   ;;  %v5009_v36 = vld [vmem:[%s6162_s4 + $0x368] sm:$0xff]  }
  0x30   : > { %4534 = vmatpush3.bf16.msra.mxu0 %v4923_v54  ;;  %v4974_v54 = vld [vmem:[%s6162_s4 + $0x2e8] sm:$0xff]  }
  0x31   : > { %4556 = vmatpush3.bf16.msra.mxu1 %v4924_v53  ;;  %4535 = vmatprep.subr.bf16.mxu0 %v4925_v56  ;;  %v4973_v53 = vld [vmem:[%s6162_s4 + $0x268] sm:$0xff]  }
  0x32   : > { %4557 = vmatprep.subr.bf16.mxu1 %v4926_v55  ;;  %v4975_v55 = vld [vmem:[%s6162_s4 + $0x228] sm:$0xff]  }
  0x33   : > { %v4976_v56 = vld [vmem:[%s6162_s4 + $0x2a8] sm:$0xff]  }
  0x34   : > { %4536 = vmatpush3.bf16.msra.mxu0 %v4927_v58  ;;  %v4978_v58 = vld [vmem:[%s6162_s4 + $0x2f0] sm:$0xff]  }
  0x35   : > { %4558 = vmatpush3.bf16.msra.mxu1 %v4928_v57  ;;  %4537 = vmatprep.subr.bf16.mxu0 %v4929_v60  ;;  %v4977_v57 = vld [vmem:[%s6162_s4 + $0x270] sm:$0xff]  }
  0x36   : > { %4559 = vmatprep.subr.bf16.mxu1 %v4930_v59  ;;  %v4979_v59 = vld [vmem:[%s6162_s4 + $0x230] sm:$0xff]  }
  0x37   : > { %v4980_v60 = vld [vmem:[%s6162_s4 + $0x2b0] sm:$0xff]  }
  0x38   : > { %4538 = vmatpush3.bf16.msra.mxu0 %v4931_v62  ;;  %v4982_v62 = vld [vmem:[%s6162_s4 + $0x2f8] sm:$0xff]  }
  0x39   : > { %4560 = vmatpush3.bf16.msra.mxu1 %v4932_v61  ;;  %4539 = vmatprep.subr.bf16.mxu0 %v4933_v0  ;;  %v4981_v61 = vld [vmem:[%s6162_s4 + $0x278] sm:$0xff]  }
  0x3a   : > { %4561 = vmatprep.subr.bf16.mxu1 %v4934_v63  ;;  %v4983_v63 = vld [vmem:[%s6162_s4 + $0x238] sm:$0xff]  }
  0x3b   : > { %v4984_v0 = vld [vmem:[%s6162_s4 + $0x2b8] sm:$0xff]  }
  0x3c   : > { %4540 = vmatpush3.bf16.msra.mxu0 %v4935_v2  ;;  %v1210_v2 = vld [vmem:[%s5596_s17 + $0x8] sm:$0x33] }
  0x3d   : > { %4562 = vmatpush3.bf16.msra.mxu1 %v4936_v1  ;;  %4541 = vmatprep.subr.bf16.mxu0 %v4937_v4  ;;  %v1209_v1 = vld [vmem:[%s5596_s17] sm:$0xff] }
  0x3e   : > { %4563 = vmatprep.subr.bf16.mxu1 %v4938_v3  ;;  %v5610_v3 = vld [vmem:[%s5596_s17 + $0x8] sm:$0x77]  ;;  %v3917_v4 = vcombine.high %v1209_v1, %v1210_v2 }
  0x40   : > { %4542 = vmatpush3.bf16.msra.mxu0 %v4939_v6  ;;  %v3966_v6 = vcombine.low %v1209_v1, %v5610_v3 }
  0x41   : > { %4564 = vmatpush3.bf16.msra.mxu1 %v4940_v5  ;;  %4543 = vmatprep.subr.bf16.mxu0 %v4941_v8  ;;  %v3967_v5 = vcombine.high %v1209_v1, %v5610_v3  ;;  %v3916_v8 = vcombine.low %v1209_v1, %v1210_v2  ;;  %v5028_v1 = vld [vmem:[%s6162_s4 + $0x480] sm:$0xff]  }
  0x42   : > { %4565 = vmatprep.subr.bf16.mxu1 %v4942_v7  ;;  %v4989_v7 = vld [vmem:[%s6162_s4 + $0x340] sm:$0xff]  }
  0x44   : > { %4544 = vmatpush3.bf16.msra.mxu0 %v4943_v10  ;;  %v1440_v10 = vshrl.u32 %v3967_v5, 16 }
  0x45   : > { %4566 = vmatpush3.bf16.msra.mxu1 %v4944_v9  ;;  %4545 = vmatprep.subr.bf16.mxu0 %v4945_v12  ;;  %v4990_v9 = vld [vmem:[%s6162_s4 + $0x3c0] sm:$0xff]   ;;  %v1433_v12 = vshrl.u32 %v3966_v6, 16 }
  0x46   : > { %4567 = vmatprep.subr.bf16.mxu1 %v4946_v11  ;;  %v1442_v11 = vshll.u32 %v3967_v5, 16  ;;  %v5029_v5 = vld [vmem:[%s6162_s4 + $0x448] sm:$0xff]  }
  0x48   : > { %4546 = vmatpush3.bf16.msra.mxu0 %v4947_v18  ;;  %v1444_v15 = vrot.slane %v1442_v11, 1  ;;  %v4993_v18 = vld [vmem:[%s6162_s4 + $0x348] sm:$0xff]   ;;  %v5034_v11 = vld [vmem:[%s6162_s4 + $0x4d0] sm:$0xff]  }
  0x49   : > { %4568 = vmatpush3.bf16.msra.mxu1 %v4948_v13  ;;  %4575 = vmatprep.subr.bf16.mxu0 %v4953_v22  ;;  %v1435_v13 = vshll.u32 %v3966_v6, 16  ;;  %v4995_v22 = vld [vmem:[%s6162_s4 + $0x308] sm:$0xff]  }
  0x4a   : > { %4597 = vmatprep.subr.bf16.mxu1 %v4954_v23  ;;  %v1445_v19 = vor.u32 %v1444_v15, %v1440_v10  ;;  %v4996_v23 = vld [vmem:[%s6162_s4 + $0x388] sm:$0xff]   ;;  %v5033_v10 = vld [vmem:[%s6162_s4 + $0x450] sm:$0xff]   ;;  %v5038_v15 = vld [vmem:[%s6162_s4 + $0x4d8] sm:$0xff]  }
  0x4b   : > { %1003 = vmatmul.mubr.bf16.vlgmr.msra.gmra.mrb[4].mxu0 %v870_v28  ;;  %v1437_v16 = vrot.slane %v1435_v13, 1  ;;  %v5001_v28 = vld [vmem:[%s6162_s4 + $0x358] sm:$0xff]   ;;  %v5036_v13 = vld [vmem:[%s6162_s4 + $0x490] sm:$0xff]  }
  0x4c   : > { %4576 = vmatpush3.bf16.msra.mxu0 %v4955_v29  ;;  %1199 = vmatmul.mubr.bf16.vlgmr.msra.gmra.mrb[4].mxu1 %v1059_v37  ;;  %v5002_v29 = vld [vmem:[%s6162_s4 + $0x3d8] sm:$0xff]   ;;  %v5010_v37 = vld [vmem:[%s6162_s4 + $0x3e8] sm:$0xff]  }
  0x4d   : > { %4577 = vmatprep.subr.bf16.mxu0 %v4957_v35  ;;  %4598 = vmatpush3.bf16.msra.mxu1 %v4956_v34  ;;  %v1438_v20 = vor.u32 %v1437_v16, %v1433_v12  ;;  %v5007_v34 = vld [vmem:[%s6162_s4 + $0x320] sm:$0xff]   ;;  %v5035_v12 = vld [vmem:[%s6162_s4 + $0x410] sm:$0xff]   ;;  %v5039_v16 = vld [vmem:[%s6162_s4 + $0x418] sm:$0xff]  }
  0x4e   : > { %4599 = vmatprep.subr.bf16.mxu1 %v4958_v38  ;;  %1382 = vmatprep.mubr.bf16.mxu0 %v3917_v4  ;;  %v5008_v35 = vld [vmem:[%s6162_s4 + $0x3a0] sm:$0xff]   ;;  %v5011_v38 = vld [vmem:[%s6162_s4 + $0x328] sm:$0xff]  }
  0x4f   : > { %1576 = vmatprep.mubr.bf16.mxu1 %v1445_v19  ;;  %v5042_v19 = vld [vmem:[%s6162_s4 + $0x4e0] sm:$0xff]  }
  0x50   : > { %4578 = vmatpush3.bf16.msra.mxu0 %v4959_v39  ;;  %v5012_v39 = vld [vmem:[%s6162_s4 + $0x3a8] sm:$0xff]  }
  0x51   : > { %4579 = vmatprep.subr.bf16.mxu0 %v4961_v41  ;;  %4600 = vmatpush3.bf16.msra.mxu1 %v4960_v40  ;;  %v5013_v40 = vld [vmem:[%s6162_s4 + $0x370] sm:$0xff]  }
  0x52   : > { %4601 = vmatprep.subr.bf16.mxu1 %v4962_v42  ;;  %v5014_v41 = vld [vmem:[%s6162_s4 + $0x3f0] sm:$0xff]  }
  0x53   : > { %v5015_v42 = vld [vmem:[%s6162_s4 + $0x330] sm:$0xff]  }
  0x54   : > { %4580 = vmatpush3.bf16.msra.mxu0 %v4963_v43  ;;  %v5016_v43 = vld [vmem:[%s6162_s4 + $0x3b0] sm:$0xff]  }
  0x55   : > { %4581 = vmatprep.subr.bf16.mxu0 %v4965_v45  ;;  %4602 = vmatpush3.bf16.msra.mxu1 %v4964_v44  ;;  %v5017_v44 = vld [vmem:[%s6162_s4 + $0x378] sm:$0xff]  }
  0x56   : > { %4603 = vmatprep.subr.bf16.mxu1 %v4966_v46  ;;  %v5018_v45 = vld [vmem:[%s6162_s4 + $0x3f8] sm:$0xff]  }
  0x57   : > { %v5019_v46 = vld [vmem:[%s6162_s4 + $0x338] sm:$0xff]  }
  0x58   : > { %4582 = vmatpush3.bf16.msra.mxu0 %v4967_v47  ;;  %v5020_v47 = vld [vmem:[%s6162_s4 + $0x3b8] sm:$0xff]  }
  0x59   : > { %4583 = vmatprep.subr.bf16.mxu0 %v4969_v49  ;;  %4604 = vmatpush3.bf16.msra.mxu1 %v4968_v48  ;;  %v1587_v48 = vld [vmem:[%s5596_s17] sm:$0xee]  ;;  %v1769_v49 = vld [vmem:[%s5596_s17 + $0x8] sm:$0xff] }
  0x5a   : > { %4605 = vmatprep.subr.bf16.mxu1 %v4970_v50  ;;  %v4017_v50 = vcombine.high %v1587_v48, %v5610_v3 }
  0x5c   : > { %4584 = vmatpush3.bf16.msra.mxu0 %v4971_v51  ;;  %v4066_v51 = vcombine.low %v1587_v48, %v1769_v49 }
  0x5d   : > { %4585 = vmatprep.subr.bf16.mxu0 %v4973_v53  ;;  %4606 = vmatpush3.bf16.msra.mxu1 %v4972_v52  ;;  %v4067_v52 = vcombine.high %v1587_v48, %v1769_v49  ;;  %v4016_v53 = vcombine.low %v1587_v48, %v5610_v3 }
  0x5e   : > { %4607 = vmatprep.subr.bf16.mxu1 %v4974_v54  ;;  %v5025_v54 = vld [vmem:[%s6162_s4 + $0x440] sm:$0xff]  }
  0x60   : > { %4586 = vmatpush3.bf16.msra.mxu0 %v4975_v55  ;;  %v5026_v55 = vld [vmem:[%s6162_s4 + $0x4c0] sm:$0xff]  }
  0x61   : > { %4587 = vmatprep.subr.bf16.mxu0 %v4977_v57  ;;  %4608 = vmatpush3.bf16.msra.mxu1 %v4976_v56  ;;  %v1627_v56 = vrot.slane %v4017_v50, 1  ;;  %v1817_v57 = vshrl.u32 %v4067_v52, 16  ;;  %v5064_v50 = vld [vmem:[%s6162_s4 + $0x580] sm:$0xff]  }
  0x62   : > { %4609 = vmatprep.subr.bf16.mxu1 %v4978_v58  ;;  %v1820_v58 = vshll.u32 %v4067_v52, 16 }
  0x64   : > { %4588 = vmatpush3.bf16.msra.mxu0 %v4979_v59  ;;  %v1626_v59 = vrot.slane %v4016_v53, 1 }
  0x65   : > { %4589 = vmatprep.subr.bf16.mxu0 %v4981_v61  ;;  %4610 = vmatpush3.bf16.msra.mxu1 %v4980_v60  ;;  %v1809_v60 = vshrl.u32 %v4066_v51, 16  ;;  %v1812_v61 = vshll.u32 %v4066_v51, 16  ;;  %v5065_v51 = vld [vmem:[%s6162_s4 + $0x548] sm:$0xff]  }
  0x66   : > { %4611 = vmatprep.subr.bf16.mxu1 %v4982_v62  ;;  %v5027_v62 = vld [vmem:[%s6162_s4 + $0x400] sm:$0xff]  }
  0x67   : > { %v1811_v2 = vrot.slane %v1809_v60, 1  ;;  %v1814_v3 = vrot.slane %v1812_v61, 2  ;;  %v5073_v60 = vld [vmem:[%s6162_s4 + $0x558] sm:$0xff]   ;;  %v5072_v61 = vld [vmem:[%s6162_s4 + $0x590] sm:$0xff]  }
  0x68   : > { %4590 = vmatpush3.bf16.msra.mxu0 %v4983_v63  ;;  %v1819_v63 = vrot.slane %v1817_v57, 1  ;;  %v5068_v57 = vld [vmem:[%s6162_s4 + $0x588] sm:$0xff]  }
  0x69   : > { %4619 = vmatprep.subr.bf16.mxu0 %v4989_v7  ;;  %4612 = vmatpush3.bf16.msra.mxu1 %v4984_v0  ;;  %v1822_v0 = vrot.slane %v1820_v58, 2  ;;  %v1815_v6 = vor.u32 %v1814_v3, %v1811_v2  ;;  %v5030_v7 = vld [vmem:[%s6162_s4 + $0x4c8] sm:$0xff]   ;;  %v5071_v58 = vld [vmem:[%s6162_s4 + $0x510] sm:$0xff]   ;;  %v5079_v2 = vld [vmem:[%s6162_s4 + $0x520] sm:$0xff]  }
  0x6a   : > { %4641 = vmatprep.subr.bf16.mxu1 %v4990_v9  ;;  %v5032_v9 = vld [vmem:[%s6162_s4 + $0x488] sm:$0xff]   ;;  %v5078_v3 = vld [vmem:[%s6162_s4 + $0x5e0] sm:$0xff]  }
  0x6b   : > { %1383 = vmatmul.mubr.bf16.vlgmr.msra.gmra.mrb[8].mxu0 %v3916_v8  ;;  %v1823_v4 = vor.u32 %v1822_v0, %v1819_v63  ;;  %v5031_v8 = vld [vmem:[%s6162_s4 + $0x408] sm:$0xff]   ;;  %v5074_v63 = vld [vmem:[%s6162_s4 + $0x5d8] sm:$0xff]   ;;  %v5077_v0 = vld [vmem:[%s6162_s4 + $0x560] sm:$0xff]  }
  0x6c   : > { %4620 = vmatpush3.bf16.msra.mxu0 %v4991_v14  ;;  %1577 = vmatmul.mubr.bf16.vlgmr.msra.gmra.mrb[8].mxu1 %v1438_v20  ;;  %v5037_v14 = vld [vmem:[%s6162_s4 + $0x458] sm:$0xff]   ;;  %v5043_v20 = vld [vmem:[%s6162_s4 + $0x420] sm:$0xff]  }
  0x6d   : > { %4621 = vmatprep.subr.bf16.mxu0 %v4993_v18  ;;  %4642 = vmatpush3.bf16.msra.mxu1 %v4992_v17  ;;  %v5040_v17 = vld [vmem:[%s6162_s4 + $0x498] sm:$0xff]   ;;  %v5041_v18 = vld [vmem:[%s6162_s4 + $0x460] sm:$0xff]  }
  0x6e   : > { %4643 = vmatprep.subr.bf16.mxu1 %v4994_v21  ;;  %1758 = vmatprep.mubr.bf16.mxu0 %v1627_v56  ;;  %v5044_v21 = vld [vmem:[%s6162_s4 + $0x4a0] sm:$0xff]   ;;  %v5069_v56 = vld [vmem:[%s6162_s4 + $0x550] sm:$0xff]  }
  0x6f   : > { %1954 = vmatprep.mubr.bf16.mxu1 %v1823_v4  ;;  %v5081_v4 = vld [vmem:[%s6162_s4 + $0x568] sm:$0xff]  }
  0x70   : > { %4622 = vmatpush3.bf16.msra.mxu0 %v4995_v22  ;;  %v5045_v22 = vld [vmem:[%s6162_s4 + $0x468] sm:$0xff]  }
  0x71   : > { %4623 = vmatprep.subr.bf16.mxu0 %v4997_v24  ;;  %4644 = vmatpush3.bf16.msra.mxu1 %v4996_v23  ;;  %v5046_v23 = vld [vmem:[%s6162_s4 + $0x4e8] sm:$0xff]  }
  0x72   : > { %4645 = vmatprep.subr.bf16.mxu1 %v4998_v25  ;;  %v5047_v24 = vld [vmem:[%s6162_s4 + $0x428] sm:$0xff]  }
  0x73   : > { %v5048_v25 = vld [vmem:[%s6162_s4 + $0x4a8] sm:$0xff]  }
  0x74   : > { %4624 = vmatpush3.bf16.msra.mxu0 %v4999_v26  ;;  %v5049_v26 = vld [vmem:[%s6162_s4 + $0x470] sm:$0xff]  }
  0x75   : > { %4625 = vmatprep.subr.bf16.mxu0 %v5001_v28  ;;  %4646 = vmatpush3.bf16.msra.mxu1 %v5000_v27  ;;  %v5050_v27 = vld [vmem:[%s6162_s4 + $0x4f0] sm:$0xff]  }
  0x76   : > { %4647 = vmatprep.subr.bf16.mxu1 %v5002_v29  ;;  %v5051_v28 = vld [vmem:[%s6162_s4 + $0x430] sm:$0xff]  }
  0x77   : > { %v5052_v29 = vld [vmem:[%s6162_s4 + $0x4b0] sm:$0xff]  }
  0x78   : > { %4626 = vmatpush3.bf16.msra.mxu0 %v5003_v30  ;;  %v5053_v30 = vld [vmem:[%s6162_s4 + $0x478] sm:$0xff]  }
  0x79   : > { %4627 = vmatprep.subr.bf16.mxu0 %v5005_v32  ;;  %4648 = vmatpush3.bf16.msra.mxu1 %v5004_v31  ;;  %v5054_v31 = vld [vmem:[%s6162_s4 + $0x4f8] sm:$0xff]  }
  0x7a   : > { %4649 = vmatprep.subr.bf16.mxu1 %v5006_v33  ;;  %v5055_v32 = vld [vmem:[%s6162_s4 + $0x438] sm:$0xff]  }
  0x7b   : > { %v5056_v33 = vld [vmem:[%s6162_s4 + $0x4b8] sm:$0xff]  }
  0x7c   : > { %4628 = vmatpush3.bf16.msra.mxu0 %v5007_v34  ;;  %v1965_v34 = vld [vmem:[%s5806_s13] sm:$0xff] }
  0x7d   : > { %4629 = vmatprep.subr.bf16.mxu0 %v5009_v36  ;;  %4650 = vmatpush3.bf16.msra.mxu1 %v5008_v35  ;;  %v1966_v35 = vld [vmem:[%s5806_s13 + $0x8] sm:$0x33] }
  0x7e   : > { %4651 = vmatprep.subr.bf16.mxu1 %v5010_v37  ;;  %v4116_v36 = vcombine.low %v1965_v34, %v1966_v35  ;;  %v4117_v37 = vcombine.high %v1965_v34, %v1966_v35 }
  0x80   : > { %4630 = vmatpush3.bf16.msra.mxu0 %v5011_v38  ;;  %v5820_v38 = vld [vmem:[%s5806_s13 + $0x8] sm:$0x77] }
  0x81   : > { %4631 = vmatprep.subr.bf16.mxu0 %v5013_v40  ;;  %4652 = vmatpush3.bf16.msra.mxu1 %v5012_v39  ;;  %v4167_v39 = vcombine.high %v1965_v34, %v5820_v38  ;;  %v4166_v40 = vcombine.low %v1965_v34, %v5820_v38 }
  0x82   : > { %4653 = vmatprep.subr.bf16.mxu1 %v5014_v41  ;;  %v5061_v41 = vld [vmem:[%s6162_s4 + $0x540] sm:$0xff]  }
  0x84   : > { %4632 = vmatpush3.bf16.msra.mxu0 %v5015_v42  ;;  %v5062_v42 = vld [vmem:[%s6162_s4 + $0x5c0] sm:$0xff]  }
  0x85   : > { %4633 = vmatprep.subr.bf16.mxu0 %v5017_v44  ;;  %4654 = vmatpush3.bf16.msra.mxu1 %v5016_v43  ;;  %v2196_v43 = vshrl.u32 %v4167_v39, 16  ;;  %v2198_v44 = vshll.u32 %v4167_v39, 16 }
  0x86   : > { %4655 = vmatprep.subr.bf16.mxu1 %v5018_v45  ;;  %v2189_v45 = vshrl.u32 %v4166_v40, 16 }
  0x87   : > { %v2200_v48 = vrot.slane %v2198_v44, 1  ;;  %v5106_v44 = vld [vmem:[%s6162_s4 + $0x6d0] sm:$0xff]  }
  0x88   : > { %4634 = vmatpush3.bf16.msra.mxu0 %v5019_v46  ;;  %v2191_v46 = vshll.u32 %v4166_v40, 16  ;;  %v5102_v40 = vld [vmem:[%s6162_s4 + $0x6c8] sm:$0xff]  }
  0x89   : > { %4663 = vmatprep.subr.bf16.mxu0 %v5025_v54  ;;  %4656 = vmatpush3.bf16.msra.mxu1 %v5020_v47  ;;  %v5063_v47 = vld [vmem:[%s6162_s4 + $0x500] sm:$0xff]   ;;  %v2201_v52 = vor.u32 %v2200_v48, %v2196_v43  ;;  %v5067_v54 = vld [vmem:[%s6162_s4 + $0x508] sm:$0xff]   ;;  %v5105_v43 = vld [vmem:[%s6162_s4 + $0x650] sm:$0xff]  }
  0x8a   : > { %4685 = vmatprep.subr.bf16.mxu1 %v5026_v55  ;;  %v2193_v49 = vrot.slane %v2191_v46, 1  ;;  %v5066_v55 = vld [vmem:[%s6162_s4 + $0x5c8] sm:$0xff]   ;;  %v5108_v46 = vld [vmem:[%s6162_s4 + $0x690] sm:$0xff]   ;;  %v5110_v48 = vld [vmem:[%s6162_s4 + $0x6d8] sm:$0xff]  }
  0x8b   : > { %1759 = vmatmul.mubr.bf16.vlgmr.msra.gmra.mrb[12].mxu0 %v1626_v59  ;;  %v5070_v59 = vld [vmem:[%s6162_s4 + $0x5d0] sm:$0xff]  }
  0x8c   : > { %4664 = vmatpush3.bf16.msra.mxu0 %v5027_v62  ;;  %1955 = vmatmul.mubr.bf16.vlgmr.msra.gmra.mrb[12].mxu1 %v1815_v6  ;;  %v2194_v53 = vor.u32 %v2193_v49, %v2189_v45  ;;  %v5075_v62 = vld [vmem:[%s6162_s4 + $0x518] sm:$0xff]   ;;  %v5083_v6 = vld [vmem:[%s6162_s4 + $0x528] sm:$0xff]   ;;  %v5107_v45 = vld [vmem:[%s6162_s4 + $0x610] sm:$0xff]  }
  0x8d   : > { %4665 = vmatprep.subr.bf16.mxu0 %v5029_v5  ;;  %4686 = vmatpush3.bf16.msra.mxu1 %v5028_v1  ;;  %v5076_v1 = vld [vmem:[%s6162_s4 + $0x598] sm:$0xff]   ;;  %v5080_v5 = vld [vmem:[%s6162_s4 + $0x5a0] sm:$0xff]  }
  0x8e   : > { %4687 = vmatprep.subr.bf16.mxu1 %v5030_v7  ;;  %2138 = vmatprep.mubr.bf16.mxu0 %v4117_v37  ;;  %v5082_v7 = vld [vmem:[%s6162_s4 + $0x5e8] sm:$0xff]   ;;  %v5111_v49 = vld [vmem:[%s6162_s4 + $0x618] sm:$0xff]  }
  0x8f   : > { %2332 = vmatprep.mubr.bf16.mxu1 %v2201_v52  ;;  %v5101_v37 = vld [vmem:[%s6162_s4 + $0x648] sm:$0xff]   ;;  %v5114_v52 = vld [vmem:[%s6162_s4 + $0x6e0] sm:$0xff]  }
  0x90   : > { %4666 = vmatpush3.bf16.msra.mxu0 %v5031_v8  ;;  %v5085_v8 = vld [vmem:[%s6162_s4 + $0x570] sm:$0xff]  }
  0x91   : > { %4667 = vmatprep.subr.bf16.mxu0 %v5033_v10  ;;  %4688 = vmatpush3.bf16.msra.mxu1 %v5032_v9  ;;  %v5084_v9 = vld [vmem:[%s6162_s4 + $0x5a8] sm:$0xff]   ;;  %v5087_v10 = vld [vmem:[%s6162_s4 + $0x530] sm:$0xff]  }
  0x92   : > { %4689 = vmatprep.subr.bf16.mxu1 %v5034_v11  ;;  %v5086_v11 = vld [vmem:[%s6162_s4 + $0x5f0] sm:$0xff]  }
  0x94   : > { %4668 = vmatpush3.bf16.msra.mxu0 %v5035_v12  ;;  %v5089_v12 = vld [vmem:[%s6162_s4 + $0x578] sm:$0xff]  }
  0x95   : > { %4669 = vmatprep.subr.bf16.mxu0 %v5037_v14  ;;  %4690 = vmatpush3.bf16.msra.mxu1 %v5036_v13  ;;  %v5088_v13 = vld [vmem:[%s6162_s4 + $0x5b0] sm:$0xff]   ;;  %v5091_v14 = vld [vmem:[%s6162_s4 + $0x538] sm:$0xff]  }
  0x96   : > { %4691 = vmatprep.subr.bf16.mxu1 %v5038_v15  ;;  %v5090_v15 = vld [vmem:[%s6162_s4 + $0x5f8] sm:$0xff]  }
  0x98   : > { %4670 = vmatpush3.bf16.msra.mxu0 %v5039_v16  ;;  %v2343_v16 = vld [vmem:[%s5806_s13] sm:$0xee] }
  0x99   : > { %4671 = vmatprep.subr.bf16.mxu0 %v5041_v18  ;;  %4692 = vmatpush3.bf16.msra.mxu1 %v5040_v17  ;;  %v5092_v17 = vld [vmem:[%s6162_s4 + $0x5b8] sm:$0xff]   ;;  %v4217_v18 = vcombine.high %v2343_v16, %v5820_v38 }
  0x9a   : > { %4693 = vmatprep.subr.bf16.mxu1 %v5042_v19  ;;  %v2525_v19 = vld [vmem:[%s5806_s13 + $0x8] sm:$0xff] }
  0x9c   : > { %4672 = vmatpush3.bf16.msra.mxu0 %v5043_v20  ;;  %v4216_v20 = vcombine.low %v2343_v16, %v5820_v38 }
  0x9d   : > { %4673 = vmatprep.subr.bf16.mxu0 %v5045_v22  ;;  %4694 = vmatpush3.bf16.msra.mxu1 %v5044_v21  ;;  %v4266_v21 = vcombine.low %v2343_v16, %v2525_v19  ;;  %v4267_v22 = vcombine.high %v2343_v16, %v2525_v19  ;;  %v5135_v16 = vld [vmem:[%s6162_s4 + $0x700] sm:$0xff]  }
  0x9e   : > { %4695 = vmatprep.subr.bf16.mxu1 %v5046_v23  ;;  %v5097_v23 = vld [vmem:[%s6162_s4 + $0x640] sm:$0xff]  }
  0x9f   : > { %v5136_v19 = vld [vmem:[%s6162_s4 + $0x780] sm:$0xff]  }
  0xa0   : > { %4674 = vmatpush3.bf16.msra.mxu0 %v5047_v24  ;;  %v2383_v24 = vrot.slane %v4217_v18, 1 }
  0xa1   : > { %4675 = vmatprep.subr.bf16.mxu0 %v5049_v26  ;;  %4696 = vmatpush3.bf16.msra.mxu1 %v5048_v25  ;;  %v2382_v25 = vrot.slane %v4216_v20, 1  ;;  %v5098_v26 = vld [vmem:[%s6162_s4 + $0x6c0] sm:$0xff]   ;;  %v5137_v20 = vld [vmem:[%s6162_s4 + $0x748] sm:$0xff]  }
  0xa2   : > { %4697 = vmatprep.subr.bf16.mxu1 %v5050_v27  ;;  %v5099_v27 = vld [vmem:[%s6162_s4 + $0x600] sm:$0xff]  }
  0xa4   : > { %4676 = vmatpush3.bf16.msra.mxu0 %v5051_v28  ;;  %v2573_v28 = vshrl.u32 %v4267_v22, 16 }
  0xa5   : > { %4677 = vmatprep.subr.bf16.mxu0 %v5053_v30  ;;  %4698 = vmatpush3.bf16.msra.mxu1 %v5052_v29  ;;  %v2576_v29 = vshll.u32 %v4267_v22, 16  ;;  %v2565_v30 = vshrl.u32 %v4266_v21, 16 }
  0xa6   : > { %4699 = vmatprep.subr.bf16.mxu1 %v5054_v31  ;;  %v2568_v31 = vshll.u32 %v4266_v21, 16 }
  0xa7   : > { %v2567_v34 = vrot.slane %v2565_v30, 1  ;;  %v5144_v30 = vld [vmem:[%s6162_s4 + $0x790] sm:$0xff]  }
  0xa8   : > { %4678 = vmatpush3.bf16.msra.mxu0 %v5055_v32  ;;  %v2575_v32 = vrot.slane %v2573_v28, 1  ;;  %v2570_v35 = vrot.slane %v2568_v31, 2  ;;  %v5143_v28 = vld [vmem:[%s6162_s4 + $0x710] sm:$0xff]  }
  0xa9   : > { %4707 = vmatprep.subr.bf16.mxu0 %v5061_v41  ;;  %4700 = vmatpush3.bf16.msra.mxu1 %v5056_v33  ;;  %v2578_v33 = vrot.slane %v2576_v29, 2  ;;  %v5103_v41 = vld [vmem:[%s6162_s4 + $0x608] sm:$0xff]  }
  0xaa   : > { %4729 = vmatprep.subr.bf16.mxu1 %v5062_v42  ;;  %v2571_v39 = vor.u32 %v2570_v35, %v2567_v34  ;;  %v5104_v42 = vld [vmem:[%s6162_s4 + $0x688] sm:$0xff]   ;;  %v5146_v35 = vld [vmem:[%s6162_s4 + $0x7d8] sm:$0xff]  }
  0xab   : > { %2139 = vmatmul.mubr.bf16.vlgmr.msra.gmra.mrb[16].mxu0 %v4116_v36  ;;  %v5100_v36 = vld [vmem:[%s6162_s4 + $0x680] sm:$0xff]   ;;  %v2579_v38 = vor.u32 %v2578_v33, %v2575_v32  ;;  %v5145_v32 = vld [vmem:[%s6162_s4 + $0x758] sm:$0xff]  }
  0xac   : > { %4708 = vmatpush3.bf16.msra.mxu0 %v5063_v47  ;;  %2333 = vmatmul.mubr.bf16.vlgmr.msra.gmra.mrb[16].mxu1 %v2194_v53  ;;  %v5109_v47 = vld [vmem:[%s6162_s4 + $0x658] sm:$0xff]   ;;  %v5115_v53 = vld [vmem:[%s6162_s4 + $0x620] sm:$0xff]  }
  0xad   : > { %4709 = vmatprep.subr.bf16.mxu0 %v5065_v51  ;;  %4730 = vmatpush3.bf16.msra.mxu1 %v5064_v50  ;;  %v5112_v50 = vld [vmem:[%s6162_s4 + $0x698] sm:$0xff]   ;;  %v5113_v51 = vld [vmem:[%s6162_s4 + $0x660] sm:$0xff]  }
  0xae   : > { %4731 = vmatprep.subr.bf16.mxu1 %v5066_v55  ;;  %2514 = vmatprep.mubr.bf16.mxu0 %v2383_v24  ;;  %v5117_v55 = vld [vmem:[%s6162_s4 + $0x668] sm:$0xff]  }
  0xaf   : > { %2710 = vmatprep.mubr.bf16.mxu1 %v2579_v38  ;;  %v5139_v24 = vld [vmem:[%s6162_s4 + $0x708] sm:$0xff]  }
  0xb0   : > { %4710 = vmatpush3.bf16.msra.mxu0 %v5067_v54  ;;  %v5116_v54 = vld [vmem:[%s6162_s4 + $0x6a0] sm:$0xff]  }
  0xb1   : > { %4711 = vmatprep.subr.bf16.mxu0 %v5069_v56  ;;  %4732 = vmatpush3.bf16.msra.mxu1 %v5068_v57  ;;  %v5118_v56 = vld [vmem:[%s6162_s4 + $0x6e8] sm:$0xff]  }
  0xb2   : > { %4733 = vmatprep.subr.bf16.mxu1 %v5070_v59  ;;  %v5119_v57 = vld [vmem:[%s6162_s4 + $0x628] sm:$0xff]   ;;  %v5121_v59 = vld [vmem:[%s6162_s4 + $0x670] sm:$0xff]  }
  0xb4   : > { %4712 = vmatpush3.bf16.msra.mxu0 %v5071_v58  ;;  %v5120_v58 = vld [vmem:[%s6162_s4 + $0x6a8] sm:$0xff]  }
  0xb5   : > { %4713 = vmatprep.subr.bf16.mxu0 %v5073_v60  ;;  %4734 = vmatpush3.bf16.msra.mxu1 %v5072_v61  ;;  %v5122_v60 = vld [vmem:[%s6162_s4 + $0x6f0] sm:$0xff]  }
  0xb6   : > { %4735 = vmatprep.subr.bf16.mxu1 %v5074_v63  ;;  %v5123_v61 = vld [vmem:[%s6162_s4 + $0x630] sm:$0xff]   ;;  %v5125_v63 = vld [vmem:[%s6162_s4 + $0x678] sm:$0xff]  }
  0xb8   : > { %4714 = vmatpush3.bf16.msra.mxu0 %v5075_v62  ;;  %v5124_v62 = vld [vmem:[%s6162_s4 + $0x6b0] sm:$0xff]  }
  0xb9   : > { %4715 = vmatprep.subr.bf16.mxu0 %v5077_v0  ;;  %4736 = vmatpush3.bf16.msra.mxu1 %v5076_v1  ;;  %v5126_v0 = vld [vmem:[%s6162_s4 + $0x6f8] sm:$0xff]  }
  0xba   : > { %4737 = vmatprep.subr.bf16.mxu1 %v5078_v3  ;;  %v5127_v1 = vld [vmem:[%s6162_s4 + $0x638] sm:$0xff]   ;;  %v2721_v3 = vld [vmem:[%s6016_s29] sm:$0xff] }
  0xbc   : > { %4716 = vmatpush3.bf16.msra.mxu0 %v5079_v2  ;;  %v5128_v2 = vld [vmem:[%s6162_s4 + $0x6b8] sm:$0xff]  }
  0xbd   : > { %4717 = vmatprep.subr.bf16.mxu0 %v5081_v4  ;;  %4738 = vmatpush3.bf16.msra.mxu1 %v5080_v5  ;;  %v2722_v4 = vld [vmem:[%s6016_s29 + $0x8] sm:$0x33] }
  0xbe   : > { %4739 = vmatprep.subr.bf16.mxu1 %v5082_v7  ;;  %v6030_v5 = vld [vmem:[%s6016_s29 + $0x8] sm:$0x77]  ;;  %v4317_v7 = vcombine.high %v2721_v3, %v2722_v4 }
  0xc0   : > { %4718 = vmatpush3.bf16.msra.mxu0 %v5083_v6  ;;  %v4316_v6 = vcombine.low %v2721_v3, %v2722_v4 }
  0xc1   : > { %4719 = vmatprep.subr.bf16.mxu0 %v5085_v8  ;;  %4740 = vmatpush3.bf16.msra.mxu1 %v5084_v9  ;;  %v4367_v8 = vcombine.high %v2721_v3, %v6030_v5  ;;  %v4366_v9 = vcombine.low %v2721_v3, %v6030_v5 }
  0xc2   : > { %4741 = vmatprep.subr.bf16.mxu1 %v5086_v11  ;;  %v5134_v11 = vld [vmem:[%s6162_s4 + $0x7c0] sm:$0xff]  }
  0xc4   : > { %4720 = vmatpush3.bf16.msra.mxu0 %v5087_v10  ;;  %v5133_v10 = vld [vmem:[%s6162_s4 + $0x740] sm:$0xff]  }
  0xc5   : > { %4721 = vmatprep.subr.bf16.mxu0 %v5089_v12  ;;  %4742 = vmatpush3.bf16.msra.mxu1 %v5088_v13  ;;  %v2952_v12 = vshrl.u32 %v4367_v8, 16  ;;  %v2954_v13 = vshll.u32 %v4367_v8, 16 }
  0xc6   : > { %4743 = vmatprep.subr.bf16.mxu1 %v5090_v15  ;;  %v2947_v15 = vshll.u32 %v4366_v9, 16 }
  0xc8   : > { %4722 = vmatpush3.bf16.msra.mxu0 %v5091_v14  ;;  %v2945_v14 = vshrl.u32 %v4366_v9, 16  ;;  %v2949_v18 = vrot.slane %v2947_v15, 1 }
  0xc9   : > { %4751 = vmatprep.subr.bf16.mxu0 %v5097_v23  ;;  %4744 = vmatpush3.bf16.msra.mxu1 %v5092_v17  ;;  %v2956_v17 = vrot.slane %v2954_v13, 1  ;;  %v5138_v23 = vld [vmem:[%s6162_s4 + $0x7c8] sm:$0xff]  }
  0xca   : > { %4773 = vmatprep.subr.bf16.mxu1 %v5098_v26  ;;  %v2950_v22 = vor.u32 %v2949_v18, %v2945_v14  ;;  %v5141_v26 = vld [vmem:[%s6162_s4 + $0x750] sm:$0xff]  }
  0xcb   : > { %2515 = vmatmul.mubr.bf16.vlgmr.msra.gmra.mrb[20].mxu0 %v2382_v25  ;;  %v2957_v21 = vor.u32 %v2956_v17, %v2952_v12  ;;  %v5140_v25 = vld [vmem:[%s6162_s4 + $0x788] sm:$0xff]  }
  0xcc   : > { %4752 = vmatpush3.bf16.msra.mxu0 %v5099_v27  ;;  %2711 = vmatmul.mubr.bf16.vlgmr.msra.gmra.mrb[20].mxu1 %v2571_v39  ;;  %v5142_v27 = vld [vmem:[%s6162_s4 + $0x7d0] sm:$0xff]   ;;  %v5148_v39 = vld [vmem:[%s6162_s4 + $0x798] sm:$0xff]  }
  0xcd   : > { %4753 = vmatprep.subr.bf16.mxu0 %v5101_v37  ;;  %4774 = vmatpush3.bf16.msra.mxu1 %v5100_v36  ;;  %v5147_v37 = vld [vmem:[%s6162_s4 + $0x718] sm:$0xff]  }
  0xce   : > { %4775 = vmatprep.subr.bf16.mxu1 %v5102_v40  ;;  %2894 = vmatprep.mubr.bf16.mxu0 %v4317_v7  ;;  %v5149_v40 = vld [vmem:[%s6162_s4 + $0x760] sm:$0xff]  }
  0xcf   : > { %3088 = vmatprep.mubr.bf16.mxu1 %v2957_v21 }
  0xd0   : > { %4754 = vmatpush3.bf16.msra.mxu0 %v5103_v41 }
  0xd1   : > { %4755 = vmatprep.subr.bf16.mxu0 %v5105_v43  ;;  %4776 = vmatpush3.bf16.msra.mxu1 %v5104_v42  ;;  %v5150_v42 = vld [vmem:[%s6162_s4 + $0x7e0] sm:$0xff]  }
  0xd2   : > { %4777 = vmatprep.subr.bf16.mxu1 %v5106_v44  ;;  %v5151_v44 = vld [vmem:[%s6162_s4 + $0x720] sm:$0xff]  }
  0xd4   : > { %4756 = vmatpush3.bf16.msra.mxu0 %v5107_v45 }
  0xd5   : > { %4757 = vmatprep.subr.bf16.mxu0 %v5109_v47  ;;  %4778 = vmatpush3.bf16.msra.mxu1 %v5108_v46  ;;  %v5152_v47 = vld [vmem:[%s6162_s4 + $0x7a0] sm:$0xff]  }
  0xd6   : > { %4779 = vmatprep.subr.bf16.mxu1 %v5110_v48 }
  0xd8   : > { %4758 = vmatpush3.bf16.msra.mxu0 %v5111_v49 }
  0xd9   : > { %4759 = vmatprep.subr.bf16.mxu0 %v5113_v51  ;;  %4780 = vmatpush3.bf16.msra.mxu1 %v5112_v50  ;;  %v5153_v50 = vld [vmem:[%s6162_s4 + $0x768] sm:$0xff]  }
  0xda   : > { %4781 = vmatprep.subr.bf16.mxu1 %v5114_v52  ;;  %v5154_v52 = vld [vmem:[%s6162_s4 + $0x7e8] sm:$0xff]  }
  0xdc   : > { %4760 = vmatpush3.bf16.msra.mxu0 %v5115_v53  ;;  %v5155_v53 = vld [vmem:[%s6162_s4 + $0x728] sm:$0xff]  }
  0xdd   : > { %4761 = vmatprep.subr.bf16.mxu0 %v5117_v55  ;;  %4782 = vmatpush3.bf16.msra.mxu1 %v5116_v54  ;;  %v5156_v55 = vld [vmem:[%s6162_s4 + $0x7a8] sm:$0xff]  }
  0xde   : > { %4783 = vmatprep.subr.bf16.mxu1 %v5118_v56  ;;  %v5157_v56 = vld [vmem:[%s6162_s4 + $0x770] sm:$0xff]  }
  0xe0   : > { %4762 = vmatpush3.bf16.msra.mxu0 %v5119_v57  ;;  %v5158_v57 = vld [vmem:[%s6162_s4 + $0x7f0] sm:$0xff]  }
  0xe1   : > { %4763 = vmatprep.subr.bf16.mxu0 %v5121_v59  ;;  %4784 = vmatpush3.bf16.msra.mxu1 %v5120_v58  ;;  %v5159_v58 = vld [vmem:[%s6162_s4 + $0x730] sm:$0xff]  }
  0xe2   : > { %4785 = vmatprep.subr.bf16.mxu1 %v5122_v60  ;;  %v5160_v59 = vld [vmem:[%s6162_s4 + $0x7b0] sm:$0xff]   ;;  %v5161_v60 = vld [vmem:[%s6162_s4 + $0x778] sm:$0xff]  }
  0xe4   : > { %4764 = vmatpush3.bf16.msra.mxu0 %v5123_v61  ;;  %v5162_v61 = vld [vmem:[%s6162_s4 + $0x7f8] sm:$0xff]  }
  0xe5   : > { %4765 = vmatprep.subr.bf16.mxu0 %v5125_v63  ;;  %4786 = vmatpush3.bf16.msra.mxu1 %v5124_v62  ;;  %v5163_v62 = vld [vmem:[%s6162_s4 + $0x738] sm:$0xff]   ;;  %v3099_v63 = vld [vmem:[%s6016_s29] sm:$0xee] }
  0xe6   : > { %4787 = vmatprep.subr.bf16.mxu1 %v5126_v0  ;;  %v3281_v0 = vld [vmem:[%s6016_s29 + $0x8] sm:$0xff]  ;;  %v4416_v4 = vcombine.low %v3099_v63, %v6030_v5 }
  0xe7   : > { %v4467_v3 = vcombine.high %v3099_v63, %v3281_v0 }
  0xe8   : > { %4766 = vmatpush3.bf16.msra.mxu0 %v5127_v1  ;;  %v4417_v1 = vcombine.high %v3099_v63, %v6030_v5 }
  0xe9   : > { %4795 = vmatprep.subr.bf16.mxu0 %v5133_v10  ;;  %4788 = vmatpush3.bf16.msra.mxu1 %v5128_v2  ;;  %v4466_v2 = vcombine.low %v3099_v63, %v3281_v0  ;;  %v3329_v8 = vshrl.u32 %v4467_v3, 16  ;;  %v3332_v9 = vshll.u32 %v4467_v3, 16  ;;  %v3138_v10 = vrot.slane %v4416_v4, 1 }
  0xea   : > { %4817 = vmatprep.subr.bf16.mxu1 %v5134_v11  ;;  %v3139_v7 = vrot.slane %v4417_v1, 1 }
  0xeb   : > { %2895 = vmatmul.mubr.bf16.vlgmr.msra.gmra.mrb[24].mxu0 %v4316_v6  ;;  %v5164_v6 = vld [vmem:[%s6162_s4 + $0x7b8] sm:$0xff]   ;;  %v3321_v11 = vshrl.u32 %v4466_v2, 16  ;;  %v3324_v12 = vshll.u32 %v4466_v2, 16  ;;  %v3331_v13 = vrot.slane %v3329_v8, 1  ;;  %v3334_v14 = vrot.slane %v3332_v9, 2 }
  0xec   : > { %4796 = vmatpush3.bf16.msra.mxu0 %v5135_v16  ;;  %3089 = vmatmul.mubr.bf16.vlgmr.msra.gmra.mrb[24].mxu1 %v2950_v22 }
  0xed   : > { %4797 = vmatprep.subr.bf16.mxu0 %v5137_v20  ;;  %4818 = vmatpush3.bf16.msra.mxu1 %v5136_v19  ;;  %v3323_v15 = vrot.slane %v3321_v11, 1  ;;  %v3326_v16 = vrot.slane %v3324_v12, 2  ;;  %v3335_v5 = vor.u32 %v3334_v14, %v3331_v13 }
  0xee   : > { %4819 = vmatprep.subr.bf16.mxu1 %v5138_v23  ;;  %3270 = vmatprep.mubr.bf16.mxu0 %v3139_v7 }
  0xef   : > { %v3327_v17 = vor.u32 %v3326_v16, %v3323_v15  ;;  %3466 = vmatprep.mubr.bf16.mxu1 %v3335_v5 }
  0xf0   : > { %4798 = vmatpush3.bf16.msra.mxu0 %v5139_v24 }
  0xf1   : > { %4799 = vmatprep.subr.bf16.mxu0 %v5141_v26  ;;  %4820 = vmatpush3.bf16.msra.mxu1 %v5140_v25 }
  0xf2   : > { %4821 = vmatprep.subr.bf16.mxu1 %v5142_v27 }
  0xf4   : > { %4800 = vmatpush3.bf16.msra.mxu0 %v5143_v28 }
  0xf5   : > { %4801 = vmatprep.subr.bf16.mxu0 %v5145_v32  ;;  %4822 = vmatpush3.bf16.msra.mxu1 %v5144_v30 }
  0xf6   : > { %4823 = vmatprep.subr.bf16.mxu1 %v5146_v35 }
  0xf8   : > { %4802 = vmatpush3.bf16.msra.mxu0 %v5147_v37 }
  0xf9   : > { %4803 = vmatprep.subr.bf16.mxu0 %v5149_v40  ;;  %4824 = vmatpush3.bf16.msra.mxu1 %v5148_v39 }
  0xfa   : > { %4825 = vmatprep.subr.bf16.mxu1 %v5150_v42 }
  0xfc   : > { %4804 = vmatpush3.bf16.msra.mxu0 %v5151_v44 }
  0xfd   : > { %4805 = vmatprep.subr.bf16.mxu0 %v5153_v50  ;;  %4826 = vmatpush3.bf16.msra.mxu1 %v5152_v47 }
  0xfe   : > { %v4503_v41 = vpop.f32.mrb[0].mxu0  ;;  %4827 = vmatprep.subr.bf16.mxu1 %v5154_v52 }
  0xff   : > { %v4525_v29 = vpop.f32.mrb[0].mxu1  ;;  %v4504_v43 = vpop.f32.mrb[1].mxu0 }
 0x100   : > { %v4526_v31 = vpop.f32.mrb[1].mxu1  ;;  %v4505_v45 = vadd.f32 %v4504_v43, %v4503_v41  ;;  %v4506_v46 = vpop.f32.mrb[2].mxu0  ;;  %4806 = vmatpush3.bf16.msra.mxu0 %v5155_v53 }
 0x101   : > { %v4527_v33 = vadd.f32 %v4526_v31, %v4525_v29  ;;  %v4528_v34 = vpop.f32.mrb[2].mxu1  ;;  %v4507_v48 = vpop.f32.mrb[3].mxu0  ;;  %4807 = vmatprep.subr.bf16.mxu0 %v5157_v56  ;;  %4828 = vmatpush3.bf16.msra.mxu1 %v5156_v55 }
 0x102   : > { %v4529_v36 = vpop.f32.mrb[3].mxu1  ;;  %v4508_v51 = vadd.f32 %v4507_v48, %v4506_v46  ;;  %4829 = vmatprep.subr.bf16.mxu1 %v5158_v57 }
 0x103   : > { %v4530_v38 = vadd.f32 %v4529_v36, %v4528_v34  ;;  %v825_v49 = vadd.f32 %v4527_v33, %v4505_v45 }
 0x104   : > { %4808 = vmatpush3.bf16.msra.mxu0 %v5159_v58 }
 0x105   : > { %v828_v54 = vadd.f32 %v4530_v38, %v4508_v51  ;;  %4809 = vmatprep.subr.bf16.mxu0 %v5161_v60  ;;  %4830 = vmatpush3.bf16.msra.mxu1 %v5160_v59 }
 0x106   : > { %4831 = vmatprep.subr.bf16.mxu1 %v5162_v61 }
 0x108   : > { %4810 = vmatpush3.bf16.msra.mxu0 %v5163_v62 }
 0x109   : > { %4832 = vmatpush3.bf16.msra.mxu1 %v5164_v6 }
 0x10b   : > { %3271 = vmatmul.mubr.bf16.vlgmr.msra.gmra.mrb[28].mxu0 %v3138_v10 }
 0x10c   : > { %3467 = vmatmul.mubr.bf16.vlgmr.msra.gmra.mrb[28].mxu1 %v3327_v17 }
 0x11e   : > { %v4547_v18 = vpop.f32.mrb[4].mxu0 }
 0x11f   : > { %v4548_v19 = vpop.f32.mrb[5].mxu0  ;;  %v4569_v20 = vpop.f32.mrb[4].mxu1 }
 0x120   : > { %v4549_v21 = vadd.f32 %v4548_v19, %v4547_v18  ;;  %v4550_v22 = vpop.f32.mrb[6].mxu0  ;;  %v4570_v23 = vpop.f32.mrb[5].mxu1 }
 0x121   : > { %v4551_v24 = vpop.f32.mrb[7].mxu0  ;;  %v4571_v26 = vadd.f32 %v4570_v23, %v4569_v20  ;;  %v4572_v27 = vpop.f32.mrb[6].mxu1 }
 0x122   : > { %v1011_v25 = vadd.f32 %v4549_v21, %v825_v49  ;;  %v4552_v28 = vadd.f32 %v4551_v24, %v4550_v22  ;;  %v4573_v29 = vpop.f32.mrb[7].mxu1 }
 0x123   : > { %v4574_v32 = vadd.f32 %v4573_v29, %v4572_v27 }
 0x124   : > { %v1207_v30 = vadd.f32 %v4571_v26, %v1011_v25  ;;  %v1012_v31 = vadd.f32 %v4552_v28, %v828_v54 }
 0x126   : > { %v1208_v33 = vadd.f32 %v4574_v32, %v1012_v31 }
 0x13e   : > { %v4591_v34 = vpop.f32.mrb[8].mxu0 }
 0x13f   : > { %v4592_v35 = vpop.f32.mrb[9].mxu0  ;;  %v4613_v39 = vpop.f32.mrb[8].mxu1 }
 0x140   : > { %v4593_v36 = vadd.f32 %v4592_v35, %v4591_v34  ;;  %v4594_v37 = vpop.f32.mrb[10].mxu0  ;;  %v4614_v42 = vpop.f32.mrb[9].mxu1 }
 0x141   : > { %v4595_v38 = vpop.f32.mrb[11].mxu0  ;;  %v4615_v43 = vadd.f32 %v4614_v42, %v4613_v39  ;;  %v4616_v44 = vpop.f32.mrb[10].mxu1 }
 0x142   : > { %v1391_v40 = vadd.f32 %v4593_v36, %v1207_v30  ;;  %v4596_v41 = vadd.f32 %v4595_v38, %v4594_v37  ;;  %v4617_v46 = vpop.f32.mrb[11].mxu1 }
 0x143   : > { %v4618_v48 = vadd.f32 %v4617_v46, %v4616_v44 }
 0x144   : > { %v1392_v45 = vadd.f32 %v4596_v41, %v1208_v33  ;;  %v1585_v47 = vadd.f32 %v4615_v43, %v1391_v40 }
 0x146   : > { %v1586_v49 = vadd.f32 %v4618_v48, %v1392_v45 }
 0x15e   : > { %v4635_v50 = vpop.f32.mrb[12].mxu0 }
 0x15f   : > { %v4636_v51 = vpop.f32.mrb[13].mxu0  ;;  %v4657_v55 = vpop.f32.mrb[12].mxu1 }
 0x160   : > { %v4637_v52 = vadd.f32 %v4636_v51, %v4635_v50  ;;  %v4638_v53 = vpop.f32.mrb[14].mxu0  ;;  %v4658_v58 = vpop.f32.mrb[13].mxu1 }
 0x161   : > { %v4639_v54 = vpop.f32.mrb[15].mxu0  ;;  %v4659_v59 = vadd.f32 %v4658_v58, %v4657_v55  ;;  %v4660_v60 = vpop.f32.mrb[14].mxu1 }
 0x162   : > { %v1767_v56 = vadd.f32 %v4637_v52, %v1585_v47  ;;  %v4640_v57 = vadd.f32 %v4639_v54, %v4638_v53  ;;  %v4661_v62 = vpop.f32.mrb[15].mxu1 }
 0x163   : > { %v4662_v0 = vadd.f32 %v4661_v62, %v4660_v60  ;;  %v4484_v62 = vld [vmem:[%s6163_s5] ss:$0 sm:$0xff] }
 0x164   : > { %v1768_v61 = vadd.f32 %v4640_v57, %v1586_v49  ;;  %v1963_v63 = vadd.f32 %v4659_v59, %v1767_v56 }
 0x166   : > { %v1964_v1 = vadd.f32 %v4662_v0, %v1768_v61 }
 0x17e   : > { %v4679_v2 = vpop.f32.mrb[16].mxu0 }
 0x17f   : > { %v4680_v3 = vpop.f32.mrb[17].mxu0  ;;  %v4701_v11 = vpop.f32.mrb[16].mxu1 }
 0x180   : > { %v4681_v4 = vadd.f32 %v4680_v3, %v4679_v2  ;;  %v4682_v6 = vpop.f32.mrb[18].mxu0  ;;  %v4702_v12 = vpop.f32.mrb[17].mxu1 }
 0x181   : > { %v4683_v7 = vpop.f32.mrb[19].mxu0  ;;  %v4703_v13 = vadd.f32 %v4702_v12, %v4701_v11  ;;  %v4704_v14 = vpop.f32.mrb[18].mxu1 }
 0x182   : > { %v2147_v8 = vadd.f32 %v4681_v4, %v1963_v63  ;;  %v4684_v9 = vadd.f32 %v4683_v7, %v4682_v6  ;;  %v4705_v15 = vpop.f32.mrb[19].mxu1 }
 0x183   : > { %v4706_v5 = vadd.f32 %v4705_v15, %v4704_v14 }
 0x184   : > { %v2148_v10 = vadd.f32 %v4684_v9, %v1964_v1  ;;  %v2341_v16 = vadd.f32 %v4703_v13, %v2147_v8 }
 0x186   : > { %v2342_v17 = vadd.f32 %v4706_v5, %v2148_v10 }
 0x19e   : > { %v4723_v18 = vpop.f32.mrb[20].mxu0 }
 0x19f   : > { %v4724_v19 = vpop.f32.mrb[21].mxu0  ;;  %v4745_v25 = vpop.f32.mrb[20].mxu1 }
 0x1a0   : > { %v4725_v20 = vadd.f32 %v4724_v19, %v4723_v18  ;;  %v4726_v21 = vpop.f32.mrb[22].mxu0  ;;  %v4746_v26 = vpop.f32.mrb[21].mxu1 }
 0x1a1   : > { %v4727_v22 = vpop.f32.mrb[23].mxu0  ;;  %v4747_v28 = vadd.f32 %v4746_v26, %v4745_v25  ;;  %v4748_v29 = vpop.f32.mrb[22].mxu1 }
 0x1a2   : > { %v2523_v23 = vadd.f32 %v4725_v20, %v2341_v16  ;;  %v4728_v24 = vadd.f32 %v4727_v22, %v4726_v21  ;;  %v4749_v30 = vpop.f32.mrb[23].mxu1 }
 0x1a3   : > { %v4750_v32 = vadd.f32 %v4749_v30, %v4748_v29 }
 0x1a4   : > { %v2524_v27 = vadd.f32 %v4728_v24, %v2342_v17  ;;  %v2719_v31 = vadd.f32 %v4747_v28, %v2523_v23 }
 0x1a6   : > { %v2720_v33 = vadd.f32 %v4750_v32, %v2524_v27 }
 0x1be   : > { %v4767_v34 = vpop.f32.mrb[24].mxu0 }
 0x1bf   : > { %v4768_v35 = vpop.f32.mrb[25].mxu0  ;;  %v4789_v41 = vpop.f32.mrb[24].mxu1 }
 0x1c0   : > { %v4769_v36 = vadd.f32 %v4768_v35, %v4767_v34  ;;  %v4770_v37 = vpop.f32.mrb[26].mxu0  ;;  %v4790_v43 = vpop.f32.mrb[25].mxu1 }
 0x1c1   : > { %v4771_v38 = vpop.f32.mrb[27].mxu0  ;;  %v4791_v44 = vadd.f32 %v4790_v43, %v4789_v41  ;;  %v4792_v45 = vpop.f32.mrb[26].mxu1 }
 0x1c2   : > { %v2903_v39 = vadd.f32 %v4769_v36, %v2719_v31  ;;  %v4772_v40 = vadd.f32 %v4771_v38, %v4770_v37  ;;  %v4793_v46 = vpop.f32.mrb[27].mxu1 }
 0x1c3   : > { %v4794_v48 = vadd.f32 %v4793_v46, %v4792_v45 }
 0x1c4   : > { %v2904_v42 = vadd.f32 %v4772_v40, %v2720_v33  ;;  %v3097_v47 = vadd.f32 %v4791_v44, %v2903_v39 }
 0x1c6   : > { %v3098_v49 = vadd.f32 %v4794_v48, %v2904_v42 }
 0x1de   : > { %v4811_v50 = vpop.f32.mrb[28].mxu0 }
 0x1df   : > { %v4812_v51 = vpop.f32.mrb[29].mxu0  ;;  %v4833_v55 = vpop.f32.mrb[28].mxu1 }
 0x1e0   : > { %v4813_v52 = vadd.f32 %v4812_v51, %v4811_v50  ;;  %v4814_v53 = vpop.f32.mrb[30].mxu0  ;;  %v4834_v58 = vpop.f32.mrb[29].mxu1 }
 0x1e1   : > { %v4815_v54 = vpop.f32.mrb[31].mxu0  ;;  %v4835_v59 = vadd.f32 %v4834_v58, %v4833_v55  ;;  %v4836_v60 = vpop.f32.mrb[30].mxu1 }
 0x1e2   : > { %v3279_v56 = vadd.f32 %v4813_v52, %v3097_v47  ;;  %v4816_v57 = vadd.f32 %v4815_v54, %v4814_v53  ;;  %v4837_v63 = vpop.f32.mrb[31].mxu1 }
 0x1e3   : > { %v4838_v1 = vadd.f32 %v4837_v63, %v4836_v60 }
 0x1e4   : > { %v3280_v61 = vadd.f32 %v4816_v57, %v3098_v49  ;;  %v3475_v0 = vadd.f32 %v4835_v59, %v3279_v56 }
 0x1e6   : > { %v3484_v2 = vadd.f32 %v4484_v62, %v3475_v0  ;;  %v3476_v3 = vadd.f32 %v4838_v1, %v3280_v61 }
 0x1e8   : > { %v3486_v4 = vsub.f32 0.0, %v3484_v2  ;;  %v3485_v6 = vadd.f32 %v4484_v62, %v3476_v3 }
 0x1ea   : > { %v3488_v7 = vmul.f32 1.442695, %v3486_v4  ;;  %v3487_v8 = vsub.f32 0.0, %v3485_v6 }
 0x1ec   : > { %5169 = vpow2.f32 %v3488_v7  ;;  %v3490_v9 = vmul.f32 1.442695, %v3487_v8 }
 0x1ee   : > { %5171 = vpow2.f32 %v3490_v9 }
 0x1f6   : > { %v5170_v10 = vpop.eup %5169 }
 0x1f7   : > { %v3492_v11 = vadd.f32 1.0, %v5170_v10 }
 0x1f8   : > { %v5172_v12 = vpop.eup %5171 }
 0x1f9   : > { %5173 = vrcp.f32 %v3492_v11  ;;  %v3493_v13 = vadd.f32 1.0, %v5172_v12 }
 0x1fb   : > { %5175 = vrcp.f32 %v3493_v13 }
 0x203   : > { %v5174_v14 = vpop.eup %5173 }
 0x204   : > { %3498 = vst [vmem:[%s456_s18] sm:$0xff] %v5174_v14 }
 0x205   : > { %v5176_v15 = vpop.eup %5175 }
 0x206   : > { %3499 = vst [vmem:[%s456_s18 + $0x8] sm:$0xf] %v5176_v15 }
 0x207 PF: > { %s16_s25 = sadd.s32 1, %s5215_s25   ;;  %s6165_s21 = smov %s5207_s23 }
 0x208   : > { %p13_p11 = scmp.ge.s32.totalorder %s16_s25, 26   ;;  %s6166_s22 = smov %s5211_s24 }
 0x209   : > { %s6167_s23 = smov %s6170_s26  ;;  %s6168_s24 = smov %s6174_s27 }
 0x20a   :  { %15 = sbr.rel (!%p13_p11) target bundleno = 3 (0x3), region = 104 }

</bundles_post_ra>
